<compile_context>
chip_gen: v6e
topology: v6e:2x2x1
jax: 0.10.0
libtpu: 0.0.40
codegen_flags: <defaults>
</compile_context>

<pallas_src>
import math
from functools import partial

import jax
import jax.numpy as jnp
from jax.experimental import pallas as pl
from jax.experimental.pallas import tpu as pltpu

# bf16 MXU operands + f32 accumulation; set to jnp.float32 for exact f32 math.
MATMUL_DT = jnp.bfloat16


def _round_up(x, m):
    return (x + m - 1) // m * m


# ------------------------------ in-kernel helpers --------------------------- #

def _style_layer(x, noise_scaled, ys, yb):
    """Noise inject + LeakyReLU(0.2) + one-pass InstanceNorm + AdaIN.

    x: (H*W, C) flat activation, noise_scaled: (H*W, C), ys/yb: (1, C).
    """
    x = x + noise_scaled
    x = jnp.maximum(x, 0.2 * x)                           # LeakyReLU(0.2)
    m = jnp.mean(x, axis=0, keepdims=True)
    m2 = jnp.mean(x * x, axis=0, keepdims=True)
    var = jnp.maximum(m2 - m * m, 0.0)                    # one-pass variance
    xn = (x - m) * jax.lax.rsqrt(var + 1e-8)
    return ys * xn + yb


def _conv3x3(x, h, w, w_ref, b_ref, pad_ref):
    """3x3 same-padding conv as 9 accumulated per-tap matmuls.

    x: (H*W, Cin) flat; w_ref: (9, Cin, Cout) tap-major; pad_ref: VMEM scratch
    of shape (H+2, >=W+2 (8-aligned), Cin).  Only the 1-pixel border of the
    scratch is zeroed (the interior is fully rewritten every call), so there is
    no full-tile clearing store pass.
    """
    cin = x.shape[-1]
    cout = w_ref.shape[-1]

    pad_ref[1:h + 1, 1:w + 1, :] = x.reshape(h, w, cin)
    zrow = jnp.zeros((1, w + 2, cin), jnp.float32)
    zcol = jnp.zeros((h, 1, cin), jnp.float32)
    pad_ref[0:1, 0:w + 2, :] = zrow
    pad_ref[h + 1:h + 2, 0:w + 2, :] = zrow
    pad_ref[1:h + 1, 0:1, :] = zcol
    pad_ref[1:h + 1, w + 1:w + 2, :] = zcol

    acc = jnp.zeros((h * w, cout), jnp.float32)
    t = 0
    for dy in range(3):
        for dx in range(3):
            win = pad_ref[dy:dy + h, dx:dx + w, :].reshape(h * w, cin)
            acc = acc + jnp.dot(win.astype(MATMUL_DT), w_ref[t],
                                preferred_element_type=jnp.float32)
            t += 1
    return acc + b_ref[...]


def _upsample2x(x, up_ref):
    """2x nearest-neighbour upsample as one MXU matmul with a 0/1 matrix.

    x: (H*W, C) flat -> (4*H*W, C) flat (row-major over the 2H x 2W grid).
    Keeps the upsample inside the kernel (no HBM round trip / XLA repeat)
    and avoids interleaving reshapes.
    """
    return jnp.dot(up_ref[...], x.astype(MATMUL_DT),
                   preferred_element_type=jnp.float32)


def _adain_params(style, affw_ref, affb_ref, c):
    """All 4 AdaIN affines of a block as one (1,S)x(S,4C) matmul, then slice."""
    aff = jnp.dot(style.astype(MATMUL_DT), affw_ref[...],
                  preferred_element_type=jnp.float32) + affb_ref[...]
    return (aff[:, 0:c], aff[:, c:2 * c],
            aff[:, 2 * c:3 * c], aff[:, 3 * c:4 * c])   # ys1, yb1, ys2, yb2


# --------------------------------- the kernel -------------------------------- #

def _generator_kernel(*refs, num_map, num_blocks):
    it = iter(refs)
    z_ref = next(it)
    map_refs = [(next(it), next(it)) for _ in range(num_map)]
    const_ref = next(it)
    blk = []
    for i in range(num_blocks):
        d = {}
        if i > 0:
            d['up'] = next(it)
            d['c1w'] = next(it)
            d['c1b'] = next(it)
        d['c2w'] = next(it)
        d['c2b'] = next(it)
        d['ns1'] = next(it)
        d['ns2'] = next(it)
        d['affw'] = next(it)
        d['affb'] = next(it)
        blk.append(d)
    rgbw_ref = next(it)
    rgbb_ref = next(it)
    o_ref = next(it)
    pads = list(it)                  # conv pad scratches, in order of use
    pit = iter(pads)

    # ---- mapping: PixelNorm + num_map x (equalized Linear + LeakyReLU 0.2) ----
    x = z_ref[0]                                          # (1, latent_dim)
    x = x * jax.lax.rsqrt(jnp.mean(x * x, axis=-1, keepdims=True) + 1e-8)
    for w_ref, b_ref in map_refs:                         # statically unrolled
        y = jnp.dot(x.astype(MATMUL_DT), w_ref[...],
                    preferred_element_type=jnp.float32) + b_ref[...]
        x = jnp.maximum(y, 0.2 * y)
    style = x                                             # (1, style_dim)

    # ---- synthesis block 0: learned const -> style -> conv3x3 -> style ----
    d = blk[0]
    c = d['c2b'].shape[-1]
    res = 4
    ys1, yb1, ys2, yb2 = _adain_params(style, d['affw'], d['affb'], c)
    act = const_ref[...]                                  # (16, C0), flat 4x4
    act = _style_layer(act, d['ns1'][...], ys1, yb1)
    act = _conv3x3(act, res, res, d['c2w'], d['c2b'], next(pit))
    act = _style_layer(act, d['ns2'][...], ys2, yb2)

    # ---- blocks 1..N-1: upsample -> conv3x3 -> style -> conv3x3 -> style ----
    for i in range(1, num_blocks):
        d = blk[i]
        c = d['c2b'].shape[-1]
        res *= 2
        ys1, yb1, ys2, yb2 = _adain_params(style, d['affw'], d['affb'], c)
        act = _upsample2x(act, d['up'])                   # (res*res, c_prev)
        act = _conv3x3(act, res, res, d['c1w'], d['c1b'], next(pit))
        act = _style_layer(act, d['ns1'][...], ys1, yb1)
        act = _conv3x3(act, res, res, d['c2w'], d['c2b'], next(pit))
        act = _style_layer(act, d['ns2'][...], ys2, yb2)

    # ---- to_rgb (equalized 1x1 conv), channel-major => NCHW, lane-dense ----
    y = jax.lax.dot_general(rgbw_ref[...], act.astype(MATMUL_DT),
                            (((1,), (1,)), ((), ())),
                            preferred_element_type=jnp.float32)   # (out_c, H*W)
    o_ref[0] = y + rgbb_ref[...]


# ------------------------------ pallas wrapper -------------------------------- #

def generator_forward(params, latent_z):
    n, latent_dim = latent_z.shape
    mapping = params['mapping']
    blocks = params['blocks']
    num_map = len(mapping)
    num_blocks = len(blocks)
    out_c = params['rgb_w'].shape[0]
    img = 4 * (2 ** (num_blocks - 1))
    hw = img * img

    z3 = latent_z.reshape(n, 1, latent_dim)

    inputs = [z3]
    in_specs = [pl.BlockSpec((1, 1, latent_dim), lambda b: (b, 0, 0))]

    def add(a):
        inputs.append(a)
        in_specs.append(pl.BlockSpec(a.shape, lambda b, _nd=a.ndim: (0,) * _nd))

    for w, bias in mapping:
        add(w)
        add(bias)
    add(params['const'])

    scratch_shapes = []
    res = 4
    for i, bp in enumerate(blocks):
        c = bp['conv2'][1].shape[-1]
        if i > 0:
            res *= 2
            add(bp['up'])
            add(bp['conv1'][0])
            add(bp['conv1'][1])
            cin1 = bp['conv1'][0].shape[1]
            scratch_shapes.append(
                pltpu.VMEM((res + 2, _round_up(res + 2, 8), cin1), jnp.float32))
        add(bp['conv2'][0])
        add(bp['conv2'][1])
        scratch_shapes.append(
            pltpu.VMEM((res + 2, _round_up(res + 2, 8), c), jnp.float32))
        add(bp['noise_scaled'][0])
        add(bp['noise_scaled'][1])
        add(bp['aff_w'])
        add(bp['aff_b'])
    add(params['rgb_w'])
    add(params['rgb_b'])

    out = pl.pallas_call(
        partial(_generator_kernel, num_map=num_map, num_blocks=num_blocks),
        out_shape=jax.ShapeDtypeStruct((n, out_c, hw), jnp.float32),
        grid=(n,),
        in_specs=in_specs,
        out_specs=pl.BlockSpec((1, out_c, hw), lambda b: (b, 0, 0)),
        scratch_shapes=scratch_shapes,
        # TODO(synk): on v7x use pltpu.CORE_PARALLEL (or pl.core_map over
        # create_tensorcore_mesh) so the two batch samples land on both
        # TensorCores; "parallel" is the portable choice for v5e/v6e.
        compiler_params=pltpu.CompilerParams(
            dimension_semantics=("parallel",)),
    )(*inputs)
    return out.reshape(n, out_c, img, img)                # NCHW, free reshape


# --------------------------- parameter construction -------------------------- #

def init_params(key, latent_dim, style_dim, in_channel, out_channel, img_size,
                num_mapping_layers=8):
    num_blocks = int(math.log2(img_size)) - 1              # 4x4 ... img_size
    mid_channels = [max(in_channel >> i, 8) for i in range(num_blocks)]

    keys = iter(jax.random.split(key, 256))

    def nk():
        return next(keys)

    def eq_linear(fan_in, fan_out, bias_init=0.0):
        # equalized-lr scale sqrt(2/fan_in) baked into the stored weight
        w = jax.random.normal(nk(), (fan_in, fan_out), jnp.float32)
        w = (w * math.sqrt(2.0 / fan_in)).astype(MATMUL_DT)
        b = jnp.full((1, fan_out), bias_init, jnp.float32)
        return w, b

    def eq_conv3x3(cin, cout):
        w = jax.random.normal(nk(), (3, 3, cin, cout), jnp.float32)
        w = (w * math.sqrt(2.0 / (cin * 9))).reshape(9, cin, cout).astype(MATMUL_DT)
        return w, jnp.zeros((1, cout), jnp.float32)

    def nn_upsample_matrix(s):
        """(4*s*s, s*s) 0/1 matrix: row-major flat(2s,2s) <- flat(s,s) NN map."""
        hi = jnp.arange(4 * s * s)
        r, col = hi // (2 * s), hi % (2 * s)
        lo = (r // 2) * s + (col // 2)
        return jax.nn.one_hot(lo, s * s, dtype=MATMUL_DT)

    mapping = []
    dims = [latent_dim] + [style_dim] * num_mapping_layers
    for i in range(num_mapping_layers):
        mapping.append(eq_linear(dims[i], dims[i + 1]))

    # learned 4x4 constant, stored flat (16, C0) so the kernel works on (H*W, C)
    const = jax.random.normal(nk(), (16, mid_channels[0]), jnp.float32)

    blocks = []
    in_c = mid_channels[0]
    for b in range(num_blocks):
        res = 4 * (2 ** b)
        c = mid_channels[b]
        bp = {}
        if b > 0:
            bp['up'] = nn_upsample_matrix(res // 2)
            bp['conv1'] = eq_conv3x3(in_c, c)
        bp['conv2'] = eq_conv3x3(c, c)
        # AdaIN affines packed [scale1 | bias1 | scale2 | bias2] -> (S, 4C)
        aw, ab = [], []
        for _ in range(2):
            ws, bs = eq_linear(style_dim, c, bias_init=1.0)   # AdaIN scale
            wb, bb = eq_linear(style_dim, c, bias_init=0.0)   # AdaIN bias
            aw += [ws, wb]
            ab += [bs, bb]
        bp['aff_w'] = jnp.concatenate(aw, axis=1)             # (S, 4C) bf16
        bp['aff_b'] = jnp.concatenate(ab, axis=1)             # (1, 4C) f32
        # Per-pixel noise folded with its (zero-init) per-channel weight into a
        # lane-dense (H*W, C) buffer (no trailing-1 lane-sparse inputs).
        # TODO(synk): the PyTorch reference draws fresh torch.randn noise each
        # forward; fixed buffers are used here (pltpu.stateful_normal could
        # reproduce the stateful semantics in-kernel).
        noise_scaled = []
        for _ in range(2):
            noise = jax.random.normal(nk(), (res * res, 1), jnp.float32)
            nw = jnp.zeros((1, c), jnp.float32)               # StyleGAN init: 0
            noise_scaled.append(noise * nw)
        bp['noise_scaled'] = noise_scaled
        blocks.append(bp)
        in_c = c

    # to_rgb stored pre-transposed (out_c, C_last) so the kernel writes NCHW.
    rgb_w = (jax.random.normal(nk(), (out_channel, mid_channels[-1]), jnp.float32)
             * math.sqrt(2.0 / mid_channels[-1])).astype(MATMUL_DT)
    rgb_b = jnp.zeros((out_channel, 1), jnp.float32)

    return {'mapping': mapping, 'const': const, 'blocks': blocks,
            'rgb_w': rgb_w, 'rgb_b': rgb_b}


# ----------------------------------- main ------------------------------------ #

if __name__ == "__main__":
    batch = 2
    latent_dim = 32
    style_dim = 32
    in_channel = 32
    out_channel = 3
    img_size = 16

    params = init_params(jax.random.PRNGKey(42), latent_dim, style_dim,
                         in_channel, out_channel, img_size)
    latent_z = jax.random.normal(jax.random.PRNGKey(0), (batch, latent_dim),
                                 jnp.float32)

    fwd = jax.jit(generator_forward)
    img = jax.block_until_ready(fwd(params, latent_z))

    assert img.shape == (batch, out_channel, img_size, img_size), img.shape
    assert img.dtype == jnp.float32
    assert bool(jnp.all(jnp.isfinite(img)))

    print("KERNEL_OK")
</pallas_src>

<mosaic_0001>
module attributes {stable_mosaic.version = 11 : i64} {
  func.func @_generator_kernel(%arg0: i32, %arg1: memref<1x1x32xf32, #tpu.memory_space<vmem>>, %arg2: memref<32x32xbf16, #tpu.memory_space<vmem>>, %arg3: memref<1x32xf32, #tpu.memory_space<vmem>>, %arg4: memref<32x32xbf16, #tpu.memory_space<vmem>>, %arg5: memref<1x32xf32, #tpu.memory_space<vmem>>, %arg6: memref<32x32xbf16, #tpu.memory_space<vmem>>, %arg7: memref<1x32xf32, #tpu.memory_space<vmem>>, %arg8: memref<32x32xbf16, #tpu.memory_space<vmem>>, %arg9: memref<1x32xf32, #tpu.memory_space<vmem>>, %arg10: memref<32x32xbf16, #tpu.memory_space<vmem>>, %arg11: memref<1x32xf32, #tpu.memory_space<vmem>>, %arg12: memref<32x32xbf16, #tpu.memory_space<vmem>>, %arg13: memref<1x32xf32, #tpu.memory_space<vmem>>, %arg14: memref<32x32xbf16, #tpu.memory_space<vmem>>, %arg15: memref<1x32xf32, #tpu.memory_space<vmem>>, %arg16: memref<32x32xbf16, #tpu.memory_space<vmem>>, %arg17: memref<1x32xf32, #tpu.memory_space<vmem>>, %arg18: memref<16x32xf32, #tpu.memory_space<vmem>>, %arg19: memref<9x32x32xbf16, #tpu.memory_space<vmem>>, %arg20: memref<1x32xf32, #tpu.memory_space<vmem>>, %arg21: memref<16x32xf32, #tpu.memory_space<vmem>>, %arg22: memref<16x32xf32, #tpu.memory_space<vmem>>, %arg23: memref<32x128xbf16, #tpu.memory_space<vmem>>, %arg24: memref<1x128xf32, #tpu.memory_space<vmem>>, %arg25: memref<64x16xbf16, #tpu.memory_space<vmem>>, %arg26: memref<9x32x16xbf16, #tpu.memory_space<vmem>>, %arg27: memref<1x16xf32, #tpu.memory_space<vmem>>, %arg28: memref<9x16x16xbf16, #tpu.memory_space<vmem>>, %arg29: memref<1x16xf32, #tpu.memory_space<vmem>>, %arg30: memref<64x16xf32, #tpu.memory_space<vmem>>, %arg31: memref<64x16xf32, #tpu.memory_space<vmem>>, %arg32: memref<32x64xbf16, #tpu.memory_space<vmem>>, %arg33: memref<1x64xf32, #tpu.memory_space<vmem>>, %arg34: memref<256x64xbf16, #tpu.memory_space<vmem>>, %arg35: memref<9x16x8xbf16, #tpu.memory_space<vmem>>, %arg36: memref<1x8xf32, #tpu.memory_space<vmem>>, %arg37: memref<9x8x8xbf16, #tpu.memory_space<vmem>>, %arg38: memref<1x8xf32, #tpu.memory_space<vmem>>, %arg39: memref<256x8xf32, #tpu.memory_space<vmem>>, %arg40: memref<256x8xf32, #tpu.memory_space<vmem>>, %arg41: memref<32x32xbf16, #tpu.memory_space<vmem>>, %arg42: memref<1x32xf32, #tpu.memory_space<vmem>>, %arg43: memref<3x8xbf16, #tpu.memory_space<vmem>>, %arg44: memref<3x1xf32, #tpu.memory_space<vmem>>, %arg45: memref<1x3x256xf32, #tpu.memory_space<vmem>>, %arg46: memref<6x8x32xf32, #tpu.memory_space<vmem>>, %arg47: memref<10x16x32xf32, #tpu.memory_space<vmem>>, %arg48: memref<10x16x16xf32, #tpu.memory_space<vmem>>, %arg49: memref<18x24x16xf32, #tpu.memory_space<vmem>>, %arg50: memref<18x24x8xf32, #tpu.memory_space<vmem>>) attributes {dimension_semantics = [#tpu.dimension_semantics<parallel>], iteration_bounds = array<i64: 2>, scalar_prefetch = 0 : i64, scratch_operands = 5 : i64, tpu.core_type = #tpu.core_type<tc>, window_params = [{transform_indices = @transform_0, window_bounds = array<i64: 1, 1, 32>}, {pipeline_mode = #tpu.pipeline_mode<synchronous>, transform_indices = @transform_1, window_bounds = array<i64: 32, 32>}, {pipeline_mode = #tpu.pipeline_mode<synchronous>, transform_indices = @transform_2, window_bounds = array<i64: 1, 32>}, {pipeline_mode = #tpu.pipeline_mode<synchronous>, transform_indices = @transform_3, window_bounds = array<i64: 32, 32>}, {pipeline_mode = #tpu.pipeline_mode<synchronous>, transform_indices = @transform_4, window_bounds = array<i64: 1, 32>}, {pipeline_mode = #tpu.pipeline_mode<synchronous>, transform_indices = @transform_5, window_bounds = array<i64: 32, 32>}, {pipeline_mode = #tpu.pipeline_mode<synchronous>, transform_indices = @transform_6, window_bounds = array<i64: 1, 32>}, {pipeline_mode = #tpu.pipeline_mode<synchronous>, transform_indices = @transform_7, window_bounds = array<i64: 32, 32>}, {pipeline_mode = #tpu.pipeline_mode<synchronous>, transform_indices = @transform_8, window_bounds = array<i64: 1, 32>}, {pipeline_mode = #tpu.pipeline_mode<synchronous>, transform_indices = @transform_9, window_bounds = array<i64: 32, 32>}, {pipeline_mode = #tpu.pipeline_mode<synchronous>, transform_indices = @transform_10, window_bounds = array<i64: 1, 32>}, {pipeline_mode = #tpu.pipeline_mode<synchronous>, transform_indices = @transform_11, window_bounds = array<i64: 32, 32>}, {pipeline_mode = #tpu.pipeline_mode<synchronous>, transform_indices = @transform_12, window_bounds = array<i64: 1, 32>}, {pipeline_mode = #tpu.pipeline_mode<synchronous>, transform_indices = @transform_13, window_bounds = array<i64: 32, 32>}, {pipeline_mode = #tpu.pipeline_mode<synchronous>, transform_indices = @transform_14, window_bounds = array<i64: 1, 32>}, {pipeline_mode = #tpu.pipeline_mode<synchronous>, transform_indices = @transform_15, window_bounds = array<i64: 32, 32>}, {pipeline_mode = #tpu.pipeline_mode<synchronous>, transform_indices = @transform_16, window_bounds = array<i64: 1, 32>}, {pipeline_mode = #tpu.pipeline_mode<synchronous>, transform_indices = @transform_17, window_bounds = array<i64: 16, 32>}, {pipeline_mode = #tpu.pipeline_mode<synchronous>, transform_indices = @transform_18, window_bounds = array<i64: 9, 32, 32>}, {pipeline_mode = #tpu.pipeline_mode<synchronous>, transform_indices = @transform_19, window_bounds = array<i64: 1, 32>}, {pipeline_mode = #tpu.pipeline_mode<synchronous>, transform_indices = @transform_20, window_bounds = array<i64: 16, 32>}, {pipeline_mode = #tpu.pipeline_mode<synchronous>, transform_indices = @transform_21, window_bounds = array<i64: 16, 32>}, {pipeline_mode = #tpu.pipeline_mode<synchronous>, transform_indices = @transform_22, window_bounds = array<i64: 32, 128>}, {pipeline_mode = #tpu.pipeline_mode<synchronous>, transform_indices = @transform_23, window_bounds = array<i64: 1, 128>}, {pipeline_mode = #tpu.pipeline_mode<synchronous>, transform_indices = @transform_24, window_bounds = array<i64: 64, 16>}, {pipeline_mode = #tpu.pipeline_mode<synchronous>, transform_indices = @transform_25, window_bounds = array<i64: 9, 32, 16>}, {pipeline_mode = #tpu.pipeline_mode<synchronous>, transform_indices = @transform_26, window_bounds = array<i64: 1, 16>}, {pipeline_mode = #tpu.pipeline_mode<synchronous>, transform_indices = @transform_27, window_bounds = array<i64: 9, 16, 16>}, {pipeline_mode = #tpu.pipeline_mode<synchronous>, transform_indices = @transform_28, window_bounds = array<i64: 1, 16>}, {pipeline_mode = #tpu.pipeline_mode<synchronous>, transform_indices = @transform_29, window_bounds = array<i64: 64, 16>}, {pipeline_mode = #tpu.pipeline_mode<synchronous>, transform_indices = @transform_30, window_bounds = array<i64: 64, 16>}, {pipeline_mode = #tpu.pipeline_mode<synchronous>, transform_indices = @transform_31, window_bounds = array<i64: 32, 64>}, {pipeline_mode = #tpu.pipeline_mode<synchronous>, transform_indices = @transform_32, window_bounds = array<i64: 1, 64>}, {pipeline_mode = #tpu.pipeline_mode<synchronous>, transform_indices = @transform_33, window_bounds = array<i64: 256, 64>}, {pipeline_mode = #tpu.pipeline_mode<synchronous>, transform_indices = @transform_34, window_bounds = array<i64: 9, 16, 8>}, {pipeline_mode = #tpu.pipeline_mode<synchronous>, transform_indices = @transform_35, window_bounds = array<i64: 1, 8>}, {pipeline_mode = #tpu.pipeline_mode<synchronous>, transform_indices = @transform_36, window_bounds = array<i64: 9, 8, 8>}, {pipeline_mode = #tpu.pipeline_mode<synchronous>, transform_indices = @transform_37, window_bounds = array<i64: 1, 8>}, {pipeline_mode = #tpu.pipeline_mode<synchronous>, transform_indices = @transform_38, window_bounds = array<i64: 256, 8>}, {pipeline_mode = #tpu.pipeline_mode<synchronous>, transform_indices = @transform_39, window_bounds = array<i64: 256, 8>}, {pipeline_mode = #tpu.pipeline_mode<synchronous>, transform_indices = @transform_40, window_bounds = array<i64: 32, 32>}, {pipeline_mode = #tpu.pipeline_mode<synchronous>, transform_indices = @transform_41, window_bounds = array<i64: 1, 32>}, {pipeline_mode = #tpu.pipeline_mode<synchronous>, transform_indices = @transform_42, window_bounds = array<i64: 3, 8>}, {pipeline_mode = #tpu.pipeline_mode<synchronous>, transform_indices = @transform_43, window_bounds = array<i64: 3, 1>}, {transform_indices = @transform_44, window_bounds = array<i64: 1, 3, 256>}]} {
    %c0 = arith.constant 0 : index
    %c0_0 = arith.constant 0 : index
    %c0_1 = arith.constant 0 : index
    %0 = vector.load %arg1[%c0, %c0_0, %c0_1] : memref<1x1x32xf32, #tpu.memory_space<vmem>>, vector<1x1x32xf32>
    %1 = vector.shape_cast %0 : vector<1x1x32xf32> to vector<1x32xf32>
    %2 = arith.mulf %1, %1 : vector<1x32xf32>
    %cst = arith.constant dense<0.000000e+00> : vector<1xf32>
    %3 = vector.multi_reduction <add>, %2, %cst [1] : vector<1x32xf32> to vector<1xf32>
    %4 = vector.shape_cast %3 : vector<1xf32> to vector<1x1xf32>
    %cst_2 = arith.constant 3.200000e+01 : f32
    %5 = vector.broadcast %cst_2 : f32 to vector<1x1xf32>
    %6 = arith.divf %4, %5 : vector<1x1xf32>
    %cst_3 = arith.constant 9.99999993E-9 : f32
    %7 = vector.broadcast %cst_3 : f32 to vector<1x1xf32>
    %8 = arith.addf %6, %7 : vector<1x1xf32>
    %9 = math.rsqrt %8 : vector<1x1xf32>
    %10 = vector.broadcast %9 : vector<1x1xf32> to vector<1x32xf32>
    %11 = arith.mulf %1, %10 : vector<1x32xf32>
    %12 = arith.truncf %11 : vector<1x32xf32> to vector<1x32xbf16>
    %c0_4 = arith.constant 0 : index
    %c0_5 = arith.constant 0 : index
    %13 = vector.load %arg2[%c0_4, %c0_5] : memref<32x32xbf16, #tpu.memory_space<vmem>>, vector<32x32xbf16>
    %cst_6 = arith.constant dense<0.000000e+00> : vector<1x32xf32>
    %14 = tpu.matmul %12, %13, %cst_6 {dimension_numbers = #tpu.dot_dimension_numbers<[1], [0], [0], [1], [0, 0, 1, 1], [], []>} : vector<1x32xbf16>, vector<32x32xbf16>, vector<1x32xf32> -> vector<1x32xf32>
    %c0_7 = arith.constant 0 : index
    %c0_8 = arith.constant 0 : index
    %15 = vector.load %arg3[%c0_7, %c0_8] : memref<1x32xf32, #tpu.memory_space<vmem>>, vector<1x32xf32>
    %16 = arith.addf %14, %15 : vector<1x32xf32>
    %cst_9 = arith.constant 2.000000e-01 : f32
    %17 = vector.broadcast %cst_9 : f32 to vector<1x32xf32>
    %18 = arith.mulf %17, %16 : vector<1x32xf32>
    %19 = arith.maximumf %16, %18 : vector<1x32xf32>
    %20 = arith.truncf %19 : vector<1x32xf32> to vector<1x32xbf16>
    %c0_10 = arith.constant 0 : index
    %c0_11 = arith.constant 0 : index
    %21 = vector.load %arg4[%c0_10, %c0_11] : memref<32x32xbf16, #tpu.memory_space<vmem>>, vector<32x32xbf16>
    %cst_12 = arith.constant dense<0.000000e+00> : vector<1x32xf32>
    %22 = tpu.matmul %20, %21, %cst_12 {dimension_numbers = #tpu.dot_dimension_numbers<[1], [0], [0], [1], [0, 0, 1, 1], [], []>} : vector<1x32xbf16>, vector<32x32xbf16>, vector<1x32xf32> -> vector<1x32xf32>
    %c0_13 = arith.constant 0 : index
    %c0_14 = arith.constant 0 : index
    %23 = vector.load %arg5[%c0_13, %c0_14] : memref<1x32xf32, #tpu.memory_space<vmem>>, vector<1x32xf32>
    %24 = arith.addf %22, %23 : vector<1x32xf32>
    %cst_15 = arith.constant 2.000000e-01 : f32
    %25 = vector.broadcast %cst_15 : f32 to vector<1x32xf32>
    %26 = arith.mulf %25, %24 : vector<1x32xf32>
    %27 = arith.maximumf %24, %26 : vector<1x32xf32>
    %28 = arith.truncf %27 : vector<1x32xf32> to vector<1x32xbf16>
    %c0_16 = arith.constant 0 : index
    %c0_17 = arith.constant 0 : index
    %29 = vector.load %arg6[%c0_16, %c0_17] : memref<32x32xbf16, #tpu.memory_space<vmem>>, vector<32x32xbf16>
    %cst_18 = arith.constant dense<0.000000e+00> : vector<1x32xf32>
    %30 = tpu.matmul %28, %29, %cst_18 {dimension_numbers = #tpu.dot_dimension_numbers<[1], [0], [0], [1], [0, 0, 1, 1], [], []>} : vector<1x32xbf16>, vector<32x32xbf16>, vector<1x32xf32> -> vector<1x32xf32>
    %c0_19 = arith.constant 0 : index
    %c0_20 = arith.constant 0 : index
    %31 = vector.load %arg7[%c0_19, %c0_20] : memref<1x32xf32, #tpu.memory_space<vmem>>, vector<1x32xf32>
    %32 = arith.addf %30, %31 : vector<1x32xf32>
    %cst_21 = arith.constant 2.000000e-01 : f32
    %33 = vector.broadcast %cst_21 : f32 to vector<1x32xf32>
    %34 = arith.mulf %33, %32 : vector<1x32xf32>
    %35 = arith.maximumf %32, %34 : vector<1x32xf32>
    %36 = arith.truncf %35 : vector<1x32xf32> to vector<1x32xbf16>
    %c0_22 = arith.constant 0 : index
    %c0_23 = arith.constant 0 : index
    %37 = vector.load %arg8[%c0_22, %c0_23] : memref<32x32xbf16, #tpu.memory_space<vmem>>, vector<32x32xbf16>
    %cst_24 = arith.constant dense<0.000000e+00> : vector<1x32xf32>
    %38 = tpu.matmul %36, %37, %cst_24 {dimension_numbers = #tpu.dot_dimension_numbers<[1], [0], [0], [1], [0, 0, 1, 1], [], []>} : vector<1x32xbf16>, vector<32x32xbf16>, vector<1x32xf32> -> vector<1x32xf32>
    %c0_25 = arith.constant 0 : index
    %c0_26 = arith.constant 0 : index
    %39 = vector.load %arg9[%c0_25, %c0_26] : memref<1x32xf32, #tpu.memory_space<vmem>>, vector<1x32xf32>
    %40 = arith.addf %38, %39 : vector<1x32xf32>
    %cst_27 = arith.constant 2.000000e-01 : f32
    %41 = vector.broadcast %cst_27 : f32 to vector<1x32xf32>
    %42 = arith.mulf %41, %40 : vector<1x32xf32>
    %43 = arith.maximumf %40, %42 : vector<1x32xf32>
    %44 = arith.truncf %43 : vector<1x32xf32> to vector<1x32xbf16>
    %c0_28 = arith.constant 0 : index
    %c0_29 = arith.constant 0 : index
    %45 = vector.load %arg10[%c0_28, %c0_29] : memref<32x32xbf16, #tpu.memory_space<vmem>>, vector<32x32xbf16>
    %cst_30 = arith.constant dense<0.000000e+00> : vector<1x32xf32>
    %46 = tpu.matmul %44, %45, %cst_30 {dimension_numbers = #tpu.dot_dimension_numbers<[1], [0], [0], [1], [0, 0, 1, 1], [], []>} : vector<1x32xbf16>, vector<32x32xbf16>, vector<1x32xf32> -> vector<1x32xf32>
    %c0_31 = arith.constant 0 : index
    %c0_32 = arith.constant 0 : index
    %47 = vector.load %arg11[%c0_31, %c0_32] : memref<1x32xf32, #tpu.memory_space<vmem>>, vector<1x32xf32>
    %48 = arith.addf %46, %47 : vector<1x32xf32>
    %cst_33 = arith.constant 2.000000e-01 : f32
    %49 = vector.broadcast %cst_33 : f32 to vector<1x32xf32>
    %50 = arith.mulf %49, %48 : vector<1x32xf32>
    %51 = arith.maximumf %48, %50 : vector<1x32xf32>
    %52 = arith.truncf %51 : vector<1x32xf32> to vector<1x32xbf16>
    %c0_34 = arith.constant 0 : index
    %c0_35 = arith.constant 0 : index
    %53 = vector.load %arg12[%c0_34, %c0_35] : memref<32x32xbf16, #tpu.memory_space<vmem>>, vector<32x32xbf16>
    %cst_36 = arith.constant dense<0.000000e+00> : vector<1x32xf32>
    %54 = tpu.matmul %52, %53, %cst_36 {dimension_numbers = #tpu.dot_dimension_numbers<[1], [0], [0], [1], [0, 0, 1, 1], [], []>} : vector<1x32xbf16>, vector<32x32xbf16>, vector<1x32xf32> -> vector<1x32xf32>
    %c0_37 = arith.constant 0 : index
    %c0_38 = arith.constant 0 : index
    %55 = vector.load %arg13[%c0_37, %c0_38] : memref<1x32xf32, #tpu.memory_space<vmem>>, vector<1x32xf32>
    %56 = arith.addf %54, %55 : vector<1x32xf32>
    %cst_39 = arith.constant 2.000000e-01 : f32
    %57 = vector.broadcast %cst_39 : f32 to vector<1x32xf32>
    %58 = arith.mulf %57, %56 : vector<1x32xf32>
    %59 = arith.maximumf %56, %58 : vector<1x32xf32>
    %60 = arith.truncf %59 : vector<1x32xf32> to vector<1x32xbf16>
    %c0_40 = arith.constant 0 : index
    %c0_41 = arith.constant 0 : index
    %61 = vector.load %arg14[%c0_40, %c0_41] : memref<32x32xbf16, #tpu.memory_space<vmem>>, vector<32x32xbf16>
    %cst_42 = arith.constant dense<0.000000e+00> : vector<1x32xf32>
    %62 = tpu.matmul %60, %61, %cst_42 {dimension_numbers = #tpu.dot_dimension_numbers<[1], [0], [0], [1], [0, 0, 1, 1], [], []>} : vector<1x32xbf16>, vector<32x32xbf16>, vector<1x32xf32> -> vector<1x32xf32>
    %c0_43 = arith.constant 0 : index
    %c0_44 = arith.constant 0 : index
    %63 = vector.load %arg15[%c0_43, %c0_44] : memref<1x32xf32, #tpu.memory_space<vmem>>, vector<1x32xf32>
    %64 = arith.addf %62, %63 : vector<1x32xf32>
    %cst_45 = arith.constant 2.000000e-01 : f32
    %65 = vector.broadcast %cst_45 : f32 to vector<1x32xf32>
    %66 = arith.mulf %65, %64 : vector<1x32xf32>
    %67 = arith.maximumf %64, %66 : vector<1x32xf32>
    %68 = arith.truncf %67 : vector<1x32xf32> to vector<1x32xbf16>
    %c0_46 = arith.constant 0 : index
    %c0_47 = arith.constant 0 : index
    %69 = vector.load %arg16[%c0_46, %c0_47] : memref<32x32xbf16, #tpu.memory_space<vmem>>, vector<32x32xbf16>
    %cst_48 = arith.constant dense<0.000000e+00> : vector<1x32xf32>
    %70 = tpu.matmul %68, %69, %cst_48 {dimension_numbers = #tpu.dot_dimension_numbers<[1], [0], [0], [1], [0, 0, 1, 1], [], []>} : vector<1x32xbf16>, vector<32x32xbf16>, vector<1x32xf32> -> vector<1x32xf32>
    %c0_49 = arith.constant 0 : index
    %c0_50 = arith.constant 0 : index
    %71 = vector.load %arg17[%c0_49, %c0_50] : memref<1x32xf32, #tpu.memory_space<vmem>>, vector<1x32xf32>
    %72 = arith.addf %70, %71 : vector<1x32xf32>
    %cst_51 = arith.constant 2.000000e-01 : f32
    %73 = vector.broadcast %cst_51 : f32 to vector<1x32xf32>
    %74 = arith.mulf %73, %72 : vector<1x32xf32>
    %75 = arith.maximumf %72, %74 : vector<1x32xf32>
    %76 = arith.truncf %75 : vector<1x32xf32> to vector<1x32xbf16>
    %c0_52 = arith.constant 0 : index
    %c0_53 = arith.constant 0 : index
    %77 = vector.load %arg23[%c0_52, %c0_53] : memref<32x128xbf16, #tpu.memory_space<vmem>>, vector<32x128xbf16>
    %cst_54 = arith.constant dense<0.000000e+00> : vector<1x128xf32>
    %78 = tpu.matmul %76, %77, %cst_54 {dimension_numbers = #tpu.dot_dimension_numbers<[1], [0], [0], [1], [0, 0, 1, 1], [], []>} : vector<1x32xbf16>, vector<32x128xbf16>, vector<1x128xf32> -> vector<1x128xf32>
    %c0_55 = arith.constant 0 : index
    %c0_56 = arith.constant 0 : index
    %79 = vector.load %arg24[%c0_55, %c0_56] : memref<1x128xf32, #tpu.memory_space<vmem>>, vector<1x128xf32>
    %80 = arith.addf %78, %79 : vector<1x128xf32>
    %81 = vector.extract_strided_slice %80 {offsets = [0, 0], sizes = [1, 32], strides = [1, 1]} : vector<1x128xf32> to vector<1x32xf32>
    %82 = vector.extract_strided_slice %80 {offsets = [0, 32], sizes = [1, 32], strides = [1, 1]} : vector<1x128xf32> to vector<1x32xf32>
    %83 = vector.extract_strided_slice %80 {offsets = [0, 64], sizes = [1, 32], strides = [1, 1]} : vector<1x128xf32> to vector<1x32xf32>
    %84 = vector.extract_strided_slice %80 {offsets = [0, 96], sizes = [1, 32], strides = [1, 1]} : vector<1x128xf32> to vector<1x32xf32>
    %c0_57 = arith.constant 0 : index
    %c0_58 = arith.constant 0 : index
    %85 = vector.load %arg18[%c0_57, %c0_58] : memref<16x32xf32, #tpu.memory_space<vmem>>, vector<16x32xf32>
    %c0_59 = arith.constant 0 : index
    %c0_60 = arith.constant 0 : index
    %86 = vector.load %arg21[%c0_59, %c0_60] : memref<16x32xf32, #tpu.memory_space<vmem>>, vector<16x32xf32>
    %87 = arith.addf %85, %86 : vector<16x32xf32>
    %cst_61 = arith.constant 2.000000e-01 : f32
    %88 = vector.broadcast %cst_61 : f32 to vector<16x32xf32>
    %89 = arith.mulf %88, %87 : vector<16x32xf32>
    %90 = arith.maximumf %87, %89 : vector<16x32xf32>
    %cst_62 = arith.constant dense<0.000000e+00> : vector<32xf32>
    %91 = vector.multi_reduction <add>, %90, %cst_62 [0] : vector<16x32xf32> to vector<32xf32>
    %92 = vector.shape_cast %91 : vector<32xf32> to vector<1x32xf32>
    %cst_63 = arith.constant 1.600000e+01 : f32
    %93 = vector.broadcast %cst_63 : f32 to vector<1x32xf32>
    %94 = arith.divf %92, %93 : vector<1x32xf32>
    %95 = arith.mulf %90, %90 : vector<16x32xf32>
    %cst_64 = arith.constant dense<0.000000e+00> : vector<32xf32>
    %96 = vector.multi_reduction <add>, %95, %cst_64 [0] : vector<16x32xf32> to vector<32xf32>
    %97 = vector.shape_cast %96 : vector<32xf32> to vector<1x32xf32>
    %cst_65 = arith.constant 1.600000e+01 : f32
    %98 = vector.broadcast %cst_65 : f32 to vector<1x32xf32>
    %99 = arith.divf %97, %98 : vector<1x32xf32>
    %100 = arith.mulf %94, %94 : vector<1x32xf32>
    %101 = arith.subf %99, %100 : vector<1x32xf32>
    %cst_66 = arith.constant 0.000000e+00 : f32
    %102 = vector.broadcast %cst_66 : f32 to vector<1x32xf32>
    %103 = arith.maximumf %101, %102 : vector<1x32xf32>
    %104 = vector.broadcast %94 : vector<1x32xf32> to vector<16x32xf32>
    %105 = arith.subf %90, %104 : vector<16x32xf32>
    %cst_67 = arith.constant 9.99999993E-9 : f32
    %106 = vector.broadcast %cst_67 : f32 to vector<1x32xf32>
    %107 = arith.addf %103, %106 : vector<1x32xf32>
    %108 = math.rsqrt %107 : vector<1x32xf32>
    %109 = vector.broadcast %108 : vector<1x32xf32> to vector<16x32xf32>
    %110 = arith.mulf %105, %109 : vector<16x32xf32>
    %111 = vector.broadcast %81 : vector<1x32xf32> to vector<16x32xf32>
    %112 = arith.mulf %111, %110 : vector<16x32xf32>
    %113 = vector.broadcast %82 : vector<1x32xf32> to vector<16x32xf32>
    %114 = arith.addf %112, %113 : vector<16x32xf32>
    %115 = vector.shape_cast %114 : vector<16x32xf32> to vector<4x4x32xf32>
    %c1 = arith.constant 1 : index
    %c1_68 = arith.constant 1 : index
    %c0_69 = arith.constant 0 : index
    %116 = vector.load %arg46[%c1, %c1_68, %c0_69] : memref<6x8x32xf32, #tpu.memory_space<vmem>>, vector<4x4x32xf32>
    tpu.vector_store %arg46[%c1, %c1_68, %c0_69], %115 {strides = array<i32>} : memref<6x8x32xf32, #tpu.memory_space<vmem>>, vector<4x4x32xf32>,
    %cst_70 = arith.constant 0.000000e+00 : f32
    %117 = vector.broadcast %cst_70 : f32 to vector<1x6x32xf32>
    %cst_71 = arith.constant 0.000000e+00 : f32
    %118 = vector.broadcast %cst_71 : f32 to vector<4x1x32xf32>
    %c0_72 = arith.constant 0 : index
    %c0_73 = arith.constant 0 : index
    %c0_74 = arith.constant 0 : index
    %119 = vector.load %arg46[%c0_72, %c0_73, %c0_74] : memref<6x8x32xf32, #tpu.memory_space<vmem>>, vector<1x6x32xf32>
    tpu.vector_store %arg46[%c0_72, %c0_73, %c0_74], %117 {strides = array<i32>} : memref<6x8x32xf32, #tpu.memory_space<vmem>>, vector<1x6x32xf32>,
    %c5 = arith.constant 5 : index
    %c0_75 = arith.constant 0 : index
    %c0_76 = arith.constant 0 : index
    %120 = vector.load %arg46[%c5, %c0_75, %c0_76] : memref<6x8x32xf32, #tpu.memory_space<vmem>>, vector<1x6x32xf32>
    tpu.vector_store %arg46[%c5, %c0_75, %c0_76], %117 {strides = array<i32>} : memref<6x8x32xf32, #tpu.memory_space<vmem>>, vector<1x6x32xf32>,
    %c1_77 = arith.constant 1 : index
    %c0_78 = arith.constant 0 : index
    %c0_79 = arith.constant 0 : index
    %121 = vector.load %arg46[%c1_77, %c0_78, %c0_79] : memref<6x8x32xf32, #tpu.memory_space<vmem>>, vector<4x1x32xf32>
    tpu.vector_store %arg46[%c1_77, %c0_78, %c0_79], %118 {strides = array<i32>} : memref<6x8x32xf32, #tpu.memory_space<vmem>>, vector<4x1x32xf32>,
    %c1_80 = arith.constant 1 : index
    %c5_81 = arith.constant 5 : index
    %c0_82 = arith.constant 0 : index
    %122 = vector.load %arg46[%c1_80, %c5_81, %c0_82] : memref<6x8x32xf32, #tpu.memory_space<vmem>>, vector<4x1x32xf32>
    tpu.vector_store %arg46[%c1_80, %c5_81, %c0_82], %118 {strides = array<i32>} : memref<6x8x32xf32, #tpu.memory_space<vmem>>, vector<4x1x32xf32>,
    %cst_83 = arith.constant 0.000000e+00 : f32
    %123 = vector.broadcast %cst_83 : f32 to vector<16x32xf32>
    %c0_84 = arith.constant 0 : index
    %c0_85 = arith.constant 0 : index
    %c0_86 = arith.constant 0 : index
    %124 = vector.load %arg46[%c0_84, %c0_85, %c0_86] : memref<6x8x32xf32, #tpu.memory_space<vmem>>, vector<4x4x32xf32>
    %125 = vector.shape_cast %124 : vector<4x4x32xf32> to vector<16x32xf32>
    %126 = arith.truncf %125 : vector<16x32xf32> to vector<16x32xbf16>
    %c0_87 = arith.constant 0 : index
    %c0_88 = arith.constant 0 : index
    %c0_89 = arith.constant 0 : index
    %127 = vector.load %arg19[%c0_87, %c0_88, %c0_89] : memref<9x32x32xbf16, #tpu.memory_space<vmem>>, vector<1x32x32xbf16>
    %128 = vector.shape_cast %127 : vector<1x32x32xbf16> to vector<32x32xbf16>
    %cst_90 = arith.constant dense<0.000000e+00> : vector<16x32xf32>
    %129 = tpu.matmul %126, %128, %cst_90 {dimension_numbers = #tpu.dot_dimension_numbers<[1], [0], [0], [1], [0, 0, 1, 1], [], []>} : vector<16x32xbf16>, vector<32x32xbf16>, vector<16x32xf32> -> vector<16x32xf32>
    %130 = arith.addf %123, %129 : vector<16x32xf32>
    %c0_91 = arith.constant 0 : index
    %c1_92 = arith.constant 1 : index
    %c0_93 = arith.constant 0 : index
    %131 = vector.load %arg46[%c0_91, %c1_92, %c0_93] : memref<6x8x32xf32, #tpu.memory_space<vmem>>, vector<4x4x32xf32>
    %132 = vector.shape_cast %131 : vector<4x4x32xf32> to vector<16x32xf32>
    %133 = arith.truncf %132 : vector<16x32xf32> to vector<16x32xbf16>
    %c1_94 = arith.constant 1 : index
    %c0_95 = arith.constant 0 : index
    %c0_96 = arith.constant 0 : index
    %134 = vector.load %arg19[%c1_94, %c0_95, %c0_96] : memref<9x32x32xbf16, #tpu.memory_space<vmem>>, vector<1x32x32xbf16>
    %135 = vector.shape_cast %134 : vector<1x32x32xbf16> to vector<32x32xbf16>
    %cst_97 = arith.constant dense<0.000000e+00> : vector<16x32xf32>
    %136 = tpu.matmul %133, %135, %cst_97 {dimension_numbers = #tpu.dot_dimension_numbers<[1], [0], [0], [1], [0, 0, 1, 1], [], []>} : vector<16x32xbf16>, vector<32x32xbf16>, vector<16x32xf32> -> vector<16x32xf32>
    %137 = arith.addf %130, %136 : vector<16x32xf32>
    %c0_98 = arith.constant 0 : index
    %c2 = arith.constant 2 : index
    %c0_99 = arith.constant 0 : index
    %138 = vector.load %arg46[%c0_98, %c2, %c0_99] : memref<6x8x32xf32, #tpu.memory_space<vmem>>, vector<4x4x32xf32>
    %139 = vector.shape_cast %138 : vector<4x4x32xf32> to vector<16x32xf32>
    %140 = arith.truncf %139 : vector<16x32xf32> to vector<16x32xbf16>
    %c2_100 = arith.constant 2 : index
    %c0_101 = arith.constant 0 : index
    %c0_102 = arith.constant 0 : index
    %141 = vector.load %arg19[%c2_100, %c0_101, %c0_102] : memref<9x32x32xbf16, #tpu.memory_space<vmem>>, vector<1x32x32xbf16>
    %142 = vector.shape_cast %141 : vector<1x32x32xbf16> to vector<32x32xbf16>
    %cst_103 = arith.constant dense<0.000000e+00> : vector<16x32xf32>
    %143 = tpu.matmul %140, %142, %cst_103 {dimension_numbers = #tpu.dot_dimension_numbers<[1], [0], [0], [1], [0, 0, 1, 1], [], []>} : vector<16x32xbf16>, vector<32x32xbf16>, vector<16x32xf32> -> vector<16x32xf32>
    %144 = arith.addf %137, %143 : vector<16x32xf32>
    %c1_104 = arith.constant 1 : index
    %c0_105 = arith.constant 0 : index
    %c0_106 = arith.constant 0 : index
    %145 = vector.load %arg46[%c1_104, %c0_105, %c0_106] : memref<6x8x32xf32, #tpu.memory_space<vmem>>, vector<4x4x32xf32>
    %146 = vector.shape_cast %145 : vector<4x4x32xf32> to vector<16x32xf32>
    %147 = arith.truncf %146 : vector<16x32xf32> to vector<16x32xbf16>
    %c3 = arith.constant 3 : index
    %c0_107 = arith.constant 0 : index
    %c0_108 = arith.constant 0 : index
    %148 = vector.load %arg19[%c3, %c0_107, %c0_108] : memref<9x32x32xbf16, #tpu.memory_space<vmem>>, vector<1x32x32xbf16>
    %149 = vector.shape_cast %148 : vector<1x32x32xbf16> to vector<32x32xbf16>
    %cst_109 = arith.constant dense<0.000000e+00> : vector<16x32xf32>
    %150 = tpu.matmul %147, %149, %cst_109 {dimension_numbers = #tpu.dot_dimension_numbers<[1], [0], [0], [1], [0, 0, 1, 1], [], []>} : vector<16x32xbf16>, vector<32x32xbf16>, vector<16x32xf32> -> vector<16x32xf32>
    %151 = arith.addf %144, %150 : vector<16x32xf32>
    %c1_110 = arith.constant 1 : index
    %c1_111 = arith.constant 1 : index
    %c0_112 = arith.constant 0 : index
    %152 = vector.load %arg46[%c1_110, %c1_111, %c0_112] : memref<6x8x32xf32, #tpu.memory_space<vmem>>, vector<4x4x32xf32>
    %153 = vector.shape_cast %152 : vector<4x4x32xf32> to vector<16x32xf32>
    %154 = arith.truncf %153 : vector<16x32xf32> to vector<16x32xbf16>
    %c4 = arith.constant 4 : index
    %c0_113 = arith.constant 0 : index
    %c0_114 = arith.constant 0 : index
    %155 = vector.load %arg19[%c4, %c0_113, %c0_114] : memref<9x32x32xbf16, #tpu.memory_space<vmem>>, vector<1x32x32xbf16>
    %156 = vector.shape_cast %155 : vector<1x32x32xbf16> to vector<32x32xbf16>
    %cst_115 = arith.constant dense<0.000000e+00> : vector<16x32xf32>
    %157 = tpu.matmul %154, %156, %cst_115 {dimension_numbers = #tpu.dot_dimension_numbers<[1], [0], [0], [1], [0, 0, 1, 1], [], []>} : vector<16x32xbf16>, vector<32x32xbf16>, vector<16x32xf32> -> vector<16x32xf32>
    %158 = arith.addf %151, %157 : vector<16x32xf32>
    %c1_116 = arith.constant 1 : index
    %c2_117 = arith.constant 2 : index
    %c0_118 = arith.constant 0 : index
    %159 = vector.load %arg46[%c1_116, %c2_117, %c0_118] : memref<6x8x32xf32, #tpu.memory_space<vmem>>, vector<4x4x32xf32>
    %160 = vector.shape_cast %159 : vector<4x4x32xf32> to vector<16x32xf32>
    %161 = arith.truncf %160 : vector<16x32xf32> to vector<16x32xbf16>
    %c5_119 = arith.constant 5 : index
    %c0_120 = arith.constant 0 : index
    %c0_121 = arith.constant 0 : index
    %162 = vector.load %arg19[%c5_119, %c0_120, %c0_121] : memref<9x32x32xbf16, #tpu.memory_space<vmem>>, vector<1x32x32xbf16>
    %163 = vector.shape_cast %162 : vector<1x32x32xbf16> to vector<32x32xbf16>
    %cst_122 = arith.constant dense<0.000000e+00> : vector<16x32xf32>
    %164 = tpu.matmul %161, %163, %cst_122 {dimension_numbers = #tpu.dot_dimension_numbers<[1], [0], [0], [1], [0, 0, 1, 1], [], []>} : vector<16x32xbf16>, vector<32x32xbf16>, vector<16x32xf32> -> vector<16x32xf32>
    %165 = arith.addf %158, %164 : vector<16x32xf32>
    %c2_123 = arith.constant 2 : index
    %c0_124 = arith.constant 0 : index
    %c0_125 = arith.constant 0 : index
    %166 = vector.load %arg46[%c2_123, %c0_124, %c0_125] : memref<6x8x32xf32, #tpu.memory_space<vmem>>, vector<4x4x32xf32>
    %167 = vector.shape_cast %166 : vector<4x4x32xf32> to vector<16x32xf32>
    %168 = arith.truncf %167 : vector<16x32xf32> to vector<16x32xbf16>
    %c6 = arith.constant 6 : index
    %c0_126 = arith.constant 0 : index
    %c0_127 = arith.constant 0 : index
    %169 = vector.load %arg19[%c6, %c0_126, %c0_127] : memref<9x32x32xbf16, #tpu.memory_space<vmem>>, vector<1x32x32xbf16>
    %170 = vector.shape_cast %169 : vector<1x32x32xbf16> to vector<32x32xbf16>
    %cst_128 = arith.constant dense<0.000000e+00> : vector<16x32xf32>
    %171 = tpu.matmul %168, %170, %cst_128 {dimension_numbers = #tpu.dot_dimension_numbers<[1], [0], [0], [1], [0, 0, 1, 1], [], []>} : vector<16x32xbf16>, vector<32x32xbf16>, vector<16x32xf32> -> vector<16x32xf32>
    %172 = arith.addf %165, %171 : vector<16x32xf32>
    %c2_129 = arith.constant 2 : index
    %c1_130 = arith.constant 1 : index
    %c0_131 = arith.constant 0 : index
    %173 = vector.load %arg46[%c2_129, %c1_130, %c0_131] : memref<6x8x32xf32, #tpu.memory_space<vmem>>, vector<4x4x32xf32>
    %174 = vector.shape_cast %173 : vector<4x4x32xf32> to vector<16x32xf32>
    %175 = arith.truncf %174 : vector<16x32xf32> to vector<16x32xbf16>
    %c7 = arith.constant 7 : index
    %c0_132 = arith.constant 0 : index
    %c0_133 = arith.constant 0 : index
    %176 = vector.load %arg19[%c7, %c0_132, %c0_133] : memref<9x32x32xbf16, #tpu.memory_space<vmem>>, vector<1x32x32xbf16>
    %177 = vector.shape_cast %176 : vector<1x32x32xbf16> to vector<32x32xbf16>
    %cst_134 = arith.constant dense<0.000000e+00> : vector<16x32xf32>
    %178 = tpu.matmul %175, %177, %cst_134 {dimension_numbers = #tpu.dot_dimension_numbers<[1], [0], [0], [1], [0, 0, 1, 1], [], []>} : vector<16x32xbf16>, vector<32x32xbf16>, vector<16x32xf32> -> vector<16x32xf32>
    %179 = arith.addf %172, %178 : vector<16x32xf32>
    %c2_135 = arith.constant 2 : index
    %c2_136 = arith.constant 2 : index
    %c0_137 = arith.constant 0 : index
    %180 = vector.load %arg46[%c2_135, %c2_136, %c0_137] : memref<6x8x32xf32, #tpu.memory_space<vmem>>, vector<4x4x32xf32>
    %181 = vector.shape_cast %180 : vector<4x4x32xf32> to vector<16x32xf32>
    %182 = arith.truncf %181 : vector<16x32xf32> to vector<16x32xbf16>
    %c8 = arith.constant 8 : index
    %c0_138 = arith.constant 0 : index
    %c0_139 = arith.constant 0 : index
    %183 = vector.load %arg19[%c8, %c0_138, %c0_139] : memref<9x32x32xbf16, #tpu.memory_space<vmem>>, vector<1x32x32xbf16>
    %184 = vector.shape_cast %183 : vector<1x32x32xbf16> to vector<32x32xbf16>
    %cst_140 = arith.constant dense<0.000000e+00> : vector<16x32xf32>
    %185 = tpu.matmul %182, %184, %cst_140 {dimension_numbers = #tpu.dot_dimension_numbers<[1], [0], [0], [1], [0, 0, 1, 1], [], []>} : vector<16x32xbf16>, vector<32x32xbf16>, vector<16x32xf32> -> vector<16x32xf32>
    %186 = arith.addf %179, %185 : vector<16x32xf32>
    %c0_141 = arith.constant 0 : index
    %c0_142 = arith.constant 0 : index
    %187 = vector.load %arg20[%c0_141, %c0_142] : memref<1x32xf32, #tpu.memory_space<vmem>>, vector<1x32xf32>
    %188 = vector.broadcast %187 : vector<1x32xf32> to vector<16x32xf32>
    %189 = arith.addf %186, %188 : vector<16x32xf32>
    %c0_143 = arith.constant 0 : index
    %c0_144 = arith.constant 0 : index
    %190 = vector.load %arg22[%c0_143, %c0_144] : memref<16x32xf32, #tpu.memory_space<vmem>>, vector<16x32xf32>
    %191 = arith.addf %189, %190 : vector<16x32xf32>
    %cst_145 = arith.constant 2.000000e-01 : f32
    %192 = vector.broadcast %cst_145 : f32 to vector<16x32xf32>
    %193 = arith.mulf %192, %191 : vector<16x32xf32>
    %194 = arith.maximumf %191, %193 : vector<16x32xf32>
    %cst_146 = arith.constant dense<0.000000e+00> : vector<32xf32>
    %195 = vector.multi_reduction <add>, %194, %cst_146 [0] : vector<16x32xf32> to vector<32xf32>
    %196 = vector.shape_cast %195 : vector<32xf32> to vector<1x32xf32>
    %cst_147 = arith.constant 1.600000e+01 : f32
    %197 = vector.broadcast %cst_147 : f32 to vector<1x32xf32>
    %198 = arith.divf %196, %197 : vector<1x32xf32>
    %199 = arith.mulf %194, %194 : vector<16x32xf32>
    %cst_148 = arith.constant dense<0.000000e+00> : vector<32xf32>
    %200 = vector.multi_reduction <add>, %199, %cst_148 [0] : vector<16x32xf32> to vector<32xf32>
    %201 = vector.shape_cast %200 : vector<32xf32> to vector<1x32xf32>
    %cst_149 = arith.constant 1.600000e+01 : f32
    %202 = vector.broadcast %cst_149 : f32 to vector<1x32xf32>
    %203 = arith.divf %201, %202 : vector<1x32xf32>
    %204 = arith.mulf %198, %198 : vector<1x32xf32>
    %205 = arith.subf %203, %204 : vector<1x32xf32>
    %cst_150 = arith.constant 0.000000e+00 : f32
    %206 = vector.broadcast %cst_150 : f32 to vector<1x32xf32>
    %207 = arith.maximumf %205, %206 : vector<1x32xf32>
    %208 = vector.broadcast %198 : vector<1x32xf32> to vector<16x32xf32>
    %209 = arith.subf %194, %208 : vector<16x32xf32>
    %cst_151 = arith.constant 9.99999993E-9 : f32
    %210 = vector.broadcast %cst_151 : f32 to vector<1x32xf32>
    %211 = arith.addf %207, %210 : vector<1x32xf32>
    %212 = math.rsqrt %211 : vector<1x32xf32>
    %213 = vector.broadcast %212 : vector<1x32xf32> to vector<16x32xf32>
    %214 = arith.mulf %209, %213 : vector<16x32xf32>
    %215 = vector.broadcast %83 : vector<1x32xf32> to vector<16x32xf32>
    %216 = arith.mulf %215, %214 : vector<16x32xf32>
    %217 = vector.broadcast %84 : vector<1x32xf32> to vector<16x32xf32>
    %218 = arith.addf %216, %217 : vector<16x32xf32>
    %219 = arith.truncf %75 : vector<1x32xf32> to vector<1x32xbf16>
    %c0_152 = arith.constant 0 : index
    %c0_153 = arith.constant 0 : index
    %220 = vector.load %arg32[%c0_152, %c0_153] : memref<32x64xbf16, #tpu.memory_space<vmem>>, vector<32x64xbf16>
    %cst_154 = arith.constant dense<0.000000e+00> : vector<1x64xf32>
    %221 = tpu.matmul %219, %220, %cst_154 {dimension_numbers = #tpu.dot_dimension_numbers<[1], [0], [0], [1], [0, 0, 1, 1], [], []>} : vector<1x32xbf16>, vector<32x64xbf16>, vector<1x64xf32> -> vector<1x64xf32>
    %c0_155 = arith.constant 0 : index
    %c0_156 = arith.constant 0 : index
    %222 = vector.load %arg33[%c0_155, %c0_156] : memref<1x64xf32, #tpu.memory_space<vmem>>, vector<1x64xf32>
    %223 = arith.addf %221, %222 : vector<1x64xf32>
    %224 = vector.extract_strided_slice %223 {offsets = [0, 0], sizes = [1, 16], strides = [1, 1]} : vector<1x64xf32> to vector<1x16xf32>
    %225 = vector.extract_strided_slice %223 {offsets = [0, 16], sizes = [1, 16], strides = [1, 1]} : vector<1x64xf32> to vector<1x16xf32>
    %226 = vector.extract_strided_slice %223 {offsets = [0, 32], sizes = [1, 16], strides = [1, 1]} : vector<1x64xf32> to vector<1x16xf32>
    %227 = vector.extract_strided_slice %223 {offsets = [0, 48], sizes = [1, 16], strides = [1, 1]} : vector<1x64xf32> to vector<1x16xf32>
    %c0_157 = arith.constant 0 : index
    %c0_158 = arith.constant 0 : index
    %228 = vector.load %arg25[%c0_157, %c0_158] : memref<64x16xbf16, #tpu.memory_space<vmem>>, vector<64x16xbf16>
    %229 = arith.truncf %218 : vector<16x32xf32> to vector<16x32xbf16>
    %cst_159 = arith.constant dense<0.000000e+00> : vector<64x32xf32>
    %230 = tpu.matmul %228, %229, %cst_159 {dimension_numbers = #tpu.dot_dimension_numbers<[1], [0], [0], [1], [0, 0, 1, 1], [], []>} : vector<64x16xbf16>, vector<16x32xbf16>, vector<64x32xf32> -> vector<64x32xf32>
    %231 = vector.shape_cast %230 : vector<64x32xf32> to vector<8x8x32xf32>
    %c1_160 = arith.constant 1 : index
    %c1_161 = arith.constant 1 : index
    %c0_162 = arith.constant 0 : index
    %232 = vector.load %arg47[%c1_160, %c1_161, %c0_162] : memref<10x16x32xf32, #tpu.memory_space<vmem>>, vector<8x8x32xf32>
    tpu.vector_store %arg47[%c1_160, %c1_161, %c0_162], %231 {strides = array<i32>} : memref<10x16x32xf32, #tpu.memory_space<vmem>>, vector<8x8x32xf32>,
    %cst_163 = arith.constant 0.000000e+00 : f32
    %233 = vector.broadcast %cst_163 : f32 to vector<1x10x32xf32>
    %cst_164 = arith.constant 0.000000e+00 : f32
    %234 = vector.broadcast %cst_164 : f32 to vector<8x1x32xf32>
    %c0_165 = arith.constant 0 : index
    %c0_166 = arith.constant 0 : index
    %c0_167 = arith.constant 0 : index
    %235 = vector.load %arg47[%c0_165, %c0_166, %c0_167] : memref<10x16x32xf32, #tpu.memory_space<vmem>>, vector<1x10x32xf32>
    tpu.vector_store %arg47[%c0_165, %c0_166, %c0_167], %233 {strides = array<i32>} : memref<10x16x32xf32, #tpu.memory_space<vmem>>, vector<1x10x32xf32>,
    %c9 = arith.constant 9 : index
    %c0_168 = arith.constant 0 : index
    %c0_169 = arith.constant 0 : index
    %236 = vector.load %arg47[%c9, %c0_168, %c0_169] : memref<10x16x32xf32, #tpu.memory_space<vmem>>, vector<1x10x32xf32>
    tpu.vector_store %arg47[%c9, %c0_168, %c0_169], %233 {strides = array<i32>} : memref<10x16x32xf32, #tpu.memory_space<vmem>>, vector<1x10x32xf32>,
    %c1_170 = arith.constant 1 : index
    %c0_171 = arith.constant 0 : index
    %c0_172 = arith.constant 0 : index
    %237 = vector.load %arg47[%c1_170, %c0_171, %c0_172] : memref<10x16x32xf32, #tpu.memory_space<vmem>>, vector<8x1x32xf32>
    tpu.vector_store %arg47[%c1_170, %c0_171, %c0_172], %234 {strides = array<i32>} : memref<10x16x32xf32, #tpu.memory_space<vmem>>, vector<8x1x32xf32>,
    %c1_173 = arith.constant 1 : index
    %c9_174 = arith.constant 9 : index
    %c0_175 = arith.constant 0 : index
    %238 = vector.load %arg47[%c1_173, %c9_174, %c0_175] : memref<10x16x32xf32, #tpu.memory_space<vmem>>, vector<8x1x32xf32>
    tpu.vector_store %arg47[%c1_173, %c9_174, %c0_175], %234 {strides = array<i32>} : memref<10x16x32xf32, #tpu.memory_space<vmem>>, vector<8x1x32xf32>,
    %cst_176 = arith.constant 0.000000e+00 : f32
    %239 = vector.broadcast %cst_176 : f32 to vector<64x16xf32>
    %c0_177 = arith.constant 0 : index
    %c0_178 = arith.constant 0 : index
    %c0_179 = arith.constant 0 : index
    %240 = vector.load %arg47[%c0_177, %c0_178, %c0_179] : memref<10x16x32xf32, #tpu.memory_space<vmem>>, vector<8x8x32xf32>
    %241 = vector.shape_cast %240 : vector<8x8x32xf32> to vector<64x32xf32>
    %242 = arith.truncf %241 : vector<64x32xf32> to vector<64x32xbf16>
    %c0_180 = arith.constant 0 : index
    %c0_181 = arith.constant 0 : index
    %c0_182 = arith.constant 0 : index
    %243 = vector.load %arg26[%c0_180, %c0_181, %c0_182] : memref<9x32x16xbf16, #tpu.memory_space<vmem>>, vector<1x32x16xbf16>
    %244 = vector.shape_cast %243 : vector<1x32x16xbf16> to vector<32x16xbf16>
    %cst_183 = arith.constant dense<0.000000e+00> : vector<64x16xf32>
    %245 = tpu.matmul %242, %244, %cst_183 {dimension_numbers = #tpu.dot_dimension_numbers<[1], [0], [0], [1], [0, 0, 1, 1], [], []>} : vector<64x32xbf16>, vector<32x16xbf16>, vector<64x16xf32> -> vector<64x16xf32>
    %246 = arith.addf %239, %245 : vector<64x16xf32>
    %c0_184 = arith.constant 0 : index
    %c1_185 = arith.constant 1 : index
    %c0_186 = arith.constant 0 : index
    %247 = vector.load %arg47[%c0_184, %c1_185, %c0_186] : memref<10x16x32xf32, #tpu.memory_space<vmem>>, vector<8x8x32xf32>
    %248 = vector.shape_cast %247 : vector<8x8x32xf32> to vector<64x32xf32>
    %249 = arith.truncf %248 : vector<64x32xf32> to vector<64x32xbf16>
    %c1_187 = arith.constant 1 : index
    %c0_188 = arith.constant 0 : index
    %c0_189 = arith.constant 0 : index
    %250 = vector.load %arg26[%c1_187, %c0_188, %c0_189] : memref<9x32x16xbf16, #tpu.memory_space<vmem>>, vector<1x32x16xbf16>
    %251 = vector.shape_cast %250 : vector<1x32x16xbf16> to vector<32x16xbf16>
    %cst_190 = arith.constant dense<0.000000e+00> : vector<64x16xf32>
    %252 = tpu.matmul %249, %251, %cst_190 {dimension_numbers = #tpu.dot_dimension_numbers<[1], [0], [0], [1], [0, 0, 1, 1], [], []>} : vector<64x32xbf16>, vector<32x16xbf16>, vector<64x16xf32> -> vector<64x16xf32>
    %253 = arith.addf %246, %252 : vector<64x16xf32>
    %c0_191 = arith.constant 0 : index
    %c2_192 = arith.constant 2 : index
    %c0_193 = arith.constant 0 : index
    %254 = vector.load %arg47[%c0_191, %c2_192, %c0_193] : memref<10x16x32xf32, #tpu.memory_space<vmem>>, vector<8x8x32xf32>
    %255 = vector.shape_cast %254 : vector<8x8x32xf32> to vector<64x32xf32>
    %256 = arith.truncf %255 : vector<64x32xf32> to vector<64x32xbf16>
    %c2_194 = arith.constant 2 : index
    %c0_195 = arith.constant 0 : index
    %c0_196 = arith.constant 0 : index
    %257 = vector.load %arg26[%c2_194, %c0_195, %c0_196] : memref<9x32x16xbf16, #tpu.memory_space<vmem>>, vector<1x32x16xbf16>
    %258 = vector.shape_cast %257 : vector<1x32x16xbf16> to vector<32x16xbf16>
    %cst_197 = arith.constant dense<0.000000e+00> : vector<64x16xf32>
    %259 = tpu.matmul %256, %258, %cst_197 {dimension_numbers = #tpu.dot_dimension_numbers<[1], [0], [0], [1], [0, 0, 1, 1], [], []>} : vector<64x32xbf16>, vector<32x16xbf16>, vector<64x16xf32> -> vector<64x16xf32>
    %260 = arith.addf %253, %259 : vector<64x16xf32>
    %c1_198 = arith.constant 1 : index
    %c0_199 = arith.constant 0 : index
    %c0_200 = arith.constant 0 : index
    %261 = vector.load %arg47[%c1_198, %c0_199, %c0_200] : memref<10x16x32xf32, #tpu.memory_space<vmem>>, vector<8x8x32xf32>
    %262 = vector.shape_cast %261 : vector<8x8x32xf32> to vector<64x32xf32>
    %263 = arith.truncf %262 : vector<64x32xf32> to vector<64x32xbf16>
    %c3_201 = arith.constant 3 : index
    %c0_202 = arith.constant 0 : index
    %c0_203 = arith.constant 0 : index
    %264 = vector.load %arg26[%c3_201, %c0_202, %c0_203] : memref<9x32x16xbf16, #tpu.memory_space<vmem>>, vector<1x32x16xbf16>
    %265 = vector.shape_cast %264 : vector<1x32x16xbf16> to vector<32x16xbf16>
    %cst_204 = arith.constant dense<0.000000e+00> : vector<64x16xf32>
    %266 = tpu.matmul %263, %265, %cst_204 {dimension_numbers = #tpu.dot_dimension_numbers<[1], [0], [0], [1], [0, 0, 1, 1], [], []>} : vector<64x32xbf16>, vector<32x16xbf16>, vector<64x16xf32> -> vector<64x16xf32>
    %267 = arith.addf %260, %266 : vector<64x16xf32>
    %c1_205 = arith.constant 1 : index
    %c1_206 = arith.constant 1 : index
    %c0_207 = arith.constant 0 : index
    %268 = vector.load %arg47[%c1_205, %c1_206, %c0_207] : memref<10x16x32xf32, #tpu.memory_space<vmem>>, vector<8x8x32xf32>
    %269 = vector.shape_cast %268 : vector<8x8x32xf32> to vector<64x32xf32>
    %270 = arith.truncf %269 : vector<64x32xf32> to vector<64x32xbf16>
    %c4_208 = arith.constant 4 : index
    %c0_209 = arith.constant 0 : index
    %c0_210 = arith.constant 0 : index
    %271 = vector.load %arg26[%c4_208, %c0_209, %c0_210] : memref<9x32x16xbf16, #tpu.memory_space<vmem>>, vector<1x32x16xbf16>
    %272 = vector.shape_cast %271 : vector<1x32x16xbf16> to vector<32x16xbf16>
    %cst_211 = arith.constant dense<0.000000e+00> : vector<64x16xf32>
    %273 = tpu.matmul %270, %272, %cst_211 {dimension_numbers = #tpu.dot_dimension_numbers<[1], [0], [0], [1], [0, 0, 1, 1], [], []>} : vector<64x32xbf16>, vector<32x16xbf16>, vector<64x16xf32> -> vector<64x16xf32>
    %274 = arith.addf %267, %273 : vector<64x16xf32>
    %c1_212 = arith.constant 1 : index
    %c2_213 = arith.constant 2 : index
    %c0_214 = arith.constant 0 : index
    %275 = vector.load %arg47[%c1_212, %c2_213, %c0_214] : memref<10x16x32xf32, #tpu.memory_space<vmem>>, vector<8x8x32xf32>
    %276 = vector.shape_cast %275 : vector<8x8x32xf32> to vector<64x32xf32>
    %277 = arith.truncf %276 : vector<64x32xf32> to vector<64x32xbf16>
    %c5_215 = arith.constant 5 : index
    %c0_216 = arith.constant 0 : index
    %c0_217 = arith.constant 0 : index
    %278 = vector.load %arg26[%c5_215, %c0_216, %c0_217] : memref<9x32x16xbf16, #tpu.memory_space<vmem>>, vector<1x32x16xbf16>
    %279 = vector.shape_cast %278 : vector<1x32x16xbf16> to vector<32x16xbf16>
    %cst_218 = arith.constant dense<0.000000e+00> : vector<64x16xf32>
    %280 = tpu.matmul %277, %279, %cst_218 {dimension_numbers = #tpu.dot_dimension_numbers<[1], [0], [0], [1], [0, 0, 1, 1], [], []>} : vector<64x32xbf16>, vector<32x16xbf16>, vector<64x16xf32> -> vector<64x16xf32>
    %281 = arith.addf %274, %280 : vector<64x16xf32>
    %c2_219 = arith.constant 2 : index
    %c0_220 = arith.constant 0 : index
    %c0_221 = arith.constant 0 : index
    %282 = vector.load %arg47[%c2_219, %c0_220, %c0_221] : memref<10x16x32xf32, #tpu.memory_space<vmem>>, vector<8x8x32xf32>
    %283 = vector.shape_cast %282 : vector<8x8x32xf32> to vector<64x32xf32>
    %284 = arith.truncf %283 : vector<64x32xf32> to vector<64x32xbf16>
    %c6_222 = arith.constant 6 : index
    %c0_223 = arith.constant 0 : index
    %c0_224 = arith.constant 0 : index
    %285 = vector.load %arg26[%c6_222, %c0_223, %c0_224] : memref<9x32x16xbf16, #tpu.memory_space<vmem>>, vector<1x32x16xbf16>
    %286 = vector.shape_cast %285 : vector<1x32x16xbf16> to vector<32x16xbf16>
    %cst_225 = arith.constant dense<0.000000e+00> : vector<64x16xf32>
    %287 = tpu.matmul %284, %286, %cst_225 {dimension_numbers = #tpu.dot_dimension_numbers<[1], [0], [0], [1], [0, 0, 1, 1], [], []>} : vector<64x32xbf16>, vector<32x16xbf16>, vector<64x16xf32> -> vector<64x16xf32>
    %288 = arith.addf %281, %287 : vector<64x16xf32>
    %c2_226 = arith.constant 2 : index
    %c1_227 = arith.constant 1 : index
    %c0_228 = arith.constant 0 : index
    %289 = vector.load %arg47[%c2_226, %c1_227, %c0_228] : memref<10x16x32xf32, #tpu.memory_space<vmem>>, vector<8x8x32xf32>
    %290 = vector.shape_cast %289 : vector<8x8x32xf32> to vector<64x32xf32>
    %291 = arith.truncf %290 : vector<64x32xf32> to vector<64x32xbf16>
    %c7_229 = arith.constant 7 : index
    %c0_230 = arith.constant 0 : index
    %c0_231 = arith.constant 0 : index
    %292 = vector.load %arg26[%c7_229, %c0_230, %c0_231] : memref<9x32x16xbf16, #tpu.memory_space<vmem>>, vector<1x32x16xbf16>
    %293 = vector.shape_cast %292 : vector<1x32x16xbf16> to vector<32x16xbf16>
    %cst_232 = arith.constant dense<0.000000e+00> : vector<64x16xf32>
    %294 = tpu.matmul %291, %293, %cst_232 {dimension_numbers = #tpu.dot_dimension_numbers<[1], [0], [0], [1], [0, 0, 1, 1], [], []>} : vector<64x32xbf16>, vector<32x16xbf16>, vector<64x16xf32> -> vector<64x16xf32>
    %295 = arith.addf %288, %294 : vector<64x16xf32>
    %c2_233 = arith.constant 2 : index
    %c2_234 = arith.constant 2 : index
    %c0_235 = arith.constant 0 : index
    %296 = vector.load %arg47[%c2_233, %c2_234, %c0_235] : memref<10x16x32xf32, #tpu.memory_space<vmem>>, vector<8x8x32xf32>
    %297 = vector.shape_cast %296 : vector<8x8x32xf32> to vector<64x32xf32>
    %298 = arith.truncf %297 : vector<64x32xf32> to vector<64x32xbf16>
    %c8_236 = arith.constant 8 : index
    %c0_237 = arith.constant 0 : index
    %c0_238 = arith.constant 0 : index
    %299 = vector.load %arg26[%c8_236, %c0_237, %c0_238] : memref<9x32x16xbf16, #tpu.memory_space<vmem>>, vector<1x32x16xbf16>
    %300 = vector.shape_cast %299 : vector<1x32x16xbf16> to vector<32x16xbf16>
    %cst_239 = arith.constant dense<0.000000e+00> : vector<64x16xf32>
    %301 = tpu.matmul %298, %300, %cst_239 {dimension_numbers = #tpu.dot_dimension_numbers<[1], [0], [0], [1], [0, 0, 1, 1], [], []>} : vector<64x32xbf16>, vector<32x16xbf16>, vector<64x16xf32> -> vector<64x16xf32>
    %302 = arith.addf %295, %301 : vector<64x16xf32>
    %c0_240 = arith.constant 0 : index
    %c0_241 = arith.constant 0 : index
    %303 = vector.load %arg27[%c0_240, %c0_241] : memref<1x16xf32, #tpu.memory_space<vmem>>, vector<1x16xf32>
    %304 = vector.broadcast %303 : vector<1x16xf32> to vector<64x16xf32>
    %305 = arith.addf %302, %304 : vector<64x16xf32>
    %c0_242 = arith.constant 0 : index
    %c0_243 = arith.constant 0 : index
    %306 = vector.load %arg30[%c0_242, %c0_243] : memref<64x16xf32, #tpu.memory_space<vmem>>, vector<64x16xf32>
    %307 = arith.addf %305, %306 : vector<64x16xf32>
    %cst_244 = arith.constant 2.000000e-01 : f32
    %308 = vector.broadcast %cst_244 : f32 to vector<64x16xf32>
    %309 = arith.mulf %308, %307 : vector<64x16xf32>
    %310 = arith.maximumf %307, %309 : vector<64x16xf32>
    %cst_245 = arith.constant dense<0.000000e+00> : vector<16xf32>
    %311 = vector.multi_reduction <add>, %310, %cst_245 [0] : vector<64x16xf32> to vector<16xf32>
    %312 = vector.shape_cast %311 : vector<16xf32> to vector<1x16xf32>
    %cst_246 = arith.constant 6.400000e+01 : f32
    %313 = vector.broadcast %cst_246 : f32 to vector<1x16xf32>
    %314 = arith.divf %312, %313 : vector<1x16xf32>
    %315 = arith.mulf %310, %310 : vector<64x16xf32>
    %cst_247 = arith.constant dense<0.000000e+00> : vector<16xf32>
    %316 = vector.multi_reduction <add>, %315, %cst_247 [0] : vector<64x16xf32> to vector<16xf32>
    %317 = vector.shape_cast %316 : vector<16xf32> to vector<1x16xf32>
    %cst_248 = arith.constant 6.400000e+01 : f32
    %318 = vector.broadcast %cst_248 : f32 to vector<1x16xf32>
    %319 = arith.divf %317, %318 : vector<1x16xf32>
    %320 = arith.mulf %314, %314 : vector<1x16xf32>
    %321 = arith.subf %319, %320 : vector<1x16xf32>
    %cst_249 = arith.constant 0.000000e+00 : f32
    %322 = vector.broadcast %cst_249 : f32 to vector<1x16xf32>
    %323 = arith.maximumf %321, %322 : vector<1x16xf32>
    %324 = vector.broadcast %314 : vector<1x16xf32> to vector<64x16xf32>
    %325 = arith.subf %310, %324 : vector<64x16xf32>
    %cst_250 = arith.constant 9.99999993E-9 : f32
    %326 = vector.broadcast %cst_250 : f32 to vector<1x16xf32>
    %327 = arith.addf %323, %326 : vector<1x16xf32>
    %328 = math.rsqrt %327 : vector<1x16xf32>
    %329 = vector.broadcast %328 : vector<1x16xf32> to vector<64x16xf32>
    %330 = arith.mulf %325, %329 : vector<64x16xf32>
    %331 = vector.broadcast %224 : vector<1x16xf32> to vector<64x16xf32>
    %332 = arith.mulf %331, %330 : vector<64x16xf32>
    %333 = vector.broadcast %225 : vector<1x16xf32> to vector<64x16xf32>
    %334 = arith.addf %332, %333 : vector<64x16xf32>
    %335 = vector.shape_cast %334 : vector<64x16xf32> to vector<8x8x16xf32>
    %c1_251 = arith.constant 1 : index
    %c1_252 = arith.constant 1 : index
    %c0_253 = arith.constant 0 : index
    %336 = vector.load %arg48[%c1_251, %c1_252, %c0_253] : memref<10x16x16xf32, #tpu.memory_space<vmem>>, vector<8x8x16xf32>
    tpu.vector_store %arg48[%c1_251, %c1_252, %c0_253], %335 {strides = array<i32>} : memref<10x16x16xf32, #tpu.memory_space<vmem>>, vector<8x8x16xf32>,
    %cst_254 = arith.constant 0.000000e+00 : f32
    %337 = vector.broadcast %cst_254 : f32 to vector<1x10x16xf32>
    %cst_255 = arith.constant 0.000000e+00 : f32
    %338 = vector.broadcast %cst_255 : f32 to vector<8x1x16xf32>
    %c0_256 = arith.constant 0 : index
    %c0_257 = arith.constant 0 : index
    %c0_258 = arith.constant 0 : index
    %339 = vector.load %arg48[%c0_256, %c0_257, %c0_258] : memref<10x16x16xf32, #tpu.memory_space<vmem>>, vector<1x10x16xf32>
    tpu.vector_store %arg48[%c0_256, %c0_257, %c0_258], %337 {strides = array<i32>} : memref<10x16x16xf32, #tpu.memory_space<vmem>>, vector<1x10x16xf32>,
    %c9_259 = arith.constant 9 : index
    %c0_260 = arith.constant 0 : index
    %c0_261 = arith.constant 0 : index
    %340 = vector.load %arg48[%c9_259, %c0_260, %c0_261] : memref<10x16x16xf32, #tpu.memory_space<vmem>>, vector<1x10x16xf32>
    tpu.vector_store %arg48[%c9_259, %c0_260, %c0_261], %337 {strides = array<i32>} : memref<10x16x16xf32, #tpu.memory_space<vmem>>, vector<1x10x16xf32>,
    %c1_262 = arith.constant 1 : index
    %c0_263 = arith.constant 0 : index
    %c0_264 = arith.constant 0 : index
    %341 = vector.load %arg48[%c1_262, %c0_263, %c0_264] : memref<10x16x16xf32, #tpu.memory_space<vmem>>, vector<8x1x16xf32>
    tpu.vector_store %arg48[%c1_262, %c0_263, %c0_264], %338 {strides = array<i32>} : memref<10x16x16xf32, #tpu.memory_space<vmem>>, vector<8x1x16xf32>,
    %c1_265 = arith.constant 1 : index
    %c9_266 = arith.constant 9 : index
    %c0_267 = arith.constant 0 : index
    %342 = vector.load %arg48[%c1_265, %c9_266, %c0_267] : memref<10x16x16xf32, #tpu.memory_space<vmem>>, vector<8x1x16xf32>
    tpu.vector_store %arg48[%c1_265, %c9_266, %c0_267], %338 {strides = array<i32>} : memref<10x16x16xf32, #tpu.memory_space<vmem>>, vector<8x1x16xf32>,
    %cst_268 = arith.constant 0.000000e+00 : f32
    %343 = vector.broadcast %cst_268 : f32 to vector<64x16xf32>
    %c0_269 = arith.constant 0 : index
    %c0_270 = arith.constant 0 : index
    %c0_271 = arith.constant 0 : index
    %344 = vector.load %arg48[%c0_269, %c0_270, %c0_271] : memref<10x16x16xf32, #tpu.memory_space<vmem>>, vector<8x8x16xf32>
    %345 = vector.shape_cast %344 : vector<8x8x16xf32> to vector<64x16xf32>
    %346 = arith.truncf %345 : vector<64x16xf32> to vector<64x16xbf16>
    %c0_272 = arith.constant 0 : index
    %c0_273 = arith.constant 0 : index
    %c0_274 = arith.constant 0 : index
    %347 = vector.load %arg28[%c0_272, %c0_273, %c0_274] : memref<9x16x16xbf16, #tpu.memory_space<vmem>>, vector<1x16x16xbf16>
    %348 = vector.shape_cast %347 : vector<1x16x16xbf16> to vector<16x16xbf16>
    %cst_275 = arith.constant dense<0.000000e+00> : vector<64x16xf32>
    %349 = tpu.matmul %346, %348, %cst_275 {dimension_numbers = #tpu.dot_dimension_numbers<[1], [0], [0], [1], [0, 0, 1, 1], [], []>} : vector<64x16xbf16>, vector<16x16xbf16>, vector<64x16xf32> -> vector<64x16xf32>
    %350 = arith.addf %343, %349 : vector<64x16xf32>
    %c0_276 = arith.constant 0 : index
    %c1_277 = arith.constant 1 : index
    %c0_278 = arith.constant 0 : index
    %351 = vector.load %arg48[%c0_276, %c1_277, %c0_278] : memref<10x16x16xf32, #tpu.memory_space<vmem>>, vector<8x8x16xf32>
    %352 = vector.shape_cast %351 : vector<8x8x16xf32> to vector<64x16xf32>
    %353 = arith.truncf %352 : vector<64x16xf32> to vector<64x16xbf16>
    %c1_279 = arith.constant 1 : index
    %c0_280 = arith.constant 0 : index
    %c0_281 = arith.constant 0 : index
    %354 = vector.load %arg28[%c1_279, %c0_280, %c0_281] : memref<9x16x16xbf16, #tpu.memory_space<vmem>>, vector<1x16x16xbf16>
    %355 = vector.shape_cast %354 : vector<1x16x16xbf16> to vector<16x16xbf16>
    %cst_282 = arith.constant dense<0.000000e+00> : vector<64x16xf32>
    %356 = tpu.matmul %353, %355, %cst_282 {dimension_numbers = #tpu.dot_dimension_numbers<[1], [0], [0], [1], [0, 0, 1, 1], [], []>} : vector<64x16xbf16>, vector<16x16xbf16>, vector<64x16xf32> -> vector<64x16xf32>
    %357 = arith.addf %350, %356 : vector<64x16xf32>
    %c0_283 = arith.constant 0 : index
    %c2_284 = arith.constant 2 : index
    %c0_285 = arith.constant 0 : index
    %358 = vector.load %arg48[%c0_283, %c2_284, %c0_285] : memref<10x16x16xf32, #tpu.memory_space<vmem>>, vector<8x8x16xf32>
    %359 = vector.shape_cast %358 : vector<8x8x16xf32> to vector<64x16xf32>
    %360 = arith.truncf %359 : vector<64x16xf32> to vector<64x16xbf16>
    %c2_286 = arith.constant 2 : index
    %c0_287 = arith.constant 0 : index
    %c0_288 = arith.constant 0 : index
    %361 = vector.load %arg28[%c2_286, %c0_287, %c0_288] : memref<9x16x16xbf16, #tpu.memory_space<vmem>>, vector<1x16x16xbf16>
    %362 = vector.shape_cast %361 : vector<1x16x16xbf16> to vector<16x16xbf16>
    %cst_289 = arith.constant dense<0.000000e+00> : vector<64x16xf32>
    %363 = tpu.matmul %360, %362, %cst_289 {dimension_numbers = #tpu.dot_dimension_numbers<[1], [0], [0], [1], [0, 0, 1, 1], [], []>} : vector<64x16xbf16>, vector<16x16xbf16>, vector<64x16xf32> -> vector<64x16xf32>
    %364 = arith.addf %357, %363 : vector<64x16xf32>
    %c1_290 = arith.constant 1 : index
    %c0_291 = arith.constant 0 : index
    %c0_292 = arith.constant 0 : index
    %365 = vector.load %arg48[%c1_290, %c0_291, %c0_292] : memref<10x16x16xf32, #tpu.memory_space<vmem>>, vector<8x8x16xf32>
    %366 = vector.shape_cast %365 : vector<8x8x16xf32> to vector<64x16xf32>
    %367 = arith.truncf %366 : vector<64x16xf32> to vector<64x16xbf16>
    %c3_293 = arith.constant 3 : index
    %c0_294 = arith.constant 0 : index
    %c0_295 = arith.constant 0 : index
    %368 = vector.load %arg28[%c3_293, %c0_294, %c0_295] : memref<9x16x16xbf16, #tpu.memory_space<vmem>>, vector<1x16x16xbf16>
    %369 = vector.shape_cast %368 : vector<1x16x16xbf16> to vector<16x16xbf16>
    %cst_296 = arith.constant dense<0.000000e+00> : vector<64x16xf32>
    %370 = tpu.matmul %367, %369, %cst_296 {dimension_numbers = #tpu.dot_dimension_numbers<[1], [0], [0], [1], [0, 0, 1, 1], [], []>} : vector<64x16xbf16>, vector<16x16xbf16>, vector<64x16xf32> -> vector<64x16xf32>
    %371 = arith.addf %364, %370 : vector<64x16xf32>
    %c1_297 = arith.constant 1 : index
    %c1_298 = arith.constant 1 : index
    %c0_299 = arith.constant 0 : index
    %372 = vector.load %arg48[%c1_297, %c1_298, %c0_299] : memref<10x16x16xf32, #tpu.memory_space<vmem>>, vector<8x8x16xf32>
    %373 = vector.shape_cast %372 : vector<8x8x16xf32> to vector<64x16xf32>
    %374 = arith.truncf %373 : vector<64x16xf32> to vector<64x16xbf16>
    %c4_300 = arith.constant 4 : index
    %c0_301 = arith.constant 0 : index
    %c0_302 = arith.constant 0 : index
    %375 = vector.load %arg28[%c4_300, %c0_301, %c0_302] : memref<9x16x16xbf16, #tpu.memory_space<vmem>>, vector<1x16x16xbf16>
    %376 = vector.shape_cast %375 : vector<1x16x16xbf16> to vector<16x16xbf16>
    %cst_303 = arith.constant dense<0.000000e+00> : vector<64x16xf32>
    %377 = tpu.matmul %374, %376, %cst_303 {dimension_numbers = #tpu.dot_dimension_numbers<[1], [0], [0], [1], [0, 0, 1, 1], [], []>} : vector<64x16xbf16>, vector<16x16xbf16>, vector<64x16xf32> -> vector<64x16xf32>
    %378 = arith.addf %371, %377 : vector<64x16xf32>
    %c1_304 = arith.constant 1 : index
    %c2_305 = arith.constant 2 : index
    %c0_306 = arith.constant 0 : index
    %379 = vector.load %arg48[%c1_304, %c2_305, %c0_306] : memref<10x16x16xf32, #tpu.memory_space<vmem>>, vector<8x8x16xf32>
    %380 = vector.shape_cast %379 : vector<8x8x16xf32> to vector<64x16xf32>
    %381 = arith.truncf %380 : vector<64x16xf32> to vector<64x16xbf16>
    %c5_307 = arith.constant 5 : index
    %c0_308 = arith.constant 0 : index
    %c0_309 = arith.constant 0 : index
    %382 = vector.load %arg28[%c5_307, %c0_308, %c0_309] : memref<9x16x16xbf16, #tpu.memory_space<vmem>>, vector<1x16x16xbf16>
    %383 = vector.shape_cast %382 : vector<1x16x16xbf16> to vector<16x16xbf16>
    %cst_310 = arith.constant dense<0.000000e+00> : vector<64x16xf32>
    %384 = tpu.matmul %381, %383, %cst_310 {dimension_numbers = #tpu.dot_dimension_numbers<[1], [0], [0], [1], [0, 0, 1, 1], [], []>} : vector<64x16xbf16>, vector<16x16xbf16>, vector<64x16xf32> -> vector<64x16xf32>
    %385 = arith.addf %378, %384 : vector<64x16xf32>
    %c2_311 = arith.constant 2 : index
    %c0_312 = arith.constant 0 : index
    %c0_313 = arith.constant 0 : index
    %386 = vector.load %arg48[%c2_311, %c0_312, %c0_313] : memref<10x16x16xf32, #tpu.memory_space<vmem>>, vector<8x8x16xf32>
    %387 = vector.shape_cast %386 : vector<8x8x16xf32> to vector<64x16xf32>
    %388 = arith.truncf %387 : vector<64x16xf32> to vector<64x16xbf16>
    %c6_314 = arith.constant 6 : index
    %c0_315 = arith.constant 0 : index
    %c0_316 = arith.constant 0 : index
    %389 = vector.load %arg28[%c6_314, %c0_315, %c0_316] : memref<9x16x16xbf16, #tpu.memory_space<vmem>>, vector<1x16x16xbf16>
    %390 = vector.shape_cast %389 : vector<1x16x16xbf16> to vector<16x16xbf16>
    %cst_317 = arith.constant dense<0.000000e+00> : vector<64x16xf32>
    %391 = tpu.matmul %388, %390, %cst_317 {dimension_numbers = #tpu.dot_dimension_numbers<[1], [0], [0], [1], [0, 0, 1, 1], [], []>} : vector<64x16xbf16>, vector<16x16xbf16>, vector<64x16xf32> -> vector<64x16xf32>
    %392 = arith.addf %385, %391 : vector<64x16xf32>
    %c2_318 = arith.constant 2 : index
    %c1_319 = arith.constant 1 : index
    %c0_320 = arith.constant 0 : index
    %393 = vector.load %arg48[%c2_318, %c1_319, %c0_320] : memref<10x16x16xf32, #tpu.memory_space<vmem>>, vector<8x8x16xf32>
    %394 = vector.shape_cast %393 : vector<8x8x16xf32> to vector<64x16xf32>
    %395 = arith.truncf %394 : vector<64x16xf32> to vector<64x16xbf16>
    %c7_321 = arith.constant 7 : index
    %c0_322 = arith.constant 0 : index
    %c0_323 = arith.constant 0 : index
    %396 = vector.load %arg28[%c7_321, %c0_322, %c0_323] : memref<9x16x16xbf16, #tpu.memory_space<vmem>>, vector<1x16x16xbf16>
    %397 = vector.shape_cast %396 : vector<1x16x16xbf16> to vector<16x16xbf16>
    %cst_324 = arith.constant dense<0.000000e+00> : vector<64x16xf32>
    %398 = tpu.matmul %395, %397, %cst_324 {dimension_numbers = #tpu.dot_dimension_numbers<[1], [0], [0], [1], [0, 0, 1, 1], [], []>} : vector<64x16xbf16>, vector<16x16xbf16>, vector<64x16xf32> -> vector<64x16xf32>
    %399 = arith.addf %392, %398 : vector<64x16xf32>
    %c2_325 = arith.constant 2 : index
    %c2_326 = arith.constant 2 : index
    %c0_327 = arith.constant 0 : index
    %400 = vector.load %arg48[%c2_325, %c2_326, %c0_327] : memref<10x16x16xf32, #tpu.memory_space<vmem>>, vector<8x8x16xf32>
    %401 = vector.shape_cast %400 : vector<8x8x16xf32> to vector<64x16xf32>
    %402 = arith.truncf %401 : vector<64x16xf32> to vector<64x16xbf16>
    %c8_328 = arith.constant 8 : index
    %c0_329 = arith.constant 0 : index
    %c0_330 = arith.constant 0 : index
    %403 = vector.load %arg28[%c8_328, %c0_329, %c0_330] : memref<9x16x16xbf16, #tpu.memory_space<vmem>>, vector<1x16x16xbf16>
    %404 = vector.shape_cast %403 : vector<1x16x16xbf16> to vector<16x16xbf16>
    %cst_331 = arith.constant dense<0.000000e+00> : vector<64x16xf32>
    %405 = tpu.matmul %402, %404, %cst_331 {dimension_numbers = #tpu.dot_dimension_numbers<[1], [0], [0], [1], [0, 0, 1, 1], [], []>} : vector<64x16xbf16>, vector<16x16xbf16>, vector<64x16xf32> -> vector<64x16xf32>
    %406 = arith.addf %399, %405 : vector<64x16xf32>
    %c0_332 = arith.constant 0 : index
    %c0_333 = arith.constant 0 : index
    %407 = vector.load %arg29[%c0_332, %c0_333] : memref<1x16xf32, #tpu.memory_space<vmem>>, vector<1x16xf32>
    %408 = vector.broadcast %407 : vector<1x16xf32> to vector<64x16xf32>
    %409 = arith.addf %406, %408 : vector<64x16xf32>
    %c0_334 = arith.constant 0 : index
    %c0_335 = arith.constant 0 : index
    %410 = vector.load %arg31[%c0_334, %c0_335] : memref<64x16xf32, #tpu.memory_space<vmem>>, vector<64x16xf32>
    %411 = arith.addf %409, %410 : vector<64x16xf32>
    %cst_336 = arith.constant 2.000000e-01 : f32
    %412 = vector.broadcast %cst_336 : f32 to vector<64x16xf32>
    %413 = arith.mulf %412, %411 : vector<64x16xf32>
    %414 = arith.maximumf %411, %413 : vector<64x16xf32>
    %cst_337 = arith.constant dense<0.000000e+00> : vector<16xf32>
    %415 = vector.multi_reduction <add>, %414, %cst_337 [0] : vector<64x16xf32> to vector<16xf32>
    %416 = vector.shape_cast %415 : vector<16xf32> to vector<1x16xf32>
    %cst_338 = arith.constant 6.400000e+01 : f32
    %417 = vector.broadcast %cst_338 : f32 to vector<1x16xf32>
    %418 = arith.divf %416, %417 : vector<1x16xf32>
    %419 = arith.mulf %414, %414 : vector<64x16xf32>
    %cst_339 = arith.constant dense<0.000000e+00> : vector<16xf32>
    %420 = vector.multi_reduction <add>, %419, %cst_339 [0] : vector<64x16xf32> to vector<16xf32>
    %421 = vector.shape_cast %420 : vector<16xf32> to vector<1x16xf32>
    %cst_340 = arith.constant 6.400000e+01 : f32
    %422 = vector.broadcast %cst_340 : f32 to vector<1x16xf32>
    %423 = arith.divf %421, %422 : vector<1x16xf32>
    %424 = arith.mulf %418, %418 : vector<1x16xf32>
    %425 = arith.subf %423, %424 : vector<1x16xf32>
    %cst_341 = arith.constant 0.000000e+00 : f32
    %426 = vector.broadcast %cst_341 : f32 to vector<1x16xf32>
    %427 = arith.maximumf %425, %426 : vector<1x16xf32>
    %428 = vector.broadcast %418 : vector<1x16xf32> to vector<64x16xf32>
    %429 = arith.subf %414, %428 : vector<64x16xf32>
    %cst_342 = arith.constant 9.99999993E-9 : f32
    %430 = vector.broadcast %cst_342 : f32 to vector<1x16xf32>
    %431 = arith.addf %427, %430 : vector<1x16xf32>
    %432 = math.rsqrt %431 : vector<1x16xf32>
    %433 = vector.broadcast %432 : vector<1x16xf32> to vector<64x16xf32>
    %434 = arith.mulf %429, %433 : vector<64x16xf32>
    %435 = vector.broadcast %226 : vector<1x16xf32> to vector<64x16xf32>
    %436 = arith.mulf %435, %434 : vector<64x16xf32>
    %437 = vector.broadcast %227 : vector<1x16xf32> to vector<64x16xf32>
    %438 = arith.addf %436, %437 : vector<64x16xf32>
    %439 = arith.truncf %75 : vector<1x32xf32> to vector<1x32xbf16>
    %c0_343 = arith.constant 0 : index
    %c0_344 = arith.constant 0 : index
    %440 = vector.load %arg41[%c0_343, %c0_344] : memref<32x32xbf16, #tpu.memory_space<vmem>>, vector<32x32xbf16>
    %cst_345 = arith.constant dense<0.000000e+00> : vector<1x32xf32>
    %441 = tpu.matmul %439, %440, %cst_345 {dimension_numbers = #tpu.dot_dimension_numbers<[1], [0], [0], [1], [0, 0, 1, 1], [], []>} : vector<1x32xbf16>, vector<32x32xbf16>, vector<1x32xf32> -> vector<1x32xf32>
    %c0_346 = arith.constant 0 : index
    %c0_347 = arith.constant 0 : index
    %442 = vector.load %arg42[%c0_346, %c0_347] : memref<1x32xf32, #tpu.memory_space<vmem>>, vector<1x32xf32>
    %443 = arith.addf %441, %442 : vector<1x32xf32>
    %444 = vector.extract_strided_slice %443 {offsets = [0, 0], sizes = [1, 8], strides = [1, 1]} : vector<1x32xf32> to vector<1x8xf32>
    %445 = vector.extract_strided_slice %443 {offsets = [0, 8], sizes = [1, 8], strides = [1, 1]} : vector<1x32xf32> to vector<1x8xf32>
    %446 = vector.extract_strided_slice %443 {offsets = [0, 16], sizes = [1, 8], strides = [1, 1]} : vector<1x32xf32> to vector<1x8xf32>
    %447 = vector.extract_strided_slice %443 {offsets = [0, 24], sizes = [1, 8], strides = [1, 1]} : vector<1x32xf32> to vector<1x8xf32>
    %c0_348 = arith.constant 0 : index
    %c0_349 = arith.constant 0 : index
    %448 = vector.load %arg34[%c0_348, %c0_349] : memref<256x64xbf16, #tpu.memory_space<vmem>>, vector<256x64xbf16>
    %449 = arith.truncf %438 : vector<64x16xf32> to vector<64x16xbf16>
    %cst_350 = arith.constant dense<0.000000e+00> : vector<256x16xf32>
    %450 = tpu.matmul %448, %449, %cst_350 {dimension_numbers = #tpu.dot_dimension_numbers<[1], [0], [0], [1], [0, 0, 1, 1], [], []>} : vector<256x64xbf16>, vector<64x16xbf16>, vector<256x16xf32> -> vector<256x16xf32>
    %451 = vector.shape_cast %450 : vector<256x16xf32> to vector<16x16x16xf32>
    %c1_351 = arith.constant 1 : index
    %c1_352 = arith.constant 1 : index
    %c0_353 = arith.constant 0 : index
    %452 = vector.load %arg49[%c1_351, %c1_352, %c0_353] : memref<18x24x16xf32, #tpu.memory_space<vmem>>, vector<16x16x16xf32>
    tpu.vector_store %arg49[%c1_351, %c1_352, %c0_353], %451 {strides = array<i32>} : memref<18x24x16xf32, #tpu.memory_space<vmem>>, vector<16x16x16xf32>,
    %cst_354 = arith.constant 0.000000e+00 : f32
    %453 = vector.broadcast %cst_354 : f32 to vector<1x18x16xf32>
    %cst_355 = arith.constant 0.000000e+00 : f32
    %454 = vector.broadcast %cst_355 : f32 to vector<16x1x16xf32>
    %c0_356 = arith.constant 0 : index
    %c0_357 = arith.constant 0 : index
    %c0_358 = arith.constant 0 : index
    %455 = vector.load %arg49[%c0_356, %c0_357, %c0_358] : memref<18x24x16xf32, #tpu.memory_space<vmem>>, vector<1x18x16xf32>
    tpu.vector_store %arg49[%c0_356, %c0_357, %c0_358], %453 {strides = array<i32>} : memref<18x24x16xf32, #tpu.memory_space<vmem>>, vector<1x18x16xf32>,
    %c17 = arith.constant 17 : index
    %c0_359 = arith.constant 0 : index
    %c0_360 = arith.constant 0 : index
    %456 = vector.load %arg49[%c17, %c0_359, %c0_360] : memref<18x24x16xf32, #tpu.memory_space<vmem>>, vector<1x18x16xf32>
    tpu.vector_store %arg49[%c17, %c0_359, %c0_360], %453 {strides = array<i32>} : memref<18x24x16xf32, #tpu.memory_space<vmem>>, vector<1x18x16xf32>,
    %c1_361 = arith.constant 1 : index
    %c0_362 = arith.constant 0 : index
    %c0_363 = arith.constant 0 : index
    %457 = vector.load %arg49[%c1_361, %c0_362, %c0_363] : memref<18x24x16xf32, #tpu.memory_space<vmem>>, vector<16x1x16xf32>
    tpu.vector_store %arg49[%c1_361, %c0_362, %c0_363], %454 {strides = array<i32>} : memref<18x24x16xf32, #tpu.memory_space<vmem>>, vector<16x1x16xf32>,
    %c1_364 = arith.constant 1 : index
    %c17_365 = arith.constant 17 : index
    %c0_366 = arith.constant 0 : index
    %458 = vector.load %arg49[%c1_364, %c17_365, %c0_366] : memref<18x24x16xf32, #tpu.memory_space<vmem>>, vector<16x1x16xf32>
    tpu.vector_store %arg49[%c1_364, %c17_365, %c0_366], %454 {strides = array<i32>} : memref<18x24x16xf32, #tpu.memory_space<vmem>>, vector<16x1x16xf32>,
    %cst_367 = arith.constant 0.000000e+00 : f32
    %459 = vector.broadcast %cst_367 : f32 to vector<256x8xf32>
    %c0_368 = arith.constant 0 : index
    %c0_369 = arith.constant 0 : index
    %c0_370 = arith.constant 0 : index
    %460 = vector.load %arg49[%c0_368, %c0_369, %c0_370] : memref<18x24x16xf32, #tpu.memory_space<vmem>>, vector<16x16x16xf32>
    %461 = vector.shape_cast %460 : vector<16x16x16xf32> to vector<256x16xf32>
    %462 = arith.truncf %461 : vector<256x16xf32> to vector<256x16xbf16>
    %c0_371 = arith.constant 0 : index
    %c0_372 = arith.constant 0 : index
    %c0_373 = arith.constant 0 : index
    %463 = vector.load %arg35[%c0_371, %c0_372, %c0_373] : memref<9x16x8xbf16, #tpu.memory_space<vmem>>, vector<1x16x8xbf16>
    %464 = vector.shape_cast %463 : vector<1x16x8xbf16> to vector<16x8xbf16>
    %cst_374 = arith.constant dense<0.000000e+00> : vector<256x8xf32>
    %465 = tpu.matmul %462, %464, %cst_374 {dimension_numbers = #tpu.dot_dimension_numbers<[1], [0], [0], [1], [0, 0, 1, 1], [], []>} : vector<256x16xbf16>, vector<16x8xbf16>, vector<256x8xf32> -> vector<256x8xf32>
    %466 = arith.addf %459, %465 : vector<256x8xf32>
    %c0_375 = arith.constant 0 : index
    %c1_376 = arith.constant 1 : index
    %c0_377 = arith.constant 0 : index
    %467 = vector.load %arg49[%c0_375, %c1_376, %c0_377] : memref<18x24x16xf32, #tpu.memory_space<vmem>>, vector<16x16x16xf32>
    %468 = vector.shape_cast %467 : vector<16x16x16xf32> to vector<256x16xf32>
    %469 = arith.truncf %468 : vector<256x16xf32> to vector<256x16xbf16>
    %c1_378 = arith.constant 1 : index
    %c0_379 = arith.constant 0 : index
    %c0_380 = arith.constant 0 : index
    %470 = vector.load %arg35[%c1_378, %c0_379, %c0_380] : memref<9x16x8xbf16, #tpu.memory_space<vmem>>, vector<1x16x8xbf16>
    %471 = vector.shape_cast %470 : vector<1x16x8xbf16> to vector<16x8xbf16>
    %cst_381 = arith.constant dense<0.000000e+00> : vector<256x8xf32>
    %472 = tpu.matmul %469, %471, %cst_381 {dimension_numbers = #tpu.dot_dimension_numbers<[1], [0], [0], [1], [0, 0, 1, 1], [], []>} : vector<256x16xbf16>, vector<16x8xbf16>, vector<256x8xf32> -> vector<256x8xf32>
    %473 = arith.addf %466, %472 : vector<256x8xf32>
    %c0_382 = arith.constant 0 : index
    %c2_383 = arith.constant 2 : index
    %c0_384 = arith.constant 0 : index
    %474 = vector.load %arg49[%c0_382, %c2_383, %c0_384] : memref<18x24x16xf32, #tpu.memory_space<vmem>>, vector<16x16x16xf32>
    %475 = vector.shape_cast %474 : vector<16x16x16xf32> to vector<256x16xf32>
    %476 = arith.truncf %475 : vector<256x16xf32> to vector<256x16xbf16>
    %c2_385 = arith.constant 2 : index
    %c0_386 = arith.constant 0 : index
    %c0_387 = arith.constant 0 : index
    %477 = vector.load %arg35[%c2_385, %c0_386, %c0_387] : memref<9x16x8xbf16, #tpu.memory_space<vmem>>, vector<1x16x8xbf16>
    %478 = vector.shape_cast %477 : vector<1x16x8xbf16> to vector<16x8xbf16>
    %cst_388 = arith.constant dense<0.000000e+00> : vector<256x8xf32>
    %479 = tpu.matmul %476, %478, %cst_388 {dimension_numbers = #tpu.dot_dimension_numbers<[1], [0], [0], [1], [0, 0, 1, 1], [], []>} : vector<256x16xbf16>, vector<16x8xbf16>, vector<256x8xf32> -> vector<256x8xf32>
    %480 = arith.addf %473, %479 : vector<256x8xf32>
    %c1_389 = arith.constant 1 : index
    %c0_390 = arith.constant 0 : index
    %c0_391 = arith.constant 0 : index
    %481 = vector.load %arg49[%c1_389, %c0_390, %c0_391] : memref<18x24x16xf32, #tpu.memory_space<vmem>>, vector<16x16x16xf32>
    %482 = vector.shape_cast %481 : vector<16x16x16xf32> to vector<256x16xf32>
    %483 = arith.truncf %482 : vector<256x16xf32> to vector<256x16xbf16>
    %c3_392 = arith.constant 3 : index
    %c0_393 = arith.constant 0 : index
    %c0_394 = arith.constant 0 : index
    %484 = vector.load %arg35[%c3_392, %c0_393, %c0_394] : memref<9x16x8xbf16, #tpu.memory_space<vmem>>, vector<1x16x8xbf16>
    %485 = vector.shape_cast %484 : vector<1x16x8xbf16> to vector<16x8xbf16>
    %cst_395 = arith.constant dense<0.000000e+00> : vector<256x8xf32>
    %486 = tpu.matmul %483, %485, %cst_395 {dimension_numbers = #tpu.dot_dimension_numbers<[1], [0], [0], [1], [0, 0, 1, 1], [], []>} : vector<256x16xbf16>, vector<16x8xbf16>, vector<256x8xf32> -> vector<256x8xf32>
    %487 = arith.addf %480, %486 : vector<256x8xf32>
    %c1_396 = arith.constant 1 : index
    %c1_397 = arith.constant 1 : index
    %c0_398 = arith.constant 0 : index
    %488 = vector.load %arg49[%c1_396, %c1_397, %c0_398] : memref<18x24x16xf32, #tpu.memory_space<vmem>>, vector<16x16x16xf32>
    %489 = vector.shape_cast %488 : vector<16x16x16xf32> to vector<256x16xf32>
    %490 = arith.truncf %489 : vector<256x16xf32> to vector<256x16xbf16>
    %c4_399 = arith.constant 4 : index
    %c0_400 = arith.constant 0 : index
    %c0_401 = arith.constant 0 : index
    %491 = vector.load %arg35[%c4_399, %c0_400, %c0_401] : memref<9x16x8xbf16, #tpu.memory_space<vmem>>, vector<1x16x8xbf16>
    %492 = vector.shape_cast %491 : vector<1x16x8xbf16> to vector<16x8xbf16>
    %cst_402 = arith.constant dense<0.000000e+00> : vector<256x8xf32>
    %493 = tpu.matmul %490, %492, %cst_402 {dimension_numbers = #tpu.dot_dimension_numbers<[1], [0], [0], [1], [0, 0, 1, 1], [], []>} : vector<256x16xbf16>, vector<16x8xbf16>, vector<256x8xf32> -> vector<256x8xf32>
    %494 = arith.addf %487, %493 : vector<256x8xf32>
    %c1_403 = arith.constant 1 : index
    %c2_404 = arith.constant 2 : index
    %c0_405 = arith.constant 0 : index
    %495 = vector.load %arg49[%c1_403, %c2_404, %c0_405] : memref<18x24x16xf32, #tpu.memory_space<vmem>>, vector<16x16x16xf32>
    %496 = vector.shape_cast %495 : vector<16x16x16xf32> to vector<256x16xf32>
    %497 = arith.truncf %496 : vector<256x16xf32> to vector<256x16xbf16>
    %c5_406 = arith.constant 5 : index
    %c0_407 = arith.constant 0 : index
    %c0_408 = arith.constant 0 : index
    %498 = vector.load %arg35[%c5_406, %c0_407, %c0_408] : memref<9x16x8xbf16, #tpu.memory_space<vmem>>, vector<1x16x8xbf16>
    %499 = vector.shape_cast %498 : vector<1x16x8xbf16> to vector<16x8xbf16>
    %cst_409 = arith.constant dense<0.000000e+00> : vector<256x8xf32>
    %500 = tpu.matmul %497, %499, %cst_409 {dimension_numbers = #tpu.dot_dimension_numbers<[1], [0], [0], [1], [0, 0, 1, 1], [], []>} : vector<256x16xbf16>, vector<16x8xbf16>, vector<256x8xf32> -> vector<256x8xf32>
    %501 = arith.addf %494, %500 : vector<256x8xf32>
    %c2_410 = arith.constant 2 : index
    %c0_411 = arith.constant 0 : index
    %c0_412 = arith.constant 0 : index
    %502 = vector.load %arg49[%c2_410, %c0_411, %c0_412] : memref<18x24x16xf32, #tpu.memory_space<vmem>>, vector<16x16x16xf32>
    %503 = vector.shape_cast %502 : vector<16x16x16xf32> to vector<256x16xf32>
    %504 = arith.truncf %503 : vector<256x16xf32> to vector<256x16xbf16>
    %c6_413 = arith.constant 6 : index
    %c0_414 = arith.constant 0 : index
    %c0_415 = arith.constant 0 : index
    %505 = vector.load %arg35[%c6_413, %c0_414, %c0_415] : memref<9x16x8xbf16, #tpu.memory_space<vmem>>, vector<1x16x8xbf16>
    %506 = vector.shape_cast %505 : vector<1x16x8xbf16> to vector<16x8xbf16>
    %cst_416 = arith.constant dense<0.000000e+00> : vector<256x8xf32>
    %507 = tpu.matmul %504, %506, %cst_416 {dimension_numbers = #tpu.dot_dimension_numbers<[1], [0], [0], [1], [0, 0, 1, 1], [], []>} : vector<256x16xbf16>, vector<16x8xbf16>, vector<256x8xf32> -> vector<256x8xf32>
    %508 = arith.addf %501, %507 : vector<256x8xf32>
    %c2_417 = arith.constant 2 : index
    %c1_418 = arith.constant 1 : index
    %c0_419 = arith.constant 0 : index
    %509 = vector.load %arg49[%c2_417, %c1_418, %c0_419] : memref<18x24x16xf32, #tpu.memory_space<vmem>>, vector<16x16x16xf32>
    %510 = vector.shape_cast %509 : vector<16x16x16xf32> to vector<256x16xf32>
    %511 = arith.truncf %510 : vector<256x16xf32> to vector<256x16xbf16>
    %c7_420 = arith.constant 7 : index
    %c0_421 = arith.constant 0 : index
    %c0_422 = arith.constant 0 : index
    %512 = vector.load %arg35[%c7_420, %c0_421, %c0_422] : memref<9x16x8xbf16, #tpu.memory_space<vmem>>, vector<1x16x8xbf16>
    %513 = vector.shape_cast %512 : vector<1x16x8xbf16> to vector<16x8xbf16>
    %cst_423 = arith.constant dense<0.000000e+00> : vector<256x8xf32>
    %514 = tpu.matmul %511, %513, %cst_423 {dimension_numbers = #tpu.dot_dimension_numbers<[1], [0], [0], [1], [0, 0, 1, 1], [], []>} : vector<256x16xbf16>, vector<16x8xbf16>, vector<256x8xf32> -> vector<256x8xf32>
    %515 = arith.addf %508, %514 : vector<256x8xf32>
    %c2_424 = arith.constant 2 : index
    %c2_425 = arith.constant 2 : index
    %c0_426 = arith.constant 0 : index
    %516 = vector.load %arg49[%c2_424, %c2_425, %c0_426] : memref<18x24x16xf32, #tpu.memory_space<vmem>>, vector<16x16x16xf32>
    %517 = vector.shape_cast %516 : vector<16x16x16xf32> to vector<256x16xf32>
    %518 = arith.truncf %517 : vector<256x16xf32> to vector<256x16xbf16>
    %c8_427 = arith.constant 8 : index
    %c0_428 = arith.constant 0 : index
    %c0_429 = arith.constant 0 : index
    %519 = vector.load %arg35[%c8_427, %c0_428, %c0_429] : memref<9x16x8xbf16, #tpu.memory_space<vmem>>, vector<1x16x8xbf16>
    %520 = vector.shape_cast %519 : vector<1x16x8xbf16> to vector<16x8xbf16>
    %cst_430 = arith.constant dense<0.000000e+00> : vector<256x8xf32>
    %521 = tpu.matmul %518, %520, %cst_430 {dimension_numbers = #tpu.dot_dimension_numbers<[1], [0], [0], [1], [0, 0, 1, 1], [], []>} : vector<256x16xbf16>, vector<16x8xbf16>, vector<256x8xf32> -> vector<256x8xf32>
    %522 = arith.addf %515, %521 : vector<256x8xf32>
    %c0_431 = arith.constant 0 : index
    %c0_432 = arith.constant 0 : index
    %523 = vector.load %arg36[%c0_431, %c0_432] : memref<1x8xf32, #tpu.memory_space<vmem>>, vector<1x8xf32>
    %524 = vector.broadcast %523 : vector<1x8xf32> to vector<256x8xf32>
    %525 = arith.addf %522, %524 : vector<256x8xf32>
    %c0_433 = arith.constant 0 : index
    %c0_434 = arith.constant 0 : index
    %526 = vector.load %arg39[%c0_433, %c0_434] : memref<256x8xf32, #tpu.memory_space<vmem>>, vector<256x8xf32>
    %527 = arith.addf %525, %526 : vector<256x8xf32>
    %cst_435 = arith.constant 2.000000e-01 : f32
    %528 = vector.broadcast %cst_435 : f32 to vector<256x8xf32>
    %529 = arith.mulf %528, %527 : vector<256x8xf32>
    %530 = arith.maximumf %527, %529 : vector<256x8xf32>
    %cst_436 = arith.constant dense<0.000000e+00> : vector<8xf32>
    %531 = vector.multi_reduction <add>, %530, %cst_436 [0] : vector<256x8xf32> to vector<8xf32>
    %532 = vector.shape_cast %531 : vector<8xf32> to vector<1x8xf32>
    %cst_437 = arith.constant 2.560000e+02 : f32
    %533 = vector.broadcast %cst_437 : f32 to vector<1x8xf32>
    %534 = arith.divf %532, %533 : vector<1x8xf32>
    %535 = arith.mulf %530, %530 : vector<256x8xf32>
    %cst_438 = arith.constant dense<0.000000e+00> : vector<8xf32>
    %536 = vector.multi_reduction <add>, %535, %cst_438 [0] : vector<256x8xf32> to vector<8xf32>
    %537 = vector.shape_cast %536 : vector<8xf32> to vector<1x8xf32>
    %cst_439 = arith.constant 2.560000e+02 : f32
    %538 = vector.broadcast %cst_439 : f32 to vector<1x8xf32>
    %539 = arith.divf %537, %538 : vector<1x8xf32>
    %540 = arith.mulf %534, %534 : vector<1x8xf32>
    %541 = arith.subf %539, %540 : vector<1x8xf32>
    %cst_440 = arith.constant 0.000000e+00 : f32
    %542 = vector.broadcast %cst_440 : f32 to vector<1x8xf32>
    %543 = arith.maximumf %541, %542 : vector<1x8xf32>
    %544 = vector.broadcast %534 : vector<1x8xf32> to vector<256x8xf32>
    %545 = arith.subf %530, %544 : vector<256x8xf32>
    %cst_441 = arith.constant 9.99999993E-9 : f32
    %546 = vector.broadcast %cst_441 : f32 to vector<1x8xf32>
    %547 = arith.addf %543, %546 : vector<1x8xf32>
    %548 = math.rsqrt %547 : vector<1x8xf32>
    %549 = vector.broadcast %548 : vector<1x8xf32> to vector<256x8xf32>
    %550 = arith.mulf %545, %549 : vector<256x8xf32>
    %551 = vector.broadcast %444 : vector<1x8xf32> to vector<256x8xf32>
    %552 = arith.mulf %551, %550 : vector<256x8xf32>
    %553 = vector.broadcast %445 : vector<1x8xf32> to vector<256x8xf32>
    %554 = arith.addf %552, %553 : vector<256x8xf32>
    %555 = vector.shape_cast %554 : vector<256x8xf32> to vector<16x16x8xf32>
    %c1_442 = arith.constant 1 : index
    %c1_443 = arith.constant 1 : index
    %c0_444 = arith.constant 0 : index
    %556 = vector.load %arg50[%c1_442, %c1_443, %c0_444] : memref<18x24x8xf32, #tpu.memory_space<vmem>>, vector<16x16x8xf32>
    tpu.vector_store %arg50[%c1_442, %c1_443, %c0_444], %555 {strides = array<i32>} : memref<18x24x8xf32, #tpu.memory_space<vmem>>, vector<16x16x8xf32>,
    %cst_445 = arith.constant 0.000000e+00 : f32
    %557 = vector.broadcast %cst_445 : f32 to vector<1x18x8xf32>
    %cst_446 = arith.constant 0.000000e+00 : f32
    %558 = vector.broadcast %cst_446 : f32 to vector<16x1x8xf32>
    %c0_447 = arith.constant 0 : index
    %c0_448 = arith.constant 0 : index
    %c0_449 = arith.constant 0 : index
    %559 = vector.load %arg50[%c0_447, %c0_448, %c0_449] : memref<18x24x8xf32, #tpu.memory_space<vmem>>, vector<1x18x8xf32>
    tpu.vector_store %arg50[%c0_447, %c0_448, %c0_449], %557 {strides = array<i32>} : memref<18x24x8xf32, #tpu.memory_space<vmem>>, vector<1x18x8xf32>,
    %c17_450 = arith.constant 17 : index
    %c0_451 = arith.constant 0 : index
    %c0_452 = arith.constant 0 : index
    %560 = vector.load %arg50[%c17_450, %c0_451, %c0_452] : memref<18x24x8xf32, #tpu.memory_space<vmem>>, vector<1x18x8xf32>
    tpu.vector_store %arg50[%c17_450, %c0_451, %c0_452], %557 {strides = array<i32>} : memref<18x24x8xf32, #tpu.memory_space<vmem>>, vector<1x18x8xf32>,
    %c1_453 = arith.constant 1 : index
    %c0_454 = arith.constant 0 : index
    %c0_455 = arith.constant 0 : index
    %561 = vector.load %arg50[%c1_453, %c0_454, %c0_455] : memref<18x24x8xf32, #tpu.memory_space<vmem>>, vector<16x1x8xf32>
    tpu.vector_store %arg50[%c1_453, %c0_454, %c0_455], %558 {strides = array<i32>} : memref<18x24x8xf32, #tpu.memory_space<vmem>>, vector<16x1x8xf32>,
    %c1_456 = arith.constant 1 : index
    %c17_457 = arith.constant 17 : index
    %c0_458 = arith.constant 0 : index
    %562 = vector.load %arg50[%c1_456, %c17_457, %c0_458] : memref<18x24x8xf32, #tpu.memory_space<vmem>>, vector<16x1x8xf32>
    tpu.vector_store %arg50[%c1_456, %c17_457, %c0_458], %558 {strides = array<i32>} : memref<18x24x8xf32, #tpu.memory_space<vmem>>, vector<16x1x8xf32>,
    %cst_459 = arith.constant 0.000000e+00 : f32
    %563 = vector.broadcast %cst_459 : f32 to vector<256x8xf32>
    %c0_460 = arith.constant 0 : index
    %c0_461 = arith.constant 0 : index
    %c0_462 = arith.constant 0 : index
    %564 = vector.load %arg50[%c0_460, %c0_461, %c0_462] : memref<18x24x8xf32, #tpu.memory_space<vmem>>, vector<16x16x8xf32>
    %565 = vector.shape_cast %564 : vector<16x16x8xf32> to vector<256x8xf32>
    %566 = arith.truncf %565 : vector<256x8xf32> to vector<256x8xbf16>
    %c0_463 = arith.constant 0 : index
    %c0_464 = arith.constant 0 : index
    %c0_465 = arith.constant 0 : index
    %567 = vector.load %arg37[%c0_463, %c0_464, %c0_465] : memref<9x8x8xbf16, #tpu.memory_space<vmem>>, vector<1x8x8xbf16>
    %568 = vector.shape_cast %567 : vector<1x8x8xbf16> to vector<8x8xbf16>
    %cst_466 = arith.constant dense<0.000000e+00> : vector<256x8xf32>
    %569 = tpu.matmul %566, %568, %cst_466 {dimension_numbers = #tpu.dot_dimension_numbers<[1], [0], [0], [1], [0, 0, 1, 1], [], []>} : vector<256x8xbf16>, vector<8x8xbf16>, vector<256x8xf32> -> vector<256x8xf32>
    %570 = arith.addf %563, %569 : vector<256x8xf32>
    %c0_467 = arith.constant 0 : index
    %c1_468 = arith.constant 1 : index
    %c0_469 = arith.constant 0 : index
    %571 = vector.load %arg50[%c0_467, %c1_468, %c0_469] : memref<18x24x8xf32, #tpu.memory_space<vmem>>, vector<16x16x8xf32>
    %572 = vector.shape_cast %571 : vector<16x16x8xf32> to vector<256x8xf32>
    %573 = arith.truncf %572 : vector<256x8xf32> to vector<256x8xbf16>
    %c1_470 = arith.constant 1 : index
    %c0_471 = arith.constant 0 : index
    %c0_472 = arith.constant 0 : index
    %574 = vector.load %arg37[%c1_470, %c0_471, %c0_472] : memref<9x8x8xbf16, #tpu.memory_space<vmem>>, vector<1x8x8xbf16>
    %575 = vector.shape_cast %574 : vector<1x8x8xbf16> to vector<8x8xbf16>
    %cst_473 = arith.constant dense<0.000000e+00> : vector<256x8xf32>
    %576 = tpu.matmul %573, %575, %cst_473 {dimension_numbers = #tpu.dot_dimension_numbers<[1], [0], [0], [1], [0, 0, 1, 1], [], []>} : vector<256x8xbf16>, vector<8x8xbf16>, vector<256x8xf32> -> vector<256x8xf32>
    %577 = arith.addf %570, %576 : vector<256x8xf32>
    %c0_474 = arith.constant 0 : index
    %c2_475 = arith.constant 2 : index
    %c0_476 = arith.constant 0 : index
    %578 = vector.load %arg50[%c0_474, %c2_475, %c0_476] : memref<18x24x8xf32, #tpu.memory_space<vmem>>, vector<16x16x8xf32>
    %579 = vector.shape_cast %578 : vector<16x16x8xf32> to vector<256x8xf32>
    %580 = arith.truncf %579 : vector<256x8xf32> to vector<256x8xbf16>
    %c2_477 = arith.constant 2 : index
    %c0_478 = arith.constant 0 : index
    %c0_479 = arith.constant 0 : index
    %581 = vector.load %arg37[%c2_477, %c0_478, %c0_479] : memref<9x8x8xbf16, #tpu.memory_space<vmem>>, vector<1x8x8xbf16>
    %582 = vector.shape_cast %581 : vector<1x8x8xbf16> to vector<8x8xbf16>
    %cst_480 = arith.constant dense<0.000000e+00> : vector<256x8xf32>
    %583 = tpu.matmul %580, %582, %cst_480 {dimension_numbers = #tpu.dot_dimension_numbers<[1], [0], [0], [1], [0, 0, 1, 1], [], []>} : vector<256x8xbf16>, vector<8x8xbf16>, vector<256x8xf32> -> vector<256x8xf32>
    %584 = arith.addf %577, %583 : vector<256x8xf32>
    %c1_481 = arith.constant 1 : index
    %c0_482 = arith.constant 0 : index
    %c0_483 = arith.constant 0 : index
    %585 = vector.load %arg50[%c1_481, %c0_482, %c0_483] : memref<18x24x8xf32, #tpu.memory_space<vmem>>, vector<16x16x8xf32>
    %586 = vector.shape_cast %585 : vector<16x16x8xf32> to vector<256x8xf32>
    %587 = arith.truncf %586 : vector<256x8xf32> to vector<256x8xbf16>
    %c3_484 = arith.constant 3 : index
    %c0_485 = arith.constant 0 : index
    %c0_486 = arith.constant 0 : index
    %588 = vector.load %arg37[%c3_484, %c0_485, %c0_486] : memref<9x8x8xbf16, #tpu.memory_space<vmem>>, vector<1x8x8xbf16>
    %589 = vector.shape_cast %588 : vector<1x8x8xbf16> to vector<8x8xbf16>
    %cst_487 = arith.constant dense<0.000000e+00> : vector<256x8xf32>
    %590 = tpu.matmul %587, %589, %cst_487 {dimension_numbers = #tpu.dot_dimension_numbers<[1], [0], [0], [1], [0, 0, 1, 1], [], []>} : vector<256x8xbf16>, vector<8x8xbf16>, vector<256x8xf32> -> vector<256x8xf32>
    %591 = arith.addf %584, %590 : vector<256x8xf32>
    %c1_488 = arith.constant 1 : index
    %c1_489 = arith.constant 1 : index
    %c0_490 = arith.constant 0 : index
    %592 = vector.load %arg50[%c1_488, %c1_489, %c0_490] : memref<18x24x8xf32, #tpu.memory_space<vmem>>, vector<16x16x8xf32>
    %593 = vector.shape_cast %592 : vector<16x16x8xf32> to vector<256x8xf32>
    %594 = arith.truncf %593 : vector<256x8xf32> to vector<256x8xbf16>
    %c4_491 = arith.constant 4 : index
    %c0_492 = arith.constant 0 : index
    %c0_493 = arith.constant 0 : index
    %595 = vector.load %arg37[%c4_491, %c0_492, %c0_493] : memref<9x8x8xbf16, #tpu.memory_space<vmem>>, vector<1x8x8xbf16>
    %596 = vector.shape_cast %595 : vector<1x8x8xbf16> to vector<8x8xbf16>
    %cst_494 = arith.constant dense<0.000000e+00> : vector<256x8xf32>
    %597 = tpu.matmul %594, %596, %cst_494 {dimension_numbers = #tpu.dot_dimension_numbers<[1], [0], [0], [1], [0, 0, 1, 1], [], []>} : vector<256x8xbf16>, vector<8x8xbf16>, vector<256x8xf32> -> vector<256x8xf32>
    %598 = arith.addf %591, %597 : vector<256x8xf32>
    %c1_495 = arith.constant 1 : index
    %c2_496 = arith.constant 2 : index
    %c0_497 = arith.constant 0 : index
    %599 = vector.load %arg50[%c1_495, %c2_496, %c0_497] : memref<18x24x8xf32, #tpu.memory_space<vmem>>, vector<16x16x8xf32>
    %600 = vector.shape_cast %599 : vector<16x16x8xf32> to vector<256x8xf32>
    %601 = arith.truncf %600 : vector<256x8xf32> to vector<256x8xbf16>
    %c5_498 = arith.constant 5 : index
    %c0_499 = arith.constant 0 : index
    %c0_500 = arith.constant 0 : index
    %602 = vector.load %arg37[%c5_498, %c0_499, %c0_500] : memref<9x8x8xbf16, #tpu.memory_space<vmem>>, vector<1x8x8xbf16>
    %603 = vector.shape_cast %602 : vector<1x8x8xbf16> to vector<8x8xbf16>
    %cst_501 = arith.constant dense<0.000000e+00> : vector<256x8xf32>
    %604 = tpu.matmul %601, %603, %cst_501 {dimension_numbers = #tpu.dot_dimension_numbers<[1], [0], [0], [1], [0, 0, 1, 1], [], []>} : vector<256x8xbf16>, vector<8x8xbf16>, vector<256x8xf32> -> vector<256x8xf32>
    %605 = arith.addf %598, %604 : vector<256x8xf32>
    %c2_502 = arith.constant 2 : index
    %c0_503 = arith.constant 0 : index
    %c0_504 = arith.constant 0 : index
    %606 = vector.load %arg50[%c2_502, %c0_503, %c0_504] : memref<18x24x8xf32, #tpu.memory_space<vmem>>, vector<16x16x8xf32>
    %607 = vector.shape_cast %606 : vector<16x16x8xf32> to vector<256x8xf32>
    %608 = arith.truncf %607 : vector<256x8xf32> to vector<256x8xbf16>
    %c6_505 = arith.constant 6 : index
    %c0_506 = arith.constant 0 : index
    %c0_507 = arith.constant 0 : index
    %609 = vector.load %arg37[%c6_505, %c0_506, %c0_507] : memref<9x8x8xbf16, #tpu.memory_space<vmem>>, vector<1x8x8xbf16>
    %610 = vector.shape_cast %609 : vector<1x8x8xbf16> to vector<8x8xbf16>
    %cst_508 = arith.constant dense<0.000000e+00> : vector<256x8xf32>
    %611 = tpu.matmul %608, %610, %cst_508 {dimension_numbers = #tpu.dot_dimension_numbers<[1], [0], [0], [1], [0, 0, 1, 1], [], []>} : vector<256x8xbf16>, vector<8x8xbf16>, vector<256x8xf32> -> vector<256x8xf32>
    %612 = arith.addf %605, %611 : vector<256x8xf32>
    %c2_509 = arith.constant 2 : index
    %c1_510 = arith.constant 1 : index
    %c0_511 = arith.constant 0 : index
    %613 = vector.load %arg50[%c2_509, %c1_510, %c0_511] : memref<18x24x8xf32, #tpu.memory_space<vmem>>, vector<16x16x8xf32>
    %614 = vector.shape_cast %613 : vector<16x16x8xf32> to vector<256x8xf32>
    %615 = arith.truncf %614 : vector<256x8xf32> to vector<256x8xbf16>
    %c7_512 = arith.constant 7 : index
    %c0_513 = arith.constant 0 : index
    %c0_514 = arith.constant 0 : index
    %616 = vector.load %arg37[%c7_512, %c0_513, %c0_514] : memref<9x8x8xbf16, #tpu.memory_space<vmem>>, vector<1x8x8xbf16>
    %617 = vector.shape_cast %616 : vector<1x8x8xbf16> to vector<8x8xbf16>
    %cst_515 = arith.constant dense<0.000000e+00> : vector<256x8xf32>
    %618 = tpu.matmul %615, %617, %cst_515 {dimension_numbers = #tpu.dot_dimension_numbers<[1], [0], [0], [1], [0, 0, 1, 1], [], []>} : vector<256x8xbf16>, vector<8x8xbf16>, vector<256x8xf32> -> vector<256x8xf32>
    %619 = arith.addf %612, %618 : vector<256x8xf32>
    %c2_516 = arith.constant 2 : index
    %c2_517 = arith.constant 2 : index
    %c0_518 = arith.constant 0 : index
    %620 = vector.load %arg50[%c2_516, %c2_517, %c0_518] : memref<18x24x8xf32, #tpu.memory_space<vmem>>, vector<16x16x8xf32>
    %621 = vector.shape_cast %620 : vector<16x16x8xf32> to vector<256x8xf32>
    %622 = arith.truncf %621 : vector<256x8xf32> to vector<256x8xbf16>
    %c8_519 = arith.constant 8 : index
    %c0_520 = arith.constant 0 : index
    %c0_521 = arith.constant 0 : index
    %623 = vector.load %arg37[%c8_519, %c0_520, %c0_521] : memref<9x8x8xbf16, #tpu.memory_space<vmem>>, vector<1x8x8xbf16>
    %624 = vector.shape_cast %623 : vector<1x8x8xbf16> to vector<8x8xbf16>
    %cst_522 = arith.constant dense<0.000000e+00> : vector<256x8xf32>
    %625 = tpu.matmul %622, %624, %cst_522 {dimension_numbers = #tpu.dot_dimension_numbers<[1], [0], [0], [1], [0, 0, 1, 1], [], []>} : vector<256x8xbf16>, vector<8x8xbf16>, vector<256x8xf32> -> vector<256x8xf32>
    %626 = arith.addf %619, %625 : vector<256x8xf32>
    %c0_523 = arith.constant 0 : index
    %c0_524 = arith.constant 0 : index
    %627 = vector.load %arg38[%c0_523, %c0_524] : memref<1x8xf32, #tpu.memory_space<vmem>>, vector<1x8xf32>
    %628 = vector.broadcast %627 : vector<1x8xf32> to vector<256x8xf32>
    %629 = arith.addf %626, %628 : vector<256x8xf32>
    %c0_525 = arith.constant 0 : index
    %c0_526 = arith.constant 0 : index
    %630 = vector.load %arg40[%c0_525, %c0_526] : memref<256x8xf32, #tpu.memory_space<vmem>>, vector<256x8xf32>
    %631 = arith.addf %629, %630 : vector<256x8xf32>
    %cst_527 = arith.constant 2.000000e-01 : f32
    %632 = vector.broadcast %cst_527 : f32 to vector<256x8xf32>
    %633 = arith.mulf %632, %631 : vector<256x8xf32>
    %634 = arith.maximumf %631, %633 : vector<256x8xf32>
    %cst_528 = arith.constant dense<0.000000e+00> : vector<8xf32>
    %635 = vector.multi_reduction <add>, %634, %cst_528 [0] : vector<256x8xf32> to vector<8xf32>
    %636 = vector.shape_cast %635 : vector<8xf32> to vector<1x8xf32>
    %cst_529 = arith.constant 2.560000e+02 : f32
    %637 = vector.broadcast %cst_529 : f32 to vector<1x8xf32>
    %638 = arith.divf %636, %637 : vector<1x8xf32>
    %639 = arith.mulf %634, %634 : vector<256x8xf32>
    %cst_530 = arith.constant dense<0.000000e+00> : vector<8xf32>
    %640 = vector.multi_reduction <add>, %639, %cst_530 [0] : vector<256x8xf32> to vector<8xf32>
    %641 = vector.shape_cast %640 : vector<8xf32> to vector<1x8xf32>
    %cst_531 = arith.constant 2.560000e+02 : f32
    %642 = vector.broadcast %cst_531 : f32 to vector<1x8xf32>
    %643 = arith.divf %641, %642 : vector<1x8xf32>
    %644 = arith.mulf %638, %638 : vector<1x8xf32>
    %645 = arith.subf %643, %644 : vector<1x8xf32>
    %cst_532 = arith.constant 0.000000e+00 : f32
    %646 = vector.broadcast %cst_532 : f32 to vector<1x8xf32>
    %647 = arith.maximumf %645, %646 : vector<1x8xf32>
    %648 = vector.broadcast %638 : vector<1x8xf32> to vector<256x8xf32>
    %649 = arith.subf %634, %648 : vector<256x8xf32>
    %cst_533 = arith.constant 9.99999993E-9 : f32
    %650 = vector.broadcast %cst_533 : f32 to vector<1x8xf32>
    %651 = arith.addf %647, %650 : vector<1x8xf32>
    %652 = math.rsqrt %651 : vector<1x8xf32>
    %653 = vector.broadcast %652 : vector<1x8xf32> to vector<256x8xf32>
    %654 = arith.mulf %649, %653 : vector<256x8xf32>
    %655 = vector.broadcast %446 : vector<1x8xf32> to vector<256x8xf32>
    %656 = arith.mulf %655, %654 : vector<256x8xf32>
    %657 = vector.broadcast %447 : vector<1x8xf32> to vector<256x8xf32>
    %658 = arith.addf %656, %657 : vector<256x8xf32>
    %c0_534 = arith.constant 0 : index
    %c0_535 = arith.constant 0 : index
    %659 = vector.load %arg43[%c0_534, %c0_535] : memref<3x8xbf16, #tpu.memory_space<vmem>>, vector<3x8xbf16>
    %660 = arith.truncf %658 : vector<256x8xf32> to vector<256x8xbf16>
    %cst_536 = arith.constant dense<0.000000e+00> : vector<3x256xf32>
    %661 = tpu.matmul %659, %660, %cst_536 {dimension_numbers = #tpu.dot_dimension_numbers<[1], [1], [0], [0], [0, 0, 1, 0], [], []>} : vector<3x8xbf16>, vector<256x8xbf16>, vector<3x256xf32> -> vector<3x256xf32>
    %c0_537 = arith.constant 0 : index
    %c0_538 = arith.constant 0 : index
    %662 = vector.load %arg44[%c0_537, %c0_538] : memref<3x1xf32, #tpu.memory_space<vmem>>, vector<3x1xf32>
    %663 = vector.broadcast %662 : vector<3x1xf32> to vector<3x256xf32>
    %664 = arith.addf %661, %663 : vector<3x256xf32>
    %c0_539 = arith.constant 0 : index
    %c0_540 = arith.constant 0 : index
    %c0_541 = arith.constant 0 : index
    %665 = vector.load %arg45[%c0_539, %c0_540, %c0_541] : memref<1x3x256xf32, #tpu.memory_space<vmem>>, vector<1x3x256xf32>
    %666 = vector.shape_cast %665 : vector<1x3x256xf32> to vector<3x256xf32>
    %667 = vector.shape_cast %664 : vector<3x256xf32> to vector<1x3x256xf32>
    tpu.vector_store %arg45[%c0_539, %c0_540, %c0_541], %667 {strides = array<i32>} : memref<1x3x256xf32, #tpu.memory_space<vmem>>, vector<1x3x256xf32>,
    return
  }
  func.func @transform_0(%arg0: i32) -> (i32, i32, i32) {
    %c0_i32 = arith.constant 0 : i32
    %c0_i32_0 = arith.constant 0 : i32
    %c0_i32_1 = arith.constant 0 : i32
    return %arg0, %c0_i32, %c0_i32_0 : i32, i32, i32
  }
  func.func @transform_1(%arg0: i32) -> (i32, i32) {
    %c0_i32 = arith.constant 0 : i32
    %c0_i32_0 = arith.constant 0 : i32
    %c0_i32_1 = arith.constant 0 : i32
    return %c0_i32, %c0_i32_0 : i32, i32
  }
  func.func @transform_2(%arg0: i32) -> (i32, i32) {
    %c0_i32 = arith.constant 0 : i32
    %c0_i32_0 = arith.constant 0 : i32
    %c0_i32_1 = arith.constant 0 : i32
    return %c0_i32, %c0_i32_0 : i32, i32
  }
  func.func @transform_3(%arg0: i32) -> (i32, i32) {
    %c0_i32 = arith.constant 0 : i32
    %c0_i32_0 = arith.constant 0 : i32
    %c0_i32_1 = arith.constant 0 : i32
    return %c0_i32, %c0_i32_0 : i32, i32
  }
  func.func @transform_4(%arg0: i32) -> (i32, i32) {
    %c0_i32 = arith.constant 0 : i32
    %c0_i32_0 = arith.constant 0 : i32
    %c0_i32_1 = arith.constant 0 : i32
    return %c0_i32, %c0_i32_0 : i32, i32
  }
  func.func @transform_5(%arg0: i32) -> (i32, i32) {
    %c0_i32 = arith.constant 0 : i32
    %c0_i32_0 = arith.constant 0 : i32
    %c0_i32_1 = arith.constant 0 : i32
    return %c0_i32, %c0_i32_0 : i32, i32
  }
  func.func @transform_6(%arg0: i32) -> (i32, i32) {
    %c0_i32 = arith.constant 0 : i32
    %c0_i32_0 = arith.constant 0 : i32
    %c0_i32_1 = arith.constant 0 : i32
    return %c0_i32, %c0_i32_0 : i32, i32
  }
  func.func @transform_7(%arg0: i32) -> (i32, i32) {
    %c0_i32 = arith.constant 0 : i32
    %c0_i32_0 = arith.constant 0 : i32
    %c0_i32_1 = arith.constant 0 : i32
    return %c0_i32, %c0_i32_0 : i32, i32
  }
  func.func @transform_8(%arg0: i32) -> (i32, i32) {
    %c0_i32 = arith.constant 0 : i32
    %c0_i32_0 = arith.constant 0 : i32
    %c0_i32_1 = arith.constant 0 : i32
    return %c0_i32, %c0_i32_0 : i32, i32
  }
  func.func @transform_9(%arg0: i32) -> (i32, i32) {
    %c0_i32 = arith.constant 0 : i32
    %c0_i32_0 = arith.constant 0 : i32
    %c0_i32_1 = arith.constant 0 : i32
    return %c0_i32, %c0_i32_0 : i32, i32
  }
  func.func @transform_10(%arg0: i32) -> (i32, i32) {
    %c0_i32 = arith.constant 0 : i32
    %c0_i32_0 = arith.constant 0 : i32
    %c0_i32_1 = arith.constant 0 : i32
    return %c0_i32, %c0_i32_0 : i32, i32
  }
  func.func @transform_11(%arg0: i32) -> (i32, i32) {
    %c0_i32 = arith.constant 0 : i32
    %c0_i32_0 = arith.constant 0 : i32
    %c0_i32_1 = arith.constant 0 : i32
    return %c0_i32, %c0_i32_0 : i32, i32
  }
  func.func @transform_12(%arg0: i32) -> (i32, i32) {
    %c0_i32 = arith.constant 0 : i32
    %c0_i32_0 = arith.constant 0 : i32
    %c0_i32_1 = arith.constant 0 : i32
    return %c0_i32, %c0_i32_0 : i32, i32
  }
  func.func @transform_13(%arg0: i32) -> (i32, i32) {
    %c0_i32 = arith.constant 0 : i32
    %c0_i32_0 = arith.constant 0 : i32
    %c0_i32_1 = arith.constant 0 : i32
    return %c0_i32, %c0_i32_0 : i32, i32
  }
  func.func @transform_14(%arg0: i32) -> (i32, i32) {
    %c0_i32 = arith.constant 0 : i32
    %c0_i32_0 = arith.constant 0 : i32
    %c0_i32_1 = arith.constant 0 : i32
    return %c0_i32, %c0_i32_0 : i32, i32
  }
  func.func @transform_15(%arg0: i32) -> (i32, i32) {
    %c0_i32 = arith.constant 0 : i32
    %c0_i32_0 = arith.constant 0 : i32
    %c0_i32_1 = arith.constant 0 : i32
    return %c0_i32, %c0_i32_0 : i32, i32
  }
  func.func @transform_16(%arg0: i32) -> (i32, i32) {
    %c0_i32 = arith.constant 0 : i32
    %c0_i32_0 = arith.constant 0 : i32
    %c0_i32_1 = arith.constant 0 : i32
    return %c0_i32, %c0_i32_0 : i32, i32
  }
  func.func @transform_17(%arg0: i32) -> (i32, i32) {
    %c0_i32 = arith.constant 0 : i32
    %c0_i32_0 = arith.constant 0 : i32
    %c0_i32_1 = arith.constant 0 : i32
    return %c0_i32, %c0_i32_0 : i32, i32
  }
  func.func @transform_18(%arg0: i32) -> (i32, i32, i32) {
    %c0_i32 = arith.constant 0 : i32
    %c0_i32_0 = arith.constant 0 : i32
    %c0_i32_1 = arith.constant 0 : i32
    %c0_i32_2 = arith.constant 0 : i32
    return %c0_i32, %c0_i32_0, %c0_i32_1 : i32, i32, i32
  }
  func.func @transform_19(%arg0: i32) -> (i32, i32) {
    %c0_i32 = arith.constant 0 : i32
    %c0_i32_0 = arith.constant 0 : i32
    %c0_i32_1 = arith.constant 0 : i32
    return %c0_i32, %c0_i32_0 : i32, i32
  }
  func.func @transform_20(%arg0: i32) -> (i32, i32) {
    %c0_i32 = arith.constant 0 : i32
    %c0_i32_0 = arith.constant 0 : i32
    %c0_i32_1 = arith.constant 0 : i32
    return %c0_i32, %c0_i32_0 : i32, i32
  }
  func.func @transform_21(%arg0: i32) -> (i32, i32) {
    %c0_i32 = arith.constant 0 : i32
    %c0_i32_0 = arith.constant 0 : i32
    %c0_i32_1 = arith.constant 0 : i32
    return %c0_i32, %c0_i32_0 : i32, i32
  }
  func.func @transform_22(%arg0: i32) -> (i32, i32) {
    %c0_i32 = arith.constant 0 : i32
    %c0_i32_0 = arith.constant 0 : i32
    %c0_i32_1 = arith.constant 0 : i32
    return %c0_i32, %c0_i32_0 : i32, i32
  }
  func.func @transform_23(%arg0: i32) -> (i32, i32) {
    %c0_i32 = arith.constant 0 : i32
    %c0_i32_0 = arith.constant 0 : i32
    %c0_i32_1 = arith.constant 0 : i32
    return %c0_i32, %c0_i32_0 : i32, i32
  }
  func.func @transform_24(%arg0: i32) -> (i32, i32) {
    %c0_i32 = arith.constant 0 : i32
    %c0_i32_0 = arith.constant 0 : i32
    %c0_i32_1 = arith.constant 0 : i32
    return %c0_i32, %c0_i32_0 : i32, i32
  }
  func.func @transform_25(%arg0: i32) -> (i32, i32, i32) {
    %c0_i32 = arith.constant 0 : i32
    %c0_i32_0 = arith.constant 0 : i32
    %c0_i32_1 = arith.constant 0 : i32
    %c0_i32_2 = arith.constant 0 : i32
    return %c0_i32, %c0_i32_0, %c0_i32_1 : i32, i32, i32
  }
  func.func @transform_26(%arg0: i32) -> (i32, i32) {
    %c0_i32 = arith.constant 0 : i32
    %c0_i32_0 = arith.constant 0 : i32
    %c0_i32_1 = arith.constant 0 : i32
    return %c0_i32, %c0_i32_0 : i32, i32
  }
  func.func @transform_27(%arg0: i32) -> (i32, i32, i32) {
    %c0_i32 = arith.constant 0 : i32
    %c0_i32_0 = arith.constant 0 : i32
    %c0_i32_1 = arith.constant 0 : i32
    %c0_i32_2 = arith.constant 0 : i32
    return %c0_i32, %c0_i32_0, %c0_i32_1 : i32, i32, i32
  }
  func.func @transform_28(%arg0: i32) -> (i32, i32) {
    %c0_i32 = arith.constant 0 : i32
    %c0_i32_0 = arith.constant 0 : i32
    %c0_i32_1 = arith.constant 0 : i32
    return %c0_i32, %c0_i32_0 : i32, i32
  }
  func.func @transform_29(%arg0: i32) -> (i32, i32) {
    %c0_i32 = arith.constant 0 : i32
    %c0_i32_0 = arith.constant 0 : i32
    %c0_i32_1 = arith.constant 0 : i32
    return %c0_i32, %c0_i32_0 : i32, i32
  }
  func.func @transform_30(%arg0: i32) -> (i32, i32) {
    %c0_i32 = arith.constant 0 : i32
    %c0_i32_0 = arith.constant 0 : i32
    %c0_i32_1 = arith.constant 0 : i32
    return %c0_i32, %c0_i32_0 : i32, i32
  }
  func.func @transform_31(%arg0: i32) -> (i32, i32) {
    %c0_i32 = arith.constant 0 : i32
    %c0_i32_0 = arith.constant 0 : i32
    %c0_i32_1 = arith.constant 0 : i32
    return %c0_i32, %c0_i32_0 : i32, i32
  }
  func.func @transform_32(%arg0: i32) -> (i32, i32) {
    %c0_i32 = arith.constant 0 : i32
    %c0_i32_0 = arith.constant 0 : i32
    %c0_i32_1 = arith.constant 0 : i32
    return %c0_i32, %c0_i32_0 : i32, i32
  }
  func.func @transform_33(%arg0: i32) -> (i32, i32) {
    %c0_i32 = arith.constant 0 : i32
    %c0_i32_0 = arith.constant 0 : i32
    %c0_i32_1 = arith.constant 0 : i32
    return %c0_i32, %c0_i32_0 : i32, i32
  }
  func.func @transform_34(%arg0: i32) -> (i32, i32, i32) {
    %c0_i32 = arith.constant 0 : i32
    %c0_i32_0 = arith.constant 0 : i32
    %c0_i32_1 = arith.constant 0 : i32
    %c0_i32_2 = arith.constant 0 : i32
    return %c0_i32, %c0_i32_0, %c0_i32_1 : i32, i32, i32
  }
  func.func @transform_35(%arg0: i32) -> (i32, i32) {
    %c0_i32 = arith.constant 0 : i32
    %c0_i32_0 = arith.constant 0 : i32
    %c0_i32_1 = arith.constant 0 : i32
    return %c0_i32, %c0_i32_0 : i32, i32
  }
  func.func @transform_36(%arg0: i32) -> (i32, i32, i32) {
    %c0_i32 = arith.constant 0 : i32
    %c0_i32_0 = arith.constant 0 : i32
    %c0_i32_1 = arith.constant 0 : i32
    %c0_i32_2 = arith.constant 0 : i32
    return %c0_i32, %c0_i32_0, %c0_i32_1 : i32, i32, i32
  }
  func.func @transform_37(%arg0: i32) -> (i32, i32) {
    %c0_i32 = arith.constant 0 : i32
    %c0_i32_0 = arith.constant 0 : i32
    %c0_i32_1 = arith.constant 0 : i32
    return %c0_i32, %c0_i32_0 : i32, i32
  }
  func.func @transform_38(%arg0: i32) -> (i32, i32) {
    %c0_i32 = arith.constant 0 : i32
    %c0_i32_0 = arith.constant 0 : i32
    %c0_i32_1 = arith.constant 0 : i32
    return %c0_i32, %c0_i32_0 : i32, i32
  }
  func.func @transform_39(%arg0: i32) -> (i32, i32) {
    %c0_i32 = arith.constant 0 : i32
    %c0_i32_0 = arith.constant 0 : i32
    %c0_i32_1 = arith.constant 0 : i32
    return %c0_i32, %c0_i32_0 : i32, i32
  }
  func.func @transform_40(%arg0: i32) -> (i32, i32) {
    %c0_i32 = arith.constant 0 : i32
    %c0_i32_0 = arith.constant 0 : i32
    %c0_i32_1 = arith.constant 0 : i32
    return %c0_i32, %c0_i32_0 : i32, i32
  }
  func.func @transform_41(%arg0: i32) -> (i32, i32) {
    %c0_i32 = arith.constant 0 : i32
    %c0_i32_0 = arith.constant 0 : i32
    %c0_i32_1 = arith.constant 0 : i32
    return %c0_i32, %c0_i32_0 : i32, i32
  }
  func.func @transform_42(%arg0: i32) -> (i32, i32) {
    %c0_i32 = arith.constant 0 : i32
    %c0_i32_0 = arith.constant 0 : i32
    %c0_i32_1 = arith.constant 0 : i32
    return %c0_i32, %c0_i32_0 : i32, i32
  }
  func.func @transform_43(%arg0: i32) -> (i32, i32) {
    %c0_i32 = arith.constant 0 : i32
    %c0_i32_0 = arith.constant 0 : i32
    %c0_i32_1 = arith.constant 0 : i32
    return %c0_i32, %c0_i32_0 : i32, i32
  }
  func.func @transform_44(%arg0: i32) -> (i32, i32, i32) {
    %c0_i32 = arith.constant 0 : i32
    %c0_i32_0 = arith.constant 0 : i32
    %c0_i32_1 = arith.constant 0 : i32
    return %arg0, %c0_i32, %c0_i32_0 : i32, i32, i32
  }
}

</mosaic_0001>

<bundles_post_ra>
// kernel: generator_forward.1
= control target key start
LH: loop header
LB: loop body
LE: loop exit
PB: predicated region body
PF: predicated region fallthrough
CT: control target
= control target key end

     0   :  { %s14658_s6 = smov 1   ;;  %s14659_s10 = smov 2   ;;  %s18988_s0 = inlined_call_operand.smem [shape: u32[45], index: -1, kind: input, shape index: {}] }
   0x1   :  { %s14719_s5 = sld [smem:[%s18988_s0]]   ;;  %s14660_s14 = smov 3  }
   0x2   :  { %s14724_s9 = sld [smem:[%s18988_s0 + %s14658_s6]]   ;;  %s14661_s18 = smov 4  }
   0x3   :  { %s14729_s13 = sld [smem:[%s18988_s0 + %s14659_s10]]   ;;  %s14662_s22 = smov 5  }
   0x4   :  { %s14734_s17 = sld [smem:[%s18988_s0 + %s14660_s14]]   ;;  %s14663_s26 = smov 6  }
   0x5   :  { %s14739_s21 = sld [smem:[%s18988_s0 + %s14661_s18]]   ;;  %s14664_s30 = smov 7  }
   0x6   :  { %s14744_s25 = sld [smem:[%s18988_s0 + %s14662_s22]]   ;;  %s14665_s4 = smov 8  }
   0x7   :  { %s14749_s29 = sld [smem:[%s18988_s0 + %s14663_s26]]   ;;  %s14666_s10 = smov 9  }
   0x8   :  { %s14754_s3 = sld [smem:[%s18988_s0 + %s14664_s30]]   ;;  %s14667_s15 = smov 10  }
   0x9   :  { %s14759_s8 = sld [smem:[%s18988_s0 + %s14665_s4]]   ;;  %s14668_s20 = smov 11  }
   0xa   :  { %s14764_s14 = sld [smem:[%s18988_s0 + %s14666_s10]]   ;;  %s14669_s26 = smov 12  }
   0xb   :  { %s14769_s19 = sld [smem:[%s18988_s0 + %s14667_s15]]   ;;  %s14670_s1 = smov 13  }
   0xc   :  { %s14774_s24 = sld [smem:[%s18988_s0 + %s14668_s20]]   ;;  %s14671_s7 = smov 14  }
   0xd   :  { %s14779_s30 = sld [smem:[%s18988_s0 + %s14669_s26]]   ;;  %s14672_s15 = smov 15  }
   0xe   :  { %19033 = sst [smem:[#allocation7_spill]] %s14754_s3  ;;  %s14673_s22 = smov 16  }
   0xf   :  { %s14784_s6 = sld [smem:[%s18988_s0 + %s14670_s1]]   ;;  %s14674_s28 = smov 17  }
  0x10   :  { %s14789_s12 = sld [smem:[%s18988_s0 + %s14671_s7]]   ;;  %s14675_s7 = smov 18  }
  0x11   :  { %s14794_s20 = sld [smem:[%s18988_s0 + %s14672_s15]]   ;;  %s14676_s15 = smov 19  }
  0x12   :  { %s14799_s27 = sld [smem:[%s18988_s0 + %s14673_s22]]   ;;  %s14677_s22 = smov 20  }
  0x13   :  { %s14804_s4 = sld [smem:[%s18988_s0 + %s14674_s28]]   ;;  %s14678_s28 = smov 21  }
  0x16   :  { %19034 = sst [smem:[#allocation8_spill]] %s14789_s12 }
  0x17   :  { %19035 = sst [smem:[#allocation9_spill]] %s14794_s20 }
  0x18   :  { %19036 = sst [smem:[#allocation10_spill]] %s14799_s27 }
  0x19   :  { %19037 = sst [smem:[#allocation11_spill]] %s14804_s4 }
  0x1a   :  { %s14809_s12 = sld [smem:[%s18988_s0 + %s14675_s7]]   ;;  %s14679_s7 = smov 22  }
  0x1b   :  { %s14814_s20 = sld [smem:[%s18988_s0 + %s14676_s15]]   ;;  %s14680_s15 = smov 23  }
  0x1c   :  { %s14819_s27 = sld [smem:[%s18988_s0 + %s14677_s22]]   ;;  %s14681_s22 = smov 24  }
  0x1d   :  { %s14824_s4 = sld [smem:[%s18988_s0 + %s14678_s28]]   ;;  %s14682_s28 = smov 25  }
  0x20   :  { %19038 = sst [smem:[#allocation12_spill]] %s14809_s12 }
  0x21   :  { %19039 = sst [smem:[#allocation13_spill]] %s14814_s20 }
  0x22   :  { %19040 = sst [smem:[#allocation14_spill]] %s14819_s27 }
  0x23   :  { %19041 = sst [smem:[#allocation15_spill]] %s14824_s4 }
  0x24   :  { %s14829_s12 = sld [smem:[%s18988_s0 + %s14679_s7]]   ;;  %s14683_s7 = smov 26  }
  0x25   :  { %s14834_s20 = sld [smem:[%s18988_s0 + %s14680_s15]]   ;;  %s14684_s15 = smov 27  }
  0x26   :  { %s14839_s27 = sld [smem:[%s18988_s0 + %s14681_s22]]   ;;  %s14685_s22 = smov 28  }
  0x27   :  { %s14844_s4 = sld [smem:[%s18988_s0 + %s14682_s28]]   ;;  %s14686_s28 = smov 29  }
  0x2a   :  { %19042 = sst [smem:[#allocation16_spill]] %s14829_s12 }
  0x2b   :  { %19043 = sst [smem:[#allocation17_spill]] %s14834_s20 }
  0x2c   :  { %19044 = sst [smem:[#allocation18_spill]] %s14839_s27 }
  0x2d   :  { %19045 = sst [smem:[#allocation19_spill]] %s14844_s4 }
  0x2e   :  { %s14849_s12 = sld [smem:[%s18988_s0 + %s14683_s7]]   ;;  %s14687_s7 = smov 30  }
  0x2f   :  { %s14854_s20 = sld [smem:[%s18988_s0 + %s14684_s15]]   ;;  %s14688_s15 = smov 31  }
  0x30   :  { %s14859_s27 = sld [smem:[%s18988_s0 + %s14685_s22]]   ;;  %s14689_s22 = smov 32  }
  0x31   :  { %s14864_s4 = sld [smem:[%s18988_s0 + %s14686_s28]]   ;;  %s14690_s28 = smov 33  }
  0x34   :  { %19046 = sst [smem:[#allocation20_spill]] %s14849_s12 }
  0x35   :  { %19047 = sst [smem:[#allocation21_spill]] %s14854_s20 }
  0x36   :  { %19048 = sst [smem:[#allocation22_spill]] %s14859_s27 }
  0x37   :  { %19049 = sst [smem:[#allocation23_spill]] %s14864_s4 }
  0x38   :  { %s14869_s12 = sld [smem:[%s18988_s0 + %s14687_s7]]   ;;  %s14691_s7 = smov 34  }
  0x39   :  { %s14874_s20 = sld [smem:[%s18988_s0 + %s14688_s15]]   ;;  %s14692_s15 = smov 35  }
  0x3a   :  { %s14879_s27 = sld [smem:[%s18988_s0 + %s14689_s22]]   ;;  %s14693_s22 = smov 36  }
  0x3b   :  { %s14884_s4 = sld [smem:[%s18988_s0 + %s14690_s28]]   ;;  %s14694_s28 = smov 37  }
  0x3e   :  { %19050 = sst [smem:[#allocation24_spill]] %s14869_s12 }
  0x3f   :  { %19051 = sst [smem:[#allocation25_spill]] %s14874_s20 }
  0x40   :  { %19052 = sst [smem:[#allocation26_spill]] %s14879_s27 }
  0x41   :  { %19053 = sst [smem:[#allocation27_spill]] %s14884_s4 }
  0x42   :  { %s14889_s12 = sld [smem:[%s18988_s0 + %s14691_s7]]   ;;  %s14695_s7 = smov 38  }
  0x43   :  { %s14894_s20 = sld [smem:[%s18988_s0 + %s14692_s15]]   ;;  %s14696_s15 = smov 39  }
  0x44   :  { %s14899_s27 = sld [smem:[%s18988_s0 + %s14693_s22]]   ;;  %s14697_s22 = smov 40  }
  0x45   :  { %s14904_s4 = sld [smem:[%s18988_s0 + %s14694_s28]]   ;;  %s14698_s28 = smov 41  }
  0x48   :  { %19054 = sst [smem:[#allocation28_spill]] %s14889_s12 }
  0x49   :  { %19055 = sst [smem:[#allocation29_spill]] %s14894_s20 }
  0x4a   :  { %19056 = sst [smem:[#allocation30_spill]] %s14899_s27 }
  0x4b   :  { %19057 = sst [smem:[#allocation31_spill]] %s14904_s4 }
  0x4c   :  { %s14909_s12 = sld [smem:[%s18988_s0 + %s14695_s7]]   ;;  %s14699_s7 = smov 42  }
  0x4d   :  { %s14914_s20 = sld [smem:[%s18988_s0 + %s14696_s15]]   ;;  %s14700_s15 = smov 43  }
  0x4e   :  { %s14919_s27 = sld [smem:[%s18988_s0 + %s14697_s22]]   ;;  %s14701_s22 = smov 44  }
  0x4f   :  { %s14924_s4 = sld [smem:[%s18988_s0 + %s14698_s28]]   ;;  %s14941_s28 = smov 0  }
  0x52   :  { %19058 = sst [smem:[#allocation32_spill]] %s14909_s12 }
  0x53   :  { %19059 = sst [smem:[#allocation33_spill]] %s14914_s20 }
  0x54   :  { %19060 = sst [smem:[#allocation34_spill]] %s14919_s27 }
  0x55   :  { %19061 = sst [smem:[#allocation35_spill]] %s14924_s4 }
  0x56   :  { %s14929_s12 = sld [smem:[%s18988_s0 + %s14699_s7]]  }
  0x57   :  { %s14934_s20 = sld [smem:[%s18988_s0 + %s14700_s15]]  }
  0x58   :  { %s14939_s27 = sld [smem:[%s18988_s0 + %s14701_s22]]  }
  0x59 LB: > { %s19062_s3 = sld [smem:[#allocation7_spill]]  ;;  %s12297_s1 = sadd.s32 4294967295, %s14656_s28   ;;  %s14656_s28 = sphi %s14941_s28, %s99_s28  }
  0x5a   : > { %p12301_p0 = scmp.ge.s32.totalorder %s14656_s28, 1  ;;  %p1205_p1 = scmp.lt.s32.totalorder %s14656_s28, 3 }
  0x5c   : > { %p1206_p2 = pnand %p12301_p0, %p1205_p1 }
  0x5e   : > { %1209 = sbr.rel (%p1206_p2) target bundleno = 5759 (0x167f), region = 196 }
  0x63   : > { %p1309_p3 = scmp.lt.s32.totalorder %s12297_s1, 1  ;;  %vm1320_vm0 = vcmask 253952   ;;  %v14522_v3 = vld [vmem:[%s14724_s9 + $0x8] sm:$0xff]   ;;  %v14523_v4 = vld [vmem:[%s14724_s9] sm:$0xff]   ;;  %v19010_v5 = vmov 0.0   ;;  %vm14703_vm1 = vmmov 0  }
  0x64   : > { %13421 = vmatprep.subr.bf16.mxu0 %v19010_v5  ;;  %1965 = vst.msk [vmem:[#allocation2 + $0x8] sm:$0x1] %vm1320_vm0, %v19010_v5  ;;  %1966 = vst.msk [vmem:[#allocation2 + $0x10] sm:$0x1] %vm1320_vm0, %v19010_v5  ;;  %13425 = vmatprep.mubr.msk.bf16.mxu0 %vm14703_vm1, %v19010_v5  ;;  %vm1347_vm2 = vcmask 261120   ;;  %v14524_v12 = vld [vmem:[%s14734_s17 + $0x8] sm:$0xff]  }
  0x65   : > { %s19242_s1 = smov (!%p1309_p3, %s12297_s1), 1  ;;  %1967 = vst.msk [vmem:[#allocation2 + $0x18] sm:$0x1] %vm1320_vm0, %v19010_v5  ;;  %1968 = vst.msk [vmem:[#allocation2 + $0x20] sm:$0x1] %vm1320_vm0, %v19010_v5  ;;  %13422 = vmatpush3.bf16.msra.mxu0 %v14522_v3  ;;  %13429 = vmatprep.subr.bf16.mxu1 %v19010_v5  ;;  %v14525_v13 = vld [vmem:[%s14734_s17] sm:$0xff]  }
  0x66   : > { %s1311_s0 = scalar_lea.vmem %s14719_s5, %s19242_s1  ;;  %1969 = vst.msk [vmem:[#allocation2 + $0xd] sm:$0x1] %vm1320_vm0, %v19010_v5  ;;  %1970 = vst.msk [vmem:[#allocation2 + $0x15] sm:$0x1] %vm1320_vm0, %v19010_v5  ;;  %13423 = vmatprep.subr.bf16.mxu0 %v19010_v5  ;;  %13433 = vmatprep.mubr.msk.bf16.mxu1 %vm14703_vm1, %v19010_v5  ;;  %v1334_v14 = vld [vmem:[%s14729_s13] sm:$0x1] }
  0x67   : > { %v1318_v0 = vld [vmem:[%s1311_s0] sm:$0x1]  ;;  %1971 = vst.msk [vmem:[#allocation2 + $0x1d] sm:$0x1] %vm1320_vm0, %v19010_v5  ;;  %1972 = vst.msk [vmem:[#allocation2 + $0x25] sm:$0x1] %vm1320_vm0, %v19010_v5  ;;  %13430 = vmatpush3.bf16.msra.mxu1 %v14524_v12 }
  0x68   : > { %v1319_v1 = vmul.f32 %v1318_v0, %v1318_v0  ;;  %2896 = vst.msk [vmem:[#allocation3 + $0x10] sm:$0x1] %vm1320_vm0, %v19010_v5  ;;  %2897 = vst.msk [vmem:[#allocation3 + $0x20] sm:$0x1] %vm1320_vm0, %v19010_v5  ;;  %13431 = vmatprep.subr.bf16.mxu1 %v19010_v5  ;;  %v14526_v23 = vld [vmem:[%s14744_s25 + $0x8] sm:$0xff]   ;;  %v14527_v24 = vld [vmem:[%s14744_s25] sm:$0xff]  }
  0x69   : > { %2898 = vst.msk [vmem:[#allocation3 + $0x30] sm:$0x1] %vm1320_vm0, %v19010_v5  ;;  %2899 = vst.msk [vmem:[#allocation3 + $0x40] sm:$0x1] %vm1320_vm0, %v19010_v5  ;;  %13424 = vmatpush3.bf16.msra.mxu0 %v14523_v4  ;;  %v1398_v25 = vld [vmem:[%s14739_s21] sm:$0x1] }
  0x6a   : > { %v1321_v2 = vsel %vm1320_vm0, %v1319_v1, 0.0  ;;  %2900 = vst.msk [vmem:[#allocation3 + $0x50] sm:$0x1] %vm1320_vm0, %v19010_v5  ;;  %2901 = vst.msk [vmem:[#allocation3 + $0x60] sm:$0x1] %vm1320_vm0, %v19010_v5  ;;  %13437 = vmatprep.subr.bf16.mxu0 %v19010_v5  ;;  %v14528_v34 = vld [vmem:[%s19062_s3 + $0x8] sm:$0xff]  }
  0x6b   : > { %1322 = vadd.xlane.f32.xlu0 %v1321_v2  ;;  %2902 = vst.msk [vmem:[#allocation3 + $0x70] sm:$0x1] %vm1320_vm0, %v19010_v5  ;;  %2903 = vst.msk [vmem:[#allocation3 + $0x80] sm:$0x1] %vm1320_vm0, %v19010_v5  ;;  %13432 = vmatpush3.bf16.msra.mxu1 %v14525_v13  ;;  %v14529_v35 = vld [vmem:[%s19062_s3] sm:$0xff]   ;;  %v14530_v45 = vld [vmem:[%s14764_s14 + $0x8] sm:$0xff]  }
  0x6c   : > { %2904 = vst.msk [vmem:[#allocation3 + $0x19] sm:$0x1] %vm1320_vm0, %v19010_v5  ;;  %2905 = vst.msk [vmem:[#allocation3 + $0x29] sm:$0x1] %vm1320_vm0, %v19010_v5  ;;  %13445 = vmatprep.subr.bf16.mxu1 %v19010_v5  ;;  %v1461_v36 = vld [vmem:[%s14749_s29] sm:$0x1] }
  0x6d   : > { %2906 = vst.msk [vmem:[#allocation3 + $0x39] sm:$0x1] %vm1320_vm0, %v19010_v5  ;;  %2907 = vst.msk [vmem:[#allocation3 + $0x49] sm:$0x1] %vm1320_vm0, %v19010_v5  ;;  %v14531_v46 = vld [vmem:[%s14764_s14] sm:$0xff]   ;;  %v14532_v56 = vld [vmem:[%s14774_s24 + $0x8] sm:$0xff]  }
  0x6e   : > { %2908 = vst.msk [vmem:[#allocation3 + $0x59] sm:$0x1] %vm1320_vm0, %v19010_v5  ;;  %2909 = vst.msk [vmem:[#allocation3 + $0x69] sm:$0x1] %vm1320_vm0, %v19010_v5  ;;  %v1524_v47 = vld [vmem:[%s14759_s8] sm:$0x1] }
  0x6f   : > { %2910 = vst.msk [vmem:[#allocation3 + $0x79] sm:$0x1] %vm1320_vm0, %v19010_v5  ;;  %2911 = vst.msk [vmem:[#allocation3 + $0x89] sm:$0x1] %vm1320_vm0, %v19010_v5  ;;  %v14533_v57 = vld [vmem:[%s14774_s24] sm:$0xff]   ;;  %v14534_v3 = vld [vmem:[%s14784_s6 + $0x8] sm:$0xff]  }
  0x70   : > { %2890 = vst.msk [vmem:[#allocation3] sm:$0xff] %vm1347_vm2, %v19010_v5  ;;  %2894 = vst.msk [vmem:[#allocation3 + $0x90] sm:$0xff] %vm1347_vm2, %v19010_v5  ;;  %v1587_v58 = vld [vmem:[%s14769_s19] sm:$0x1]  ;;  %s19063_s2 = sld [smem:[#allocation9_spill]]  ;;  %vm1961_vm3 = vcmask 259072  }
  0x71   : > { %v14535_v4 = vld [vmem:[%s14784_s6] sm:$0xff]   ;;  %s19064_s7 = sld [smem:[#allocation8_spill]]  ;;  %1962 = vst.msk [vmem:[#allocation2] sm:$0x3f] %vm1961_vm3, %v19010_v5  ;;  %1964 = vst.msk [vmem:[#allocation2 + $0x28] sm:$0x3f] %vm1961_vm3, %v19010_v5 }
  0x72   : > { %s19065_s10 = sld [smem:[#allocation16_spill]]  ;;  %s19007_s23 = smov 96   ;;  %vm1956_vm4 = vcmask 257024   ;;  %vm2803_vm5 = vcmask 130048   ;;  %vm2891_vm6 = vcmask 254976   ;;  %vm4077_vm7 = vcmask 123904  }
  0x73   : > { %s19066_s11 = sld [smem:[#allocation10_spill]]  ;;  %4076 = vst.msk [vmem:[#allocation4] sm:$0xff] %vm2803_vm5, %v19010_v5  ;;  %4080 = vst.msk [vmem:[#allocation4 + $0x90] sm:$0xff] %vm2803_vm5, %v19010_v5  ;;  %vm4082_vm8 = vcmask 122880   ;;  %vm5394_vm9 = vcmask 523264   ;;  %vm8461_vm10 = vcmask 64512  }
  0x74   : > { %s19067_s15 = sld [smem:[#allocation12_spill]]  ;;  %5637 = vst.msk [vmem:[#allocation5] sm:$0xff] %vm2803_vm5, %v19010_v5  ;;  %5638 = vst.msk [vmem:[#allocation5 + $0x8] sm:$0xff] %vm2803_vm5, %v19010_v5  ;;  %vm8997_vm11 = vcmask 1043456   ;;  %vm8811_vm12 = vcmask 58368   ;;  %vm8817_vm13 = vcmask 57344  }
  0x75   : > { %s19068_s16 = sld [smem:[#allocation17_spill]]  ;;  %5641 = vst.msk [vmem:[#allocation5 + $0x198] sm:$0xff] %vm2803_vm5, %v19010_v5  ;;  %5642 = vst.msk [vmem:[#allocation5 + $0x1a0] sm:$0xff] %vm2803_vm5, %v19010_v5 }
  0x76   : > { %s19069_s18 = sld [smem:[#allocation11_spill]]  ;;  %2892 = vst.msk [vmem:[#allocation3 + $0x8] sm:$0x3] %vm2891_vm6, %v19010_v5  ;;  %2895 = vst.msk [vmem:[#allocation3 + $0x98] sm:$0x3] %vm2891_vm6, %v19010_v5 }
  0x77   : > { %s19071_s22 = sld [smem:[#allocation14_spill]]  ;;  %4078 = vst.msk [vmem:[#allocation4 + $0x8] sm:$0x3] %vm4077_vm7, %v19010_v5  ;;  %4081 = vst.msk [vmem:[#allocation4 + $0x98] sm:$0x3] %vm4077_vm7, %v19010_v5 }
  0x78   : > { %s19072_s26 = sld [smem:[#allocation25_spill]]  ;;  %5639 = vst.msk [vmem:[#allocation5 + $0x10] sm:$0x3] %vm4077_vm7, %v19010_v5  ;;  %5643 = vst.msk [vmem:[#allocation5 + $0x1a8] sm:$0x3] %vm4077_vm7, %v19010_v5 }
  0x79   : > { %s19073_s0 = sld [smem:[#allocation13_spill]]  ;;  %4083 = vst.msk [vmem:[#allocation4 + $0x10] sm:$0x1] %vm4082_vm8, %v19010_v5  ;;  %4084 = vst.msk [vmem:[#allocation4 + $0x20] sm:$0x1] %vm4082_vm8, %v19010_v5 }
  0x7a   : > { %4085 = vst.msk [vmem:[#allocation4 + $0x30] sm:$0x1] %vm4082_vm8, %v19010_v5  ;;  %4086 = vst.msk [vmem:[#allocation4 + $0x40] sm:$0x1] %vm4082_vm8, %v19010_v5  ;;  %s19096_s4 = sld [smem:[#allocation35_spill]] }
  0x7b   : > { %4087 = vst.msk [vmem:[#allocation4 + $0x50] sm:$0x1] %vm4082_vm8, %v19010_v5  ;;  %4088 = vst.msk [vmem:[#allocation4 + $0x60] sm:$0x1] %vm4082_vm8, %v19010_v5  ;;  %s19098_s3 = sld [smem:[#allocation28_spill]] }
  0x7c   : > { %4089 = vst.msk [vmem:[#allocation4 + $0x70] sm:$0x1] %vm4082_vm8, %v19010_v5  ;;  %4090 = vst.msk [vmem:[#allocation4 + $0x80] sm:$0x1] %vm4082_vm8, %v19010_v5 }
  0x7d   : > { %4091 = vst.msk [vmem:[#allocation4 + $0x19] sm:$0x1] %vm4082_vm8, %v19010_v5  ;;  %4092 = vst.msk [vmem:[#allocation4 + $0x29] sm:$0x1] %vm4082_vm8, %v19010_v5 }
  0x7e   : > { %4093 = vst.msk [vmem:[#allocation4 + $0x39] sm:$0x1] %vm4082_vm8, %v19010_v5  ;;  %4094 = vst.msk [vmem:[#allocation4 + $0x49] sm:$0x1] %vm4082_vm8, %v19010_v5 }
  0x7f   : > { %4095 = vst.msk [vmem:[#allocation4 + $0x59] sm:$0x1] %vm4082_vm8, %v19010_v5  ;;  %4096 = vst.msk [vmem:[#allocation4 + $0x69] sm:$0x1] %vm4082_vm8, %v19010_v5 }
  0x80   : > { %4097 = vst.msk [vmem:[#allocation4 + $0x79] sm:$0x1] %vm4082_vm8, %v19010_v5  ;;  %4098 = vst.msk [vmem:[#allocation4 + $0x89] sm:$0x1] %vm4082_vm8, %v19010_v5 }
  0x81   : > { %5644 = vst.msk [vmem:[#allocation5 + $0x18] sm:$0x1] %vm4082_vm8, %v19010_v5  ;;  %5645 = vst.msk [vmem:[#allocation5 + $0x30] sm:$0x1] %vm4082_vm8, %v19010_v5 }
  0x82   : > { %5646 = vst.msk [vmem:[#allocation5 + $0x48] sm:$0x1] %vm4082_vm8, %v19010_v5  ;;  %5647 = vst.msk [vmem:[#allocation5 + $0x60] sm:$0x1] %vm4082_vm8, %v19010_v5 }
  0x83   : > { %5648 = vst.msk [vmem:[#allocation5 + $0x78] sm:$0x1] %vm4082_vm8, %v19010_v5  ;;  %5649 = vst.msk [vmem:[#allocation5 + $0x90] sm:$0x1] %vm4082_vm8, %v19010_v5 }
  0x84   : > { %5650 = vst.msk [vmem:[#allocation5 + $0xa8] sm:$0x1] %vm4082_vm8, %v19010_v5  ;;  %5651 = vst.msk [vmem:[#allocation5 + $0xc0] sm:$0x1] %vm4082_vm8, %v19010_v5 }
  0x85   : > { %5652 = vst.msk [vmem:[#allocation5 + $0xd8] sm:$0x1] %vm4082_vm8, %v19010_v5  ;;  %5653 = vst.msk [vmem:[#allocation5 + $0xf0] sm:$0x1] %vm4082_vm8, %v19010_v5 }
  0x86   : > { %5654 = vst.msk [vmem:[#allocation5 + $0x108] sm:$0x1] %vm4082_vm8, %v19010_v5  ;;  %5655 = vst.msk [vmem:[#allocation5 + $0x120] sm:$0x1] %vm4082_vm8, %v19010_v5 }
  0x87   : > { %5656 = vst.msk [vmem:[#allocation5 + $0x138] sm:$0x1] %vm4082_vm8, %v19010_v5  ;;  %5657 = vst.msk [vmem:[#allocation5 + $0x150] sm:$0x1] %vm4082_vm8, %v19010_v5 }
  0x88   : > { %5658 = vst.msk [vmem:[#allocation5 + $0x168] sm:$0x1] %vm4082_vm8, %v19010_v5  ;;  %5659 = vst.msk [vmem:[#allocation5 + $0x180] sm:$0x1] %vm4082_vm8, %v19010_v5 }
  0x89   : > { %5660 = vst.msk [vmem:[#allocation5 + $0x29] sm:$0x1] %vm4082_vm8, %v19010_v5  ;;  %5661 = vst.msk [vmem:[#allocation5 + $0x41] sm:$0x1] %vm4082_vm8, %v19010_v5 }
  0x8a   : > { %5662 = vst.msk [vmem:[#allocation5 + $0x59] sm:$0x1] %vm4082_vm8, %v19010_v5  ;;  %5663 = vst.msk [vmem:[#allocation5 + $0x71] sm:$0x1] %vm4082_vm8, %v19010_v5 }
  0x8b   : > { %5664 = vst.msk [vmem:[#allocation5 + $0x89] sm:$0x1] %vm4082_vm8, %v19010_v5  ;;  %5665 = vst.msk [vmem:[#allocation5 + $0xa1] sm:$0x1] %vm4082_vm8, %v19010_v5 }
  0x8c   : > { %5666 = vst.msk [vmem:[#allocation5 + $0xb9] sm:$0x1] %vm4082_vm8, %v19010_v5  ;;  %5667 = vst.msk [vmem:[#allocation5 + $0xd1] sm:$0x1] %vm4082_vm8, %v19010_v5 }
  0x8d   : > { %5668 = vst.msk [vmem:[#allocation5 + $0xe9] sm:$0x1] %vm4082_vm8, %v19010_v5  ;;  %5669 = vst.msk [vmem:[#allocation5 + $0x101] sm:$0x1] %vm4082_vm8, %v19010_v5 }
  0x8e   : > { %5670 = vst.msk [vmem:[#allocation5 + $0x119] sm:$0x1] %vm4082_vm8, %v19010_v5  ;;  %5671 = vst.msk [vmem:[#allocation5 + $0x131] sm:$0x1] %vm4082_vm8, %v19010_v5 }
  0x8f   : > { %5672 = vst.msk [vmem:[#allocation5 + $0x149] sm:$0x1] %vm4082_vm8, %v19010_v5  ;;  %5673 = vst.msk [vmem:[#allocation5 + $0x161] sm:$0x1] %vm4082_vm8, %v19010_v5 }
  0x90   : > { %5674 = vst.msk [vmem:[#allocation5 + $0x179] sm:$0x1] %vm4082_vm8, %v19010_v5  ;;  %5675 = vst.msk [vmem:[#allocation5 + $0x191] sm:$0x1] %vm4082_vm8, %v19010_v5 }
  0xf4   : > { %v1323_v6 = vpop.xlane.xlu0 %1322 }
  0xf5   : > { %v1325_v7 = vmul.f32 0.03125, %v1323_v6  ;;  %v1650_v6 = vld [vmem:[%s14779_s30] sm:$0x1] }
  0xf7   : > { %v1326_v8 = vadd.f32 1e-08, %v1325_v7 }
  0xf9   : > { %14636 = vrsqrt.f32 %v1326_v8 }
 0x106   : > { %v14637_v9 = vpop.eup %14636 }
 0x107   : > { %v1328_v10 = vmul.f32 %v14637_v9, %v1318_v0 }
 0x109   : > { %v1329_v11 = vpack.c.bf16 %v1328_v10, %v1328_v10 }
 0x10b   : > { %13426 = vmatmul.mubr.msk.bf16.vlgmr.msra.gmra.mxu0 %vm1347_vm2, %v1329_v11 }
 0x10c   : > { %13441 = vmatprep.mubr.msk.bf16.mxu0 %vm14703_vm1, %v19010_v5  ;;  %13438 = vmatpush3.bf16.msra.mxu0 %v14526_v23 }
 0x10d   : > { %13439 = vmatprep.subr.bf16.mxu0 %v19010_v5 }
 0x110   : > { %13440 = vmatpush3.bf16.msra.mxu0 %v14527_v24 }
 0x111   : > { %13453 = vmatprep.subr.bf16.mxu0 %v19010_v5 }
 0x1cb   : > { %v1385_v15 = vpop.f32.mrf.mxu0 }
 0x1cc   : > { %v1386_v16 = vadd.f32 %v1385_v15, %v1334_v14  ;;  %v14536_v15 = vld [vmem:[%s19063_s2 + $0x8] sm:$0xff]  }
 0x1cd   : > { %v13427_v17 = vpop.f32.mrf.mxu0 }
 0x1ce   : > { %v1391_v18 = vmul.f32 0.2, %v1386_v16  ;;  %v1713_v17 = vld [vmem:[%s19064_s7] sm:$0x1]  ;;  %s19074_s7 = sld [smem:[#allocation15_spill]] }
 0x1cf   : > { %v1388_v19 = vpop.f32.mrf.mxu0 }
 0x1d0   : > { %v1392_v20 = vmax.f32 %v1386_v16, %v1391_v18  ;;  %v14537_v16 = vld [vmem:[%s19063_s2] sm:$0xff]   ;;  %s19012_s2 = smov 112  }
 0x1d1   : > { %v13428_v21 = vpop.f32.mrf.mxu0 }
 0x1d2   : > { %v1393_v22 = vpack.c.bf16 %v1392_v20, %v1392_v20 }
 0x1d4   : > { %13434 = vmatmul.mubr.msk.bf16.vlgmr.msra.gmra.mxu1 %vm1347_vm2, %v1393_v22 }
 0x1d5   : > { %13449 = vmatprep.mubr.msk.bf16.mxu1 %vm14703_vm1, %v19010_v5  ;;  %13446 = vmatpush3.bf16.msra.mxu1 %v14528_v34 }
 0x1d6   : > { %13447 = vmatprep.subr.bf16.mxu1 %v19010_v5 }
 0x1d9   : > { %13448 = vmatpush3.bf16.msra.mxu1 %v14529_v35 }
 0x1da   : > { %13461 = vmatprep.subr.bf16.mxu1 %v19010_v5 }
 0x294   : > { %v1448_v26 = vpop.f32.mrf.mxu1 }
 0x295   : > { %v1449_v27 = vadd.f32 %v1448_v26, %v1398_v25  ;;  %v14538_v26 = vld [vmem:[%s19065_s10 + $0x8] sm:$0xff]  }
 0x296   : > { %v13435_v28 = vpop.f32.mrf.mxu1 }
 0x297   : > { %v1454_v29 = vmul.f32 0.2, %v1449_v27  ;;  %v1776_v28 = vld [vmem:[%s19066_s11] sm:$0x1]  ;;  %s19075_s11 = sld [smem:[#allocation18_spill]] }
 0x298   : > { %v1451_v30 = vpop.f32.mrf.mxu1 }
 0x299   : > { %v1455_v31 = vmax.f32 %v1449_v27, %v1454_v29  ;;  %v14539_v27 = vld [vmem:[%s19065_s10] sm:$0xff]  }
 0x29a   : > { %v13436_v32 = vpop.f32.mrf.mxu1 }
 0x29b   : > { %v1456_v33 = vpack.c.bf16 %v1455_v31, %v1455_v31 }
 0x29d   : > { %13442 = vmatmul.mubr.msk.bf16.vlgmr.msra.gmra.mxu0 %vm1347_vm2, %v1456_v33 }
 0x29e   : > { %13457 = vmatprep.mubr.msk.bf16.mxu0 %vm14703_vm1, %v19010_v5  ;;  %13454 = vmatpush3.bf16.msra.mxu0 %v14530_v45 }
 0x29f   : > { %13455 = vmatprep.subr.bf16.mxu0 %v19010_v5 }
 0x2a2   : > { %13456 = vmatpush3.bf16.msra.mxu0 %v14531_v46 }
 0x2a3   : > { %13469 = vmatprep.subr.bf16.mxu0 %v19010_v5 }
 0x35d   : > { %v1511_v37 = vpop.f32.mrf.mxu0 }
 0x35e   : > { %v1512_v38 = vadd.f32 %v1511_v37, %v1461_v36  ;;  %v1937_v37 = vlaneseq }
 0x35f   : > { %v13443_v39 = vpop.f32.mrf.mxu0 }
 0x360   : > { %v1517_v40 = vmul.f32 0.2, %v1512_v38  ;;  %v14540_v39 = vld [vmem:[%s19067_s15 + $0x18] sm:$0xff]  }
 0x361   : > { %v1514_v41 = vpop.f32.mrf.mxu0 }
 0x362   : > { %v1518_v42 = vmax.f32 %v1512_v38, %v1517_v40  ;;  %v1938_v38 = vshrl.u32 %v1937_v37, 7  ;;  %v14541_v40 = vld [vmem:[%s19067_s15 + $0x8] sm:$0xff]   ;;  %v1839_v41 = vld [vmem:[%s19068_s16] sm:$0x1]  ;;  %s14705_s16 = smov 64  }
 0x363   : > { %v13444_v43 = vpop.f32.mrf.mxu0 }
 0x364   : > { %v1519_v44 = vpack.c.bf16 %v1518_v42, %v1518_v42  ;;  %v14542_v42 = vld [vmem:[%s19067_s15 + $0x10] sm:$0xff]   ;;  %v14543_v43 = vld [vmem:[%s19067_s15] sm:$0xff]  }
 0x366   : > { %13450 = vmatmul.mubr.msk.bf16.vlgmr.msra.gmra.mxu1 %vm1347_vm2, %v1519_v44  ;;  %v15093_v44 = vsub.s32 0, %v1938_v38 }
 0x367   : > { %13465 = vmatprep.mubr.msk.bf16.mxu1 %vm14703_vm1, %v19010_v5  ;;  %13462 = vmatpush3.bf16.msra.mxu1 %v14532_v56 }
 0x368   : > { %13463 = vmatprep.subr.bf16.mxu1 %v19010_v5  ;;  %19070 = vst [vmem:[#allocation36_spill] sm:$0xff] %v15093_v44 }
 0x36b   : > { %13464 = vmatpush3.bf16.msra.mxu1 %v14533_v57 }
 0x36c   : > { %13477 = vmatprep.subr.bf16.mxu1 %v19010_v5 }
 0x426   : > { %v1574_v48 = vpop.f32.mrf.mxu1 }
 0x427   : > { %v1575_v49 = vadd.f32 %v1574_v48, %v1524_v47 }
 0x428   : > { %v13451_v50 = vpop.f32.mrf.mxu1 }
 0x429   : > { %v1580_v51 = vmul.f32 0.2, %v1575_v49 }
 0x42a   : > { %v1577_v52 = vpop.f32.mrf.mxu1 }
 0x42b   : > { %v1581_v53 = vmax.f32 %v1575_v49, %v1580_v51  ;;  %v1895_v51 = vld [vmem:[%s19069_s18] sm:$0xff]  ;;  %v1896_v52 = vld [vmem:[%s19069_s18 + $0x8] sm:$0xff] }
 0x42c   : > { %v13452_v54 = vpop.f32.mrf.mxu1 }
 0x42d   : > { %v1582_v55 = vpack.c.bf16 %v1581_v53, %v1581_v53  ;;  %v1897_v53 = vld [vmem:[%s19071_s22] sm:$0xff]  ;;  %v1898_v54 = vld [vmem:[%s19071_s22 + $0x8] sm:$0xff] }
 0x42e   : > { %v1900_v56 = vadd.f32 %v1898_v54, %v1896_v52 }
 0x42f   : > { %13458 = vmatmul.mubr.msk.bf16.vlgmr.msra.gmra.mxu0 %vm1347_vm2, %v1582_v55  ;;  %v1899_v55 = vadd.f32 %v1897_v53, %v1895_v51  ;;  %v14556_v53 = vld [vmem:[%s19067_s15 + $0x48] sm:$0xff]  }
 0x430   : > { %13473 = vmatprep.mubr.msk.bf16.mxu0 %vm14703_vm1, %v19010_v5  ;;  %13470 = vmatpush3.bf16.msra.mxu0 %v14534_v3 }
 0x431   : > { %13471 = vmatprep.subr.bf16.mxu0 %v19010_v5  ;;  %v1901_v57 = vmul.f32 0.2, %v1899_v55 }
 0x434   : > { %13472 = vmatpush3.bf16.msra.mxu0 %v14535_v4 }
 0x435   : > { %13485 = vmatprep.subr.bf16.mxu0 %v19010_v5 }
 0x4ef   : > { %v1637_v59 = vpop.f32.mrf.mxu0 }
 0x4f0   : > { %v1638_v60 = vadd.f32 %v1637_v59, %v1587_v58  ;;  %v1902_v58 = vmul.f32 0.2, %v1900_v56  ;;  %v1903_v59 = vmax.f32 %v1899_v55, %v1901_v57  ;;  %v14557_v55 = vld [vmem:[%s19067_s15 + $0x58] sm:$0xff]   ;;  %v14558_v57 = vld [vmem:[%s19067_s15 + $0x40] sm:$0xff]  }
 0x4f1   : > { %v13459_v61 = vpop.f32.mrf.mxu0 }
 0x4f2   : > { %v1643_v62 = vmul.f32 0.2, %v1638_v60  ;;  %v1905_v61 = vsel %vm1347_vm2, %v1903_v59, 0.0 }
 0x4f3   : > { %v1640_v63 = vpop.f32.mrf.mxu0 }
 0x4f4   : > { %v1644_v0 = vmax.f32 %v1638_v60, %v1643_v62  ;;  %v1904_v60 = vmax.f32 %v1900_v56, %v1902_v58  ;;  %v1916_v63 = vmul.f32 %v1903_v59, %v1903_v59  ;;  %v14559_v58 = vld [vmem:[%s19067_s15 + $0x50] sm:$0xff]  }
 0x4f5   : > { %v13460_v1 = vpop.f32.mrf.mxu0 }
 0x4f6   : > { %v1645_v2 = vpack.c.bf16 %v1644_v0, %v1644_v0  ;;  %v1906_v62 = vsel %vm1347_vm2, %v1904_v60, 0.0  ;;  %v1917_v0 = vmul.f32 %v1904_v60, %v1904_v60 }
 0x4f7   : > { %v1907_v1 = vadd.f32 %v1906_v62, %v1905_v61 }
 0x4f8   : > { %13466 = vmatmul.mubr.msk.bf16.vlgmr.msra.gmra.mxu1 %vm1347_vm2, %v1645_v2  ;;  %v1918_v2 = vsel %vm1347_vm2, %v1916_v63, 0.0  ;;  %v1919_v3 = vsel %vm1347_vm2, %v1917_v0, 0.0  ;;  %v14564_v63 = vld [vmem:[%s19067_s15 + $0x68] sm:$0xff]  }
 0x4f9   : > { %13481 = vmatprep.mubr.msk.bf16.mxu1 %vm14703_vm1, %v19010_v5  ;;  %13478 = vmatpush3.bf16.msra.mxu1 %v14536_v15  ;;  %v1908_v4 = vrot.slane %v1907_v1, 4 }
 0x4fa   : > { %13479 = vmatprep.subr.bf16.mxu1 %v19010_v5 }
 0x4fd   : > { %13480 = vmatpush3.bf16.msra.mxu1 %v14537_v16 }
 0x4fe   : > { %13493 = vmatprep.subr.bf16.mxu1 %v19010_v5 }
 0x5b8   : > { %v1700_v7 = vpop.f32.mrf.mxu1 }
 0x5b9   : > { %v1701_v8 = vadd.f32 %v1700_v7, %v1650_v6  ;;  %v1920_v6 = vadd.f32 %v1919_v3, %v1918_v2  ;;  %v1909_v7 = vadd.f32 %v1908_v4, %v1907_v1  ;;  %v14565_v1 = vld [vmem:[%s19067_s15 + $0x78] sm:$0xff]   ;;  %v14566_v3 = vld [vmem:[%s19067_s15 + $0x60] sm:$0xff]   ;;  %v14567_v4 = vld [vmem:[%s19067_s15 + $0x70] sm:$0xff]  }
 0x5ba   : > { %v13467_v9 = vpop.f32.mrf.mxu1 }
 0x5bb   : > { %v1706_v10 = vmul.f32 0.2, %v1701_v8  ;;  %v1910_v9 = vrot.slane %v1909_v7, 2 }
 0x5bc   : > { %v1703_v11 = vpop.f32.mrf.mxu1 }
 0x5bd   : > { %v1707_v12 = vmax.f32 %v1701_v8, %v1706_v10  ;;  %v1921_v8 = vrot.slane %v1920_v6, 4  ;;  %v1911_v11 = vadd.f32 %v1910_v9, %v1909_v7 }
 0x5be   : > { %v13468_v13 = vpop.f32.mrf.mxu1 }
 0x5bf   : > { %v1708_v14 = vpack.c.bf16 %v1707_v12, %v1707_v12  ;;  %v1922_v10 = vadd.f32 %v1921_v8, %v1920_v6  ;;  %v1912_v13 = vrot.slane %v1911_v11, 1 }
 0x5c1   : > { %13474 = vmatmul.mubr.msk.bf16.vlgmr.msra.gmra.mxu0 %vm1347_vm2, %v1708_v14  ;;  %v1923_v12 = vrot.slane %v1922_v10, 2  ;;  %v1913_v15 = vadd.f32 %v1912_v13, %v1911_v11 }
 0x5c2   : > { %13489 = vmatprep.mubr.msk.bf16.mxu0 %vm14703_vm1, %v19010_v5  ;;  %13486 = vmatpush3.bf16.msra.mxu0 %v14538_v26 }
 0x5c3   : > { %13487 = vmatprep.subr.bf16.mxu0 %v19010_v5  ;;  %v1924_v14 = vadd.f32 %v1923_v12, %v1922_v10  ;;  %v14572_v10 = vld [vmem:[%s19067_s15 + $0x88] sm:$0xff]  }
 0x5c4   : > { %v14573_v12 = vld [vmem:[%s19072_s26 + $0x8] sm:$0xff]  }
 0x5c5   : > { %v1925_v16 = vrot.slane %v1924_v14, 1 }
 0x5c6   : > { %13488 = vmatpush3.bf16.msra.mxu0 %v14539_v27 }
 0x5c7   : > { %13501 = vmatprep.subr.bf16.mxu0 %v19010_v5 }
 0x681   : > { %v1763_v18 = vpop.f32.mrf.mxu0 }
 0x682   : > { %v1764_v19 = vadd.f32 %v1763_v18, %v1713_v17  ;;  %v1915_v17 = vmul.f32 0.0625, %v1913_v15  ;;  %v1926_v18 = vadd.f32 %v1925_v16, %v1924_v14  ;;  %v14574_v14 = vld [vmem:[%s19067_s15 + $0x80] sm:$0xff]  }
 0x683   : > { %v13475_v20 = vpop.f32.mrf.mxu0  ;;  %v14575_v15 = vld [vmem:[%s19072_s26] sm:$0xff]  }
 0x684   : > { %v1769_v21 = vmul.f32 0.2, %v1764_v19  ;;  %v1928_v20 = vmul.f32 %v1915_v17, %v1915_v17 }
 0x685   : > { %v1766_v22 = vpop.f32.mrf.mxu0 }
 0x686   : > { %v1770_v23 = vmax.f32 %v1764_v19, %v1769_v21  ;;  %v1927_v19 = vmul.f32 0.0625, %v1926_v18 }
 0x687   : > { %v13476_v24 = vpop.f32.mrf.mxu0 }
 0x688   : > { %v1771_v25 = vpack.c.bf16 %v1770_v23, %v1770_v23  ;;  %v1929_v21 = vsub.f32 %v1927_v19, %v1928_v20  ;;  %v1931_v24 = vsub.f32 %v1903_v59, %v1915_v17 }
 0x68a   : > { %13482 = vmatmul.mubr.msk.bf16.vlgmr.msra.gmra.mxu1 %vm1347_vm2, %v1771_v25  ;;  %v1930_v22 = vmax.f32 %v1929_v21, 0.0  ;;  %v1932_v25 = vsub.f32 %v1904_v60, %v1915_v17 }
 0x68b   : > { %13497 = vmatprep.mubr.msk.bf16.mxu1 %vm14703_vm1, %v19010_v5  ;;  %13494 = vmatpush3.bf16.msra.mxu1 %v14540_v39  ;;  %v14548_v39 = vld [vmem:[%s19067_s15 + $0x28] sm:$0xff]  }
 0x68c   : > { %13495 = vmatprep.subr.bf16.mxu1 %v19010_v5  ;;  %v1933_v23 = vadd.f32 1e-08, %v1930_v22 }
 0x68e   : > { %14638 = vrsqrt.f32 %v1933_v23 }
 0x68f   : > { %13496 = vmatpush3.bf16.msra.mxu1 %v14542_v42 }
 0x690   : > { %13509 = vmatprep.subr.bf16.mxu1 %v19010_v5 }
 0x69b   : > { %v14639_v26 = vpop.eup %14638 }
 0x69c   : > { %v1935_v27 = vmul.f32 %v14639_v26, %v1931_v24 }
 0x74a   : > { %v1826_v29 = vpop.f32.mrf.mxu1 }
 0x74b   : > { %v1827_v30 = vadd.f32 %v1826_v29, %v1776_v28  ;;  %v1936_v28 = vmul.f32 %v14639_v26, %v1932_v25 }
 0x74c   : > { %v13483_v31 = vpop.f32.mrf.mxu1 }
 0x74d   : > { %v1832_v32 = vmul.f32 0.2, %v1827_v30 }
 0x74e   : > { %v1829_v33 = vpop.f32.mrf.mxu1 }
 0x74f   : > { %v1833_v34 = vmax.f32 %v1827_v30, %v1832_v32 }
 0x750   : > { %v13484_v35 = vpop.f32.mrf.mxu1 }
 0x751   : > { %v15080_v36 = vpack.c.bf16 %v1833_v34, %v1833_v34 }
 0x753   : > { %13490 = vmatmul.mubr.msk.bf16.vlgmr.msra.gmra.mxu0 %vm1347_vm2, %v15080_v36 }
 0x754   : > { %13505 = vmatprep.mubr.msk.bf16.mxu0 %vm14703_vm1, %v19010_v5  ;;  %13502 = vmatpush3.bf16.msra.mxu0 %v14541_v40 }
 0x755   : > { %13503 = vmatprep.subr.bf16.mxu0 %v19010_v5 }
 0x758   : > { %13504 = vmatpush3.bf16.msra.mxu0 %v14543_v43  ;;  %v14549_v43 = vld [vmem:[%s19067_s15 + $0x38] sm:$0xff]  }
 0x759   : > { %13517 = vmatprep.subr.bf16.mxu0 %v19010_v5 }
 0x813   : > { %v1889_v45 = vpop.f32.mrf.mxu0 }
 0x814   : > { %v1890_v46 = vadd.f32 %v1889_v45, %v1839_v41 }
 0x815   : > { %v13491_v47 = vpop.f32.mrf.mxu0 }
 0x816   : > { %v15098_v48 = vrot.slane %v1890_v46, %v15093_v44  ;;  %v14550_v46 = vld [vmem:[%s19067_s15 + $0x20] sm:$0xff]   ;;  %v14551_v47 = vld [vmem:[%s19067_s15 + $0x30] sm:$0xff]  }
 0x817   : > { %v1892_v49 = vpop.f32.mrf.mxu0 }
 0x818   : > { %1944 = vrot.lane.b32.xlu0 %v15098_v48, %s19007_s23  ;;  %v1941_v29 = vmul.f32 %v15098_v48, %v1935_v27  ;;  %v1942_v30 = vmul.f32 %v15098_v48, %v1936_v28  ;;  %s19077_s23 = sld [smem:[#allocation19_spill]] }
 0x819   : > { %v13492_v50 = vpop.f32.mrf.mxu0 }
 0x88a   : > { %v15114_v31 = vpop.permute.xlu0 %1944 }
 0x88b   : > { %v1947_v32 = vadd.f32 %v15114_v31, %v1941_v29  ;;  %v1948_v33 = vadd.f32 %v15114_v31, %v1942_v30 }
 0x88d   : > { %v1951_v34 = vcombine.high %v1947_v32, %v1947_v32  ;;  %v1952_v35 = vcombine.high %v1948_v33, %v1948_v33  ;;  %1957 = vst.msk [vmem:[#allocation2 + $0x9] sm:$0xf] %vm1956_vm4, %v1947_v32  ;;  %1959 = vst.msk [vmem:[#allocation2 + $0x19] sm:$0xf] %vm1956_vm4, %v1948_v33 }
 0x88f   : > { %1958 = vst.msk [vmem:[#allocation2 + $0x11] sm:$0xf] %vm1956_vm4, %v1951_v34  ;;  %1960 = vst.msk [vmem:[#allocation2 + $0x21] sm:$0xf] %vm1956_vm4, %v1952_v35 }
 0x894   : > { %v14544_v37 = vld [vmem:[#allocation2 + $0x1] ss:$8 sps:$4 sm:$0xff]  }
 0x895   : > { %v14546_v38 = vld [vmem:[#allocation2] ss:$8 sps:$4 sm:$0xff]  }
 0x896   : > { %v14545_v40 = vld [vmem:[#allocation2 + $0x11] ss:$8 sps:$4 sm:$0xff]   ;;  %v14552_v52 = vld [vmem:[#allocation2 + $0x2] ss:$8 sps:$4 sm:$0xff]  }
 0x897   : > { %v14547_v41 = vld [vmem:[#allocation2 + $0x10] ss:$8 sps:$4 sm:$0xff]   ;;  %v2002_v42 = vpack.c.bf16 %v14545_v40, %v14544_v37  ;;  %v14569_v7 = vld [vmem:[#allocation2 + $0x20] ss:$8 sps:$4 sm:$0xff]  }
 0x898   : > { %v1985_v45 = vpack.c.bf16 %v14547_v41, %v14546_v38  ;;  %v14553_v49 = vld [vmem:[#allocation2 + $0x12] ss:$8 sps:$4 sm:$0xff]   ;;  %v14571_v9 = vld [vmem:[#allocation2 + $0x21] ss:$8 sps:$4 sm:$0xff]  }
 0x899   : > { %13498 = vmatmul.mubr.msk.bf16.vlgmr.msra.gmra.mxu1 %vm1347_vm2, %v2002_v42  ;;  %v14554_v50 = vld [vmem:[#allocation2 + $0x8] ss:$8 sps:$4 sm:$0xff]   ;;  %v14555_v51 = vld [vmem:[#allocation2 + $0x18] ss:$8 sps:$4 sm:$0xff]   ;;  %v2132_v54 = vpack.c.bf16 %v14553_v49, %v14552_v52 }
 0x89a   : > { %13506 = vmatmul.mubr.msk.bf16.vlgmr.msra.gmra.mxu0 %vm1347_vm2, %v1985_v45  ;;  %13510 = vmatpush3.bf16.msra.mxu1 %v14548_v39  ;;  %v2208_v56 = vpack.c.bf16 %v14555_v51, %v14554_v50  ;;  %v14560_v59 = vld [vmem:[#allocation2 + $0x9] ss:$8 sps:$4 sm:$0xff]   ;;  %v14561_v60 = vld [vmem:[#allocation2 + $0x19] ss:$8 sps:$4 sm:$0xff]  }
 0x89b   : > { %13518 = vmatpush3.bf16.msra.mxu0 %v14549_v43  ;;  %13511 = vmatprep.subr.bf16.mxu1 %v19010_v5  ;;  %v14562_v61 = vld [vmem:[#allocation2 + $0xa] ss:$8 sps:$4 sm:$0xff]   ;;  %v14563_v62 = vld [vmem:[#allocation2 + $0x1a] ss:$8 sps:$4 sm:$0xff]   ;;  %v2284_v0 = vpack.c.bf16 %v14561_v60, %v14560_v59 }
 0x89c   : > { %13519 = vmatprep.subr.bf16.mxu0 %v19010_v5  ;;  %13513 = vmatprep.mubr.msk.bf16.mxu1 %vm14703_vm1, %v19010_v5  ;;  %v2360_v2 = vpack.c.bf16 %v14563_v62, %v14562_v61  ;;  %v14568_v6 = vld [vmem:[#allocation2 + $0x10] ss:$8 sps:$4 sm:$0xff]   ;;  %v14577_v17 = vld [vmem:[#allocation2 + $0x22] ss:$8 sps:$4 sm:$0xff]  }
 0x89d   : > { %13521 = vmatprep.mubr.msk.bf16.mxu0 %vm14703_vm1, %v19010_v5  ;;  %v14570_v8 = vld [vmem:[#allocation2 + $0x11] ss:$8 sps:$4 sm:$0xff]   ;;  %v2437_v11 = vpack.c.bf16 %v14569_v7, %v14568_v6  ;;  %v12390_v6 = vld [vmem:[%s19073_s0] ss:$0 sm:$0xff]  ;;  %s19076_s0 = sld [smem:[#allocation26_spill]] }
 0x89e   : > { %13512 = vmatpush3.bf16.msra.mxu1 %v14550_v46  ;;  %v2513_v13 = vpack.c.bf16 %v14571_v9, %v14570_v8  ;;  %v14576_v16 = vld [vmem:[#allocation2 + $0x12] ss:$8 sps:$4 sm:$0xff]   ;;  %v2662_v9 = vld [vmem:[%s19074_s7] sm:$0xff] }
 0x89f   : > { %13520 = vmatpush3.bf16.msra.mxu0 %v14551_v47  ;;  %13525 = vmatprep.subr.bf16.mxu1 %v19010_v5  ;;  %v2589_v18 = vpack.c.bf16 %v14577_v17, %v14576_v16 }
 0x8a0   : > { %13533 = vmatprep.subr.bf16.mxu0 %v19010_v5 }
 0x8a1   : > { %13514 = vmatmul.mubr.msk.bf16.vlgmr.msra.gmra.mxu1 %vm1347_vm2, %v2132_v54 }
 0x8a2   : > { %13522 = vmatmul.mubr.msk.bf16.vlgmr.msra.gmra.mxu0 %vm1347_vm2, %v2208_v56  ;;  %13526 = vmatpush3.bf16.msra.mxu1 %v14556_v53 }
 0x8a3   : > { %13534 = vmatpush3.bf16.msra.mxu0 %v14557_v55  ;;  %13527 = vmatprep.subr.bf16.mxu1 %v19010_v5 }
 0x8a4   : > { %13535 = vmatprep.subr.bf16.mxu0 %v19010_v5  ;;  %13529 = vmatprep.mubr.msk.bf16.mxu1 %vm14703_vm1, %v19010_v5 }
 0x8a5   : > { %13537 = vmatprep.mubr.msk.bf16.mxu0 %vm14703_vm1, %v19010_v5 }
 0x8a6   : > { %13528 = vmatpush3.bf16.msra.mxu1 %v14558_v57 }
 0x8a7   : > { %13536 = vmatpush3.bf16.msra.mxu0 %v14559_v58  ;;  %13541 = vmatprep.subr.bf16.mxu1 %v19010_v5 }
 0x8a8   : > { %13549 = vmatprep.subr.bf16.mxu0 %v19010_v5 }
 0x8a9   : > { %13530 = vmatmul.mubr.msk.bf16.vlgmr.msra.gmra.mxu1 %vm1347_vm2, %v2284_v0 }
 0x8aa   : > { %13538 = vmatmul.mubr.msk.bf16.vlgmr.msra.gmra.mxu0 %vm1347_vm2, %v2360_v2  ;;  %13542 = vmatpush3.bf16.msra.mxu1 %v14564_v63 }
 0x8ab   : > { %13550 = vmatpush3.bf16.msra.mxu0 %v14565_v1  ;;  %13543 = vmatprep.subr.bf16.mxu1 %v19010_v5 }
 0x8ac   : > { %13551 = vmatprep.subr.bf16.mxu0 %v19010_v5  ;;  %13545 = vmatprep.mubr.msk.bf16.mxu1 %vm14703_vm1, %v19010_v5 }
 0x8ad   : > { %13553 = vmatprep.mubr.msk.bf16.mxu0 %vm14703_vm1, %v19010_v5 }
 0x8ae   : > { %13544 = vmatpush3.bf16.msra.mxu1 %v14566_v3 }
 0x8af   : > { %13552 = vmatpush3.bf16.msra.mxu0 %v14567_v4  ;;  %13557 = vmatprep.subr.bf16.mxu1 %v19010_v5 }
 0x8b0   : > { %13565 = vmatprep.subr.bf16.mxu0 %v19010_v5 }
 0x8b1   : > { %13546 = vmatmul.mubr.msk.bf16.vlgmr.msra.gmra.mxu1 %vm1347_vm2, %v2437_v11 }
 0x8b2   : > { %13554 = vmatmul.mubr.msk.bf16.vlgmr.msra.gmra.mxu0 %vm1347_vm2, %v2513_v13  ;;  %13558 = vmatpush3.bf16.msra.mxu1 %v14572_v10 }
 0x8b3   : > { %13566 = vmatpush3.bf16.msra.mxu0 %v14573_v12  ;;  %13559 = vmatprep.subr.bf16.mxu1 %v19010_v5 }
 0x8b4   : > { %13567 = vmatprep.subr.bf16.mxu0 %v19010_v5  ;;  %13561 = vmatprep.mubr.msk.bf16.mxu1 %vm14703_vm1, %v19010_v5 }
 0x8b5   : > { %13569 = vmatprep.mubr.msk.bf16.mxu0 %vm14703_vm1, %v19010_v5 }
 0x8b6   : > { %13560 = vmatpush3.bf16.msra.mxu1 %v14574_v14 }
 0x8b7   : > { %13568 = vmatpush3.bf16.msra.mxu0 %v14575_v15 }
 0x8b9   : > { %13562 = vmatmul.mubr.msk.bf16.vlgmr.msra.gmra.mxu1 %vm1347_vm2, %v2589_v18  ;;  %v2663_v18 = vld [vmem:[%s19074_s7 + $0x8] sm:$0xff] }
 0x8ba   : > { %13570 = vmatmul.mubr.msk.bf16.vlgmr.msra.gmra.mxu0 %vm1347_vm2, %v15080_v36 }
 0x959   : > { %v2057_v19 = vpop.f32.mrf.mxu1 }
 0x95a   : > { %v2113_v20 = vpop.f32.mrf.mxu0 }
 0x95b   : > { %v13499_v21 = vpop.f32.mrf.mxu1  ;;  %v2114_v33 = vadd.f32 %v2113_v20, %v2057_v19 }
 0x95c   : > { %v13507_v22 = vpop.f32.mrf.mxu0 }
 0x95d   : > { %v2060_v23 = vpop.f32.mrf.mxu1 }
 0x95e   : > { %v2116_v24 = vpop.f32.mrf.mxu0 }
 0x95f   : > { %v13500_v25 = vpop.f32.mrf.mxu1  ;;  %v2117_v40 = vadd.f32 %v2116_v24, %v2060_v23 }
 0x960   : > { %v13508_v26 = vpop.f32.mrf.mxu0 }
 0x961   : > { %v2187_v27 = vpop.f32.mrf.mxu1 }
 0x962   : > { %v2263_v28 = vpop.f32.mrf.mxu0  ;;  %v2194_v37 = vadd.f32 %v2187_v27, %v2114_v33 }
 0x963   : > { %v13515_v29 = vpop.f32.mrf.mxu1 }
 0x964   : > { %v13523_v30 = vpop.f32.mrf.mxu0  ;;  %v2270_v43 = vadd.f32 %v2263_v28, %v2194_v37 }
 0x965   : > { %v2190_v32 = vpop.f32.mrf.mxu1 }
 0x966   : > { %v2266_v34 = vpop.f32.mrf.mxu0  ;;  %v2195_v45 = vadd.f32 %v2190_v32, %v2117_v40 }
 0x967   : > { %v13516_v35 = vpop.f32.mrf.mxu1 }
 0x968   : > { %v13524_v38 = vpop.f32.mrf.mxu0  ;;  %v2271_v52 = vadd.f32 %v2266_v34, %v2195_v45 }
 0x969   : > { %v2339_v39 = vpop.f32.mrf.mxu1 }
 0x96a   : > { %v2415_v41 = vpop.f32.mrf.mxu0  ;;  %v2346_v49 = vadd.f32 %v2339_v39, %v2270_v43 }
 0x96b   : > { %v13531_v42 = vpop.f32.mrf.mxu1 }
 0x96c   : > { %v13539_v46 = vpop.f32.mrf.mxu0  ;;  %v2422_v55 = vadd.f32 %v2415_v41, %v2346_v49 }
 0x96d   : > { %v2342_v47 = vpop.f32.mrf.mxu1 }
 0x96e   : > { %v2418_v50 = vpop.f32.mrf.mxu0  ;;  %v2347_v56 = vadd.f32 %v2342_v47, %v2271_v52 }
 0x96f   : > { %v13532_v51 = vpop.f32.mrf.mxu1 }
 0x970   : > { %v13540_v53 = vpop.f32.mrf.mxu0  ;;  %v2423_v62 = vadd.f32 %v2418_v50, %v2347_v56 }
 0x971   : > { %v2492_v54 = vpop.f32.mrf.mxu1 }
 0x972   : > { %v2568_v57 = vpop.f32.mrf.mxu0  ;;  %v2499_v59 = vadd.f32 %v2492_v54, %v2422_v55 }
 0x973   : > { %v13547_v58 = vpop.f32.mrf.mxu1 }
 0x974   : > { %v13555_v60 = vpop.f32.mrf.mxu0  ;;  %v2575_v1 = vadd.f32 %v2568_v57, %v2499_v59 }
 0x975   : > { %v2495_v61 = vpop.f32.mrf.mxu1 }
 0x976   : > { %v2571_v63 = vpop.f32.mrf.mxu0  ;;  %v2500_v2 = vadd.f32 %v2495_v61, %v2423_v62  ;;  %v14578_v62 = vld [vmem:[%s19075_s11] sm:$0xff]  }
 0x977   : > { %v13548_v0 = vpop.f32.mrf.mxu1  ;;  %13575 = vmatprep.mubr.msk.bf16.mxu1 %vm2803_vm5, %v14578_v62 }
 0x978   : > { %v13556_v3 = vpop.f32.mrf.mxu0  ;;  %v2576_v11 = vadd.f32 %v2571_v63, %v2500_v2 }
 0x979   : > { %v2644_v4 = vpop.f32.mrf.mxu1  ;;  %v2717_v3 = vld [vmem:[%s19076_s0] sm:$0x1]  ;;  %s19080_s0 = sld [smem:[#allocation20_spill]] }
 0x97a   : > { %v2651_v7 = vadd.f32 %v2644_v4, %v2575_v1  ;;  %v15176_v8 = vpop.f32.mrf.mxu0 }
 0x97b   : > { %v13563_v10 = vpop.f32.mrf.mxu1 }
 0x97c   : > { %v2660_v12 = vadd.f32 %v12390_v6, %v2651_v7  ;;  %v13571_v13 = vpop.f32.mrf.mxu0  ;;  %v2765_v7 = vadd.f32 %v15176_v8, %v2717_v3  ;;  %v14581_v8 = vld [vmem:[%s19075_s11 + $0x18] sm:$0xff]  }
 0x97d   : > { %v2647_v14 = vpop.f32.mrf.mxu1  ;;  %v14583_v13 = vld [vmem:[%s19077_s23 + $0x8] sm:$0xff]  }
 0x97e   : > { %v2664_v15 = vadd.f32 %v2662_v9, %v2660_v12  ;;  %v2652_v16 = vadd.f32 %v2647_v14, %v2576_v11  ;;  %v2767_v17 = vpop.f32.mrf.mxu0  ;;  %v15205_v10 = vrot.slane %v2765_v7, %v15093_v44  ;;  %v14579_v11 = vld [vmem:[%s19075_s11 + $0x8] sm:$0xff]   ;;  %v14582_v12 = vld [vmem:[%s19077_s23 + $0x18] sm:$0xff]   ;;  %v14584_v14 = vld [vmem:[%s19077_s23 + $0x10] sm:$0xff]  }
 0x97f   : > { %v13564_v19 = vpop.f32.mrf.mxu1  ;;  %13583 = vmatprep.subr.bf16.mxu0 %v14582_v12  ;;  %v14587_v17 = vld [vmem:[%s19077_s23 + $0x38] sm:$0xff]   ;;  %v14592_v7 = vld [vmem:[%s19077_s23 + $0x40] sm:$0xff]  }
 0x980   : > { %v2666_v20 = vmul.f32 0.2, %v2664_v15  ;;  %v2661_v21 = vadd.f32 %v12390_v6, %v2652_v16  ;;  %v13572_v22 = vpop.f32.mrf.mxu0  ;;  %19078 = vst [vmem:[#allocation37_spill] sm:$0xff] %v15205_v10  ;;  %13584 = vmatpush3.bf16.msra.mxu0 %v14582_v12  ;;  %v14586_v16 = vld [vmem:[%s19077_s23 + $0x28] sm:$0xff]  }
 0x981   : > { %13585 = vmatprep.subr.bf16.mxu0 %v14584_v14 }
 0x982   : > { %v2668_v23 = vmax.f32 %v2664_v15, %v2666_v20  ;;  %v2665_v24 = vadd.f32 %v2663_v18, %v2661_v21  ;;  %v14585_v15 = vld [vmem:[%s19077_s23] sm:$0xff]  }
 0x984   : > { %v2667_v25 = vmul.f32 0.2, %v2665_v24  ;;  %v2680_v26 = vmul.f32 %v2668_v23, %v2668_v23  ;;  %v2670_v28 = vsel %vm1347_vm2, %v2668_v23, 0.0  ;;  %13586 = vmatpush3.bf16.msra.mxu0 %v14584_v14 }
 0x985   : > { %13607 = vmatprep.subr.bf16.mxu0 %v14586_v16 }
 0x986   : > { %v2669_v27 = vmax.f32 %v2665_v24, %v2667_v25  ;;  %v2682_v33 = vsel %vm1347_vm2, %v2680_v26, 0.0  ;;  %v2912_v24 = vld [vmem:[#allocation3] sm:$0xff] }
 0x988   : > { %v2671_v29 = vsel %vm1347_vm2, %v2669_v27, 0.0  ;;  %v2681_v30 = vmul.f32 %v2669_v27, %v2669_v27 }
 0x989   : > { %v2672_v32 = vadd.f32 %v2671_v29, %v2670_v28 }
 0x98a   : > { %v2683_v34 = vsel %vm1347_vm2, %v2681_v30, 0.0 }
 0x98b   : > { %v2673_v35 = vrot.slane %v2672_v32, 4  ;;  %v2684_v37 = vadd.f32 %v2683_v34, %v2682_v33 }
 0x98d   : > { %v2685_v38 = vrot.slane %v2684_v37, 4  ;;  %v2674_v39 = vadd.f32 %v2673_v35, %v2672_v32 }
 0x98f   : > { %v2686_v40 = vadd.f32 %v2685_v38, %v2684_v37  ;;  %v2675_v41 = vrot.slane %v2674_v39, 2 }
 0x991   : > { %v2687_v42 = vrot.slane %v2686_v40, 2  ;;  %v2676_v43 = vadd.f32 %v2675_v41, %v2674_v39  ;;  %v14589_v41 = vld [vmem:[%s19077_s23 + $0x30] sm:$0xff]  }
 0x993   : > { %v2688_v45 = vadd.f32 %v2687_v42, %v2686_v40  ;;  %v2677_v46 = vrot.slane %v2676_v43, 1  ;;  %v14588_v40 = vld [vmem:[%s19077_s23 + $0x20] sm:$0xff]  }
 0x995   : > { %v2678_v47 = vadd.f32 %v2677_v46, %v2676_v43  ;;  %v2689_v49 = vrot.slane %v2688_v45, 1 }
 0x997   : > { %v2679_v50 = vmul.f32 0.0625, %v2678_v47  ;;  %v2690_v51 = vadd.f32 %v2689_v49, %v2688_v45 }
 0x999   : > { %v2691_v52 = vmul.f32 0.0625, %v2690_v51  ;;  %v2692_v53 = vmul.f32 %v2679_v50, %v2679_v50  ;;  %v2695_v57 = vsub.f32 %v2668_v23, %v2679_v50  ;;  %v2696_v60 = vsub.f32 %v2669_v27, %v2679_v50  ;;  %v2928_v23 = vld [vmem:[#allocation3 + $0x1] sm:$0xff]  ;;  %v14590_v50 = vld [vmem:[%s19077_s23 + $0x48] sm:$0xff]  }
 0x99a   : > { %v14591_v51 = vld [vmem:[%s19077_s23 + $0x58] sm:$0xff]  }
 0x99b   : > { %v2693_v54 = vsub.f32 %v2691_v52, %v2692_v53  ;;  %v3123_v53 = vld [vmem:[#allocation3 + $0x2] sm:$0xff] }
 0x99d   : > { %v2694_v55 = vmax.f32 %v2693_v54, 0.0 }
 0x99f   : > { %v2697_v56 = vadd.f32 1e-08, %v2694_v55 }
 0x9a1   : > { %14640 = vrsqrt.f32 %v2697_v56 }
 0x9ae   : > { %v14641_v58 = vpop.eup %14640 }
 0x9af   : > { %v2699_v59 = vmul.f32 %v14641_v58, %v2695_v57  ;;  %v2700_v61 = vmul.f32 %v14641_v58, %v2696_v60 }
 0x9b1   : > { %2703 = vrot.lane.b32.xlu1 %v2699_v59, %s14705_s16 }
 0x9b5   : > { %2705 = vrot.lane.b32.xlu1 %v2700_v61, %s14705_s16 }
 0xa23   : > { %v2704_v63 = vpop.permute.xlu1 %2703 }
 0xa24   : > { %v2709_v0 = vmul.f32 %v2704_v63, %v15098_v48 }
 0xa26   : > { %v2711_v4 = vadd.f32 %v2709_v0, %v15114_v31 }
 0xa27   : > { %v2706_v1 = vpop.permute.xlu1 %2705 }
 0xa28   : > { %v2710_v2 = vmul.f32 %v2706_v1, %v15098_v48 }
 0xa2a   : > { %v2712_v6 = vadd.f32 %v2710_v2, %v15114_v31  ;;  %v14580_v31 = vld [vmem:[%s19075_s11 + $0x10] sm:$0xff]  }
 0xa2c   : > { %v2778_v9 = vpack.c.bf16 %v2712_v6, %v2711_v4 }
 0xa2e   : > { %2800 = vrot.lane.b32.xlu1 %v2778_v9, %s14705_s16  ;;  %v14593_v9 = vld [vmem:[%s19077_s23 + $0x50] sm:$0xff]   ;;  %s19079_s16 = sld [smem:[#allocation21_spill]] }
 0xa32   : > { %4056 = vrot.lane.b32.xlu1 %v15205_v10, %s19012_s2  ;;  %s19081_s2 = sld [smem:[#allocation23_spill]] }
 0xaa0   : > { %v2801_v48 = vpop.permute.xlu1 %2800 }
 0xaa1   : > { %13573 = vmatprep.subr.bf16.mxu1 %v2801_v48 }
 0xaa2   : > { %13574 = vmatpush3.bf16.msra.mxu1 %v2801_v48  ;;  %v14594_v48 = vld [vmem:[%s19077_s23 + $0x68] sm:$0xff]  }
 0xaa3   : > { %13595 = vmatprep.subr.bf16.mxu1 %v14583_v13 }
 0xaa5   : > { %13576 = vmatmul.mubr.msk.bf16.vlgmr.msra.gmra.mxu1 %vm2803_vm5, %v14579_v11 }
 0xaa6   : > { %13579 = vmatprep.mubr.msk.bf16.mxu1 %vm2803_vm5, %v14580_v31  ;;  %13596 = vmatpush3.bf16.msra.mxu1 %v14583_v13 }
 0xaa7   : > { %13597 = vmatprep.subr.bf16.mxu1 %v14585_v15 }
 0xaaa   : > { %13598 = vmatpush3.bf16.msra.mxu1 %v14585_v15 }
 0xaab   : > { %13619 = vmatprep.subr.bf16.mxu1 %v14587_v17 }
 0xaad   : > { %13580 = vmatmul.mubr.msk.bf16.gmra.mxu1 %vm2803_vm5, %v14581_v8  ;;  %v14595_v8 = vld [vmem:[%s19077_s23 + $0x78] sm:$0xff]  }
 0xb65   : > { %v13577_v18 = vpop.f32.mrf.mxu1 }
 0xb66   : > { %2884 = vst.msk [vmem:[#allocation3 + $0x31] sm:$0xff] %vm1347_vm2, %v13577_v18 }
 0xb67   : > { %v2850_v19 = vpop.f32.mrf.mxu1 }
 0xb68   : > { %2882 = vst.msk [vmem:[#allocation3 + $0x11] sm:$0xff] %vm1347_vm2, %v2850_v19 }
 0xb69   : > { %v13578_v20 = vpop.f32.mrf.mxu1 }
 0xb6a   : > { %2885 = vst.msk [vmem:[#allocation3 + $0x41] sm:$0xff] %vm1347_vm2, %v13578_v20 }
 0xb6b   : > { %v2853_v21 = vpop.f32.mrf.mxu1 }
 0xb6c   : > { %2883 = vst.msk [vmem:[#allocation3 + $0x21] sm:$0xff] %vm1347_vm2, %v2853_v21  ;;  %v14596_v21 = vld [vmem:[%s19077_s23 + $0x60] sm:$0xff]  }
 0xb6d   : > { %v13581_v22 = vpop.f32.mrf.mxu1  ;;  %v15235_v32 = vld [vmem:[#allocation3 + $0x31] sm:$0xff] }
 0xb6e   : > { %2888 = vst.msk [vmem:[#allocation3 + $0x71] sm:$0xff] %vm1347_vm2, %v13581_v22  ;;  %v2915_v37 = vld [vmem:[#allocation3 + $0x30] sm:$0xff]  ;;  %v14597_v22 = vld [vmem:[%s19077_s23 + $0x70] sm:$0xff]  }
 0xb6f   : > { %v2866_v25 = vpop.f32.mrf.mxu1  ;;  %v15228_v26 = vld [vmem:[#allocation3 + $0x11] sm:$0xff] }
 0xb70   : > { %v2913_v27 = vld [vmem:[#allocation3 + $0x10] sm:$0xff]  ;;  %2886 = vst.msk [vmem:[#allocation3 + $0x51] sm:$0xff] %vm1347_vm2, %v2866_v25  ;;  %v2936_v28 = vpack.c.bf16 %v15228_v26, %v2928_v23  ;;  %v14598_v25 = vld [vmem:[%s19077_s23 + $0x88] sm:$0xff]  }
 0xb71   : > { %v2920_v29 = vpack.c.bf16 %v2913_v27, %v2912_v24  ;;  %v13582_v30 = vpop.f32.mrf.mxu1  ;;  %v15252_v42 = vld [vmem:[#allocation3 + $0x41] sm:$0xff]  ;;  %v3124_v54 = vld [vmem:[#allocation3 + $0x12] sm:$0xff] }
 0xb72   : > { %2889 = vst.msk [vmem:[#allocation3 + $0x81] sm:$0xff] %vm1347_vm2, %v13582_v30  ;;  %13587 = vmatprep.mubr.msk.bf16.mxu0 %vm1347_vm2, %v2936_v28  ;;  %v2916_v45 = vld [vmem:[#allocation3 + $0x40] sm:$0xff]  ;;  %v3131_v60 = vpack.c.bf16 %v3124_v54, %v3123_v53  ;;  %v3126_v0 = vld [vmem:[#allocation3 + $0x32] sm:$0xff] }
 0xb73   : > { %13599 = vmatprep.mubr.msk.bf16.mxu1 %vm1347_vm2, %v2920_v29  ;;  %v2869_v33 = vpop.f32.mrf.mxu1  ;;  %v15237_v34 = vld [vmem:[#allocation3 + $0x21] sm:$0xff]  ;;  %v3246_v2 = vpack.c.bf16 %v2916_v45, %v2915_v37  ;;  %v14599_v28 = vld [vmem:[%s19077_s23 + $0x80] sm:$0xff]  }
 0xb74   : > { %v2914_v35 = vld [vmem:[#allocation3 + $0x20] sm:$0xff]  ;;  %2887 = vst.msk [vmem:[#allocation3 + $0x61] sm:$0xff] %vm1347_vm2, %v2869_v33  ;;  %v15242_v38 = vpack.c.bf16 %v15235_v32, %v15237_v34  ;;  %v3359_v15 = vpack.c.bf16 %v15237_v34, %v15228_v26  ;;  %v3587_v29 = vld [vmem:[#allocation3 + $0x90] sm:$0xff] }
 0xb75   : > { %v15244_v39 = vpack.c.bf16 %v2915_v37, %v2914_v35  ;;  %v15268_v52 = vld [vmem:[#allocation3 + $0x71] sm:$0xff]  ;;  %v3245_v61 = vpack.c.bf16 %v2914_v35, %v2913_v27  ;;  %v3125_v62 = vld [vmem:[#allocation3 + $0x22] sm:$0xff] }
 0xb76   : > { %13588 = vmatmul.mubr.msk.bf16.vlgmr.msra.gmra.mxu0 %vm1347_vm2, %v15242_v38  ;;  %v2919_v57 = vld [vmem:[#allocation3 + $0x70] sm:$0xff]  ;;  %v15281_v1 = vpack.c.bf16 %v3126_v0, %v3125_v62  ;;  %v3127_v3 = vld [vmem:[#allocation3 + $0x42] sm:$0xff] }
 0xb77   : > { %13600 = vmatmul.mubr.msk.bf16.vlgmr.msra.gmra.mxu1 %vm1347_vm2, %v15244_v39  ;;  %v15254_v43 = vld [vmem:[#allocation3 + $0x51] sm:$0xff]  ;;  %13608 = vmatpush3.bf16.msra.mxu0 %v14586_v16  ;;  %v3473_v16 = vpack.c.bf16 %v3125_v62, %v3124_v54  ;;  %v3474_v18 = vpack.c.bf16 %v3127_v3, %v3126_v0 }
 0xb78   : > { %v2917_v46 = vld [vmem:[#allocation3 + $0x50] sm:$0xff]  ;;  %13620 = vmatpush3.bf16.msra.mxu1 %v14587_v17  ;;  %v15258_v47 = vpack.c.bf16 %v15254_v43, %v15252_v42  ;;  %13609 = vmatprep.subr.bf16.mxu0 %v14588_v40  ;;  %v3360_v17 = vpack.c.bf16 %v15252_v42, %v15235_v32 }
 0xb79   : > { %v15260_v49 = vpack.c.bf16 %v2917_v46, %v2916_v45  ;;  %13621 = vmatprep.subr.bf16.mxu1 %v14589_v41  ;;  %v3128_v63 = vld [vmem:[#allocation3 + $0x52] sm:$0xff]  ;;  %v3244_v31 = vld [vmem:[#allocation3 + $0x80] sm:$0xff] }
 0xb7a   : > { %13591 = vmatprep.mubr.msk.bf16.mxu0 %vm1347_vm2, %v15258_v47  ;;  %v15283_v4 = vpack.c.bf16 %v3128_v63, %v3127_v3  ;;  %v3130_v12 = vld [vmem:[#allocation3 + $0x72] sm:$0xff]  ;;  %v3248_v14 = vpack.c.bf16 %v3244_v31, %v2919_v57  ;;  %v3358_v23 = vld [vmem:[#allocation3 + $0x81] sm:$0xff]  ;;  %v3591_v32 = vpack.c.bf16 %v3587_v29, %v3244_v31 }
 0xb7b   : > { %13603 = vmatprep.mubr.msk.bf16.mxu1 %vm1347_vm2, %v15260_v49  ;;  %v2934_v55 = vld [vmem:[#allocation3 + $0x61] sm:$0xff]  ;;  %13610 = vmatpush3.bf16.msra.mxu0 %v14588_v40  ;;  %v3362_v26 = vpack.c.bf16 %v3358_v23, %v15268_v52  ;;  %v3701_v30 = vld [vmem:[#allocation3 + $0x91] sm:$0xff] }
 0xb7c   : > { %v2918_v56 = vld [vmem:[#allocation3 + $0x60] sm:$0xff]  ;;  %13622 = vmatpush3.bf16.msra.mxu1 %v14589_v41  ;;  %v15271_v58 = vpack.c.bf16 %v15268_v52, %v2934_v55  ;;  %13631 = vmatprep.subr.bf16.mxu0 %v14590_v50  ;;  %v3361_v19 = vpack.c.bf16 %v2934_v55, %v15254_v43  ;;  %v3705_v33 = vpack.c.bf16 %v3701_v30, %v3358_v23  ;;  %v3815_v34 = vld [vmem:[#allocation3 + $0x92] sm:$0xff]  ;;  %v15496_v31 = vld [vmem:[%s19079_s16 + $0x18] sm:$0xff]  }
 0xb7d   : > { %v15273_v59 = vpack.c.bf16 %v2919_v57, %v2918_v56  ;;  %13643 = vmatprep.subr.bf16.mxu1 %v14591_v51  ;;  %v3247_v6 = vpack.c.bf16 %v2918_v56, %v2917_v46  ;;  %v3129_v11 = vld [vmem:[#allocation3 + $0x62] sm:$0xff]  ;;  %v14601_v52 = vld [vmem:[%s19079_s16] sm:$0xff]  }
 0xb7e   : > { %13592 = vmatmul.mubr.msk.bf16.gmra.mxu0 %vm1347_vm2, %v15271_v58  ;;  %v3134_v13 = vpack.c.bf16 %v3130_v12, %v3129_v11  ;;  %v3475_v20 = vpack.c.bf16 %v3129_v11, %v3128_v63  ;;  %v3472_v24 = vld [vmem:[#allocation3 + $0x82] sm:$0xff] }
 0xb7f   : > { %13604 = vmatmul.mubr.msk.bf16.gmra.mxu1 %vm1347_vm2, %v15273_v59  ;;  %13611 = vmatprep.mubr.msk.bf16.mxu0 %vm1347_vm2, %v3131_v60  ;;  %v3476_v27 = vpack.c.bf16 %v3472_v24, %v3130_v12  ;;  %v3819_v35 = vpack.c.bf16 %v3815_v34, %v3472_v24  ;;  %v15486_v3 = vld [vmem:[%s19079_s16 + $0x10] sm:$0xff]  }
 0xb80   : > { %13623 = vmatprep.mubr.msk.bf16.mxu1 %vm1347_vm2, %v3245_v61 }
 0xb86   : > { %13612 = vmatmul.mubr.msk.bf16.vlgmr.msra.gmra.mxu0 %vm1347_vm2, %v15281_v1 }
 0xb87   : > { %13624 = vmatmul.mubr.msk.bf16.vlgmr.msra.gmra.mxu1 %vm1347_vm2, %v3246_v2  ;;  %13615 = vmatprep.mubr.msk.bf16.mxu0 %vm1347_vm2, %v15283_v4 }
 0xb88   : > { %13627 = vmatprep.mubr.msk.bf16.mxu1 %vm1347_vm2, %v3247_v6  ;;  %13632 = vmatpush3.bf16.msra.mxu0 %v14590_v50 }
 0xb89   : > { %13644 = vmatpush3.bf16.msra.mxu1 %v14591_v51  ;;  %13633 = vmatprep.subr.bf16.mxu0 %v14592_v7  ;;  %v14600_v51 = vld [vmem:[%s19079_s16 + $0x8] sm:$0xff]  }
 0xb8a   : > { %13645 = vmatprep.subr.bf16.mxu1 %v14593_v9 }
 0xb8c   : > { %13634 = vmatpush3.bf16.msra.mxu0 %v14592_v7 }
 0xb8d   : > { %13646 = vmatpush3.bf16.msra.mxu1 %v14593_v9  ;;  %13655 = vmatprep.subr.bf16.mxu0 %v14594_v48 }
 0xb8e   : > { %13667 = vmatprep.subr.bf16.mxu1 %v14595_v8  ;;  %13616 = vmatmul.mubr.msk.bf16.gmra.mxu0 %vm1347_vm2, %v3134_v13 }
 0xb8f   : > { %13628 = vmatmul.mubr.msk.bf16.gmra.mxu1 %vm1347_vm2, %v3248_v14  ;;  %13635 = vmatprep.mubr.msk.bf16.mxu0 %vm1347_vm2, %v3359_v15 }
 0xb90   : > { %13647 = vmatprep.mubr.msk.bf16.mxu1 %vm1347_vm2, %v3473_v16 }
 0xb96   : > { %13636 = vmatmul.mubr.msk.bf16.vlgmr.msra.gmra.mxu0 %vm1347_vm2, %v3360_v17 }
 0xb97   : > { %13648 = vmatmul.mubr.msk.bf16.vlgmr.msra.gmra.mxu1 %vm1347_vm2, %v3474_v18  ;;  %13639 = vmatprep.mubr.msk.bf16.mxu0 %vm1347_vm2, %v3361_v19 }
 0xb98   : > { %13651 = vmatprep.mubr.msk.bf16.mxu1 %vm1347_vm2, %v3475_v20  ;;  %13656 = vmatpush3.bf16.msra.mxu0 %v14594_v48 }
 0xb99   : > { %13668 = vmatpush3.bf16.msra.mxu1 %v14595_v8  ;;  %13657 = vmatprep.subr.bf16.mxu0 %v14596_v21 }
 0xb9a   : > { %13669 = vmatprep.subr.bf16.mxu1 %v14597_v22 }
 0xb9c   : > { %13658 = vmatpush3.bf16.msra.mxu0 %v14596_v21 }
 0xb9d   : > { %13670 = vmatpush3.bf16.msra.mxu1 %v14597_v22  ;;  %13679 = vmatprep.subr.bf16.mxu0 %v14598_v25 }
 0xb9e   : > { %13640 = vmatmul.mubr.msk.bf16.gmra.mxu0 %vm1347_vm2, %v3362_v26  ;;  %13691 = vmatprep.subr.bf16.mxu1 %v14600_v51 }
 0xb9f   : > { %13652 = vmatmul.mubr.msk.bf16.gmra.mxu1 %vm1347_vm2, %v3476_v27  ;;  %13659 = vmatprep.mubr.msk.bf16.mxu0 %vm1347_vm2, %v15244_v39 }
 0xba0   : > { %13671 = vmatprep.mubr.msk.bf16.mxu1 %vm1347_vm2, %v15242_v38 }
 0xba6   : > { %13660 = vmatmul.mubr.msk.bf16.vlgmr.msra.gmra.mxu0 %vm1347_vm2, %v15260_v49 }
 0xba7   : > { %13672 = vmatmul.mubr.msk.bf16.vlgmr.msra.gmra.mxu1 %vm1347_vm2, %v15258_v47  ;;  %13663 = vmatprep.mubr.msk.bf16.mxu0 %vm1347_vm2, %v15273_v59 }
 0xba8   : > { %13675 = vmatprep.mubr.msk.bf16.mxu1 %vm1347_vm2, %v15271_v58  ;;  %13680 = vmatpush3.bf16.msra.mxu0 %v14598_v25 }
 0xba9   : > { %13681 = vmatprep.subr.bf16.mxu0 %v14599_v28  ;;  %13692 = vmatpush3.bf16.msra.mxu1 %v14600_v51 }
 0xbaa   : > { %13711 = vmatprep.subr.bf16.mxu1 %v15486_v3 }
 0xbac   : > { %13682 = vmatpush3.bf16.msra.mxu0 %v14599_v28 }
 0xbad   : > { %13701 = vmatprep.subr.bf16.mxu0 %v14601_v52 }
 0xbae   : > { %13664 = vmatmul.mubr.msk.bf16.gmra.mxu0 %vm1347_vm2, %v3591_v32 }
 0xbaf   : > { %13676 = vmatmul.mubr.msk.bf16.gmra.mxu1 %vm1347_vm2, %v3705_v33  ;;  %13683 = vmatprep.mubr.msk.bf16.mxu0 %vm1347_vm2, %v15281_v1 }
 0xbb6   : > { %13684 = vmatmul.mubr.msk.bf16.vlgmr.msra.gmra.mxu0 %vm1347_vm2, %v15283_v4 }
 0xbb7   : > { %13687 = vmatprep.mubr.msk.bf16.mxu0 %vm1347_vm2, %v3134_v13  ;;  %13702 = vmatpush3.bf16.msra.mxu0 %v14601_v52 }
 0xbb8   : > { %13721 = vmatprep.subr.bf16.mxu0 %v15496_v31 }
 0xbbe   : > { %13688 = vmatmul.mubr.msk.bf16.gmra.mxu0 %vm1347_vm2, %v3819_v35 }
 0xc36   : > { %v15335_v37 = vpop.f32.mrf.mxu0 }
 0xc37   : > { %v15337_v38 = vpop.f32.mrf.mxu1 }
 0xc38   : > { %v15339_v39 = vpop.f32.mrf.mxu0  ;;  %v3101_v25 = vadd.f32 %v15337_v38, %v15335_v37 }
 0xc39   : > { %v15341_v40 = vpop.f32.mrf.mxu1 }
 0xc3a   : > { %v15343_v41 = vpop.f32.mrf.mxu0  ;;  %v3093_v28 = vadd.f32 %v15341_v40, %v15339_v39 }
 0xc3b   : > { %v15345_v42 = vpop.f32.mrf.mxu1 }
 0xc3c   : > { %v15347_v43 = vpop.f32.mrf.mxu0  ;;  %v3104_v33 = vadd.f32 %v15345_v42, %v15343_v41 }
 0xc3d   : > { %v15349_v45 = vpop.f32.mrf.mxu1 }
 0xc3e   : > { %v15351_v46 = vpop.f32.mrf.mxu0  ;;  %v3096_v51 = vadd.f32 %v15349_v45, %v15347_v43 }
 0xc3f   : > { %v15353_v47 = vpop.f32.mrf.mxu1 }
 0xc40   : > { %v15355_v49 = vpop.f32.mrf.mxu0  ;;  %v3117_v41 = vadd.f32 %v15353_v47, %v15351_v46 }
 0xc41   : > { %v15357_v50 = vpop.f32.mrf.mxu1 }
 0xc42   : > { %v15361_v53 = vpop.f32.mrf.mxu0  ;;  %v3109_v43 = vadd.f32 %v15357_v50, %v15355_v49 }
 0xc43   : > { %v15363_v54 = vpop.f32.mrf.mxu1 }
 0xc44   : > { %v15369_v55 = vpop.f32.mrf.mxu0  ;;  %v3120_v45 = vadd.f32 %v15363_v54, %v15361_v53 }
 0xc45   : > { %v15371_v56 = vpop.f32.mrf.mxu1 }
 0xc46   : > { %v15373_v57 = vpop.f32.mrf.mxu0  ;;  %v3112_v46 = vadd.f32 %v15371_v56, %v15369_v55 }
 0xc47   : > { %v15375_v58 = vpop.f32.mrf.mxu1  ;;  %v3231_v29 = vadd.f32 %v15373_v57, %v3101_v25 }
 0xc48   : > { %v15377_v59 = vpop.f32.mrf.mxu0 }
 0xc49   : > { %v15379_v60 = vpop.f32.mrf.mxu1  ;;  %v3229_v34 = vadd.f32 %v15377_v59, %v3093_v28  ;;  %v3345_v37 = vadd.f32 %v15375_v58, %v3231_v29 }
 0xc4a   : > { %v15381_v61 = vpop.f32.mrf.mxu0 }
 0xc4b   : > { %v15383_v62 = vpop.f32.mrf.mxu1  ;;  %v3232_v38 = vadd.f32 %v15381_v61, %v3104_v33  ;;  %v3343_v39 = vadd.f32 %v15379_v60, %v3229_v34 }
 0xc4c   : > { %v15385_v63 = vpop.f32.mrf.mxu0 }
 0xc4d   : > { %v15387_v0 = vpop.f32.mrf.mxu1  ;;  %v3230_v40 = vadd.f32 %v15385_v63, %v3096_v51  ;;  %v3346_v59 = vadd.f32 %v15383_v62, %v3232_v38  ;;  %v3939_v38 = vld [vmem:[%s19081_s2 + $0x10] sm:$0xff] }
 0xc4e   : > { %v13617_v1 = vpop.f32.mrf.mxu0 }
 0xc4f   : > { %v13629_v2 = vpop.f32.mrf.mxu1  ;;  %v3235_v58 = vadd.f32 %v13617_v1, %v3117_v41  ;;  %v3344_v60 = vadd.f32 %v15387_v0, %v3230_v40 }
 0xc50   : > { %v3214_v4 = vpop.f32.mrf.mxu0 }
 0xc51   : > { %v15488_v6 = vpop.f32.mrf.mxu1  ;;  %v3233_v47 = vadd.f32 %v3214_v4, %v3109_v43  ;;  %v3349_v49 = vadd.f32 %v13629_v2, %v3235_v58  ;;  %v3940_v43 = vld [vmem:[%s19081_s2 + $0x18] sm:$0xff] }
 0xc52   : > { %v13618_v7 = vpop.f32.mrf.mxu0 }
 0xc53   : > { %v15491_v9 = vpop.f32.mrf.mxu1  ;;  %v3236_v29 = vadd.f32 %v13618_v7, %v3120_v45  ;;  %v3347_v0 = vadd.f32 %v15488_v6, %v3233_v47 }
 0xc54   : > { %v3217_v48 = vpop.f32.mrf.mxu0 }
 0xc55   : > { %v15493_v11 = vpop.f32.mrf.mxu1  ;;  %v3234_v50 = vadd.f32 %v3217_v48, %v3112_v46 }
 0xc56   : > { %v13637_v8 = vpop.f32.mrf.mxu0 }
 0xc57   : > { %v13649_v12 = vpop.f32.mrf.mxu1  ;;  %v3459_v57 = vadd.f32 %v13637_v8, %v3345_v37  ;;  %v15535_v37 = vld [vmem:[%s19080_s0] ss:$0 sm:$0xff]  ;;  %s19083_s0 = sld [smem:[#allocation34_spill]] }
 0xc58   : > { %v3426_v13 = vpop.f32.mrf.mxu0 }
 0xc59   : > { %v3540_v14 = vpop.f32.mrf.mxu1  ;;  %v3457_v25 = vadd.f32 %v3426_v13, %v3343_v39  ;;  %v3573_v63 = vadd.f32 %v13649_v12, %v3459_v57  ;;  %v3350_v12 = vadd.f32 %v15491_v9, %v3236_v29  ;;  %v3937_v57 = vld [vmem:[%s19081_s2] sm:$0xff] }
 0xc5a   : > { %v13638_v15 = vpop.f32.mrf.mxu0 }
 0xc5b   : > { %v13650_v16 = vpop.f32.mrf.mxu1  ;;  %v3460_v8 = vadd.f32 %v13638_v15, %v3346_v59  ;;  %v3571_v13 = vadd.f32 %v3540_v14, %v3457_v25  ;;  %v3348_v14 = vadd.f32 %v15493_v11, %v3234_v50 }
 0xc5c   : > { %v3429_v17 = vpop.f32.mrf.mxu0 }
 0xc5d   : > { %v3543_v18 = vpop.f32.mrf.mxu1  ;;  %v3458_v33 = vadd.f32 %v3429_v17, %v3344_v60  ;;  %v3574_v54 = vadd.f32 %v13650_v16, %v3460_v8 }
 0xc5e   : > { %v13641_v19 = vpop.f32.mrf.mxu0 }
 0xc5f   : > { %v15499_v20 = vpop.f32.mrf.mxu1  ;;  %v3463_v15 = vadd.f32 %v13641_v19, %v3349_v49  ;;  %v3572_v56 = vadd.f32 %v3543_v18, %v3458_v33 }
 0xc60   : > { %v3442_v21 = vpop.f32.mrf.mxu0 }
 0xc61   : > { %v15501_v22 = vpop.f32.mrf.mxu1  ;;  %v3461_v17 = vadd.f32 %v3442_v21, %v3347_v0  ;;  %v3577_v9 = vadd.f32 %v15499_v20, %v3463_v15 }
 0xc62   : > { %v13642_v23 = vpop.f32.mrf.mxu0 }
 0xc63   : > { %v15503_v24 = vpop.f32.mrf.mxu1  ;;  %v3464_v2 = vadd.f32 %v13642_v23, %v3350_v12  ;;  %v3575_v21 = vadd.f32 %v15501_v22, %v3461_v17 }
 0xc64   : > { %v3445_v26 = vpop.f32.mrf.mxu0 }
 0xc65   : > { %v15507_v27 = vpop.f32.mrf.mxu1  ;;  %v3462_v19 = vadd.f32 %v3445_v26, %v3348_v14  ;;  %v3578_v23 = vadd.f32 %v15503_v24, %v3464_v2 }
 0xc66   : > { %v13661_v30 = vpop.f32.mrf.mxu0 }
 0xc67   : > { %v13673_v32 = vpop.f32.mrf.mxu1  ;;  %v3688_v34 = vadd.f32 %v13661_v30, %v3573_v63  ;;  %v3576_v59 = vadd.f32 %v15507_v27, %v3462_v19  ;;  %v3938_v27 = vld [vmem:[%s19081_s2 + $0x8] sm:$0xff] }
 0xc68   : > { %v3655_v35 = vpop.f32.mrf.mxu0 }
 0xc69   : > { %v3769_v52 = vpop.f32.mrf.mxu1  ;;  %v3686_v1 = vadd.f32 %v3655_v35, %v3571_v13  ;;  %v3802_v4 = vadd.f32 %v13673_v32, %v3688_v34 }
 0xc6a   : > { %v13662_v5 = vpop.f32.mrf.mxu0 }
 0xc6b   : > { %v13674_v61 = vpop.f32.mrf.mxu1  ;;  %v3689_v7 = vadd.f32 %v13662_v5, %v3574_v54  ;;  %v3800_v16 = vadd.f32 %v3769_v52, %v3686_v1 }
 0xc6c   : > { %v3658_v42 = vpop.f32.mrf.mxu0 }
 0xc6d   : > { %v3772_v51 = vpop.f32.mrf.mxu1  ;;  %v3687_v35 = vadd.f32 %v3658_v42, %v3572_v56  ;;  %v3803_v18 = vadd.f32 %v13674_v61, %v3689_v7 }
 0xc6e   : > { %v13665_v28 = vpop.f32.mrf.mxu0 }
 0xc6f   : > { %v13677_v48 = vpop.f32.mrf.mxu1  ;;  %v3692_v32 = vadd.f32 %v13665_v28, %v3577_v9  ;;  %v3801_v41 = vadd.f32 %v3772_v51, %v3687_v35  ;;  %v3943_v51 = vld [vmem:[%s19081_s2 + $0x30] sm:$0xff] }
 0xc70   : > { %v3671_v62 = vpop.f32.mrf.mxu0 }
 0xc71   : > { %v3785_v40 = vpop.f32.mrf.mxu1  ;;  %v3690_v25 = vadd.f32 %v3671_v62, %v3575_v21  ;;  %v3806_v28 = vadd.f32 %v13677_v48, %v3692_v32 }
 0xc72   : > { %v13666_v53 = vpop.f32.mrf.mxu0 }
 0xc73   : > { %v3693_v58 = vadd.f32 %v13666_v53, %v3578_v23  ;;  %v13678_v60 = vpop.f32.mrf.mxu1  ;;  %v3804_v62 = vadd.f32 %v3785_v40, %v3690_v25 }
 0xc74   : > { %v3674_v55 = vpop.f32.mrf.mxu0 }
 0xc75   : > { %v3691_v63 = vadd.f32 %v3674_v55, %v3576_v59  ;;  %v3807_v49 = vadd.f32 %v13678_v60, %v3693_v58  ;;  %v3788_v53 = vpop.f32.mrf.mxu1 }
 0xc76   : > { %v13685_v30 = vpop.f32.mrf.mxu0 }
 0xc77   : > { %v3916_v6 = vadd.f32 %v13685_v30, %v3802_v4  ;;  %v3805_v55 = vadd.f32 %v3788_v53, %v3691_v63  ;;  %v3941_v4 = vld [vmem:[%s19081_s2 + $0x20] sm:$0xff] }
 0xc78   : > { %v3883_v39 = vpop.f32.mrf.mxu0 }
 0xc79   : > { %v3931_v5 = vadd.f32 %v15535_v37, %v3916_v6  ;;  %v3914_v11 = vadd.f32 %v3883_v39, %v3800_v16  ;;  %v3942_v39 = vld [vmem:[%s19081_s2 + $0x28] sm:$0xff] }
 0xc7a   : > { %v13686_v52 = vpop.f32.mrf.mxu0 }
 0xc7b   : > { %v3947_v42 = vadd.f32 %v3939_v38, %v3931_v5  ;;  %v3929_v20 = vadd.f32 %v15535_v37, %v3914_v11  ;;  %v3917_v26 = vadd.f32 %v13686_v52, %v3803_v18  ;;  %v3944_v38 = vld [vmem:[%s19081_s2 + $0x38] sm:$0xff]  ;;  %s19089_s2 = sld [smem:[#allocation24_spill]] }
 0xc7c   : > { %v3886_v45 = vpop.f32.mrf.mxu0 }
 0xc7d   : > { %v3945_v61 = vadd.f32 %v3937_v57, %v3929_v20  ;;  %v3932_v22 = vadd.f32 %v15535_v37, %v3917_v26  ;;  %v3915_v24 = vadd.f32 %v3886_v45, %v3801_v41  ;;  %v3955_v46 = vmul.f32 0.2, %v3947_v42 }
 0xc7e   : > { %v13689_v8 = vpop.f32.mrf.mxu0 }
 0xc7f   : > { %v3953_v47 = vmul.f32 0.2, %v3945_v61  ;;  %v3948_v29 = vadd.f32 %v3940_v43, %v3932_v22  ;;  %v3930_v13 = vadd.f32 %v15535_v37, %v3915_v24  ;;  %v3920_v33 = vadd.f32 %v13689_v8, %v3806_v28 }
 0xc80   : > { %v3899_v34 = vpop.f32.mrf.mxu0  ;;  %v15553_v56 = vmax.f32 %v3947_v42, %v3955_v46 }
 0xc81   : > { %v15549_v50 = vmax.f32 %v3945_v61, %v3953_v47  ;;  %v3956_v54 = vmul.f32 0.2, %v3948_v29  ;;  %v3946_v1 = vadd.f32 %v3938_v27, %v3930_v13  ;;  %v3935_v0 = vadd.f32 %v15535_v37, %v3920_v33 }
 0xc82   : > { %v3918_v12 = vadd.f32 %v3899_v34, %v3804_v62  ;;  %v13690_v15 = vpop.f32.mrf.mxu0  ;;  %v3994_v18 = vmul.f32 %v15553_v56, %v15553_v56  ;;  %v3972_v57 = vsel %vm2803_vm5, %v15553_v56, 0.0 }
 0xc83   : > { %v3954_v7 = vmul.f32 0.2, %v3946_v1  ;;  %v3951_v14 = vadd.f32 %v3943_v51, %v3935_v0  ;;  %v3921_v2 = vadd.f32 %v13690_v15, %v3807_v49  ;;  %v3992_v30 = vmul.f32 %v15549_v50, %v15549_v50 }
 0xc84   : > { %v3933_v17 = vadd.f32 %v15535_v37, %v3918_v12  ;;  %v3902_v48 = vpop.f32.mrf.mxu0  ;;  %v15559_v35 = vmax.f32 %v3948_v29, %v3956_v54  ;;  %v3969_v5 = vsel %vm2803_vm5, %v15549_v50, 0.0  ;;  %v4003_v61 = vsel %vm2803_vm5, %v3994_v18, 0.0 }
 0xc85   : > { %v3919_v16 = vadd.f32 %v3902_v48, %v3805_v55  ;;  %v15561_v6 = vmax.f32 %v3946_v1, %v3954_v7  ;;  %v3936_v19 = vadd.f32 %v15535_v37, %v3921_v2  ;;  %v3959_v32 = vmul.f32 0.2, %v3951_v14 }
 0xc86   : > { %v3949_v9 = vadd.f32 %v3941_v4, %v3933_v17  ;;  %v4000_v20 = vsel %vm2803_vm5, %v3992_v30, 0.0  ;;  %v3995_v26 = vmul.f32 %v15559_v35, %v15559_v35  ;;  %v3974_v22 = vsel %vm2803_vm5, %v15559_v35, 0.0 }
 0xc87   : > { %v3934_v11 = vadd.f32 %v15535_v37, %v3919_v16  ;;  %v3970_v21 = vsel %vm2803_vm5, %v15561_v6, 0.0  ;;  %v3993_v23 = vmul.f32 %v15561_v6, %v15561_v6  ;;  %v3952_v41 = vadd.f32 %v3944_v38, %v3936_v19 }
 0xc88   : > { %v3957_v40 = vmul.f32 0.2, %v3949_v9  ;;  %v3971_v52 = vadd.f32 %v3970_v21, %v3969_v5  ;;  %v3967_v24 = vmax.f32 %v3951_v14, %v3959_v32  ;;  %v4005_v46 = vsel %vm2803_vm5, %v3995_v26, 0.0 }
 0xc89   : > { %v3950_v42 = vadd.f32 %v3942_v39, %v3934_v11  ;;  %v4001_v37 = vsel %vm2803_vm5, %v3993_v23, 0.0  ;;  %v3960_v45 = vmul.f32 0.2, %v3952_v41 }
 0xc8a   : > { %v15581_v59 = vmax.f32 %v3949_v9, %v3957_v40  ;;  %v3973_v25 = vadd.f32 %v3972_v57, %v3971_v52  ;;  %v4002_v43 = vadd.f32 %v4001_v37, %v4000_v20  ;;  %v3998_v62 = vmul.f32 %v3967_v24, %v3967_v24 }
 0xc8b   : > { %v3958_v58 = vmul.f32 0.2, %v3950_v42  ;;  %v3968_v29 = vmax.f32 %v3952_v41, %v3960_v45  ;;  %v3980_v54 = vsel %vm2803_vm5, %v3967_v24, 0.0 }
 0xc8c   : > { %v3996_v28 = vmul.f32 %v15581_v59, %v15581_v59  ;;  %v4004_v60 = vadd.f32 %v4003_v61, %v4002_v43  ;;  %v3975_v63 = vadd.f32 %v3974_v22, %v3973_v25  ;;  %v3976_v47 = vsel %vm2803_vm5, %v15581_v59, 0.0 }
 0xc8d   : > { %v3966_v8 = vmax.f32 %v3950_v42, %v3958_v58  ;;  %v3999_v1 = vmul.f32 %v3968_v29, %v3968_v29  ;;  %v4011_v55 = vsel %vm2803_vm5, %v3998_v62, 0.0  ;;  %v3982_v4 = vsel %vm2803_vm5, %v3968_v29, 0.0  ;;  %v15607_v62 = vpop.permute.xlu1 %4056 }
 0xc8e   : > { %v3977_v13 = vadd.f32 %v3976_v47, %v3975_v63  ;;  %v4006_v27 = vadd.f32 %v4005_v46, %v4004_v60  ;;  %v4007_v33 = vsel %vm2803_vm5, %v3996_v28, 0.0  ;;  %19082 = vst [vmem:[#allocation38_spill] sm:$0xff] %v15607_v62 }
 0xc8f   : > { %v3978_v34 = vsel %vm2803_vm5, %v3966_v8, 0.0  ;;  %v3997_v49 = vmul.f32 %v3966_v8, %v3966_v8  ;;  %v4013_v17 = vsel %vm2803_vm5, %v3999_v1, 0.0 }
 0xc90   : > { %v4008_v51 = vadd.f32 %v4007_v33, %v4006_v27  ;;  %v3979_v53 = vadd.f32 %v3978_v34, %v3977_v13 }
 0xc91   : > { %v4009_v0 = vsel %vm2803_vm5, %v3997_v49, 0.0 }
 0xc92   : > { %v3981_v12 = vadd.f32 %v3980_v54, %v3979_v53  ;;  %v4010_v15 = vadd.f32 %v4009_v0, %v4008_v51 }
 0xc94   : > { %v3983_v7 = vadd.f32 %v3982_v4, %v3981_v12  ;;  %v4012_v14 = vadd.f32 %v4011_v55, %v4010_v15  ;;  %v4113_v15 = vld [vmem:[#allocation4 + $0x1] sm:$0xff] }
 0xc95   : > { %v4099_v55 = vld [vmem:[#allocation4] sm:$0xff] }
 0xc96   : > { %v3984_v2 = vrot.slane %v3983_v7, 4  ;;  %v4014_v48 = vadd.f32 %v4013_v17, %v4012_v14 }
 0xc98   : > { %v3985_v30 = vadd.f32 %v3984_v2, %v3983_v7  ;;  %v4015_v16 = vrot.slane %v4014_v48, 4 }
 0xc9a   : > { %v3986_v9 = vrot.slane %v3985_v30, 2  ;;  %v4016_v19 = vadd.f32 %v4015_v16, %v4014_v48 }
 0xc9c   : > { %v3987_v38 = vadd.f32 %v3986_v9, %v3985_v30  ;;  %v4017_v39 = vrot.slane %v4016_v19, 2 }
 0xc9e   : > { %v3988_v18 = vrot.slane %v3987_v38, 1  ;;  %v4018_v5 = vadd.f32 %v4017_v39, %v4016_v19 }
 0xca0   : > { %v3989_v11 = vadd.f32 %v3988_v18, %v3987_v38  ;;  %v4019_v21 = vrot.slane %v4018_v5, 1 }
 0xca2   : > { %v3991_v23 = vmul.f32 0.015625, %v3989_v11  ;;  %v4020_v32 = vadd.f32 %v4019_v21, %v4018_v5  ;;  %v14604_v21 = vld [vmem:[%s19079_s16 + $0x20] sm:$0xff]  }
 0xca4   : > { %v4021_v40 = vmul.f32 0.015625, %v4020_v32  ;;  %v4022_v57 = vmul.f32 %v3991_v23, %v3991_v23  ;;  %v4030_v20 = vsub.f32 %v3966_v8, %v3991_v23  ;;  %v4025_v26 = vsub.f32 %v15549_v50, %v3991_v23 }
 0xca5   : > { %v4026_v37 = vsub.f32 %v15561_v6, %v3991_v23  ;;  %v4027_v25 = vsub.f32 %v15553_v56, %v3991_v23  ;;  %v4028_v45 = vsub.f32 %v15559_v35, %v3991_v23  ;;  %v4029_v58 = vsub.f32 %v15581_v59, %v3991_v23 }
 0xca6   : > { %v4023_v52 = vsub.f32 %v4021_v40, %v4022_v57  ;;  %v4031_v61 = vsub.f32 %v3967_v24, %v3991_v23  ;;  %v4032_v22 = vsub.f32 %v3968_v29, %v3991_v23  ;;  %v14605_v23 = vld [vmem:[%s19079_s16 + $0x28] sm:$0xff]  }
 0xca8   : > { %v4024_v41 = vmax.f32 %v4023_v52, 0.0 }
 0xcaa   : > { %v4033_v42 = vadd.f32 1e-08, %v4024_v41 }
 0xcac   : > { %14642 = vrsqrt.f32 %v4033_v42  ;;  %v4294_v42 = vld [vmem:[#allocation4 + $0x2] sm:$0xff] }
 0xcb9   : > { %v14643_v43 = vpop.eup %14642 }
 0xcba   : > { %v4040_v28 = vmul.f32 %v14643_v43, %v4030_v20  ;;  %v4035_v60 = vmul.f32 %v14643_v43, %v4025_v26  ;;  %v4036_v63 = vmul.f32 %v14643_v43, %v4026_v37  ;;  %v4037_v46 = vmul.f32 %v14643_v43, %v4027_v25 }
 0xcbb   : > { %v4038_v47 = vmul.f32 %v14643_v43, %v4028_v45  ;;  %v4039_v13 = vmul.f32 %v14643_v43, %v4029_v58  ;;  %v4041_v8 = vmul.f32 %v14643_v43, %v4031_v61  ;;  %v4042_v27 = vmul.f32 %v14643_v43, %v4032_v22 }
 0xcbc   : > { %v4052_v50 = vmul.f32 %v15205_v10, %v4040_v28  ;;  %v4047_v6 = vmul.f32 %v15205_v10, %v4035_v60  ;;  %v4048_v56 = vmul.f32 %v15205_v10, %v4036_v63  ;;  %v4049_v35 = vmul.f32 %v15205_v10, %v4037_v46  ;;  %v14606_v63 = vld [vmem:[%s19079_s16 + $0x30] sm:$0xff]   ;;  %v14607_v46 = vld [vmem:[%s19079_s16 + $0x38] sm:$0xff]  }
 0xcbd   : > { %v4050_v59 = vmul.f32 %v15205_v10, %v4038_v47  ;;  %v4051_v24 = vmul.f32 %v15205_v10, %v4039_v13  ;;  %v4053_v29 = vmul.f32 %v15205_v10, %v4041_v8  ;;  %v4054_v33 = vmul.f32 %v15205_v10, %v4042_v27 }
 0xcbe   : > { %v4064_v34 = vadd.f32 %v15607_v62, %v4052_v50  ;;  %v4059_v49 = vadd.f32 %v15607_v62, %v4047_v6  ;;  %v4060_v51 = vadd.f32 %v15607_v62, %v4048_v56  ;;  %v4061_v53 = vadd.f32 %v15607_v62, %v4049_v35 }
 0xcbf   : > { %v4062_v54 = vadd.f32 %v15607_v62, %v4050_v59  ;;  %v4063_v1 = vadd.f32 %v15607_v62, %v4051_v24  ;;  %v4065_v0 = vadd.f32 %v15607_v62, %v4053_v29  ;;  %v4066_v12 = vadd.f32 %v15607_v62, %v4054_v33  ;;  %v14608_v33 = vld [vmem:[%s19079_s16 + $0x40] sm:$0xff]  }
 0xcc0   : > { %4073 = vst.msk [vmem:[#allocation4 + $0x61] sm:$0xff] %vm2803_vm5, %v4064_v34  ;;  %4068 = vst.msk [vmem:[#allocation4 + $0x11] sm:$0xff] %vm2803_vm5, %v4059_v49 }
 0xcc1   : > { %4069 = vst.msk [vmem:[#allocation4 + $0x21] sm:$0xff] %vm2803_vm5, %v4060_v51  ;;  %4070 = vst.msk [vmem:[#allocation4 + $0x31] sm:$0xff] %vm2803_vm5, %v4061_v53  ;;  %v19084_v51 = vmov 0.0  }
 0xcc2   : > { %4071 = vst.msk [vmem:[#allocation4 + $0x41] sm:$0xff] %vm2803_vm5, %v4062_v54  ;;  %4072 = vst.msk [vmem:[#allocation4 + $0x51] sm:$0xff] %vm2803_vm5, %v4063_v1  ;;  %v14609_v1 = vld [vmem:[%s19083_s0 + $0x8] sm:$0xff]  }
 0xcc3   : > { %4074 = vst.msk [vmem:[#allocation4 + $0x71] sm:$0xff] %vm2803_vm5, %v4065_v0  ;;  %4075 = vst.msk [vmem:[#allocation4 + $0x81] sm:$0xff] %vm2803_vm5, %v4066_v12  ;;  %v14610_v0 = vld [vmem:[%s19083_s0] sm:$0xff]   ;;  %s19088_s0 = sld [smem:[#allocation22_spill]] }
 0xcc4   : > { %v4726_v12 = vld [vmem:[#allocation4 + $0x90] sm:$0xff] }
 0xcc7   : > { %v15629_v4 = vld [vmem:[#allocation4 + $0x11] sm:$0xff]  ;;  %v4119_v40 = vld [vmem:[#allocation4 + $0x61] sm:$0xff] }
 0xcc8   : > { %v4100_v7 = vld [vmem:[#allocation4 + $0x10] sm:$0xff]  ;;  %v15631_v14 = vld [vmem:[#allocation4 + $0x21] sm:$0xff]  ;;  %v4121_v17 = vpack.c.bf16 %v15629_v4, %v4113_v15 }
 0xcc9   : > { %v4107_v2 = vpack.c.bf16 %v4100_v7, %v4099_v55  ;;  %v15634_v48 = vld [vmem:[#allocation4 + $0x31] sm:$0xff]  ;;  %v4101_v30 = vld [vmem:[#allocation4 + $0x20] sm:$0xff]  ;;  %v4514_v6 = vpack.c.bf16 %v15631_v14, %v15629_v4 }
 0xcca   : > { %v4102_v16 = vld [vmem:[#allocation4 + $0x30] sm:$0xff]  ;;  %v15638_v9 = vpack.c.bf16 %v15634_v48, %v15631_v14  ;;  %v15642_v38 = vld [vmem:[#allocation4 + $0x41] sm:$0xff]  ;;  %13693 = vmatprep.mubr.msk.bf16.mxu1 %vm2803_vm5, %v4121_v17  ;;  %v4408_v43 = vpack.c.bf16 %v4101_v30, %v4100_v7 }
 0xccb   : > { %v15640_v19 = vpack.c.bf16 %v4102_v16, %v4101_v30  ;;  %v15644_v39 = vld [vmem:[#allocation4 + $0x51] sm:$0xff]  ;;  %v4103_v18 = vld [vmem:[#allocation4 + $0x40] sm:$0xff]  ;;  %13703 = vmatprep.mubr.msk.bf16.mxu0 %vm2803_vm5, %v4107_v2  ;;  %v4515_v35 = vpack.c.bf16 %v15642_v38, %v15634_v48 }
 0xccc   : > { %v15650_v5 = vpack.c.bf16 %v15644_v39, %v15642_v38  ;;  %v4104_v11 = vld [vmem:[#allocation4 + $0x50] sm:$0xff]  ;;  %13694 = vmatmul.mubr.msk.bf16.vlgmr.msra.gmra.mxu1 %vm2803_vm5, %v15638_v9  ;;  %v4105_v52 = vld [vmem:[#allocation4 + $0x60] sm:$0xff]  ;;  %v4409_v22 = vpack.c.bf16 %v4103_v18, %v4102_v16  ;;  %v4516_v24 = vpack.c.bf16 %v4119_v40, %v15644_v39 }
 0xccd   : > { %13704 = vmatmul.mubr.msk.bf16.vlgmr.msra.gmra.mxu0 %vm2803_vm5, %v15640_v19  ;;  %v15658_v32 = vpack.c.bf16 %v4104_v11, %v4103_v18  ;;  %13712 = vmatpush3.bf16.msra.mxu1 %v15486_v3  ;;  %v4120_v57 = vld [vmem:[#allocation4 + $0x71] sm:$0xff]  ;;  %v4296_v3 = vld [vmem:[#allocation4 + $0x22] sm:$0xff]  ;;  %v4410_v60 = vpack.c.bf16 %v4105_v52, %v4104_v11 }
 0xcce   : > { %13697 = vmatprep.mubr.msk.bf16.mxu1 %vm2803_vm5, %v15650_v5  ;;  %13722 = vmatpush3.bf16.msra.mxu0 %v15496_v31  ;;  %v4106_v41 = vld [vmem:[#allocation4 + $0x70] sm:$0xff]  ;;  %v4124_v26 = vpack.c.bf16 %v4120_v57, %v4119_v40  ;;  %v4298_v45 = vld [vmem:[#allocation4 + $0x42] sm:$0xff] }
 0xccf   : > { %13707 = vmatprep.mubr.msk.bf16.mxu0 %vm2803_vm5, %v15658_v32  ;;  %13731 = vmatprep.subr.bf16.mxu1 %v14604_v21  ;;  %v4295_v20 = vld [vmem:[#allocation4 + $0x12] sm:$0xff]  ;;  %v4110_v37 = vpack.c.bf16 %v4106_v41, %v4105_v52  ;;  %v4300_v47 = vld [vmem:[#allocation4 + $0x62] sm:$0xff] }
 0xcd0   : > { %13741 = vmatprep.subr.bf16.mxu0 %v14605_v23  ;;  %v4302_v25 = vpack.c.bf16 %v4295_v20, %v4294_v42  ;;  %v4297_v31 = vld [vmem:[#allocation4 + $0x32] sm:$0xff]  ;;  %v4407_v8 = vld [vmem:[#allocation4 + $0x80] sm:$0xff]  ;;  %v4620_v56 = vpack.c.bf16 %v4296_v3, %v4295_v20 }
 0xcd1   : > { %v4299_v58 = vld [vmem:[#allocation4 + $0x52] sm:$0xff]  ;;  %v4303_v61 = vpack.c.bf16 %v4297_v31, %v4296_v3  ;;  %v4411_v50 = vpack.c.bf16 %v4407_v8, %v4106_v41  ;;  %v4621_v59 = vpack.c.bf16 %v4298_v45, %v4297_v31  ;;  %v4513_v34 = vld [vmem:[#allocation4 + $0x81] sm:$0xff]  ;;  %v4730_v55 = vpack.c.bf16 %v4726_v12, %v4407_v8 }
 0xcd2   : > { %v4304_v28 = vpack.c.bf16 %v4299_v58, %v4298_v45  ;;  %v4301_v13 = vld [vmem:[#allocation4 + $0x72] sm:$0xff]  ;;  %v4622_v29 = vpack.c.bf16 %v4300_v47, %v4299_v58  ;;  %v4619_v49 = vld [vmem:[#allocation4 + $0x82] sm:$0xff]  ;;  %v4517_v53 = vpack.c.bf16 %v4513_v34, %v4120_v57 }
 0xcd3   : > { %v4305_v27 = vpack.c.bf16 %v4301_v13, %v4300_v47  ;;  %v4623_v54 = vpack.c.bf16 %v4619_v49, %v4301_v13  ;;  %v4832_v15 = vld [vmem:[#allocation4 + $0x91] sm:$0xff] }
 0xcd4   : > { %13698 = vmatmul.mubr.msk.bf16.gmra.mxu1 %vm2803_vm5, %v4124_v26  ;;  %v4836_v4 = vpack.c.bf16 %v4832_v15, %v4513_v34  ;;  %v4938_v7 = vld [vmem:[#allocation4 + $0x92] sm:$0xff] }
 0xcd5   : > { %13708 = vmatmul.mubr.msk.bf16.gmra.mxu0 %vm2803_vm5, %v4110_v37  ;;  %13713 = vmatprep.mubr.msk.bf16.mxu1 %vm2803_vm5, %v4302_v25  ;;  %v4942_v14 = vpack.c.bf16 %v4938_v7, %v4619_v49 }
 0xcd6   : > { %13723 = vmatprep.mubr.msk.bf16.mxu0 %vm2803_vm5, %v4408_v43 }
 0xcdc   : > { %13714 = vmatmul.mubr.msk.bf16.vlgmr.msra.gmra.mxu1 %vm2803_vm5, %v4303_v61 }
 0xcdd   : > { %13724 = vmatmul.mubr.msk.bf16.vlgmr.msra.gmra.mxu0 %vm2803_vm5, %v4409_v22  ;;  %13717 = vmatprep.mubr.msk.bf16.mxu1 %vm2803_vm5, %v4304_v28 }
 0xcde   : > { %13727 = vmatprep.mubr.msk.bf16.mxu0 %vm2803_vm5, %v4410_v60  ;;  %13732 = vmatpush3.bf16.msra.mxu1 %v14604_v21 }
 0xcdf   : > { %13742 = vmatpush3.bf16.msra.mxu0 %v14605_v23  ;;  %13751 = vmatprep.subr.bf16.mxu1 %v14606_v63 }
 0xce0   : > { %13761 = vmatprep.subr.bf16.mxu0 %v14607_v46 }
 0xce4   : > { %13718 = vmatmul.mubr.msk.bf16.gmra.mxu1 %vm2803_vm5, %v4305_v27 }
 0xce5   : > { %13728 = vmatmul.mubr.msk.bf16.gmra.mxu0 %vm2803_vm5, %v4411_v50  ;;  %13733 = vmatprep.mubr.msk.bf16.mxu1 %vm2803_vm5, %v4514_v6 }
 0xce6   : > { %13743 = vmatprep.mubr.msk.bf16.mxu0 %vm2803_vm5, %v4620_v56 }
 0xcec   : > { %13734 = vmatmul.mubr.msk.bf16.vlgmr.msra.gmra.mxu1 %vm2803_vm5, %v4515_v35 }
 0xced   : > { %13744 = vmatmul.mubr.msk.bf16.vlgmr.msra.gmra.mxu0 %vm2803_vm5, %v4621_v59  ;;  %13737 = vmatprep.mubr.msk.bf16.mxu1 %vm2803_vm5, %v4516_v24 }
 0xcee   : > { %13747 = vmatprep.mubr.msk.bf16.mxu0 %vm2803_vm5, %v4622_v29  ;;  %13752 = vmatpush3.bf16.msra.mxu1 %v14606_v63 }
 0xcef   : > { %13762 = vmatpush3.bf16.msra.mxu0 %v14607_v46  ;;  %13771 = vmatprep.subr.bf16.mxu1 %v14608_v33 }
 0xcf0   : > { %13781 = vmatprep.subr.bf16.mxu0 %v19084_v51 }
 0xcf4   : > { %13738 = vmatmul.mubr.msk.bf16.gmra.mxu1 %vm2803_vm5, %v4517_v53 }
 0xcf5   : > { %13748 = vmatmul.mubr.msk.bf16.gmra.mxu0 %vm2803_vm5, %v4623_v54  ;;  %13753 = vmatprep.mubr.msk.bf16.mxu1 %vm2803_vm5, %v15640_v19 }
 0xcf6   : > { %13763 = vmatprep.mubr.msk.bf16.mxu0 %vm2803_vm5, %v15638_v9 }
 0xcfc   : > { %13754 = vmatmul.mubr.msk.bf16.vlgmr.msra.gmra.mxu1 %vm2803_vm5, %v15658_v32 }
 0xcfd   : > { %13764 = vmatmul.mubr.msk.bf16.vlgmr.msra.gmra.mxu0 %vm2803_vm5, %v15650_v5  ;;  %13757 = vmatprep.mubr.msk.bf16.mxu1 %vm2803_vm5, %v4110_v37 }
 0xcfe   : > { %13767 = vmatprep.mubr.msk.bf16.mxu0 %vm2803_vm5, %v4124_v26  ;;  %13772 = vmatpush3.bf16.msra.mxu1 %v14608_v33 }
 0xcff   : > { %13782 = vmatpush3.bf16.msra.mxu0 %v14609_v1 }
 0xd00   : > { %13783 = vmatprep.subr.bf16.mxu0 %v19084_v51 }
 0xd03   : > { %13784 = vmatpush3.bf16.msra.mxu0 %v14610_v0 }
 0xd04   : > { %13758 = vmatmul.mubr.msk.bf16.gmra.mxu1 %vm2803_vm5, %v4730_v55 }
 0xd05   : > { %13768 = vmatmul.mubr.msk.bf16.gmra.mxu0 %vm2803_vm5, %v4836_v4  ;;  %13773 = vmatprep.mubr.msk.bf16.mxu1 %vm2803_vm5, %v4303_v61 }
 0xd06   : > { %13785 = vmatprep.mubr.msk.bf16.mxu0 %vm14703_vm1, %v19084_v51 }
 0xd0c   : > { %13774 = vmatmul.mubr.msk.bf16.vlgmr.msra.gmra.mxu1 %vm2803_vm5, %v4304_v28 }
 0xd0d   : > { %13786 = vmatmul.mubr.msk.bf16.vlgmr.msra.gmra.mxu0 %vm1347_vm2, %v15080_v36  ;;  %13777 = vmatprep.mubr.msk.bf16.mxu1 %vm2803_vm5, %v4305_v27 }
 0xd14   : > { %13778 = vmatmul.mubr.msk.bf16.gmra.mxu1 %vm2803_vm5, %v4942_v14 }
 0xd8c   : > { %v13695_v17 = vpop.f32.mrf.mxu1 }
 0xd8d   : > { %v13705_v2 = vpop.f32.mrf.mxu0 }
 0xd8e   : > { %v4180_v48 = vpop.f32.mrf.mxu1  ;;  %v4272_v29 = vadd.f32 %v13705_v2, %v13695_v17 }
 0xd8f   : > { %v4263_v30 = vpop.f32.mrf.mxu0 }
 0xd90   : > { %v13696_v16 = vpop.f32.mrf.mxu1  ;;  %v4264_v49 = vadd.f32 %v4263_v30, %v4180_v48 }
 0xd91   : > { %v13706_v9 = vpop.f32.mrf.mxu0 }
 0xd92   : > { %v4183_v19 = vpop.f32.mrf.mxu1  ;;  %v4275_v0 = vadd.f32 %v13706_v9, %v13696_v16 }
 0xd93   : > { %v4266_v38 = vpop.f32.mrf.mxu0 }
 0xd94   : > { %v13699_v39 = vpop.f32.mrf.mxu1  ;;  %v4267_v4 = vadd.f32 %v4266_v38, %v4183_v19 }
 0xd95   : > { %v13709_v18 = vpop.f32.mrf.mxu0 }
 0xd96   : > { %v4196_v5 = vpop.f32.mrf.mxu1  ;;  %v4288_v2 = vadd.f32 %v13709_v18, %v13699_v39 }
 0xd97   : > { %v4279_v11 = vpop.f32.mrf.mxu0 }
 0xd98   : > { %v13700_v21 = vpop.f32.mrf.mxu1  ;;  %v4280_v30 = vadd.f32 %v4279_v11, %v4196_v5 }
 0xd99   : > { %v13710_v36 = vpop.f32.mrf.mxu0 }
 0xd9a   : > { %v15716_v23 = vpop.f32.mrf.mxu1 }
 0xd9b   : > { %v15718_v32 = vpop.f32.mrf.mxu0 }
 0xd9c   : > { %v13715_v40 = vpop.f32.mrf.mxu1  ;;  %v4283_v38 = vadd.f32 %v15718_v32, %v15716_v23 }
 0xd9d   : > { %v13725_v57 = vpop.f32.mrf.mxu0  ;;  %v4394_v53 = vadd.f32 %v13715_v40, %v4272_v29  ;;  %v4291_v40 = vadd.f32 %v13710_v36, %v13700_v21 }
 0xd9e   : > { %v4361_v52 = vpop.f32.mrf.mxu1 }
 0xd9f   : > { %v4467_v41 = vpop.f32.mrf.mxu0  ;;  %v4392_v12 = vadd.f32 %v4361_v52, %v4264_v49  ;;  %v4500_v7 = vadd.f32 %v13725_v57, %v4394_v53 }
 0xda0   : > { %v13716_v42 = vpop.f32.mrf.mxu1 }
 0xda1   : > { %v13726_v20 = vpop.f32.mrf.mxu0  ;;  %v4395_v14 = vadd.f32 %v13716_v42, %v4275_v0  ;;  %v4498_v62 = vadd.f32 %v4467_v41, %v4392_v12 }
 0xda2   : > { %v4364_v26 = vpop.f32.mrf.mxu1 }
 0xda3   : > { %v4470_v37 = vpop.f32.mrf.mxu0  ;;  %v4393_v10 = vadd.f32 %v4364_v26, %v4267_v4 }
 0xda4   : > { %v13719_v25 = vpop.f32.mrf.mxu1 }
 0xda5   : > { %v13729_v43 = vpop.f32.mrf.mxu0  ;;  %v4398_v29 = vadd.f32 %v13719_v25, %v4288_v2  ;;  %v4499_v52 = vadd.f32 %v4470_v37, %v4393_v10 }
 0xda6   : > { %v4377_v3 = vpop.f32.mrf.mxu1 }
 0xda7   : > { %v15720_v31 = vpop.f32.mrf.mxu0  ;;  %v4396_v57 = vadd.f32 %v4377_v3, %v4280_v30 }
 0xda8   : > { %v13720_v45 = vpop.f32.mrf.mxu1 }
 0xda9   : > { %v15722_v58 = vpop.f32.mrf.mxu0  ;;  %v4399_v41 = vadd.f32 %v13720_v45, %v4291_v40  ;;  %v4502_v10 = vadd.f32 %v15720_v31, %v4396_v57 }
 0xdaa   : > { %v4380_v61 = vpop.f32.mrf.mxu1 }
 0xdab   : > { %v15724_v22 = vpop.f32.mrf.mxu0  ;;  %v4505_v37 = vadd.f32 %v15722_v58, %v4399_v41 }
 0xdac   : > { %v13735_v28 = vpop.f32.mrf.mxu1 }
 0xdad   : > { %v13745_v60 = vpop.f32.mrf.mxu0  ;;  %v4606_v17 = vadd.f32 %v13735_v28, %v4500_v7 }
 0xdae   : > { %v4573_v63 = vpop.f32.mrf.mxu1 }
 0xdaf   : > { %v4679_v46 = vpop.f32.mrf.mxu0  ;;  %v4604_v48 = vadd.f32 %v4573_v63, %v4498_v62  ;;  %v4712_v49 = vadd.f32 %v13745_v60, %v4606_v17  ;;  %v4397_v62 = vadd.f32 %v4380_v61, %v4283_v38 }
 0xdb0   : > { %v13736_v47 = vpop.f32.mrf.mxu1 }
 0xdb1   : > { %v13746_v13 = vpop.f32.mrf.mxu0  ;;  %v4710_v39 = vadd.f32 %v4679_v46, %v4604_v48  ;;  %v4503_v63 = vadd.f32 %v15724_v22, %v4397_v62  ;;  %v5055_v48 = vld [vmem:[%s19089_s2 + $0x18] sm:$0xff] }
 0xdb2   : > { %v4576_v8 = vpop.f32.mrf.mxu1 }
 0xdb3   : > { %v4682_v27 = vpop.f32.mrf.mxu0  ;;  %v4605_v18 = vadd.f32 %v4576_v8, %v4499_v52 }
 0xdb4   : > { %v13739_v50 = vpop.f32.mrf.mxu1 }
 0xdb5   : > { %v15726_v6 = vpop.f32.mrf.mxu0  ;;  %v4711_v3 = vadd.f32 %v4682_v27, %v4605_v18  ;;  %v5054_v27 = vld [vmem:[%s19089_s2 + $0x10] sm:$0xff] }
 0xdb6   : > { %v4589_v56 = vpop.f32.mrf.mxu1 }
 0xdb7   : > { %v15728_v35 = vpop.f32.mrf.mxu0 }
 0xdb8   : > { %19085 = vst [vmem:[#allocation39_spill] sm:$0xff] %v15728_v35  ;;  %v13740_v59 = vpop.f32.mrf.mxu1 }
 0xdb9   : > { %v15730_v24 = vpop.f32.mrf.mxu0  ;;  %v4611_v61 = vadd.f32 %v13740_v59, %v4505_v37 }
 0xdba   : > { %19086 = vst [vmem:[#allocation40_spill] sm:$0xff] %v15730_v24  ;;  %v15732_v33 = vpop.f32.mrf.mxu1 }
 0xdbb   : > { %v15734_v34 = vpop.f32.mrf.mxu0 }
 0xdbc   : > { %19087 = vst [vmem:[#allocation41_spill] sm:$0xff] %v15734_v34  ;;  %v13755_v54 = vpop.f32.mrf.mxu1  ;;  %v4501_v34 = vadd.f32 %v13726_v20, %v4395_v14  ;;  %v4504_v20 = vadd.f32 %v13729_v43, %v4398_v29  ;;  %v4608_v43 = vadd.f32 %v4589_v56, %v4502_v10 }
 0xdbd   : > { %v13765_v1 = vpop.f32.mrf.mxu0  ;;  %v4819_v28 = vadd.f32 %v13755_v54, %v4712_v49 }
 0xdbe   : > { %v4786_v15 = vpop.f32.mrf.mxu1  ;;  %v4607_v19 = vadd.f32 %v13736_v47, %v4501_v34  ;;  %v4610_v25 = vadd.f32 %v13739_v50, %v4504_v20  ;;  %v15742_v47 = vld [vmem:[%s19088_s0] ss:$0 sm:$0xff]  ;;  %v4609_v34 = vadd.f32 %v15732_v33, %v4503_v63  ;;  %s14707_s0 = smov 32  }
 0xdbf   : > { %v4892_v55 = vpop.f32.mrf.mxu0  ;;  %v4817_v36 = vadd.f32 %v4786_v15, %v4710_v39  ;;  %v4925_v45 = vadd.f32 %v13765_v1, %v4819_v28  ;;  %v19090_v54 = vld [vmem:[#allocation39_spill] sm:$0xff] }
 0xdc0   : > { %v13756_v51 = vpop.f32.mrf.mxu1  ;;  %v4713_v21 = vadd.f32 %v13746_v13, %v4607_v19  ;;  %v4716_v50 = vadd.f32 %v15726_v6, %v4610_v25  ;;  %v4714_v1 = vadd.f32 %v19090_v54, %v4608_v43  ;;  %v5053_v28 = vld [vmem:[%s19089_s2 + $0x8] sm:$0xff] }
 0xdc1   : > { %v13766_v44 = vpop.f32.mrf.mxu0  ;;  %v4923_v31 = vadd.f32 %v4892_v55, %v4817_v36  ;;  %v19091_v0 = vld [vmem:[#allocation40_spill] sm:$0xff]  ;;  %v5052_v55 = vld [vmem:[%s19089_s2] sm:$0xff] }
 0xdc2   : > { %v4789_v24 = vpop.f32.mrf.mxu1  ;;  %v4820_v60 = vadd.f32 %v13756_v51, %v4713_v21  ;;  %v4717_v12 = vadd.f32 %v19091_v0, %v4611_v61  ;;  %v5058_v36 = vld [vmem:[%s19089_s2 + $0x30] sm:$0xff] }
 0xdc3   : > { %v4895_v35 = vpop.f32.mrf.mxu0  ;;  %v4818_v8 = vadd.f32 %v4789_v24, %v4711_v3  ;;  %v19092_v17 = vld [vmem:[#allocation41_spill] sm:$0xff] }
 0xdc4   : > { %v13759_v16 = vpop.f32.mrf.mxu1  ;;  %v4926_v22 = vadd.f32 %v13766_v44, %v4820_v60  ;;  %v4715_v2 = vadd.f32 %v19092_v17, %v4609_v34  ;;  %v5056_v60 = vld [vmem:[%s19089_s2 + $0x20] sm:$0xff]  ;;  %v5059_v34 = vld [vmem:[%s19089_s2 + $0x38] sm:$0xff] }
 0xdc5   : > { %v13769_v9 = vpop.f32.mrf.mxu0  ;;  %v4823_v15 = vadd.f32 %v13759_v16, %v4716_v50  ;;  %v4924_v7 = vadd.f32 %v4895_v35, %v4818_v8 }
 0xdc6   : > { %v4802_v42 = vpop.f32.mrf.mxu1 }
 0xdc7   : > { %v4908_v26 = vpop.f32.mrf.mxu0  ;;  %v4821_v44 = vadd.f32 %v4802_v42, %v4714_v1  ;;  %v4929_v19 = vadd.f32 %v13769_v9, %v4823_v15 }
 0xdc8   : > { %v13760_v5 = vpop.f32.mrf.mxu1 }
 0xdc9   : > { %v13770_v11 = vpop.f32.mrf.mxu0  ;;  %v4824_v29 = vadd.f32 %v13760_v5, %v4717_v12  ;;  %v4927_v42 = vadd.f32 %v4908_v26, %v4821_v44 }
 0xdca   : > { %v4805_v23 = vpop.f32.mrf.mxu1 }
 0xdcb   : > { %v4911_v32 = vpop.f32.mrf.mxu0  ;;  %v4822_v38 = vadd.f32 %v4805_v23, %v4715_v2  ;;  %v4930_v21 = vadd.f32 %v13770_v11, %v4824_v29 }
 0xdcc   : > { %v13775_v46 = vpop.f32.mrf.mxu1 }
 0xdcd   : > { %v15744_v13 = vpop.f32.mrf.mxu0  ;;  %v5031_v58 = vadd.f32 %v13775_v46, %v4925_v45  ;;  %v4928_v3 = vadd.f32 %v4911_v32, %v4822_v38 }
 0xdce   : > { %v4998_v53 = vpop.f32.mrf.mxu1 }
 0xdcf   : > { %v13787_v51 = vpop.f32.mrf.mxu0  ;;  %v5046_v56 = vadd.f32 %v15742_v47, %v5031_v58  ;;  %v5029_v59 = vadd.f32 %v4998_v53, %v4923_v31 }
 0xdd0   : > { %v13776_v24 = vpop.f32.mrf.mxu1 }
 0xdd1   : > { %v5259_v4 = vpop.f32.mrf.mxu0  ;;  %v5062_v6 = vadd.f32 %v5054_v27, %v5046_v56  ;;  %v5044_v33 = vadd.f32 %v15742_v47, %v5029_v59  ;;  %v5032_v14 = vadd.f32 %v13776_v24, %v4926_v22  ;;  %v5057_v27 = vld [vmem:[%s19089_s2 + $0x28] sm:$0xff]  ;;  %s19093_s2 = sld [smem:[#allocation27_spill]] }
 0xdd2   : > { %v5001_v30 = vpop.f32.mrf.mxu1 }
 0xdd3   : > { %v13788_v40 = vpop.f32.mrf.mxu0  ;;  %v5060_v52 = vadd.f32 %v5052_v55, %v5044_v33  ;;  %v5047_v16 = vadd.f32 %v15742_v47, %v5032_v14  ;;  %v5030_v49 = vadd.f32 %v5001_v30, %v4924_v7  ;;  %v5070_v57 = vmul.f32 0.2, %v5062_v6 }
 0xdd4   : > { %v13779_v35 = vpop.f32.mrf.mxu1 }
 0xdd5   : > { %v5068_v41 = vmul.f32 0.2, %v5060_v52  ;;  %v5063_v39 = vadd.f32 %v5055_v48, %v5047_v16  ;;  %v5045_v18 = vadd.f32 %v15742_v47, %v5030_v49  ;;  %v5035_v20 = vadd.f32 %v13779_v35, %v4929_v19 }
 0xdd6   : > { %v5014_v62 = vpop.f32.mrf.mxu1  ;;  %v15763_v45 = vmax.f32 %v5062_v6, %v5070_v57 }
 0xdd7   : > { %v15759_v5 = vmax.f32 %v5060_v52, %v5068_v41  ;;  %v5071_v10 = vmul.f32 0.2, %v5063_v39  ;;  %v5061_v37 = vadd.f32 %v5053_v28, %v5045_v18  ;;  %v5050_v9 = vadd.f32 %v15742_v47, %v5035_v20 }
 0xdd8   : > { %v5033_v25 = vadd.f32 %v5014_v62, %v4927_v42  ;;  %v13780_v23 = vpop.f32.mrf.mxu1  ;;  %v5108_v53 = vmul.f32 %v15763_v45, %v15763_v45  ;;  %v5087_v0 = vsel %vm2803_vm5, %v15763_v45, 0.0 }
 0xdd9   : > { %v5069_v63 = vmul.f32 0.2, %v5061_v37  ;;  %v5066_v26 = vadd.f32 %v5058_v36, %v5050_v9  ;;  %v5036_v11 = vadd.f32 %v13780_v23, %v4930_v21  ;;  %v5106_v46 = vmul.f32 %v15759_v5, %v15759_v5 }
 0xdda   : > { %v5048_v43 = vadd.f32 %v15742_v47, %v5033_v25  ;;  %v5017_v61 = vpop.f32.mrf.mxu1  ;;  %v15769_v8 = vmax.f32 %v5063_v39, %v5071_v10  ;;  %v5084_v51 = vsel %vm2803_vm5, %v15759_v5, 0.0  ;;  %v5117_v2 = vsel %vm2803_vm5, %v5108_v53, 0.0 }
 0xddb   : > { %v5034_v31 = vadd.f32 %v5017_v61, %v4928_v3  ;;  %v15771_v58 = vmax.f32 %v5061_v37, %v5069_v63  ;;  %v5051_v32 = vadd.f32 %v15742_v47, %v5036_v11  ;;  %v5074_v54 = vmul.f32 0.2, %v5066_v26 }
 0xddc   : > { %v5064_v50 = vadd.f32 %v5056_v60, %v5048_v43  ;;  %v5114_v24 = vsel %vm2803_vm5, %v5106_v46, 0.0  ;;  %v5109_v4 = vmul.f32 %v15769_v8, %v15769_v8  ;;  %v5089_v44 = vsel %vm2803_vm5, %v15769_v8, 0.0 }
 0xddd   : > { %v5049_v22 = vadd.f32 %v15742_v47, %v5034_v31  ;;  %v5085_v56 = vsel %vm2803_vm5, %v15771_v58, 0.0  ;;  %v5107_v59 = vmul.f32 %v15771_v58, %v15771_v58  ;;  %v5067_v15 = vadd.f32 %v5059_v34, %v5051_v32 }
 0xdde   : > { %v5072_v1 = vmul.f32 0.2, %v5064_v50  ;;  %v5086_v12 = vadd.f32 %v5085_v56, %v5084_v51  ;;  %v5082_v48 = vmax.f32 %v5066_v26, %v5074_v54  ;;  %v5119_v16 = vsel %vm2803_vm5, %v5109_v4, 0.0 }
 0xddf   : > { %v5065_v55 = vadd.f32 %v5057_v27, %v5049_v22  ;;  %v5115_v47 = vsel %vm2803_vm5, %v5107_v59, 0.0  ;;  %v5075_v14 = vmul.f32 0.2, %v5067_v15 }
 0xde0   : > { %v15791_v7 = vmax.f32 %v5064_v50, %v5072_v1  ;;  %v5088_v6 = vadd.f32 %v5087_v0, %v5086_v12  ;;  %v5116_v33 = vadd.f32 %v5115_v47, %v5114_v24  ;;  %v5112_v57 = vmul.f32 %v5082_v48, %v5082_v48 }
 0xde1   : > { %v5073_v17 = vmul.f32 0.2, %v5065_v55  ;;  %v5083_v19 = vmax.f32 %v5067_v15, %v5075_v14  ;;  %v5095_v20 = vsel %vm2803_vm5, %v5082_v48, 0.0 }
 0xde2   : > { %v5110_v30 = vmul.f32 %v15791_v7, %v15791_v7  ;;  %v5118_v40 = vadd.f32 %v5117_v2, %v5116_v33  ;;  %v5090_v29 = vadd.f32 %v5089_v44, %v5088_v6  ;;  %v5091_v49 = vsel %vm2803_vm5, %v15791_v7, 0.0 }
 0xde3   : > { %v5081_v52 = vmax.f32 %v5065_v55, %v5073_v17  ;;  %v5113_v62 = vmul.f32 %v5083_v19, %v5083_v19  ;;  %v5125_v37 = vsel %vm2803_vm5, %v5112_v57, 0.0  ;;  %v5097_v9 = vsel %vm2803_vm5, %v5083_v19, 0.0 }
 0xde4   : > { %v5092_v38 = vadd.f32 %v5091_v49, %v5090_v29  ;;  %v5120_v35 = vadd.f32 %v5119_v16, %v5118_v40  ;;  %v5121_v41 = vsel %vm2803_vm5, %v5110_v30, 0.0  ;;  %v19094_v16 = vld [vmem:[#allocation37_spill] sm:$0xff] }
 0xde5   : > { %v5093_v39 = vsel %vm2803_vm5, %v5081_v52, 0.0  ;;  %v5111_v18 = vmul.f32 %v5081_v52, %v5081_v52  ;;  %v5127_v3 = vsel %vm2803_vm5, %v5113_v62, 0.0 }
 0xde6   : > { %v5122_v28 = vadd.f32 %v5121_v41, %v5120_v35  ;;  %v5094_v42 = vadd.f32 %v5093_v39, %v5092_v38  ;;  %v19095_v38 = vld [vmem:[#allocation38_spill] sm:$0xff] }
 0xde7   : > { %v5123_v21 = vsel %vm2803_vm5, %v5111_v18, 0.0 }
 0xde8   : > { %v5096_v36 = vadd.f32 %v5095_v20, %v5094_v42  ;;  %v5124_v10 = vadd.f32 %v5123_v21, %v5122_v28  ;;  %v14611_v20 = vld [vmem:[%s19093_s2] sm:$0xff]  }
 0xde9   : > { %13797 = vmatprep.mubr.msk.bf16.mxu1 %vm5394_vm9, %v14611_v20 }
 0xdea   : > { %v5098_v25 = vadd.f32 %v5097_v9, %v5096_v36  ;;  %v5126_v23 = vadd.f32 %v5125_v37, %v5124_v10  ;;  %v5209_v37 = vld [vmem:[%s19096_s4] sm:$0x1]  ;;  %s14708_s4 = smov 120  }
 0xdec   : > { %v5099_v60 = vrot.slane %v5098_v25, 4  ;;  %v5128_v63 = vadd.f32 %v5127_v3, %v5126_v23 }
 0xdee   : > { %v5100_v26 = vadd.f32 %v5099_v60, %v5098_v25  ;;  %v5129_v43 = vrot.slane %v5128_v63, 4  ;;  %v5257_v60 = vadd.f32 %v15744_v13, %v5209_v37  ;;  %v14627_v13 = vld [vmem:[%s19098_s3 + $0x8] sm:$0xff]  }
 0xdef   : > { %13829 = vmatprep.subr.bf16.mxu0 %v14627_v13 }
 0xdf0   : > { %v5101_v11 = vrot.slane %v5100_v26, 2  ;;  %v5130_v61 = vadd.f32 %v5129_v43, %v5128_v63  ;;  %13830 = vmatpush3.bf16.msra.mxu0 %v14627_v13 }
 0xdf2   : > { %v5102_v46 = vadd.f32 %v5101_v11, %v5100_v26  ;;  %v5131_v31 = vrot.slane %v5130_v61, 2 }
 0xdf4   : > { %v5103_v50 = vrot.slane %v5102_v46, 1  ;;  %v5132_v32 = vadd.f32 %v5131_v31, %v5130_v61  ;;  %v19099_v61 = vld [vmem:[#allocation36_spill] sm:$0xff] }
 0xdf6   : > { %v5104_v34 = vadd.f32 %v5103_v50, %v5102_v46  ;;  %v5133_v27 = vrot.slane %v5132_v32, 1  ;;  %v15837_v46 = vrot.slane %v5257_v60, %v19099_v61 }
 0xdf8   : > { %v5105_v53 = vmul.f32 0.015625, %v5104_v34  ;;  %v5134_v51 = vadd.f32 %v5133_v27, %v5132_v32  ;;  %19100 = vst [vmem:[#allocation39_spill] sm:$0xff] %v15837_v46 }
 0xdfa   : > { %v5135_v22 = vmul.f32 0.015625, %v5134_v51  ;;  %v5136_v56 = vmul.f32 %v5105_v53, %v5105_v53  ;;  %v5145_v0 = vsub.f32 %v5082_v48, %v5105_v53  ;;  %v5144_v12 = vsub.f32 %v5081_v52, %v5105_v53  ;;  %v14613_v51 = vld [vmem:[%s19093_s2 + $0x10] sm:$0xff]  }
 0xdfb   : > { %v5146_v4 = vsub.f32 %v5083_v19, %v5105_v53  ;;  %v5142_v47 = vsub.f32 %v15769_v8, %v5105_v53  ;;  %v5143_v14 = vsub.f32 %v15791_v7, %v5105_v53  ;;  %v5140_v17 = vsub.f32 %v15771_v58, %v5105_v53 }
 0xdfc   : > { %v5137_v59 = vsub.f32 %v5135_v22, %v5136_v56  ;;  %v5141_v48 = vsub.f32 %v15763_v45, %v5105_v53  ;;  %v5139_v40 = vsub.f32 %v15759_v5, %v5105_v53  ;;  %v14612_v53 = vld [vmem:[%s19093_s2 + $0x8] sm:$0xff]   ;;  %v14614_v22 = vld [vmem:[%s19093_s2 + $0x18] sm:$0xff]   ;;  %v14615_v56 = vld [vmem:[%s19093_s2 + $0x20] sm:$0xff]  }
 0xdfe   : > { %v5138_v54 = vmax.f32 %v5137_v59, 0.0  ;;  %v14616_v59 = vld [vmem:[%s19093_s2 + $0x28] sm:$0xff]  }
 0xe00   : > { %v5147_v1 = vadd.f32 1e-08, %v5138_v54  ;;  %v14617_v54 = vld [vmem:[%s19093_s2 + $0x30] sm:$0xff]  }
 0xe02   : > { %14644 = vrsqrt.f32 %v5147_v1  ;;  %v14618_v1 = vld [vmem:[%s19093_s2 + $0x38] sm:$0xff]  }
 0xe0f   : > { %v14645_v15 = vpop.eup %14644 }
 0xe10   : > { %v5155_v55 = vmul.f32 %v14645_v15, %v5145_v0  ;;  %v5154_v24 = vmul.f32 %v14645_v15, %v5144_v12  ;;  %v5156_v6 = vmul.f32 %v14645_v15, %v5146_v4  ;;  %v5152_v33 = vmul.f32 %v14645_v15, %v5142_v47  ;;  %v14619_v0 = vld [vmem:[%s19093_s2 + $0x40] sm:$0xff]   ;;  %v14620_v12 = vld [vmem:[%s19093_s2 + $0x48] sm:$0xff]   ;;  %v14625_v47 = vld [vmem:[%s19093_s2 + $0x70] sm:$0xff]  }
 0xe11   : > { %v5153_v2 = vmul.f32 %v14645_v15, %v5143_v14  ;;  %v5150_v44 = vmul.f32 %v14645_v15, %v5140_v17  ;;  %v5151_v30 = vmul.f32 %v14645_v15, %v5141_v48  ;;  %v5149_v29 = vmul.f32 %v14645_v15, %v5139_v40  ;;  %v14621_v15 = vld [vmem:[%s19093_s2 + $0x50] sm:$0xff]   ;;  %v14624_v4 = vld [vmem:[%s19093_s2 + $0x68] sm:$0xff]   ;;  %v5727_v14 = vld [vmem:[#allocation5 + $0x9] sm:$0xff] }
 0xe12   : > { %5177 = vrot.lane.b32.xlu1 %v5155_v55, %s14707_s0  ;;  %5175 = vrot.lane.b32.xlu0 %v5154_v24, %s14707_s0  ;;  %v14622_v55 = vld [vmem:[%s19093_s2 + $0x58] sm:$0xff]   ;;  %v14623_v24 = vld [vmem:[%s19093_s2 + $0x60] sm:$0xff]  }
 0xe16   : > { %5179 = vrot.lane.b32.xlu1 %v5156_v6, %s14707_s0  ;;  %5171 = vrot.lane.b32.xlu0 %v5152_v33, %s14707_s0  ;;  %v14626_v6 = vld [vmem:[%s19093_s2 + $0x78] sm:$0xff]   ;;  %s19209_s2 = sld [smem:[#allocation33_spill]] }
 0xe17   : > { %v5726_v33 = vld [vmem:[#allocation5 + $0x1] sm:$0xff] }
 0xe18   : > { %v5758_v17 = vpack.c.bf16 %v5727_v14, %v5726_v33 }
 0xe1a   : > { %5173 = vrot.lane.b32.xlu1 %v5153_v2, %s14707_s0  ;;  %5167 = vrot.lane.b32.xlu0 %v5150_v44, %s14707_s0  ;;  %v14628_v2 = vld [vmem:[%s19098_s3] sm:$0xff]   ;;  %v15875_v44 = vld [vmem:[%s19098_s3 + $0x10] sm:$0xff]  }
 0xe1b   : > { %13831 = vmatprep.mubr.msk.bf16.mxu0 %vm2803_vm5, %v5758_v17  ;;  %13863 = vmatprep.subr.bf16.mxu0 %v14628_v2 }
 0xe1e   : > { %5169 = vrot.lane.b32.xlu1 %v5151_v30, %s14707_s0 }
 0xe22   : > { %5165 = vrot.lane.b32.xlu1 %v5149_v29, %s14707_s0  ;;  %s19097_s0 = smov 96  }
 0xe84   : > { %v5178_v8 = vpop.permute.xlu1 %5177  ;;  %v5176_v52 = vpop.permute.xlu0 %5175 }
 0xe85   : > { %v5195_v49 = vmul.f32 %v5178_v8, %v19094_v16  ;;  %v5194_v57 = vmul.f32 %v5176_v52, %v19094_v16 }
 0xe87   : > { %v5203_v35 = vadd.f32 %v5195_v49, %v19095_v38  ;;  %v5202_v18 = vadd.f32 %v5194_v57, %v19095_v38  ;;  %v15889_v57 = vld [vmem:[%s19098_s3 + $0x18] sm:$0xff]  }
 0xe88   : > { %v5180_v7 = vpop.permute.xlu1 %5179  ;;  %v5172_v19 = vpop.permute.xlu0 %5171 }
 0xe89   : > { %v5196_v58 = vmul.f32 %v5180_v7, %v19094_v16  ;;  %v5192_v28 = vmul.f32 %v5172_v19, %v19094_v16 }
 0xe8b   : > { %v5204_v45 = vadd.f32 %v5196_v58, %v19095_v38  ;;  %v5200_v9 = vadd.f32 %v5192_v28, %v19095_v38 }
 0xe8c   : > { %v5174_v41 = vpop.permute.xlu1 %5173  ;;  %v5168_v62 = vpop.permute.xlu0 %5167 }
 0xe8d   : > { %v5193_v5 = vmul.f32 %v5174_v41, %v19094_v16  ;;  %v5297_v39 = vpack.c.bf16 %v5204_v45, %v5203_v35  ;;  %v5190_v25 = vmul.f32 %v5168_v62, %v19094_v16 }
 0xe8f   : > { %v5201_v42 = vadd.f32 %v5193_v5, %v19095_v38  ;;  %5388 = vrot.lane.b32.xlu1 %v5297_v39, %s19097_s0  ;;  %v5198_v43 = vadd.f32 %v5190_v25, %v19095_v38 }
 0xe90   : > { %v5170_v21 = vpop.permute.xlu1 %5169 }
 0xe91   : > { %v5191_v36 = vmul.f32 %v5170_v21, %v19094_v16  ;;  %v5296_v10 = vpack.c.bf16 %v5202_v18, %v5201_v42 }
 0xe93   : > { %v5199_v23 = vadd.f32 %v5191_v36, %v19095_v38  ;;  %5386 = vrot.lane.b32.xlu0 %v5296_v10, %s19097_s0 }
 0xe94   : > { %v5166_v3 = vpop.permute.xlu1 %5165 }
 0xe95   : > { %v5189_v63 = vmul.f32 %v5166_v3, %v19094_v16  ;;  %v5295_v26 = vpack.c.bf16 %v5200_v9, %v5199_v23 }
 0xe97   : > { %v5197_v11 = vadd.f32 %v5189_v63, %v19095_v38  ;;  %5384 = vrot.lane.b32.xlu1 %v5295_v26, %s19097_s0 }
 0xe99   : > { %v5294_v31 = vpack.c.bf16 %v5198_v43, %v5197_v11 }
 0xe9b   : > { %8741 = vrot.lane.b32.xlu1 %v15837_v46, %s14708_s4  ;;  %5382 = vrot.lane.b32.xlu0 %v5294_v31, %s19097_s0  ;;  %s19146_s4 = sld [smem:[#allocation29_spill]] }
 0xe9c   : > { %s19154_s0 = sld [smem:[#allocation32_spill]] }
 0xf01   : > { %v5389_v50 = vpop.permute.xlu1 %5388 }
 0xf02   : > { %13789 = vmatprep.subr.bf16.mxu1 %v5389_v50 }
 0xf03   : > { %13790 = vmatpush3.bf16.msra.mxu1 %v5389_v50 }
 0xf05   : > { %v5387_v32 = vpop.permute.xlu0 %5386 }
 0xf06   : > { %13791 = vmatprep.subr.bf16.mxu1 %v5387_v32 }
 0xf07   : > { %13792 = vmatpush3.bf16.msra.mxu1 %v5387_v32 }
 0xf09   : > { %v5385_v34 = vpop.permute.xlu1 %5384 }
 0xf0a   : > { %13793 = vmatprep.subr.bf16.mxu1 %v5385_v34 }
 0xf0b   : > { %13794 = vmatpush3.bf16.msra.mxu1 %v5385_v34 }
 0xf0d   : > { %v5383_v27 = vpop.permute.xlu0 %5382 }
 0xf0e   : > { %13795 = vmatprep.subr.bf16.mxu1 %v5383_v27 }
 0xf0f   : > { %13796 = vmatpush3.bf16.msra.mxu1 %v5383_v27 }
 0xf10   : > { %14441 = vmatprep.subr.bf16.mxu1 %v14627_v13 }
 0xf12   : > { %13798 = vmatmul.mubr.msk.bf16.vlgmr.msra.gmra.mxu1 %vm5394_vm9, %v14612_v53 }
 0xf13   : > { %13801 = vmatprep.mubr.msk.bf16.mxu1 %vm5394_vm9, %v14613_v51  ;;  %14442 = vmatpush3.bf16.msra.mxu1 %v14627_v13 }
 0xf14   : > { %13897 = vmatprep.subr.bf16.mxu1 %v15875_v44 }
 0xf1a   : > { %13802 = vmatmul.mubr.msk.bf16.gmra.mxu1 %vm5394_vm9, %v14614_v22 }
 0xf1b   : > { %13805 = vmatprep.mubr.msk.bf16.mxu1 %vm5394_vm9, %v14615_v56 }
 0xf22   : > { %13806 = vmatmul.mubr.msk.bf16.gmra.mxu1 %vm5394_vm9, %v14616_v59  ;;  %v5676_v59 = vld [vmem:[#allocation5] sm:$0xff] }
 0xf23   : > { %13809 = vmatprep.mubr.msk.bf16.mxu1 %vm5394_vm9, %v14617_v54  ;;  %v5677_v54 = vld [vmem:[#allocation5 + $0x8] sm:$0xff] }
 0xf2a   : > { %13810 = vmatmul.mubr.msk.bf16.gmra.mxu1 %vm5394_vm9, %v14618_v1 }
 0xf2b   : > { %13813 = vmatprep.mubr.msk.bf16.mxu1 %vm5394_vm9, %v14619_v0 }
 0xf32   : > { %13814 = vmatmul.mubr.msk.bf16.gmra.mxu1 %vm5394_vm9, %v14620_v12 }
 0xf33   : > { %13817 = vmatprep.mubr.msk.bf16.mxu1 %vm5394_vm9, %v14621_v15 }
 0xf3a   : > { %13818 = vmatmul.mubr.msk.bf16.gmra.mxu1 %vm5394_vm9, %v14622_v55 }
 0xf3b   : > { %13821 = vmatprep.mubr.msk.bf16.mxu1 %vm5394_vm9, %v14623_v24 }
 0xf42   : > { %13822 = vmatmul.mubr.msk.bf16.gmra.mxu1 %vm5394_vm9, %v14624_v4 }
 0xf43   : > { %13825 = vmatprep.mubr.msk.bf16.mxu1 %vm5394_vm9, %v14625_v47  ;;  %v5708_v47 = vpack.c.bf16 %v5677_v54, %v5676_v59 }
 0xf4a   : > { %13826 = vmatmul.mubr.msk.bf16.gmra.mxu1 %vm5394_vm9, %v14626_v6 }
 0xfd2   : > { %v13799_v48 = vpop.f32.mrf.mxu1 }
 0xfd3   : > { %5607 = vst.msk [vmem:[#allocation5 + $0x31] sm:$0xff] %vm2803_vm5, %v13799_v48 }
 0xfd4   : > { %v5477_v30 = vpop.f32.mrf.mxu1 }
 0xfd5   : > { %5605 = vst.msk [vmem:[#allocation5 + $0x19] sm:$0xff] %vm2803_vm5, %v5477_v30 }
 0xfd6   : > { %v13800_v40 = vpop.f32.mrf.mxu1 }
 0xfd7   : > { %5608 = vst.msk [vmem:[#allocation5 + $0x39] sm:$0xff] %vm2803_vm5, %v13800_v40 }
 0xfd8   : > { %v5480_v29 = vpop.f32.mrf.mxu1 }
 0xfd9   : > { %5606 = vst.msk [vmem:[#allocation5 + $0x21] sm:$0xff] %vm2803_vm5, %v5480_v29 }
 0xfda   : > { %v13803_v8 = vpop.f32.mrf.mxu1  ;;  %v5730_v35 = vld [vmem:[#allocation5 + $0x31] sm:$0xff] }
 0xfdb   : > { %5611 = vst.msk [vmem:[#allocation5 + $0x61] sm:$0xff] %vm2803_vm5, %v13803_v8 }
 0xfdc   : > { %v5493_v52 = vpop.f32.mrf.mxu1  ;;  %v5728_v58 = vld [vmem:[#allocation5 + $0x19] sm:$0xff] }
 0xfdd   : > { %5609 = vst.msk [vmem:[#allocation5 + $0x49] sm:$0xff] %vm2803_vm5, %v5493_v52  ;;  %v5678_v52 = vld [vmem:[#allocation5 + $0x18] sm:$0xff] }
 0xfde   : > { %v13804_v16 = vpop.f32.mrf.mxu1  ;;  %v5731_v49 = vld [vmem:[#allocation5 + $0x39] sm:$0xff] }
 0xfdf   : > { %5612 = vst.msk [vmem:[#allocation5 + $0x69] sm:$0xff] %vm2803_vm5, %v13804_v16  ;;  %v15891_v41 = vpack.c.bf16 %v5731_v49, %v5730_v35  ;;  %v5681_v30 = vld [vmem:[#allocation5 + $0x38] sm:$0xff] }
 0xfe0   : > { %v5496_v7 = vpop.f32.mrf.mxu1  ;;  %v5729_v19 = vld [vmem:[#allocation5 + $0x21] sm:$0xff] }
 0xfe1   : > { %5610 = vst.msk [vmem:[#allocation5 + $0x51] sm:$0xff] %vm2803_vm5, %v5496_v7  ;;  %v15886_v38 = vpack.c.bf16 %v5729_v19, %v5728_v58  ;;  %v5680_v58 = vld [vmem:[#allocation5 + $0x30] sm:$0xff] }
 0xfe2   : > { %v13807_v45 = vpop.f32.mrf.mxu1  ;;  %v5734_v21 = vld [vmem:[#allocation5 + $0x61] sm:$0xff] }
 0xfe3   : > { %5615 = vst.msk [vmem:[#allocation5 + $0x91] sm:$0xff] %vm2803_vm5, %v13807_v45  ;;  %13832 = vmatmul.mubr.msk.bf16.vlgmr.msra.gmra.mxu0 %vm2803_vm5, %v15886_v38  ;;  %v15957_v45 = vpack.c.bf16 %v5681_v30, %v5680_v58  ;;  %v16019_v30 = vld [vmem:[%s19098_s3 + $0x30] sm:$0xff]  }
 0xfe4   : > { %v5509_v5 = vpop.f32.mrf.mxu1  ;;  %13835 = vmatprep.mubr.msk.bf16.mxu0 %vm2803_vm5, %v15891_v41  ;;  %13864 = vmatpush3.bf16.msra.mxu0 %v14628_v2  ;;  %v5732_v42 = vld [vmem:[#allocation5 + $0x49] sm:$0xff]  ;;  %v5679_v2 = vld [vmem:[#allocation5 + $0x20] sm:$0xff] }
 0xfe5   : > { %5613 = vst.msk [vmem:[#allocation5 + $0x79] sm:$0xff] %vm2803_vm5, %v5509_v5  ;;  %13931 = vmatprep.subr.bf16.mxu0 %v15889_v57  ;;  %v15953_v49 = vpack.c.bf16 %v5679_v2, %v5678_v52  ;;  %v15960_v5 = vld [vmem:[%s19098_s3 + $0x20] sm:$0xff]  }
 0xfe6   : > { %v13808_v39 = vpop.f32.mrf.mxu1  ;;  %v5735_v18 = vld [vmem:[#allocation5 + $0x69] sm:$0xff] }
 0xfe7   : > { %5616 = vst.msk [vmem:[#allocation5 + $0x99] sm:$0xff] %vm2803_vm5, %v13808_v39  ;;  %v15904_v10 = vpack.c.bf16 %v5735_v18, %v5734_v21  ;;  %v15963_v39 = vld [vmem:[%s19098_s3 + $0x28] sm:$0xff]   ;;  %v5685_v21 = vld [vmem:[#allocation5 + $0x68] sm:$0xff] }
 0xfe8   : > { %v5512_v28 = vpop.f32.mrf.mxu1  ;;  %v5733_v20 = vld [vmem:[#allocation5 + $0x51] sm:$0xff] }
 0xfe9   : > { %5614 = vst.msk [vmem:[#allocation5 + $0x81] sm:$0xff] %vm2803_vm5, %v5512_v28  ;;  %v15902_v62 = vpack.c.bf16 %v5733_v20, %v5732_v42  ;;  %v5683_v42 = vld [vmem:[#allocation5 + $0x50] sm:$0xff] }
 0xfea   : > { %v13811_v36 = vpop.f32.mrf.mxu1  ;;  %v5738_v26 = vld [vmem:[#allocation5 + $0x91] sm:$0xff] }
 0xfeb   : > { %5619 = vst.msk [vmem:[#allocation5 + $0xc1] sm:$0xff] %vm2803_vm5, %v13811_v36  ;;  %13836 = vmatmul.mubr.msk.bf16.gmra.mxu0 %vm2803_vm5, %v15902_v62  ;;  %v5688_v59 = vld [vmem:[#allocation5 + $0x90] sm:$0xff] }
 0xfec   : > { %v5525_v37 = vpop.f32.mrf.mxu1  ;;  %13839 = vmatprep.mubr.msk.bf16.mxu0 %vm2803_vm5, %v15904_v10  ;;  %v5736_v3 = vld [vmem:[#allocation5 + $0x79] sm:$0xff]  ;;  %v6216_v58 = vld [vmem:[#allocation5 + $0x6a] sm:$0xff] }
 0xfed   : > { %5617 = vst.msk [vmem:[#allocation5 + $0xa9] sm:$0xff] %vm2803_vm5, %v5525_v37 }
 0xfee   : > { %v13812_v9 = vpop.f32.mrf.mxu1  ;;  %v5739_v25 = vld [vmem:[#allocation5 + $0x99] sm:$0xff] }
 0xfef   : > { %5620 = vst.msk [vmem:[#allocation5 + $0xc9] sm:$0xff] %vm2803_vm5, %v13812_v9  ;;  %v15916_v11 = vpack.c.bf16 %v5739_v25, %v5738_v26  ;;  %v5682_v25 = vld [vmem:[#allocation5 + $0x48] sm:$0xff] }
 0xff0   : > { %v5528_v23 = vpop.f32.mrf.mxu1  ;;  %v5737_v60 = vld [vmem:[#allocation5 + $0x81] sm:$0xff] }
 0xff1   : > { %5618 = vst.msk [vmem:[#allocation5 + $0xb1] sm:$0xff] %vm2803_vm5, %v5528_v23  ;;  %v15914_v63 = vpack.c.bf16 %v5737_v60, %v5736_v3  ;;  %v5684_v3 = vld [vmem:[#allocation5 + $0x60] sm:$0xff] }
 0xff2   : > { %v13815_v43 = vpop.f32.mrf.mxu1  ;;  %v5742_v53 = vld [vmem:[#allocation5 + $0xc1] sm:$0xff]  ;;  %v15987_v26 = vpack.c.bf16 %v5685_v21, %v5684_v3 }
 0xff3   : > { %5623 = vst.msk [vmem:[#allocation5 + $0xf1] sm:$0xff] %vm2803_vm5, %v13815_v43  ;;  %13840 = vmatmul.mubr.msk.bf16.gmra.mxu0 %vm2803_vm5, %v15914_v63  ;;  %v6207_v43 = vld [vmem:[#allocation5 + $0x2] sm:$0xff] }
 0xff4   : > { %v5541_v61 = vpop.f32.mrf.mxu1  ;;  %13843 = vmatprep.mubr.msk.bf16.mxu0 %vm2803_vm5, %v15916_v11  ;;  %v5740_v32 = vld [vmem:[#allocation5 + $0xa9] sm:$0xff] }
 0xff5   : > { %5621 = vst.msk [vmem:[#allocation5 + $0xd9] sm:$0xff] %vm2803_vm5, %v5541_v61  ;;  %v6208_v61 = vld [vmem:[#allocation5 + $0xa] sm:$0xff] }
 0xff6   : > { %v13816_v31 = vpop.f32.mrf.mxu1  ;;  %v5743_v13 = vld [vmem:[#allocation5 + $0xc9] sm:$0xff] }
 0xff7   : > { %5624 = vst.msk [vmem:[#allocation5 + $0xf9] sm:$0xff] %vm2803_vm5, %v13816_v31  ;;  %v15928_v22 = vpack.c.bf16 %v5743_v13, %v5742_v53  ;;  %v5687_v31 = vld [vmem:[#allocation5 + $0x80] sm:$0xff]  ;;  %v5689_v13 = vld [vmem:[#allocation5 + $0x98] sm:$0xff]  ;;  %v6239_v53 = vpack.c.bf16 %v6208_v61, %v6207_v43 }
 0xff8   : > { %v5544_v50 = vpop.f32.mrf.mxu1  ;;  %v5741_v34 = vld [vmem:[#allocation5 + $0xb1] sm:$0xff]  ;;  %v16001_v54 = vpack.c.bf16 %v5689_v13, %v5688_v59 }
 0xff9   : > { %5622 = vst.msk [vmem:[#allocation5 + $0xe1] sm:$0xff] %vm2803_vm5, %v5544_v50  ;;  %v15926_v27 = vpack.c.bf16 %v5741_v34, %v5740_v32  ;;  %v5686_v34 = vld [vmem:[#allocation5 + $0x78] sm:$0xff] }
 0xffa   : > { %v13819_v51 = vpop.f32.mrf.mxu1  ;;  %v5746_v0 = vld [vmem:[#allocation5 + $0xf1] sm:$0xff] }
 0xffb   : > { %5627 = vst.msk [vmem:[#allocation5 + $0x121] sm:$0xff] %vm2803_vm5, %v13819_v51  ;;  %13844 = vmatmul.mubr.msk.bf16.gmra.mxu0 %vm2803_vm5, %v15926_v27 }
 0xffc   : > { %v5557_v56 = vpop.f32.mrf.mxu1  ;;  %13847 = vmatprep.mubr.msk.bf16.mxu0 %vm2803_vm5, %v15928_v22  ;;  %v5744_v24 = vld [vmem:[#allocation5 + $0xd9] sm:$0xff] }
 0xffd   : > { %5625 = vst.msk [vmem:[#allocation5 + $0x109] sm:$0xff] %vm2803_vm5, %v5557_v56  ;;  %v15999_v56 = vpack.c.bf16 %v5687_v31, %v5686_v34  ;;  %v6221_v34 = vld [vmem:[#allocation5 + $0xaa] sm:$0xff] }
 0xffe   : > { %v13820_v1 = vpop.f32.mrf.mxu1  ;;  %v5747_v12 = vld [vmem:[#allocation5 + $0xf9] sm:$0xff] }
 0xfff   : > { %5628 = vst.msk [vmem:[#allocation5 + $0x129] sm:$0xff] %vm2803_vm5, %v13820_v1  ;;  %v15937_v15 = vpack.c.bf16 %v5747_v12, %v5746_v0  ;;  %v5691_v1 = vld [vmem:[#allocation5 + $0xb0] sm:$0xff]  ;;  %v6209_v0 = vld [vmem:[#allocation5 + $0x1a] sm:$0xff]  ;;  %v6210_v12 = vld [vmem:[#allocation5 + $0x22] sm:$0xff] }
0x1000   : > { %v5560_v55 = vpop.f32.mrf.mxu1  ;;  %v5745_v4 = vld [vmem:[#allocation5 + $0xe1] sm:$0xff]  ;;  %v5697_v52 = vld [vmem:[#allocation5 + $0xf8] sm:$0xff] }
0x1001   : > { %5626 = vst.msk [vmem:[#allocation5 + $0x111] sm:$0xff] %vm2803_vm5, %v5560_v55  ;;  %13851 = vmatprep.mubr.msk.bf16.mxu1 %vm2803_vm5, %v15937_v15  ;;  %v15942_v6 = vpack.c.bf16 %v5745_v4, %v5744_v24  ;;  %v5693_v55 = vld [vmem:[#allocation5 + $0xc8] sm:$0xff]  ;;  %v6211_v24 = vld [vmem:[#allocation5 + $0x32] sm:$0xff]  ;;  %v6212_v4 = vld [vmem:[#allocation5 + $0x3a] sm:$0xff] }
0x1002   : > { %v13823_v33 = vpop.f32.mrf.mxu1  ;;  %v5750_v7 = vld [vmem:[#allocation5 + $0x121] sm:$0xff] }
0x1003   : > { %5631 = vst.msk [vmem:[#allocation5 + $0x151] sm:$0xff] %vm2803_vm5, %v13823_v33  ;;  %13848 = vmatmul.mubr.msk.bf16.gmra.mxu0 %vm2803_vm5, %v15942_v6  ;;  %v5700_v31 = vld [vmem:[#allocation5 + $0x120] sm:$0xff] }
0x1004   : > { %v5573_v14 = vpop.f32.mrf.mxu1  ;;  %13865 = vmatprep.mubr.msk.bf16.mxu0 %vm2803_vm5, %v5708_v47  ;;  %v5748_v29 = vld [vmem:[#allocation5 + $0x109] sm:$0xff] }
0x1005   : > { %5629 = vst.msk [vmem:[#allocation5 + $0x139] sm:$0xff] %vm2803_vm5, %v5573_v14  ;;  %v5690_v47 = vld [vmem:[#allocation5 + $0xa8] sm:$0xff]  ;;  %v16012_v14 = vpack.c.bf16 %v6210_v12, %v6209_v0 }
0x1006   : > { %v13824_v17 = vpop.f32.mrf.mxu1  ;;  %v5751_v48 = vld [vmem:[#allocation5 + $0x129] sm:$0xff]  ;;  %v16010_v33 = vpack.c.bf16 %v5691_v1, %v5690_v47 }
0x1007   : > { %5632 = vst.msk [vmem:[#allocation5 + $0x159] sm:$0xff] %vm2803_vm5, %v13824_v17  ;;  %v15955_v35 = vpack.c.bf16 %v5751_v48, %v5750_v7  ;;  %v5692_v17 = vld [vmem:[#allocation5 + $0xc0] sm:$0xff]  ;;  %v16016_v48 = vpack.c.bf16 %v6212_v4, %v6211_v24  ;;  %v5698_v3 = vld [vmem:[#allocation5 + $0x108] sm:$0xff] }
0x1008   : > { %v5576_v40 = vpop.f32.mrf.mxu1  ;;  %v5749_v8 = vld [vmem:[#allocation5 + $0x111] sm:$0xff]  ;;  %v16014_v2 = vpack.c.bf16 %v5693_v55, %v5692_v17  ;;  %v6215_v7 = vld [vmem:[#allocation5 + $0x62] sm:$0xff] }
0x1009   : > { %5630 = vst.msk [vmem:[#allocation5 + $0x141] sm:$0xff] %vm2803_vm5, %v5576_v40  ;;  %v15951_v16 = vpack.c.bf16 %v5749_v8, %v5748_v29  ;;  %v5695_v40 = vld [vmem:[#allocation5 + $0xe0] sm:$0xff]  ;;  %v6213_v29 = vld [vmem:[#allocation5 + $0x4a] sm:$0xff]  ;;  %v6214_v8 = vld [vmem:[#allocation5 + $0x52] sm:$0xff]  ;;  %v16037_v21 = vpack.c.bf16 %v6216_v58, %v6215_v7 }
0x100a   : > { %v13827_v19 = vpop.f32.mrf.mxu1  ;;  %v6223_v1 = vld [vmem:[#allocation5 + $0xc2] sm:$0xff]  ;;  %v6224_v0 = vld [vmem:[#allocation5 + $0xca] sm:$0xff]  ;;  %v6228_v7 = vld [vmem:[#allocation5 + $0xfa] sm:$0xff] }
0x100b   : > { %5635 = vst.msk [vmem:[#allocation5 + $0x181] sm:$0xff] %vm2803_vm5, %v13827_v19  ;;  %13852 = vmatmul.mubr.msk.bf16.vlgmr.msra.gmra.mxu1 %vm2803_vm5, %v15951_v16  ;;  %13866 = vmatmul.mubr.msk.bf16.vlgmr.msra.gmra.mxu0 %vm2803_vm5, %v15953_v49  ;;  %v5694_v19 = vld [vmem:[#allocation5 + $0xd8] sm:$0xff]  ;;  %v5704_v4 = vld [vmem:[#allocation5 + $0x150] sm:$0xff]  ;;  %v16069_v17 = vpack.c.bf16 %v6224_v0, %v6223_v1 }
0x100c   : > { %v5589_v18 = vpop.f32.mrf.mxu1  ;;  %13855 = vmatprep.mubr.msk.bf16.mxu1 %vm2803_vm5, %v15955_v35  ;;  %13869 = vmatprep.mubr.msk.bf16.mxu0 %vm2803_vm5, %v15957_v45  ;;  %v5752_v37 = vld [vmem:[#allocation5 + $0x139] sm:$0xff] }
0x100d   : > { %5633 = vst.msk [vmem:[#allocation5 + $0x169] sm:$0xff] %vm2803_vm5, %v5589_v18  ;;  %13898 = vmatpush3.bf16.msra.mxu1 %v15875_v44  ;;  %13932 = vmatpush3.bf16.msra.mxu0 %v15889_v57  ;;  %v15983_v44 = vpack.c.bf16 %v5683_v42, %v5682_v25  ;;  %v5754_v57 = vld [vmem:[#allocation5 + $0x151] sm:$0xff]  ;;  %v16031_v18 = vpack.c.bf16 %v5695_v40, %v5694_v19 }
0x100e   : > { %v13828_v28 = vpop.f32.mrf.mxu1  ;;  %13965 = vmatprep.subr.bf16.mxu1 %v15960_v5  ;;  %13999 = vmatprep.subr.bf16.mxu0 %v15963_v39  ;;  %v5755_v20 = vld [vmem:[#allocation5 + $0x159] sm:$0xff]  ;;  %v5696_v42 = vld [vmem:[#allocation5 + $0xf0] sm:$0xff] }
0x100f   : > { %5636 = vst.msk [vmem:[#allocation5 + $0x189] sm:$0xff] %vm2803_vm5, %v13828_v28  ;;  %v15985_v60 = vpack.c.bf16 %v5755_v20, %v5754_v57  ;;  %v16033_v28 = vpack.c.bf16 %v6214_v8, %v6213_v29  ;;  %v16035_v20 = vpack.c.bf16 %v5697_v52, %v5696_v42  ;;  %v6219_v25 = vld [vmem:[#allocation5 + $0x92] sm:$0xff]  ;;  %v6220_v57 = vld [vmem:[#allocation5 + $0x9a] sm:$0xff]  ;;  %v6226_v8 = vld [vmem:[#allocation5 + $0xe2] sm:$0xff] }
0x1010   : > { %v5592_v36 = vpop.f32.mrf.mxu1  ;;  %v5753_v9 = vld [vmem:[#allocation5 + $0x141] sm:$0xff]  ;;  %v5705_v59 = vld [vmem:[#allocation5 + $0x158] sm:$0xff] }
0x1011   : > { %5634 = vst.msk [vmem:[#allocation5 + $0x171] sm:$0xff] %vm2803_vm5, %v5592_v36  ;;  %v15981_v23 = vpack.c.bf16 %v5753_v9, %v5752_v37  ;;  %v6217_v36 = vld [vmem:[#allocation5 + $0x7a] sm:$0xff]  ;;  %v6218_v37 = vld [vmem:[#allocation5 + $0x82] sm:$0xff]  ;;  %v16067_v47 = vpack.c.bf16 %v5705_v59, %v5704_v4  ;;  %v6227_v52 = vld [vmem:[#allocation5 + $0xf2] sm:$0xff] }
0x1012   : > { %v5701_v9 = vld [vmem:[#allocation5 + $0x128] sm:$0xff]  ;;  %v16049_v61 = vpack.c.bf16 %v6218_v37, %v6217_v36  ;;  %v5702_v12 = vld [vmem:[#allocation5 + $0x138] sm:$0xff]  ;;  %v14635_v4 = vld [vmem:[%s19098_s3 + $0x40] sm:$0xff]  }
0x1013   : > { %13856 = vmatmul.mubr.msk.bf16.gmra.mxu1 %vm2803_vm5, %v15981_v23  ;;  %13870 = vmatmul.mubr.msk.bf16.gmra.mxu0 %vm2803_vm5, %v15983_v44  ;;  %v16051_v13 = vpack.c.bf16 %v5701_v9, %v5700_v31  ;;  %v6225_v29 = vld [vmem:[#allocation5 + $0xda] sm:$0xff]  ;;  %v6229_v36 = vld [vmem:[#allocation5 + $0x10a] sm:$0xff]  ;;  %v6230_v37 = vld [vmem:[#allocation5 + $0x112] sm:$0xff] }
0x1014   : > { %13859 = vmatprep.mubr.msk.bf16.mxu1 %vm2803_vm5, %v15985_v60  ;;  %13873 = vmatprep.mubr.msk.bf16.mxu0 %vm2803_vm5, %v15987_v26  ;;  %v5756_v50 = vld [vmem:[#allocation5 + $0x169] sm:$0xff]  ;;  %v16081_v42 = vpack.c.bf16 %v6226_v8, %v6225_v29  ;;  %v7698_v8 = vld [vmem:[#allocation5 + $0x31] sm:$0xff] }
0x1015   : > { %v5706_v58 = vld [vmem:[#allocation5 + $0x168] sm:$0xff] }
0x1016   : > { %v6231_v9 = vld [vmem:[#allocation5 + $0x122] sm:$0xff] }
0x1017   : > { %v14634_v31 = vld [vmem:[%s19098_s3 + $0x38] sm:$0xff]  }
0x1018   : > { %v5757_v32 = vld [vmem:[#allocation5 + $0x171] sm:$0xff] }
0x1019   : > { %v15997_v51 = vpack.c.bf16 %v5757_v32, %v5756_v50  ;;  %v16053_v50 = vpack.c.bf16 %v6220_v57, %v6219_v25  ;;  %v5703_v32 = vld [vmem:[#allocation5 + $0x140] sm:$0xff]  ;;  %v5707_v40 = vld [vmem:[#allocation5 + $0x170] sm:$0xff]  ;;  %v16093_v57 = vpack.c.bf16 %v6230_v37, %v6229_v36 }
0x101a   : > { %v16063_v55 = vpack.c.bf16 %v5703_v32, %v5702_v12  ;;  %v16079_v19 = vpack.c.bf16 %v5707_v40, %v5706_v58  ;;  %v6232_v25 = vld [vmem:[#allocation5 + $0x12a] sm:$0xff]  ;;  %v6234_v32 = vld [vmem:[#allocation5 + $0x142] sm:$0xff]  ;;  %v6238_v0 = vld [vmem:[#allocation5 + $0x172] sm:$0xff] }
0x101b   : > { %13860 = vmatmul.mubr.msk.bf16.gmra.mxu1 %vm2803_vm5, %v15997_v51  ;;  %13874 = vmatmul.mubr.msk.bf16.gmra.mxu0 %vm2803_vm5, %v15999_v56  ;;  %v7703_v36 = vld [vmem:[#allocation5 + $0x69] sm:$0xff] }
0x101c   : > { %13877 = vmatprep.mubr.msk.bf16.mxu0 %vm2803_vm5, %v16001_v54  ;;  %13899 = vmatprep.mubr.msk.bf16.mxu1 %vm2803_vm5, %v6239_v53  ;;  %v6222_v53 = vld [vmem:[#allocation5 + $0xb2] sm:$0xff]  ;;  %v7700_v37 = vld [vmem:[#allocation5 + $0x49] sm:$0xff] }
0x101d   : > { %v16065_v24 = vpack.c.bf16 %v6222_v53, %v6221_v34  ;;  %v6235_v34 = vld [vmem:[#allocation5 + $0x152] sm:$0xff]  ;;  %v6236_v53 = vld [vmem:[#allocation5 + $0x15a] sm:$0xff] }
0x101e   : > { %v16109_v1 = vpack.c.bf16 %v6236_v53, %v6235_v34 }
0x1023   : > { %13878 = vmatmul.mubr.msk.bf16.gmra.mxu0 %vm2803_vm5, %v16010_v33  ;;  %13900 = vmatmul.mubr.msk.bf16.vlgmr.msra.gmra.mxu1 %vm2803_vm5, %v16012_v14 }
0x1024   : > { %13881 = vmatprep.mubr.msk.bf16.mxu0 %vm2803_vm5, %v16014_v2  ;;  %13903 = vmatprep.mubr.msk.bf16.mxu1 %vm2803_vm5, %v16016_v48 }
0x1025   : > { %13966 = vmatpush3.bf16.msra.mxu1 %v15960_v5  ;;  %v5699_v5 = vld [vmem:[#allocation5 + $0x110] sm:$0xff] }
0x1026   : > { %14033 = vmatprep.subr.bf16.mxu1 %v16019_v30  ;;  %v16047_v43 = vpack.c.bf16 %v5699_v5, %v5698_v3  ;;  %v16083_v5 = vpack.c.bf16 %v6228_v7, %v6227_v52  ;;  %v16095_v3 = vpack.c.bf16 %v6232_v25, %v6231_v9  ;;  %v7701_v7 = vld [vmem:[#allocation5 + $0x51] sm:$0xff] }
0x1027   : > { %v7731_v25 = vpack.c.bf16 %v7701_v7, %v7700_v37 }
0x102b   : > { %13882 = vmatmul.mubr.msk.bf16.gmra.mxu0 %vm2803_vm5, %v16031_v18  ;;  %13904 = vmatmul.mubr.msk.bf16.gmra.mxu1 %vm2803_vm5, %v16033_v28 }
0x102c   : > { %13885 = vmatprep.mubr.msk.bf16.mxu0 %vm2803_vm5, %v16035_v20  ;;  %13907 = vmatprep.mubr.msk.bf16.mxu1 %vm2803_vm5, %v16037_v21 }
0x1033   : > { %13886 = vmatmul.mubr.msk.bf16.gmra.mxu0 %vm2803_vm5, %v16047_v43  ;;  %13908 = vmatmul.mubr.msk.bf16.gmra.mxu1 %vm2803_vm5, %v16049_v61 }
0x1034   : > { %13889 = vmatprep.mubr.msk.bf16.mxu0 %vm2803_vm5, %v16051_v13  ;;  %13911 = vmatprep.mubr.msk.bf16.mxu1 %vm2803_vm5, %v16053_v50 }
0x103b   : > { %13890 = vmatmul.mubr.msk.bf16.gmra.mxu0 %vm2803_vm5, %v16063_v55  ;;  %13912 = vmatmul.mubr.msk.bf16.gmra.mxu1 %vm2803_vm5, %v16065_v24 }
0x103c   : > { %13893 = vmatprep.mubr.msk.bf16.mxu0 %vm2803_vm5, %v16067_v47  ;;  %13915 = vmatprep.mubr.msk.bf16.mxu1 %vm2803_vm5, %v16069_v17 }
0x1043   : > { %13894 = vmatmul.mubr.msk.bf16.gmra.mxu0 %vm2803_vm5, %v16079_v19  ;;  %13916 = vmatmul.mubr.msk.bf16.gmra.mxu1 %vm2803_vm5, %v16081_v42 }
0x1044   : > { %13919 = vmatprep.mubr.msk.bf16.mxu1 %vm2803_vm5, %v16083_v5  ;;  %13933 = vmatprep.mubr.msk.bf16.mxu0 %vm2803_vm5, %v15953_v49  ;;  %v6233_v49 = vld [vmem:[#allocation5 + $0x13a] sm:$0xff] }
0x1045   : > { %v16107_v59 = vpack.c.bf16 %v6234_v32, %v6233_v49 }
0x104b   : > { %13920 = vmatmul.mubr.msk.bf16.gmra.mxu1 %vm2803_vm5, %v16093_v57  ;;  %13934 = vmatmul.mubr.msk.bf16.vlgmr.msra.gmra.mxu0 %vm2803_vm5, %v15957_v45 }
0x104c   : > { %13923 = vmatprep.mubr.msk.bf16.mxu1 %vm2803_vm5, %v16095_v3  ;;  %13937 = vmatprep.mubr.msk.bf16.mxu0 %vm2803_vm5, %v15983_v44 }
0x104d   : > { %14000 = vmatpush3.bf16.msra.mxu0 %v15963_v39  ;;  %v6237_v39 = vld [vmem:[#allocation5 + $0x16a] sm:$0xff] }
0x104e   : > { %14067 = vmatprep.subr.bf16.mxu0 %v14634_v31  ;;  %v16119_v12 = vpack.c.bf16 %v6238_v0, %v6237_v39  ;;  %v7707_v0 = vld [vmem:[#allocation5 + $0x99] sm:$0xff] }
0x1053   : > { %13924 = vmatmul.mubr.msk.bf16.gmra.mxu1 %vm2803_vm5, %v16107_v59  ;;  %13938 = vmatmul.mubr.msk.bf16.gmra.mxu0 %vm2803_vm5, %v15987_v26 }
0x1054   : > { %13927 = vmatprep.mubr.msk.bf16.mxu1 %vm2803_vm5, %v16109_v1  ;;  %13941 = vmatprep.mubr.msk.bf16.mxu0 %vm2803_vm5, %v15999_v56 }
0x105b   : > { %13928 = vmatmul.mubr.msk.bf16.gmra.mxu1 %vm2803_vm5, %v16119_v12  ;;  %13942 = vmatmul.mubr.msk.bf16.gmra.mxu0 %vm2803_vm5, %v16001_v54 }
0x105c   : > { %13945 = vmatprep.mubr.msk.bf16.mxu0 %vm2803_vm5, %v16010_v33  ;;  %13967 = vmatprep.mubr.msk.bf16.mxu1 %vm2803_vm5, %v15886_v38  ;;  %v6536_v38 = vld [vmem:[#allocation5 + $0x188] sm:$0xff] }
0x1063   : > { %13946 = vmatmul.mubr.msk.bf16.gmra.mxu0 %vm2803_vm5, %v16014_v2  ;;  %13968 = vmatmul.mubr.msk.bf16.vlgmr.msra.gmra.mxu1 %vm2803_vm5, %v15891_v41  ;;  %v6535_v41 = vld [vmem:[#allocation5 + $0x180] sm:$0xff] }
0x1064   : > { %13949 = vmatprep.mubr.msk.bf16.mxu0 %vm2803_vm5, %v16031_v18  ;;  %13971 = vmatprep.mubr.msk.bf16.mxu1 %vm2803_vm5, %v15902_v62  ;;  %v16163_v62 = vpack.c.bf16 %v6536_v38, %v6535_v41 }
0x1065   : > { %14034 = vmatpush3.bf16.msra.mxu1 %v16019_v30  ;;  %v7699_v30 = vld [vmem:[#allocation5 + $0x39] sm:$0xff] }
0x1066   : > { %14101 = vmatprep.subr.bf16.mxu1 %v14635_v4  ;;  %v7730_v52 = vpack.c.bf16 %v7699_v30, %v7698_v8 }
0x106b   : > { %13950 = vmatmul.mubr.msk.bf16.gmra.mxu0 %vm2803_vm5, %v16035_v20  ;;  %13972 = vmatmul.mubr.msk.bf16.gmra.mxu1 %vm2803_vm5, %v15904_v10  ;;  %v6834_v10 = vld [vmem:[#allocation5 + $0x189] sm:$0xff] }
0x106c   : > { %13953 = vmatprep.mubr.msk.bf16.mxu0 %vm2803_vm5, %v16047_v43  ;;  %13975 = vmatprep.mubr.msk.bf16.mxu1 %vm2803_vm5, %v15914_v63  ;;  %v6833_v63 = vld [vmem:[#allocation5 + $0x181] sm:$0xff] }
0x1073   : > { %13954 = vmatmul.mubr.msk.bf16.gmra.mxu0 %vm2803_vm5, %v16051_v13  ;;  %13976 = vmatmul.mubr.msk.bf16.gmra.mxu1 %vm2803_vm5, %v15916_v11  ;;  %v16189_v11 = vpack.c.bf16 %v6834_v10, %v6833_v63 }
0x1074   : > { %13957 = vmatprep.mubr.msk.bf16.mxu0 %vm2803_vm5, %v16063_v55  ;;  %13979 = vmatprep.mubr.msk.bf16.mxu1 %vm2803_vm5, %v15926_v27 }
0x107b   : > { %13958 = vmatmul.mubr.msk.bf16.gmra.mxu0 %vm2803_vm5, %v16067_v47  ;;  %13980 = vmatmul.mubr.msk.bf16.gmra.mxu1 %vm2803_vm5, %v15928_v22 }
0x107c   : > { %13961 = vmatprep.mubr.msk.bf16.mxu0 %vm2803_vm5, %v16079_v19  ;;  %13983 = vmatprep.mubr.msk.bf16.mxu1 %vm2803_vm5, %v15942_v6 }
0x1083   : > { %13962 = vmatmul.mubr.msk.bf16.gmra.mxu0 %vm2803_vm5, %v16163_v62  ;;  %13984 = vmatmul.mubr.msk.bf16.gmra.mxu1 %vm2803_vm5, %v15937_v15 }
0x1084   : > { %13987 = vmatprep.mubr.msk.bf16.mxu1 %vm2803_vm5, %v15951_v16  ;;  %14001 = vmatprep.mubr.msk.bf16.mxu0 %vm2803_vm5, %v16012_v14  ;;  %v7132_v14 = vld [vmem:[#allocation5 + $0x18a] sm:$0xff] }
0x108b   : > { %13988 = vmatmul.mubr.msk.bf16.gmra.mxu1 %vm2803_vm5, %v15955_v35  ;;  %14002 = vmatmul.mubr.msk.bf16.vlgmr.msra.gmra.mxu0 %vm2803_vm5, %v16016_v48 }
0x108c   : > { %13991 = vmatprep.mubr.msk.bf16.mxu1 %vm2803_vm5, %v15981_v23  ;;  %14005 = vmatprep.mubr.msk.bf16.mxu0 %vm2803_vm5, %v16033_v28 }
0x108d   : > { %14068 = vmatpush3.bf16.msra.mxu0 %v14634_v31 }
0x1093   : > { %13992 = vmatmul.mubr.msk.bf16.gmra.mxu1 %vm2803_vm5, %v15985_v60  ;;  %14006 = vmatmul.mubr.msk.bf16.gmra.mxu0 %vm2803_vm5, %v16037_v21 }
0x1094   : > { %13995 = vmatprep.mubr.msk.bf16.mxu1 %vm2803_vm5, %v15997_v51  ;;  %14009 = vmatprep.mubr.msk.bf16.mxu0 %vm2803_vm5, %v16049_v61 }
0x109b   : > { %13996 = vmatmul.mubr.msk.bf16.gmra.mxu1 %vm2803_vm5, %v16189_v11  ;;  %14010 = vmatmul.mubr.msk.bf16.gmra.mxu0 %vm2803_vm5, %v16053_v50 }
0x109c   : > { %14013 = vmatprep.mubr.msk.bf16.mxu0 %vm2803_vm5, %v16065_v24  ;;  %14035 = vmatprep.mubr.msk.bf16.mxu1 %vm2803_vm5, %v15957_v45 }
0x10a3   : > { %v13833_v27 = vpop.f32.mrf.mxu0  ;;  %14014 = vmatmul.mubr.msk.bf16.gmra.mxu0 %vm2803_vm5, %v16069_v17  ;;  %14036 = vmatmul.mubr.msk.bf16.vlgmr.msra.gmra.mxu1 %vm2803_vm5, %v15983_v44 }
0x10a4   : > { %14017 = vmatprep.mubr.msk.bf16.mxu0 %vm2803_vm5, %v16081_v42  ;;  %14039 = vmatprep.mubr.msk.bf16.mxu1 %vm2803_vm5, %v15987_v26 }
0x10a5   : > { %v5865_v22 = vpop.f32.mrf.mxu0  ;;  %14102 = vmatpush3.bf16.msra.mxu1 %v14635_v4 }
0x10a7   : > { %v13834_v15 = vpop.f32.mrf.mxu0 }
0x10a9   : > { %v16207_v6 = vpop.f32.mrf.mxu0 }
0x10ab   : > { %v16209_v16 = vpop.f32.mrf.mxu0  ;;  %14018 = vmatmul.mubr.msk.bf16.gmra.mxu0 %vm2803_vm5, %v16083_v5  ;;  %14040 = vmatmul.mubr.msk.bf16.gmra.mxu1 %vm2803_vm5, %v15999_v56 }
0x10ac   : > { %14021 = vmatprep.mubr.msk.bf16.mxu0 %vm2803_vm5, %v16093_v57  ;;  %14043 = vmatprep.mubr.msk.bf16.mxu1 %vm2803_vm5, %v16001_v54  ;;  %v7702_v57 = vld [vmem:[#allocation5 + $0x61] sm:$0xff] }
0x10ad   : > { %v16219_v35 = vpop.f32.mrf.mxu0  ;;  %v7732_v31 = vpack.c.bf16 %v7703_v36, %v7702_v57 }
0x10af   : > { %v16221_v45 = vpop.f32.mrf.mxu0 }
0x10b1   : > { %v16223_v23 = vpop.f32.mrf.mxu0 }
0x10b3   : > { %v16225_v44 = vpop.f32.mrf.mxu0  ;;  %14022 = vmatmul.mubr.msk.bf16.gmra.mxu0 %vm2803_vm5, %v16095_v3  ;;  %14044 = vmatmul.mubr.msk.bf16.gmra.mxu1 %vm2803_vm5, %v16010_v33  ;;  %v7131_v33 = vld [vmem:[#allocation5 + $0x182] sm:$0xff] }
0x10b4   : > { %14025 = vmatprep.mubr.msk.bf16.mxu0 %vm2803_vm5, %v16107_v59  ;;  %14047 = vmatprep.mubr.msk.bf16.mxu1 %vm2803_vm5, %v16014_v2  ;;  %v16257_v29 = vpack.c.bf16 %v7132_v14, %v7131_v33  ;;  %v7705_v59 = vld [vmem:[#allocation5 + $0x81] sm:$0xff]  ;;  %v7430_v33 = vld [vmem:[#allocation5 + $0x198] sm:$0xff] }
0x10b5   : > { %v16235_v60 = vpop.f32.mrf.mxu0 }
0x10b7   : > { %v16237_v26 = vpop.f32.mrf.mxu0 }
0x10b9   : > { %v16239_v51 = vpop.f32.mrf.mxu0 }
0x10bb   : > { %v16241_v56 = vpop.f32.mrf.mxu0  ;;  %14026 = vmatmul.mubr.msk.bf16.gmra.mxu0 %vm2803_vm5, %v16109_v1  ;;  %14048 = vmatmul.mubr.msk.bf16.gmra.mxu1 %vm2803_vm5, %v16031_v18 }
0x10bc   : > { %14029 = vmatprep.mubr.msk.bf16.mxu0 %vm2803_vm5, %v16119_v12  ;;  %14051 = vmatprep.mubr.msk.bf16.mxu1 %vm2803_vm5, %v16035_v20  ;;  %v7704_v12 = vld [vmem:[#allocation5 + $0x79] sm:$0xff] }
0x10bd   : > { %v16251_v54 = vpop.f32.mrf.mxu0  ;;  %v7733_v41 = vpack.c.bf16 %v7705_v59, %v7704_v12 }
0x10bf   : > { %v16253_v2 = vpop.f32.mrf.mxu0 }
0x10c1   : > { %v16255_v40 = vpop.f32.mrf.mxu0 }
0x10c3   : > { %v16259_v18 = vpop.f32.mrf.mxu0  ;;  %14030 = vmatmul.mubr.msk.bf16.gmra.mxu0 %vm2803_vm5, %v16257_v29  ;;  %14052 = vmatmul.mubr.msk.bf16.gmra.mxu1 %vm2803_vm5, %v16047_v43 }
0x10c4   : > { %14055 = vmatprep.mubr.msk.bf16.mxu1 %vm2803_vm5, %v16051_v13  ;;  %14069 = vmatprep.mubr.msk.bf16.mxu0 %vm2803_vm5, %v7730_v52  ;;  %v7709_v52 = vld [vmem:[#allocation5 + $0xb1] sm:$0xff] }
0x10c5   : > { %v16268_v20 = vpop.f32.mrf.mxu0 }
0x10c7   : > { %v16270_v58 = vpop.f32.mrf.mxu0 }
0x10c9   : > { %v16272_v9 = vpop.f32.mrf.mxu0 }
0x10cb   : > { %v16274_v49 = vpop.f32.mrf.mxu1  ;;  %v13867_v43 = vpop.f32.mrf.mxu0  ;;  %14056 = vmatmul.mubr.msk.bf16.gmra.mxu1 %vm2803_vm5, %v16063_v55  ;;  %14070 = vmatmul.mubr.msk.bf16.vlgmr.msra.gmra.mxu0 %vm2803_vm5, %v7731_v25 }
0x10cc   : > { %v16279_v13 = vadd.f32 %v13867_v43, %v13833_v27  ;;  %14059 = vmatprep.mubr.msk.bf16.mxu1 %vm2803_vm5, %v16067_v47  ;;  %14073 = vmatprep.mubr.msk.bf16.mxu0 %vm2803_vm5, %v7732_v31  ;;  %v7706_v47 = vld [vmem:[#allocation5 + $0x91] sm:$0xff]  ;;  %v7710_v43 = vld [vmem:[#allocation5 + $0xc1] sm:$0xff] }
0x10cd   : > { %v16284_v32 = vpop.f32.mrf.mxu1  ;;  %v6080_v34 = vpop.f32.mrf.mxu0  ;;  %v7734_v63 = vpack.c.bf16 %v7707_v0, %v7706_v47 }
0x10ce   : > { %v16286_v53 = vadd.f32 %v6080_v34, %v5865_v22 }
0x10cf   : > { %v16288_v1 = vpop.f32.mrf.mxu1  ;;  %v13868_v39 = vpop.f32.mrf.mxu0 }
0x10d0   : > { %v16290_v55 = vadd.f32 %v13868_v39, %v13834_v15 }
0x10d1   : > { %v16292_v4 = vpop.f32.mrf.mxu1  ;;  %v6083_v38 = vpop.f32.mrf.mxu0 }
0x10d2   : > { %v16295_v10 = vadd.f32 %v6083_v38, %v16207_v6  ;;  %v7431_v6 = vld [vmem:[#allocation5 + $0x1a0] sm:$0xff] }
0x10d3   : > { %v16297_v27 = vpop.f32.mrf.mxu1  ;;  %v13871_v22 = vpop.f32.mrf.mxu0  ;;  %14060 = vmatmul.mubr.msk.bf16.gmra.mxu1 %vm2803_vm5, %v16079_v19  ;;  %14074 = vmatmul.mubr.msk.bf16.gmra.mxu0 %vm2803_vm5, %v7733_v41  ;;  %v7447_v36 = vpack.c.bf16 %v7431_v6, %v7430_v33  ;;  %v7713_v38 = vld [vmem:[#allocation5 + $0xe1] sm:$0xff] }
0x10d4   : > { %v16303_v15 = vadd.f32 %v13871_v22, %v16209_v16  ;;  %14063 = vmatprep.mubr.msk.bf16.mxu1 %vm2803_vm5, %v16163_v62  ;;  %14077 = vmatprep.mubr.msk.bf16.mxu0 %vm2803_vm5, %v7734_v63  ;;  %v7711_v16 = vld [vmem:[#allocation5 + $0xc9] sm:$0xff]  ;;  %v7715_v63 = vld [vmem:[#allocation5 + $0xf9] sm:$0xff] }
0x10d5   : > { %v16308_v14 = vpop.f32.mrf.mxu1  ;;  %v6096_v30 = vpop.f32.mrf.mxu0  ;;  %v7708_v62 = vld [vmem:[#allocation5 + $0xa9] sm:$0xff] }
0x10d6   : > { %v16311_v8 = vadd.f32 %v6096_v30, %v16219_v35  ;;  %v7735_v31 = vpack.c.bf16 %v7709_v52, %v7708_v62  ;;  %v7736_v35 = vpack.c.bf16 %v7711_v16, %v7710_v43 }
0x10d7   : > { %v16313_v19 = vpop.f32.mrf.mxu1  ;;  %v13872_v7 = vpop.f32.mrf.mxu0 }
0x10d8   : > { %v16316_v37 = vadd.f32 %v13872_v7, %v16221_v45 }
0x10d9   : > { %v16318_v25 = vpop.f32.mrf.mxu1  ;;  %v6099_v57 = vpop.f32.mrf.mxu0 }
0x10da   : > { %v16321_v34 = vadd.f32 %v6099_v57, %v16223_v23 }
0x10db   : > { %v16323_v59 = vpop.f32.mrf.mxu1  ;;  %v13875_v39 = vpop.f32.mrf.mxu0  ;;  %14064 = vmatmul.mubr.msk.bf16.gmra.mxu1 %vm2803_vm5, %v7447_v36  ;;  %14078 = vmatmul.mubr.msk.bf16.gmra.mxu0 %vm2803_vm5, %v7735_v31 }
0x10dc   : > { %v16328_v45 = vadd.f32 %v13875_v39, %v16225_v44  ;;  %14081 = vmatprep.mubr.msk.bf16.mxu0 %vm2803_vm5, %v7736_v35  ;;  %14103 = vmatprep.mubr.msk.bf16.mxu1 %vm2803_vm5, %v16016_v48  ;;  %v7712_v44 = vld [vmem:[#allocation5 + $0xd9] sm:$0xff]  ;;  %v7714_v48 = vld [vmem:[#allocation5 + $0xf1] sm:$0xff]  ;;  %v7719_v35 = vld [vmem:[#allocation5 + $0x129] sm:$0xff] }
0x10dd   : > { %v16333_v0 = vpop.f32.mrf.mxu1  ;;  %v6112_v23 = vpop.f32.mrf.mxu0  ;;  %v7737_v30 = vpack.c.bf16 %v7713_v38, %v7712_v44  ;;  %v7738_v7 = vpack.c.bf16 %v7715_v63, %v7714_v48  ;;  %v7718_v63 = vld [vmem:[#allocation5 + $0x121] sm:$0xff] }
0x10de   : > { %v16336_v12 = vadd.f32 %v6112_v23, %v16235_v60  ;;  %v7716_v23 = vld [vmem:[#allocation5 + $0x109] sm:$0xff]  ;;  %v7740_v44 = vpack.c.bf16 %v7719_v35, %v7718_v63 }
0x10df   : > { %v16338_v41 = vpop.f32.mrf.mxu1  ;;  %v13876_v47 = vpop.f32.mrf.mxu0 }
0x10e0   : > { %v16341_v22 = vadd.f32 %v13876_v47, %v16237_v26 }
0x10e1   : > { %v16343_v33 = vpop.f32.mrf.mxu1  ;;  %v6115_v6 = vpop.f32.mrf.mxu0 }
0x10e2   : > { %v16346_v52 = vadd.f32 %v6115_v6, %v16239_v51 }
0x10e3   : > { %v13879_v60 = vpop.f32.mrf.mxu0  ;;  %v13901_v36 = vpop.f32.mrf.mxu1  ;;  %14082 = vmatmul.mubr.msk.bf16.gmra.mxu0 %vm2803_vm5, %v7737_v30  ;;  %14104 = vmatmul.mubr.msk.bf16.vlgmr.msra.gmra.mxu1 %vm2803_vm5, %v16033_v28  ;;  %v7717_v28 = vld [vmem:[#allocation5 + $0x111] sm:$0xff] }
0x10e4   : > { %v16352_v26 = vadd.f32 %v13879_v60, %v16241_v56  ;;  %v16355_v16 = vadd.f32 %v13901_v36, %v16279_v13  ;;  %14085 = vmatprep.mubr.msk.bf16.mxu0 %vm2803_vm5, %v7738_v7  ;;  %14107 = vmatprep.mubr.msk.bf16.mxu1 %vm2803_vm5, %v16037_v21  ;;  %v7739_v47 = vpack.c.bf16 %v7717_v28, %v7716_v23  ;;  %v7723_v36 = vld [vmem:[#allocation5 + $0x159] sm:$0xff] }
0x10e5   : > { %v6128_v51 = vpop.f32.mrf.mxu0  ;;  %v6346_v62 = vpop.f32.mrf.mxu1 }
0x10e6   : > { %v16361_v57 = vadd.f32 %v6128_v51, %v16251_v54  ;;  %v16364_v31 = vadd.f32 %v6346_v62, %v16286_v53  ;;  %v7720_v62 = vld [vmem:[#allocation5 + $0x139] sm:$0xff] }
0x10e7   : > { %v13880_v43 = vpop.f32.mrf.mxu0  ;;  %v13902_v56 = vpop.f32.mrf.mxu1 }
0x10e8   : > { %v16367_v13 = vadd.f32 %v13880_v43, %v16253_v2  ;;  %v16370_v39 = vadd.f32 %v13902_v56, %v16290_v55 }
0x10e9   : > { %v6131_v21 = vpop.f32.mrf.mxu0  ;;  %v6349_v38 = vpop.f32.mrf.mxu1 }
0x10ea   : > { %v16373_v54 = vadd.f32 %v6131_v21, %v16255_v40  ;;  %v16376_v53 = vadd.f32 %v6349_v38, %v16295_v10 }
0x10eb   : > { %v13883_v6 = vpop.f32.mrf.mxu0  ;;  %v13905_v30 = vpop.f32.mrf.mxu1  ;;  %14086 = vmatmul.mubr.msk.bf16.gmra.mxu0 %vm2803_vm5, %v7739_v47  ;;  %14108 = vmatmul.mubr.msk.bf16.gmra.mxu1 %vm2803_vm5, %v16049_v61  ;;  %v7721_v61 = vld [vmem:[#allocation5 + $0x141] sm:$0xff] }
0x10ec   : > { %v16382_v2 = vadd.f32 %v13883_v6, %v16259_v18  ;;  %v16385_v55 = vadd.f32 %v13905_v30, %v16303_v15  ;;  %14089 = vmatprep.mubr.msk.bf16.mxu0 %vm2803_vm5, %v7740_v44  ;;  %14111 = vmatprep.mubr.msk.bf16.mxu1 %vm2803_vm5, %v16053_v50  ;;  %v7741_v43 = vpack.c.bf16 %v7721_v61, %v7720_v62  ;;  %v7724_v6 = vld [vmem:[#allocation5 + $0x169] sm:$0xff]  ;;  %v7729_v61 = vld [vmem:[#allocation5 + $0x1a1] sm:$0xff]  ;;  %v8015_v62 = vld [vmem:[#allocation5 + $0x112] sm:$0xff] }
0x10ed   : > { %v6144_v40 = vpop.f32.mrf.mxu0  ;;  %v6362_v10 = vpop.f32.mrf.mxu1 }
0x10ee   : > { %v16391_v48 = vadd.f32 %v6144_v40, %v16268_v20  ;;  %v16394_v7 = vadd.f32 %v6362_v10, %v16311_v8  ;;  %v7722_v20 = vld [vmem:[#allocation5 + $0x151] sm:$0xff] }
0x10ef   : > { %v13884_v60 = vpop.f32.mrf.mxu0  ;;  %v13906_v18 = vpop.f32.mrf.mxu1  ;;  %v7742_v8 = vpack.c.bf16 %v7723_v36, %v7722_v20 }
0x10f0   : > { %v16397_v15 = vadd.f32 %v13884_v60, %v16270_v58  ;;  %v16400_v51 = vadd.f32 %v13906_v18, %v16316_v37 }
0x10f1   : > { %v16402_v50 = vpop.f32.mrf.mxu0  ;;  %v6365_v28 = vpop.f32.mrf.mxu1 }
0x10f2   : > { %v16405_v56 = vadd.f32 %v6365_v28, %v16321_v34 }
0x10f3   : > { %v13887_v35 = vpop.f32.mrf.mxu0  ;;  %v13909_v23 = vpop.f32.mrf.mxu1  ;;  %14090 = vmatmul.mubr.msk.bf16.gmra.mxu0 %vm2803_vm5, %v7741_v43  ;;  %14112 = vmatmul.mubr.msk.bf16.gmra.mxu1 %vm2803_vm5, %v16065_v24  ;;  %v7725_v24 = vld [vmem:[#allocation5 + $0x171] sm:$0xff] }
0x10f4   : > { %v16411_v58 = vadd.f32 %v13887_v35, %v16274_v49  ;;  %v16414_v37 = vadd.f32 %v13909_v23, %v16328_v45  ;;  %14093 = vmatprep.mubr.msk.bf16.mxu0 %vm2803_vm5, %v7742_v8  ;;  %14115 = vmatprep.mubr.msk.bf16.mxu1 %vm2803_vm5, %v16069_v17  ;;  %v7743_v40 = vpack.c.bf16 %v7725_v24, %v7724_v6 }
0x10f5   : > { %v6160_v34 = vpop.f32.mrf.mxu0  ;;  %v6378_v21 = vpop.f32.mrf.mxu1 }
0x10f6   : > { %v16420_v38 = vadd.f32 %v6160_v34, %v16284_v32  ;;  %v16423_v47 = vadd.f32 %v6378_v21, %v16336_v12 }
0x10f7   : > { %v13888_v63 = vpop.f32.mrf.mxu0  ;;  %v13910_v49 = vpop.f32.mrf.mxu1 }
0x10f8   : > { %v16426_v44 = vadd.f32 %v13888_v63, %v16288_v1  ;;  %v16429_v45 = vadd.f32 %v13910_v49, %v16341_v22  ;;  %v8018_v63 = vld [vmem:[#allocation5 + $0x13a] sm:$0xff]  ;;  %v8019_v49 = vld [vmem:[#allocation5 + $0x142] sm:$0xff] }
0x10f9   : > { %v16431_v30 = vpop.f32.mrf.mxu0  ;;  %v6381_v17 = vpop.f32.mrf.mxu1 }
0x10fa   : > { %v16434_v32 = vadd.f32 %v6381_v17, %v16346_v52  ;;  %v7728_v52 = vld [vmem:[#allocation5 + $0x199] sm:$0xff] }
0x10fb   : > { %v13891_v10 = vpop.f32.mrf.mxu0  ;;  %v13913_v12 = vpop.f32.mrf.mxu1  ;;  %14094 = vmatmul.mubr.msk.bf16.gmra.mxu0 %vm2803_vm5, %v7743_v40  ;;  %14116 = vmatmul.mubr.msk.bf16.gmra.mxu1 %vm2803_vm5, %v16081_v42  ;;  %v7745_v43 = vpack.c.bf16 %v7729_v61, %v7728_v52  ;;  %v8020_v40 = vld [vmem:[#allocation5 + $0x152] sm:$0xff]  ;;  %v8039_v52 = vpack.c.bf16 %v8019_v49, %v8018_v63  ;;  %v8027_v63 = vld [vmem:[#allocation5 + $0x1a2] sm:$0xff] }
0x10fc   : > { %v16440_v1 = vadd.f32 %v13891_v10, %v16297_v27  ;;  %v16443_v22 = vadd.f32 %v13913_v12, %v16352_v26  ;;  %14097 = vmatprep.mubr.msk.bf16.mxu0 %vm2803_vm5, %v16189_v11  ;;  %14119 = vmatprep.mubr.msk.bf16.mxu1 %vm2803_vm5, %v16083_v5  ;;  %v8014_v27 = vld [vmem:[#allocation5 + $0x10a] sm:$0xff]  ;;  %v8021_v10 = vld [vmem:[#allocation5 + $0x15a] sm:$0xff] }
0x10fd   : > { %v6176_v60 = vpop.f32.mrf.mxu0  ;;  %v6394_v18 = vpop.f32.mrf.mxu1  ;;  %v8037_v35 = vpack.c.bf16 %v8015_v62, %v8014_v27 }
0x10fe   : > { %v16450_v36 = vadd.f32 %v6176_v60, %v16308_v14  ;;  %v16453_v42 = vadd.f32 %v6394_v18, %v16361_v57 }
0x10ff   : > { %v13892_v26 = vpop.f32.mrf.mxu0  ;;  %v13914_v28 = vpop.f32.mrf.mxu1 }
0x1100   : > { %v16456_v11 = vadd.f32 %v13892_v26, %v16313_v19  ;;  %v16459_v5 = vadd.f32 %v13914_v28, %v16367_v13  ;;  %v8022_v26 = vld [vmem:[#allocation5 + $0x16a] sm:$0xff]  ;;  %v8023_v28 = vld [vmem:[#allocation5 + $0x172] sm:$0xff] }
0x1101   : > { %v16461_v20 = vpop.f32.mrf.mxu0  ;;  %v6397_v8 = vpop.f32.mrf.mxu1 }
0x1102   : > { %v16464_v14 = vadd.f32 %v6397_v8, %v16373_v54 }
0x1103   : > { %v13895_v57 = vpop.f32.mrf.mxu0  ;;  %v13917_v23 = vpop.f32.mrf.mxu1  ;;  %14098 = vmatmul.mubr.msk.bf16.gmra.mxu0 %vm2803_vm5, %v7745_v43  ;;  %14120 = vmatmul.mubr.msk.bf16.gmra.mxu1 %vm2803_vm5, %v8037_v35 }
0x1104   : > { %v6201_v34 = vadd.f32 %v13895_v57, %v16323_v59  ;;  %v16470_v19 = vadd.f32 %v13917_v23, %v16382_v2  ;;  %14123 = vmatprep.mubr.msk.bf16.mxu1 %vm2803_vm5, %v16095_v3  ;;  %v8041_v23 = vpack.c.bf16 %v8023_v28, %v8022_v26 }
0x1105   : > { %v6192_v13 = vpop.f32.mrf.mxu0  ;;  %v6410_v21 = vpop.f32.mrf.mxu1 }
0x1106   : > { %v6193_v24 = vadd.f32 %v6192_v13, %v16333_v0  ;;  %v16476_v54 = vadd.f32 %v6410_v21, %v16391_v48  ;;  %v8040_v0 = vpack.c.bf16 %v8021_v10, %v8020_v40 }
0x1107   : > { %v13896_v6 = vpop.f32.mrf.mxu0  ;;  %v13918_v17 = vpop.f32.mrf.mxu1 }
0x1108   : > { %v6204_v59 = vadd.f32 %v13896_v6, %v16338_v41  ;;  %v16480_v2 = vadd.f32 %v13918_v17, %v16397_v15 }
0x1109   : > { %v16482_v12 = vpop.f32.mrf.mxu0  ;;  %v16484_v3 = vpop.f32.mrf.mxu1 }
0x110b   : > { %v13921_v61 = vpop.f32.mrf.mxu1  ;;  %v13935_v48 = vpop.f32.mrf.mxu0  ;;  %14124 = vmatmul.mubr.msk.bf16.gmra.mxu1 %vm2803_vm5, %v8039_v52 }
0x110c   : > { %v16488_v60 = vadd.f32 %v13921_v61, %v16411_v58  ;;  %v6773_v18 = vadd.f32 %v13935_v48, %v16355_v16  ;;  %14127 = vmatprep.mubr.msk.bf16.mxu1 %vm2803_vm5, %v8040_v0 }
0x110d   : > { %v6426_v41 = vpop.f32.mrf.mxu1  ;;  %v6644_v15 = vpop.f32.mrf.mxu0 }
0x110e   : > { %v16493_v27 = vadd.f32 %v6426_v41, %v16420_v38  ;;  %v6771_v62 = vadd.f32 %v6644_v15, %v16364_v31 }
0x110f   : > { %v13922_v43 = vpop.f32.mrf.mxu1  ;;  %v13936_v8 = vpop.f32.mrf.mxu0 }
0x1110   : > { %v16497_v35 = vadd.f32 %v13922_v43, %v16426_v44  ;;  %v6774_v58 = vadd.f32 %v13936_v8, %v16370_v39  ;;  %v8026_v44 = vld [vmem:[#allocation5 + $0x19a] sm:$0xff] }
0x1111   : > { %v16500_v57 = vpop.f32.mrf.mxu1  ;;  %v16502_v16 = vpop.f32.mrf.mxu0  ;;  %v8043_v52 = vpack.c.bf16 %v8027_v63, %v8026_v44 }
0x1113   : > { %v13925_v13 = vpop.f32.mrf.mxu1  ;;  %v13939_v21 = vpop.f32.mrf.mxu0  ;;  %14128 = vmatmul.mubr.msk.bf16.gmra.mxu1 %vm2803_vm5, %v8041_v23 }
0x1114   : > { %v16506_v31 = vadd.f32 %v13925_v13, %v16440_v1  ;;  %v6777_v38 = vadd.f32 %v13939_v21, %v16385_v55  ;;  %14131 = vmatprep.mubr.msk.bf16.mxu1 %vm2803_vm5, %v16257_v29 }
0x1115   : > { %v6442_v39 = vpop.f32.mrf.mxu1  ;;  %v6660_v49 = vpop.f32.mrf.mxu0 }
0x1116   : > { %v16512_v6 = vadd.f32 %v6442_v39, %v16450_v36  ;;  %v6775_v17 = vadd.f32 %v6660_v49, %v16394_v7 }
0x1117   : > { %v13926_v40 = vpop.f32.mrf.mxu1  ;;  %v13940_v10 = vpop.f32.mrf.mxu0 }
0x1118   : > { %v16516_v1 = vadd.f32 %v13926_v40, %v16456_v11  ;;  %v6778_v55 = vadd.f32 %v13940_v10, %v16400_v51 }
0x1119   : > { %v16519_v0 = vpop.f32.mrf.mxu1  ;;  %v16521_v29 = vpop.f32.mrf.mxu0 }
0x111b   : > { %v13929_v61 = vpop.f32.mrf.mxu1  ;;  %v13943_v48 = vpop.f32.mrf.mxu0  ;;  %14132 = vmatmul.mubr.msk.bf16.gmra.mxu1 %vm2803_vm5, %v8043_v52 }
0x111c   : > { %v16524_v36 = vadd.f32 %v13929_v61, %v6201_v34  ;;  %v6781_v7 = vadd.f32 %v13943_v48, %v16414_v37 }
0x111d   : > { %v6458_v41 = vpop.f32.mrf.mxu1  ;;  %v6676_v15 = vpop.f32.mrf.mxu0 }
0x111e   : > { %v16527_v26 = vadd.f32 %v6458_v41, %v6193_v24  ;;  %v6779_v11 = vadd.f32 %v6676_v15, %v16423_v47  ;;  %v19101_v41 = vmov 0.0  }
0x111f   : > { %v13930_v28 = vpop.f32.mrf.mxu1  ;;  %v13944_v51 = vpop.f32.mrf.mxu0  ;;  %8809 = vst.msk [vmem:[#allocation6] sm:$0xff] %vm8461_vm10, %v19101_v41  ;;  %8810 = vst.msk [vmem:[#allocation6 + $0x8] sm:$0xff] %vm8461_vm10, %v19101_v41 }
0x1120   : > { %v16530_v43 = vadd.f32 %v13930_v28, %v6204_v59  ;;  %v6782_v8 = vadd.f32 %v13944_v51, %v16429_v45  ;;  %8814 = vst.msk [vmem:[#allocation6 + $0x198] sm:$0xff] %vm8461_vm10, %v19101_v41  ;;  %8815 = vst.msk [vmem:[#allocation6 + $0x1a0] sm:$0xff] %vm8461_vm10, %v19101_v41 }
0x1121   : > { %v16533_v23 = vpop.f32.mrf.mxu1  ;;  %v16535_v13 = vpop.f32.mrf.mxu0 }
0x1123   : > { %v13947_v34 = vpop.f32.mrf.mxu0  ;;  %v13969_v21 = vpop.f32.mrf.mxu1 }
0x1124   : > { %v6785_v37 = vadd.f32 %v13947_v34, %v16443_v22  ;;  %v16538_v44 = vadd.f32 %v13969_v21, %v6773_v18 }
0x1125   : > { %v6692_v24 = vpop.f32.mrf.mxu0  ;;  %v6942_v63 = vpop.f32.mrf.mxu1 }
0x1126   : > { %v6783_v47 = vadd.f32 %v6692_v24, %v16453_v42  ;;  %v16541_v39 = vadd.f32 %v6942_v63, %v6771_v62 }
0x1127   : > { %v13948_v59 = vpop.f32.mrf.mxu0  ;;  %v13970_v49 = vpop.f32.mrf.mxu1 }
0x1128   : > { %v6786_v45 = vadd.f32 %v13948_v59, %v16459_v5  ;;  %v16544_v40 = vadd.f32 %v13970_v49, %v6774_v58 }
0x1129   : > { %v16546_v10 = vpop.f32.mrf.mxu0  ;;  %v16548_v52 = vpop.f32.mrf.mxu1 }
0x112b   : > { %v13951_v61 = vpop.f32.mrf.mxu0  ;;  %v13973_v22 = vpop.f32.mrf.mxu1 }
0x112c   : > { %v6789_v18 = vadd.f32 %v13951_v61, %v16470_v19  ;;  %v16551_v48 = vadd.f32 %v13973_v22, %v6777_v38 }
0x112d   : > { %v6708_v42 = vpop.f32.mrf.mxu0  ;;  %v6958_v62 = vpop.f32.mrf.mxu1 }
0x112e   : > { %v6787_v5 = vadd.f32 %v6708_v42, %v16476_v54  ;;  %v16562_v19 = vadd.f32 %v6958_v62, %v6775_v17 }
0x112f   : > { %v13952_v58 = vpop.f32.mrf.mxu0  ;;  %v13974_v38 = vpop.f32.mrf.mxu1 }
0x1130   : > { %19102 = vst [vmem:[#allocation40_spill] sm:$0xff] %v16562_v19  ;;  %v6790_v15 = vadd.f32 %v13952_v58, %v16480_v2  ;;  %v16565_v28 = vadd.f32 %v13974_v38, %v6778_v55 }
0x1131   : > { %v16567_v51 = vpop.f32.mrf.mxu0  ;;  %v16569_v34 = vpop.f32.mrf.mxu1 }
0x1133   : > { %v13955_v21 = vpop.f32.mrf.mxu0  ;;  %v13977_v24 = vpop.f32.mrf.mxu1 }
0x1134   : > { %v6793_v63 = vadd.f32 %v13955_v21, %v16488_v60  ;;  %v16572_v59 = vadd.f32 %v13977_v24, %v6781_v7 }
0x1135   : > { %v6724_v49 = vpop.f32.mrf.mxu0  ;;  %v6974_v54 = vpop.f32.mrf.mxu1 }
0x1136   : > { %v6791_v17 = vadd.f32 %v6724_v49, %v16493_v27  ;;  %v16575_v61 = vadd.f32 %v6974_v54, %v6779_v11 }
0x1137   : > { %v13956_v22 = vpop.f32.mrf.mxu0  ;;  %v13978_v2 = vpop.f32.mrf.mxu1 }
0x1138   : > { %19103 = vst [vmem:[#allocation41_spill] sm:$0xff] %v16575_v61  ;;  %v6794_v55 = vadd.f32 %v13956_v22, %v16497_v35  ;;  %v16578_v42 = vadd.f32 %v13978_v2, %v6782_v8 }
0x1139   : > { %v16580_v62 = vpop.f32.mrf.mxu0  ;;  %v16582_v58 = vpop.f32.mrf.mxu1 }
0x113b   : > { %v13959_v38 = vpop.f32.mrf.mxu0  ;;  %v13981_v60 = vpop.f32.mrf.mxu1 }
0x113c   : > { %v6797_v7 = vadd.f32 %v13959_v38, %v16506_v31  ;;  %v16585_v21 = vadd.f32 %v13981_v60, %v6785_v37 }
0x113d   : > { %v6740_v24 = vpop.f32.mrf.mxu0  ;;  %v6990_v27 = vpop.f32.mrf.mxu1 }
0x113e   : > { %v6795_v11 = vadd.f32 %v6740_v24, %v16512_v6  ;;  %v16588_v49 = vadd.f32 %v6990_v27, %v6783_v47 }
0x113f   : > { %v13960_v54 = vpop.f32.mrf.mxu0  ;;  %v13982_v35 = vpop.f32.mrf.mxu1 }
0x1140   : > { %19104 = vst [vmem:[#allocation37_spill] sm:$0xff] %v16588_v49  ;;  %v6798_v8 = vadd.f32 %v13960_v54, %v16516_v1  ;;  %v16591_v22 = vadd.f32 %v13982_v35, %v6786_v45 }
0x1141   : > { %v16593_v2 = vpop.f32.mrf.mxu0  ;;  %v16595_v46 = vpop.f32.mrf.mxu1 }
0x1143   : > { %v13963_v41 = vpop.f32.mrf.mxu0  ;;  %v13985_v31 = vpop.f32.mrf.mxu1 }
0x1144   : > { %v6801_v37 = vadd.f32 %v13963_v41, %v16524_v36  ;;  %v16598_v38 = vadd.f32 %v13985_v31, %v6789_v18 }
0x1145   : > { %v6756_v60 = vpop.f32.mrf.mxu0  ;;  %v7006_v6 = vpop.f32.mrf.mxu1 }
0x1146   : > { %v6799_v47 = vadd.f32 %v6756_v60, %v16527_v26  ;;  %v16601_v24 = vadd.f32 %v7006_v6, %v6787_v5 }
0x1147   : > { %v13964_v27 = vpop.f32.mrf.mxu0  ;;  %v13986_v1 = vpop.f32.mrf.mxu1 }
0x1148   : > { %19105 = vst [vmem:[#allocation38_spill] sm:$0xff] %v16601_v24  ;;  %v6802_v45 = vadd.f32 %v13964_v27, %v16530_v43  ;;  %v16604_v54 = vadd.f32 %v13986_v1, %v6790_v15 }
0x1149   : > { %v16606_v35 = vpop.f32.mrf.mxu0  ;;  %v16608_v49 = vpop.f32.mrf.mxu1 }
0x114b   : > { %v13989_v61 = vpop.f32.mrf.mxu1  ;;  %v14003_v36 = vpop.f32.mrf.mxu0 }
0x114c   : > { %v16610_v18 = vadd.f32 %v13989_v61, %v6793_v63  ;;  %v7369_v41 = vadd.f32 %v14003_v36, %v16538_v44 }
0x114d   : > { %v7022_v31 = vpop.f32.mrf.mxu1  ;;  %v7240_v26 = vpop.f32.mrf.mxu0 }
0x114e   : > { %v16613_v5 = vadd.f32 %v7022_v31, %v6791_v17  ;;  %v7367_v60 = vadd.f32 %v7240_v26, %v16541_v39 }
0x114f   : > { %v13990_v6 = vpop.f32.mrf.mxu1  ;;  %v14004_v43 = vpop.f32.mrf.mxu0 }
0x1150   : > { %19106 = vst [vmem:[#allocation36_spill] sm:$0xff] %v16613_v5  ;;  %v16616_v15 = vadd.f32 %v13990_v6, %v6794_v55  ;;  %v7370_v27 = vadd.f32 %v14004_v43, %v16544_v40 }
0x1151   : > { %v16619_v1 = vpop.f32.mrf.mxu1  ;;  %v16621_v24 = vpop.f32.mrf.mxu0 }
0x1152   : > { %19107 = vst [vmem:[#allocation42_spill] sm:$0xff] %v16621_v24 }
0x1153   : > { %v13993_v63 = vpop.f32.mrf.mxu1  ;;  %v14007_v61 = vpop.f32.mrf.mxu0 }
0x1154   : > { %v16623_v19 = vadd.f32 %v13993_v63, %v6797_v7  ;;  %v7373_v44 = vadd.f32 %v14007_v61, %v16551_v48 }
0x1155   : > { %v7038_v17 = vpop.f32.mrf.mxu1  ;;  %v16626_v36 = vpop.f32.mrf.mxu0 }
0x1156   : > { %19108 = vst [vmem:[#allocation43_spill] sm:$0xff] %v16626_v36  ;;  %v16628_v39 = vadd.f32 %v7038_v17, %v6795_v11 }
0x1157   : > { %v13994_v31 = vpop.f32.mrf.mxu1  ;;  %v14008_v55 = vpop.f32.mrf.mxu0 }
0x1158   : > { %19109 = vst [vmem:[#allocation44_spill] sm:$0xff] %v16628_v39  ;;  %v7096_v26 = vadd.f32 %v13994_v31, %v6798_v8  ;;  %v7374_v40 = vadd.f32 %v14008_v55, %v16565_v28 }
0x1159   : > { %v16631_v6 = vpop.f32.mrf.mxu1  ;;  %v16633_v43 = vpop.f32.mrf.mxu0 }
0x115a   : > { %19110 = vst [vmem:[#allocation45_spill] sm:$0xff] %v16633_v43 }
0x115b   : > { %v13997_v5 = vpop.f32.mrf.mxu1  ;;  %v14011_v24 = vpop.f32.mrf.mxu0 }
0x115c   : > { %v7099_v7 = vadd.f32 %v13997_v5, %v6801_v37  ;;  %v7377_v63 = vadd.f32 %v14011_v24, %v16572_v59 }
0x115d   : > { %v7054_v48 = vpop.f32.mrf.mxu1  ;;  %v16636_v61 = vpop.f32.mrf.mxu0 }
0x115e   : > { %v16638_v36 = vadd.f32 %v7054_v48, %v6799_v47 }
0x115f   : > { %v13998_v11 = vpop.f32.mrf.mxu1  ;;  %v14012_v17 = vpop.f32.mrf.mxu0 }
0x1160   : > { %19111 = vst [vmem:[#allocation46_spill] sm:$0xff] %v16638_v36  ;;  %v7100_v39 = vadd.f32 %v13998_v11, %v6802_v45  ;;  %v7378_v8 = vadd.f32 %v14012_v17, %v16578_v42 }
0x1161   : > { %v16641_v28 = vpop.f32.mrf.mxu1  ;;  %v16643_v31 = vpop.f32.mrf.mxu0 }
0x1162   : > { %19112 = vst [vmem:[#allocation47_spill] sm:$0xff] %v16641_v28  ;;  %19113 = vst [vmem:[#allocation48_spill] sm:$0xff] %v16643_v31 }
0x1163   : > { %v14015_v55 = vpop.f32.mrf.mxu0  ;;  %v14037_v43 = vpop.f32.mrf.mxu1 }
0x1164   : > { %v7381_v37 = vadd.f32 %v14015_v55, %v16585_v21  ;;  %v16646_v5 = vadd.f32 %v14037_v43, %v7369_v41 }
0x1165   : > { %v16648_v59 = vpop.f32.mrf.mxu0  ;;  %v7539_v24 = vpop.f32.mrf.mxu1 }
0x1166   : > { %19114 = vst [vmem:[#allocation49_spill] sm:$0xff] %v16646_v5  ;;  %v16650_v47 = vadd.f32 %v7539_v24, %v7367_v60 }
0x1167   : > { %v14016_v48 = vpop.f32.mrf.mxu0  ;;  %v14038_v36 = vpop.f32.mrf.mxu1 }
0x1168   : > { %19115 = vst [vmem:[#allocation50_spill] sm:$0xff] %v16650_v47  ;;  %v7382_v45 = vadd.f32 %v14016_v48, %v16591_v22  ;;  %v16653_v42 = vadd.f32 %v14038_v36, %v7370_v27 }
0x1169   : > { %v16655_v11 = vpop.f32.mrf.mxu0  ;;  %v16657_v17 = vpop.f32.mrf.mxu1 }
0x116a   : > { %19116 = vst [vmem:[#allocation51_spill] sm:$0xff] %v16653_v42 }
0x116b   : > { %v14019_v31 = vpop.f32.mrf.mxu0  ;;  %v14041_v28 = vpop.f32.mrf.mxu1 }
0x116c   : > { %v7385_v21 = vadd.f32 %v14019_v31, %v16598_v38  ;;  %v16660_v41 = vadd.f32 %v14041_v28, %v7373_v44 }
0x116d   : > { %v16662_v43 = vpop.f32.mrf.mxu0  ;;  %v16664_v60 = vpop.f32.mrf.mxu1 }
0x116e   : > { %19117 = vst [vmem:[#allocation52_spill] sm:$0xff] %v16660_v41 }
0x116f   : > { %v14020_v55 = vpop.f32.mrf.mxu0  ;;  %v14042_v24 = vpop.f32.mrf.mxu1 }
0x1170   : > { %v7386_v22 = vadd.f32 %v14020_v55, %v16604_v54  ;;  %v16667_v27 = vadd.f32 %v14042_v24, %v7374_v40 }
0x1171   : > { %v16669_v36 = vpop.f32.mrf.mxu0  ;;  %v16671_v48 = vpop.f32.mrf.mxu1 }
0x1172   : > { %19118 = vst [vmem:[#allocation53_spill] sm:$0xff] %v16667_v27  ;;  %19119 = vst [vmem:[#allocation54_spill] sm:$0xff] %v16671_v48 }
0x1173   : > { %v14023_v42 = vpop.f32.mrf.mxu0  ;;  %v14045_v47 = vpop.f32.mrf.mxu1 }
0x1174   : > { %v7389_v38 = vadd.f32 %v14023_v42, %v16610_v18  ;;  %v16674_v44 = vadd.f32 %v14045_v47, %v7377_v63 }
0x1175   : > { %v16676_v28 = vpop.f32.mrf.mxu0  ;;  %v16678_v31 = vpop.f32.mrf.mxu1 }
0x1176   : > { %19120 = vst [vmem:[#allocation55_spill] sm:$0xff] %v16674_v44  ;;  %19121 = vst [vmem:[#allocation56_spill] sm:$0xff] %v16676_v28 }
0x1177   : > { %19122 = vst [vmem:[#allocation57_spill] sm:$0xff] %v16678_v31  ;;  %v14024_v41 = vpop.f32.mrf.mxu0  ;;  %v14046_v5 = vpop.f32.mrf.mxu1 }
0x1178   : > { %v7390_v54 = vadd.f32 %v14024_v41, %v16616_v15  ;;  %v16681_v40 = vadd.f32 %v14046_v5, %v7378_v8 }
0x1179   : > { %v16683_v55 = vpop.f32.mrf.mxu0  ;;  %v16685_v24 = vpop.f32.mrf.mxu1 }
0x117a   : > { %19123 = vst [vmem:[#allocation58_spill] sm:$0xff] %v16681_v40  ;;  %19124 = vst [vmem:[#allocation59_spill] sm:$0xff] %v16683_v55 }
0x117b   : > { %19125 = vst [vmem:[#allocation60_spill] sm:$0xff] %v16685_v24  ;;  %v14027_v27 = vpop.f32.mrf.mxu0  ;;  %v14049_v48 = vpop.f32.mrf.mxu1 }
0x117c   : > { %v7393_v18 = vadd.f32 %v14027_v27, %v16623_v19  ;;  %v16688_v63 = vadd.f32 %v14049_v48, %v7381_v37 }
0x117d   : > { %v16690_v47 = vpop.f32.mrf.mxu0  ;;  %v16692_v42 = vpop.f32.mrf.mxu1 }
0x117e   : > { %19126 = vst [vmem:[#allocation61_spill] sm:$0xff] %v16688_v63 }
0x117f   : > { %v14028_v44 = vpop.f32.mrf.mxu0  ;;  %v14050_v31 = vpop.f32.mrf.mxu1 }
0x1180   : > { %v7394_v28 = vadd.f32 %v14028_v44, %v7096_v26  ;;  %v16694_v15 = vadd.f32 %v14050_v31, %v7382_v45 }
0x1181   : > { %v16696_v8 = vpop.f32.mrf.mxu0  ;;  %v16698_v5 = vpop.f32.mrf.mxu1 }
0x1182   : > { %19127 = vst [vmem:[#allocation62_spill] sm:$0xff] %v16694_v15 }
0x1183   : > { %v14031_v41 = vpop.f32.mrf.mxu0  ;;  %v14053_v40 = vpop.f32.mrf.mxu1 }
0x1184   : > { %v7397_v24 = vadd.f32 %v14031_v41, %v7099_v7  ;;  %v16700_v55 = vadd.f32 %v14053_v40, %v7385_v21 }
0x1185   : > { %v16702_v19 = vpop.f32.mrf.mxu0  ;;  %v16704_v37 = vpop.f32.mrf.mxu1 }
0x1186   : > { %19128 = vst [vmem:[#allocation63_spill] sm:$0xff] %v16700_v55 }
0x1187   : > { %v14032_v27 = vpop.f32.mrf.mxu0  ;;  %v14054_v48 = vpop.f32.mrf.mxu1 }
0x1188   : > { %v16706_v63 = vadd.f32 %v14032_v27, %v7100_v39  ;;  %v16708_v26 = vadd.f32 %v14054_v48, %v7386_v22 }
0x1189   : > { %v16710_v45 = vpop.f32.mrf.mxu0  ;;  %v16712_v44 = vpop.f32.mrf.mxu1 }
0x118a   : > { %19129 = vst [vmem:[#allocation64_spill] sm:$0xff] %v16708_v26  ;;  %19130 = vst [vmem:[#allocation65_spill] sm:$0xff] %v16712_v44 }
0x118b   : > { %v14057_v31 = vpop.f32.mrf.mxu1  ;;  %v16714_v15 = vpop.f32.mrf.mxu0 }
0x118c   : > { %v16716_v7 = vadd.f32 %v14057_v31, %v7389_v38 }
0x118d   : > { %v16718_v21 = vpop.f32.mrf.mxu1  ;;  %v16720_v40 = vpop.f32.mrf.mxu0 }
0x118e   : > { %19131 = vst [vmem:[#allocation66_spill] sm:$0xff] %v16716_v7  ;;  %19132 = vst [vmem:[#allocation67_spill] sm:$0xff] %v16718_v21  ;;  %v6148_v7 = vadd.f32 %v16402_v50, %v16272_v9 }
0x118f   : > { %v14058_v41 = vpop.f32.mrf.mxu1  ;;  %v16722_v55 = vpop.f32.mrf.mxu0 }
0x1190   : > { %19133 = vst [vmem:[#allocation68_spill] sm:$0xff] %v16722_v55  ;;  %v16724_v39 = vadd.f32 %v14058_v41, %v7390_v54  ;;  %v6164_v54 = vadd.f32 %v16431_v30, %v16292_v4  ;;  %v6180_v41 = vadd.f32 %v16461_v20, %v16318_v25  ;;  %v6776_v25 = vadd.f32 %v16521_v29, %v16405_v56 }
0x1191   : > { %v16726_v22 = vpop.f32.mrf.mxu1  ;;  %v16728_v27 = vpop.f32.mrf.mxu0  ;;  %v6780_v30 = vadd.f32 %v16535_v13, %v16434_v32  ;;  %v6784_v20 = vadd.f32 %v16546_v10, %v16464_v14 }
0x1192   : > { %19134 = vst [vmem:[#allocation69_spill] sm:$0xff] %v16724_v39  ;;  %v6772_v39 = vadd.f32 %v16502_v16, %v16376_v53  ;;  %v6498_v4 = vadd.f32 %v16519_v0, %v6180_v41 }
0x1193   : > { %v14061_v48 = vpop.f32.mrf.mxu1  ;;  %v16730_v26 = vpop.f32.mrf.mxu0  ;;  %v7078_v32 = vadd.f32 %v16582_v58, %v6780_v30 }
0x1194   : > { %v16732_v44 = vadd.f32 %v14061_v48, %v7393_v18  ;;  %v6196_v18 = vadd.f32 %v16482_v12, %v16343_v33  ;;  %v7070_v53 = vadd.f32 %v16548_v52, %v6772_v39  ;;  %v6796_v56 = vadd.f32 %v16593_v2, %v6498_v4 }
0x1195   : > { %v16734_v38 = vpop.f32.mrf.mxu1  ;;  %v16736_v31 = vpop.f32.mrf.mxu0 }
0x1196   : > { %19135 = vst [vmem:[#allocation70_spill] sm:$0xff] %v16732_v44  ;;  %v6490_v44 = vadd.f32 %v16484_v3, %v6148_v7  ;;  %v6502_v33 = vadd.f32 %v16533_v23, %v6196_v18  ;;  %v7082_v23 = vadd.f32 %v16595_v46, %v6784_v20  ;;  %v19141_v7 = vld [vmem:[#allocation41_spill] sm:$0xff] }
0x1197   : > { %v14062_v21 = vpop.f32.mrf.mxu1  ;;  %v16740_v55 = vpop.f32.mrf.mxu0  ;;  %v7375_v46 = vadd.f32 %v16636_v61, %v19141_v7  ;;  %v19144_v18 = vld [vmem:[#allocation37_spill] sm:$0xff] }
0x1198   : > { %19136 = vst [vmem:[#allocation71_spill] sm:$0xff] %v16740_v55  ;;  %v16748_v48 = vadd.f32 %v14062_v21, %v7394_v28  ;;  %v6494_v55 = vadd.f32 %v16500_v57, %v6164_v54  ;;  %v6788_v12 = vadd.f32 %v16567_v51, %v6490_v44  ;;  %v7074_v57 = vadd.f32 %v16569_v34, %v6776_v25  ;;  %v19137_v34 = vld [vmem:[#allocation42_spill] sm:$0xff]  ;;  %v19140_v44 = vld [vmem:[#allocation45_spill] sm:$0xff] }
0x1199   : > { %v16753_v9 = vpop.f32.mrf.mxu1  ;;  %v16755_v50 = vpop.f32.mrf.mxu0  ;;  %v6800_v14 = vadd.f32 %v16606_v35, %v6502_v33  ;;  %v7368_v28 = vadd.f32 %v19137_v34, %v7070_v53  ;;  %v19142_v35 = vld [vmem:[#allocation47_spill] sm:$0xff]  ;;  %v7380_v4 = vadd.f32 %v16655_v11, %v7082_v23  ;;  %v19145_v33 = vld [vmem:[#allocation38_spill] sm:$0xff]  ;;  %v19152_v23 = vld [vmem:[#allocation49_spill] sm:$0xff] }
0x119a   : > { %v6792_v0 = vadd.f32 %v16580_v62, %v6494_v55  ;;  %v7086_v13 = vadd.f32 %v16608_v49, %v6788_v12  ;;  %v19138_v62 = vld [vmem:[#allocation40_spill] sm:$0xff]  ;;  %v19139_v55 = vld [vmem:[#allocation43_spill] sm:$0xff]  ;;  %v7372_v58 = vadd.f32 %v19140_v44, %v7074_v57  ;;  %v7383_v30 = vadd.f32 %v16662_v43, %v19145_v33  ;;  %v19147_v53 = vld [vmem:[#allocation54_spill] sm:$0xff] }
0x119b   : > { %v14065_v3 = vpop.f32.mrf.mxu1  ;;  %v16768_v16 = vpop.f32.mrf.mxu0  ;;  %v7371_v2 = vadd.f32 %v19139_v55, %v19138_v62  ;;  %v7098_v21 = vadd.f32 %v19142_v35, %v6800_v14  ;;  %v19143_v49 = vld [vmem:[#allocation48_spill] sm:$0xff]  ;;  %v7667_v25 = vadd.f32 %v16657_v17, %v7368_v28  ;;  %v7966_v14 = vadd.f32 %v16714_v15, %v19152_v23  ;;  %v19157_v15 = vld [vmem:[#allocation50_spill] sm:$0xff]  ;;  %v19159_v35 = vld [vmem:[#allocation67_spill] sm:$0xff] }
0x119c   : > { %v16773_v29 = vadd.f32 %v14065_v3, %v7397_v24  ;;  %v7090_v51 = vadd.f32 %v16619_v1, %v6792_v0  ;;  %v7094_v24 = vadd.f32 %v16631_v6, %v6796_v56  ;;  %v7376_v39 = vadd.f32 %v19143_v49, %v7078_v32  ;;  %v19149_v0 = vld [vmem:[#allocation56_spill] sm:$0xff]  ;;  %v19150_v56 = vld [vmem:[#allocation57_spill] sm:$0xff]  ;;  %v19151_v32 = vld [vmem:[#allocation59_spill] sm:$0xff] }
0x119d   : > { %v7651_v10 = vpop.f32.mrf.mxu1  ;;  %v16779_v52 = vpop.f32.mrf.mxu0  ;;  %v7379_v1 = vadd.f32 %v16648_v59, %v19144_v18  ;;  %v7670_v61 = vadd.f32 %v16664_v60, %v7371_v2  ;;  %v7384_v20 = vadd.f32 %v16669_v36, %v7086_v13  ;;  %v7671_v12 = vadd.f32 %v19147_v53, %v7372_v58  ;;  %v19148_v59 = vld [vmem:[#allocation36_spill] sm:$0xff]  ;;  %v16815_v2 = vld [vmem:[%s19146_s4] ss:$0 sm:$0xff]  ;;  %s19174_s4 = sld [smem:[#allocation30_spill]] }
0x119e   : > { %v7387_v11 = vadd.f32 %v19149_v0, %v19148_v59  ;;  %v7674_v17 = vadd.f32 %v19150_v56, %v7375_v46  ;;  %v19153_v43 = vld [vmem:[#allocation60_spill] sm:$0xff]  ;;  %v7392_v28 = vadd.f32 %v16696_v8, %v7094_v24  ;;  %v7679_v44 = vadd.f32 %v16698_v5, %v7380_v4  ;;  %v19158_v8 = vld [vmem:[#allocation65_spill] sm:$0xff]  ;;  %v8333_v53 = vld [vmem:[%s19154_s0] sm:$0xff] }
0x119f   : > { %v14066_v54 = vpop.f32.mrf.mxu1  ;;  %v14080_v41 = vpop.f32.mrf.mxu0  ;;  %v7675_v34 = vadd.f32 %v19153_v43, %v7376_v39  ;;  %v19155_v60 = vld [vmem:[#allocation44_spill] sm:$0xff]  ;;  %v7678_v13 = vadd.f32 %v16692_v42, %v7379_v1  ;;  %v7964_v7 = vadd.f32 %v16720_v40, %v19157_v15  ;;  %v7396_v42 = vadd.f32 %v16710_v45, %v7098_v21  ;;  %v19167_v15 = vld [vmem:[#allocation61_spill] sm:$0xff] }
0x11a0   : > { %v16796_v6 = vadd.f32 %v14066_v54, %v16706_v63  ;;  %v7388_v63 = vadd.f32 %v19151_v32, %v7090_v51  ;;  %v7391_v36 = vadd.f32 %v16690_v47, %v19155_v60  ;;  %v19156_v51 = vld [vmem:[#allocation46_spill] sm:$0xff]  ;;  %v16823_v47 = vadd.f32 %v16704_v37, %v7383_v30  ;;  %v8335_v5 = vld [vmem:[%s19154_s0 + $0x10] sm:$0xff] }
0x11a1   : > { %v7654_v3 = vpop.f32.mrf.mxu1  ;;  %v7872_v57 = vpop.f32.mrf.mxu0  ;;  %v7395_v58 = vadd.f32 %v16702_v19, %v19156_v51  ;;  %v16827_v24 = vadd.f32 %v19158_v8, %v7384_v20  ;;  %v16830_v49 = vadd.f32 %v19159_v35, %v7387_v11  ;;  %v19160_v19 = vld [vmem:[#allocation51_spill] sm:$0xff]  ;;  %v19161_v18 = vld [vmem:[#allocation68_spill] sm:$0xff]  ;;  %v7965_v45 = vadd.f32 %v16728_v27, %v7667_v25  ;;  %v19163_v11 = vld [vmem:[#allocation53_spill] sm:$0xff] }
0x11a2   : > { %v7967_v1 = vadd.f32 %v19161_v18, %v19160_v19  ;;  %v16836_v40 = vadd.f32 %v16726_v22, %v7388_v63  ;;  %v19162_v21 = vld [vmem:[#allocation52_spill] sm:$0xff]  ;;  %v16843_v30 = vadd.f32 %v16734_v38, %v7391_v36  ;;  %v7968_v20 = vadd.f32 %v16736_v31, %v7670_v61  ;;  %v19164_v22 = vld [vmem:[#allocation71_spill] sm:$0xff]  ;;  %v8336_v61 = vld [vmem:[%s19154_s0 + $0x18] sm:$0xff] }
0x11a3   : > { %v14083_v62 = vpop.f32.mrf.mxu0  ;;  %v14105_v55 = vpop.f32.mrf.mxu1  ;;  %v7970_v33 = vadd.f32 %v16730_v26, %v19162_v21  ;;  %v7971_v56 = vadd.f32 %v19164_v22, %v19163_v11  ;;  %v16851_v27 = vadd.f32 %v16753_v9, %v7392_v28  ;;  %v16854_v26 = vadd.f32 %v16755_v50, %v7671_v12  ;;  %v19165_v38 = vld [vmem:[#allocation55_spill] sm:$0xff]  ;;  %v19166_v28 = vld [vmem:[#allocation58_spill] sm:$0xff] }
0x11a4   : > { %v8264_v46 = vadd.f32 %v14105_v55, %v7966_v14  ;;  %v16858_v25 = vadd.f32 %v16768_v16, %v19165_v38  ;;  %v16860_v31 = vadd.f32 %v7651_v10, %v7395_v58  ;;  %v16864_v60 = vadd.f32 %v16779_v52, %v7674_v17  ;;  %v8334_v8 = vld [vmem:[%s19154_s0 + $0x8] sm:$0xff]  ;;  %v8337_v11 = vld [vmem:[%s19154_s0 + $0x20] sm:$0xff] }
0x11a5   : > { %v7885_v39 = vpop.f32.mrf.mxu0  ;;  %v8135_v54 = vpop.f32.mrf.mxu1  ;;  %v16868_v50 = vadd.f32 %v14080_v41, %v19166_v28  ;;  %v16870_v12 = vadd.f32 %v7654_v3, %v7396_v42  ;;  %v16872_v16 = vadd.f32 %v7872_v57, %v7675_v34  ;;  %v19168_v41 = vld [vmem:[#allocation62_spill] sm:$0xff] }
0x11a6   : > { %v8303_v37 = vadd.f32 %v16815_v2, %v8264_v46  ;;  %v8262_v4 = vadd.f32 %v8135_v54, %v7964_v7  ;;  %v16875_v7 = vadd.f32 %v14083_v62, %v19167_v15  ;;  %v16880_v35 = vadd.f32 %v7885_v39, %v7678_v13  ;;  %v19169_v39 = vld [vmem:[#allocation63_spill] sm:$0xff] }
0x11a7   : > { %v14084_v59 = vpop.f32.mrf.mxu0  ;;  %v14106_v0 = vpop.f32.mrf.mxu1 }
0x11a8   : > { %v8367_v32 = vadd.f32 %v8335_v5, %v8303_v37  ;;  %v8301_v63 = vadd.f32 %v16815_v2, %v8262_v4  ;;  %v8265_v23 = vadd.f32 %v14106_v0, %v7967_v1  ;;  %v16883_v5 = vadd.f32 %v14084_v59, %v19168_v41  ;;  %v8339_v1 = vld [vmem:[%s19154_s0 + $0x30] sm:$0xff] }
0x11a9   : > { %v7888_v14 = vpop.f32.mrf.mxu0  ;;  %v8138_v43 = vpop.f32.mrf.mxu1 }
0x11aa   : > { %v8399_v36 = vmul.f32 0.2, %v8367_v32  ;;  %v8365_v55 = vadd.f32 %v8333_v53, %v8301_v63  ;;  %v8304_v9 = vadd.f32 %v16815_v2, %v8265_v23  ;;  %v8263_v10 = vadd.f32 %v8138_v43, %v7965_v45  ;;  %v19170_v43 = vld [vmem:[#allocation64_spill] sm:$0xff] }
0x11ab   : > { %v14087_v51 = vpop.f32.mrf.mxu0  ;;  %v14109_v58 = vpop.f32.mrf.mxu1  ;;  %v16890_v18 = vadd.f32 %v7888_v14, %v7679_v44 }
0x11ac   : > { %v16877_v52 = vmax.f32 %v8367_v32, %v8399_v36  ;;  %v8397_v17 = vmul.f32 0.2, %v8365_v55  ;;  %v8368_v46 = vadd.f32 %v8336_v61, %v8304_v9  ;;  %v8302_v3 = vadd.f32 %v16815_v2, %v8263_v10 }
0x11ad   : > { %v8268_v57 = vadd.f32 %v14109_v58, %v7970_v33  ;;  %v7901_v34 = vpop.f32.mrf.mxu0  ;;  %v8151_v42 = vpop.f32.mrf.mxu1  ;;  %v16894_v37 = vadd.f32 %v14087_v51, %v19169_v39  ;;  %v8340_v51 = vld [vmem:[%s19154_s0 + $0x38] sm:$0xff] }
0x11ae   : > { %v8535_v62 = vmul.f32 %v16877_v52, %v16877_v52  ;;  %v16888_v54 = vmax.f32 %v8365_v55, %v8397_v17  ;;  %v8400_v19 = vmul.f32 0.2, %v8368_v46  ;;  %v8366_v13 = vadd.f32 %v8334_v8, %v8302_v3 }
0x11af   : > { %v8307_v4 = vadd.f32 %v16815_v2, %v8268_v57  ;;  %v8266_v45 = vadd.f32 %v8151_v42, %v7968_v20  ;;  %v14088_v21 = vpop.f32.mrf.mxu0  ;;  %v14110_v33 = vpop.f32.mrf.mxu1  ;;  %v8465_v53 = vsel %vm8461_vm10, %v16877_v52, 0.0  ;;  %v16904_v44 = vadd.f32 %v7901_v34, %v16823_v47  ;;  %v8338_v42 = vld [vmem:[%s19154_s0 + $0x28] sm:$0xff] }
0x11b0   : > { %v8533_v59 = vmul.f32 %v16888_v54, %v16888_v54  ;;  %v16901_v0 = vmax.f32 %v8368_v46, %v8400_v19  ;;  %v8568_v22 = vsel %vm8461_vm10, %v8535_v62, 0.0  ;;  %v8398_v32 = vmul.f32 0.2, %v8366_v13 }
0x11b1   : > { %v8371_v63 = vadd.f32 %v8339_v1, %v8307_v4  ;;  %v8305_v20 = vadd.f32 %v16815_v2, %v8266_v45  ;;  %v7904_v23 = vpop.f32.mrf.mxu0  ;;  %v8154_v38 = vpop.f32.mrf.mxu1  ;;  %v8462_v61 = vsel %vm8461_vm10, %v16888_v54, 0.0  ;;  %v16913_v36 = vadd.f32 %v14088_v21, %v19170_v43 }
0x11b2   : > { %v8565_v14 = vsel %vm8461_vm10, %v8533_v59, 0.0  ;;  %v8269_v47 = vadd.f32 %v14110_v33, %v7971_v56  ;;  %v8536_v55 = vmul.f32 %v16901_v0, %v16901_v0  ;;  %v16917_v9 = vmax.f32 %v8366_v13, %v8398_v32 }
0x11b3   : > { %v8403_v28 = vmul.f32 0.2, %v8371_v63  ;;  %v8369_v10 = vadd.f32 %v8337_v11, %v8305_v20  ;;  %v14091_v58 = vpop.f32.mrf.mxu0  ;;  %v14113_v15 = vpop.f32.mrf.mxu1  ;;  %v8467_v17 = vsel %vm8461_vm10, %v16901_v0, 0.0  ;;  %v16924_v8 = vadd.f32 %v7904_v23, %v16827_v24  ;;  %v8343_v23 = vld [vmem:[%s19154_s0 + $0x50] sm:$0xff] }
0x11b4   : > { %v8308_v46 = vadd.f32 %v16815_v2, %v8269_v47  ;;  %v8267_v56 = vadd.f32 %v8154_v38, %v16854_v26  ;;  %v8463_v41 = vsel %vm8461_vm10, %v16917_v9, 0.0  ;;  %v8534_v3 = vmul.f32 %v16917_v9, %v16917_v9 }
0x11b5   : > { %v16931_v57 = vmax.f32 %v8371_v63, %v8403_v28  ;;  %v8401_v34 = vmul.f32 0.2, %v8369_v10  ;;  %v7917_v62 = vpop.f32.mrf.mxu0  ;;  %v8167_v19 = vpop.f32.mrf.mxu1  ;;  %v8464_v1 = vadd.f32 %v8463_v41, %v8462_v61  ;;  %v8272_v39 = vadd.f32 %v14113_v15, %v16858_v25  ;;  %v19171_v61 = vld [vmem:[#allocation66_spill] sm:$0xff] }
0x11b6   : > { %v8372_v13 = vadd.f32 %v8340_v51, %v8308_v46  ;;  %v8306_v24 = vadd.f32 %v16815_v2, %v8267_v56  ;;  %v8570_v26 = vsel %vm8461_vm10, %v8536_v55, 0.0  ;;  %v8566_v4 = vsel %vm8461_vm10, %v8534_v3, 0.0 }
0x11b7   : > { %v8539_v45 = vmul.f32 %v16931_v57, %v16931_v57  ;;  %v16940_v21 = vmax.f32 %v8369_v10, %v8401_v34  ;;  %v14092_v33 = vpop.f32.mrf.mxu0  ;;  %v14114_v59 = vpop.f32.mrf.mxu1  ;;  %v8466_v11 = vadd.f32 %v8465_v53, %v8464_v1  ;;  %v8567_v32 = vadd.f32 %v8566_v4, %v8565_v14 }
0x11b8   : > { %v8404_v63 = vmul.f32 0.2, %v8372_v13  ;;  %v8370_v20 = vadd.f32 %v8338_v42, %v8306_v24  ;;  %v8473_v38 = vsel %vm8461_vm10, %v16931_v57, 0.0  ;;  %v16948_v43 = vadd.f32 %v14091_v58, %v19171_v61 }
0x11b9   : > { %v8537_v25 = vmul.f32 %v16940_v21, %v16940_v21  ;;  %v8311_v47 = vadd.f32 %v16815_v2, %v8272_v39  ;;  %v7920_v55 = vpop.f32.mrf.mxu0  ;;  %v8170_v28 = vpop.f32.mrf.mxu1  ;;  %v8569_v10 = vadd.f32 %v8568_v22, %v8567_v32  ;;  %v8468_v53 = vadd.f32 %v8467_v17, %v8466_v11  ;;  %v8341_v17 = vld [vmem:[%s19154_s0 + $0x40] sm:$0xff]  ;;  %v19172_v11 = vld [vmem:[#allocation69_spill] sm:$0xff] }
0x11ba   : > { %v16951_v14 = vmax.f32 %v8372_v13, %v8404_v63  ;;  %v8402_v51 = vmul.f32 0.2, %v8370_v20  ;;  %v8576_v15 = vsel %vm8461_vm10, %v8539_v45, 0.0  ;;  %v8469_v46 = vsel %vm8461_vm10, %v16940_v21, 0.0 }
0x11bb   : > { %v8375_v56 = vadd.f32 %v8343_v23, %v8311_v47  ;;  %v8270_v41 = vadd.f32 %v8167_v19, %v16864_v60  ;;  %v14095_v58 = vpop.f32.mrf.mxu0  ;;  %v14117_v3 = vpop.f32.mrf.mxu1  ;;  %v8470_v34 = vadd.f32 %v8469_v46, %v8468_v53  ;;  %v8571_v42 = vadd.f32 %v8570_v26, %v8569_v10 }
0x11bc   : > { %v8572_v1 = vsel %vm8461_vm10, %v8537_v25, 0.0  ;;  %v8540_v22 = vmul.f32 %v16951_v14, %v16951_v14  ;;  %v16961_v13 = vmax.f32 %v8370_v20, %v8402_v51  ;;  %v16964_v39 = vadd.f32 %v7917_v62, %v16830_v49  ;;  %v8344_v25 = vld [vmem:[%s19154_s0 + $0x58] sm:$0xff] }
0x11bd   : > { %v8407_v24 = vmul.f32 0.2, %v8375_v56  ;;  %v8309_v4 = vadd.f32 %v16815_v2, %v8270_v41  ;;  %v7933_v60 = vpop.f32.mrf.mxu0  ;;  %v8183_v19 = vpop.f32.mrf.mxu1  ;;  %v8573_v45 = vadd.f32 %v8572_v1, %v8571_v42  ;;  %v8475_v26 = vsel %vm8461_vm10, %v16951_v14, 0.0  ;;  %v8342_v41 = vld [vmem:[%s19154_s0 + $0x48] sm:$0xff] }
0x11be   : > { %v16970_v32 = vadd.f32 %v14092_v33, %v19172_v11  ;;  %v8273_v63 = vadd.f32 %v14114_v59, %v16868_v50  ;;  %v8471_v20 = vsel %vm8461_vm10, %v16961_v13, 0.0  ;;  %v8538_v49 = vmul.f32 %v16961_v13, %v16961_v13 }
0x11bf   : > { %v16977_v62 = vmax.f32 %v8375_v56, %v8407_v24  ;;  %v8373_v23 = vadd.f32 %v8341_v17, %v8309_v4  ;;  %v14118_v61 = vpop.f32.mrf.mxu1  ;;  %v8578_v47 = vsel %vm8461_vm10, %v8540_v22, 0.0  ;;  %v8472_v10 = vadd.f32 %v8471_v20, %v8470_v34  ;;  %v14096_v50 = vpop.f32.mrf.mxu0  ;;  %v19173_v24 = vld [vmem:[#allocation70_spill] sm:$0xff] }
0x11c0   : > { %v8312_v33 = vadd.f32 %v16815_v2, %v8273_v63  ;;  %v8271_v53 = vadd.f32 %v8170_v28, %v16872_v16  ;;  %v8574_v59 = vsel %vm8461_vm10, %v8538_v49, 0.0  ;;  %v16987_v56 = vadd.f32 %v7920_v55, %v16836_v40 }
0x11c1   : > { %v8543_v51 = vmul.f32 %v16977_v62, %v16977_v62  ;;  %v8405_v46 = vmul.f32 0.2, %v8373_v23  ;;  %v8186_v42 = vpop.f32.mrf.mxu1  ;;  %v8474_v1 = vadd.f32 %v8473_v38, %v8472_v10  ;;  %v8575_v22 = vadd.f32 %v8574_v59, %v8573_v45  ;;  %v8347_v45 = vld [vmem:[%s19154_s0 + $0x70] sm:$0xff]  ;;  %v7936_v49 = vpop.f32.mrf.mxu0 }
0x11c2   : > { %v8376_v34 = vadd.f32 %v8344_v25, %v8312_v33  ;;  %v8310_v17 = vadd.f32 %v16815_v2, %v8271_v53  ;;  %v8481_v16 = vsel %vm8461_vm10, %v16977_v62, 0.0  ;;  %v16996_v4 = vadd.f32 %v14095_v58, %v19173_v24  ;;  %v8345_v53 = vld [vmem:[%s19154_s0 + $0x60] sm:$0xff] }
0x11c3   : > { %v16993_v28 = vmax.f32 %v8373_v23, %v8405_v46  ;;  %v8276_v11 = vadd.f32 %v14117_v3, %v16875_v7  ;;  %v14121_v40 = vpop.f32.mrf.mxu1  ;;  %v8577_v55 = vadd.f32 %v8576_v15, %v8575_v22  ;;  %v8476_v63 = vadd.f32 %v8475_v26, %v8474_v1 }
0x11c4   : > { %v8408_v20 = vmul.f32 0.2, %v8376_v34  ;;  %v8374_v38 = vadd.f32 %v8342_v41, %v8310_v17  ;;  %v8584_v25 = vsel %vm8461_vm10, %v8543_v51, 0.0  ;;  %v8274_v58 = vadd.f32 %v8183_v19, %v16880_v35 }
0x11c5   : > { %v8541_v10 = vmul.f32 %v16993_v28, %v16993_v28  ;;  %v8315_v23 = vadd.f32 %v16815_v2, %v8276_v11  ;;  %v8199_v33 = vpop.f32.mrf.mxu1  ;;  %v8477_v7 = vsel %vm8461_vm10, %v16993_v28, 0.0  ;;  %v8579_v3 = vadd.f32 %v8578_v47, %v8577_v55  ;;  %v14099_v47 = vpop.f32.mrf.mxu0 }
0x11c6   : > { %v17007_v15 = vmax.f32 %v8376_v34, %v8408_v20  ;;  %v8406_v26 = vmul.f32 0.2, %v8374_v38  ;;  %v8478_v59 = vadd.f32 %v8477_v7, %v8476_v63  ;;  %v8313_v41 = vadd.f32 %v16815_v2, %v8274_v58 }
0x11c7   : > { %v8580_v46 = vsel %vm8461_vm10, %v8541_v10, 0.0  ;;  %v8379_v51 = vadd.f32 %v8347_v45, %v8315_v23  ;;  %v14122_v1 = vpop.f32.mrf.mxu1  ;;  %v17015_v35 = vadd.f32 %v7933_v60, %v16843_v30  ;;  %v17018_v19 = vadd.f32 %v14096_v50, %v16748_v48 }
0x11c8   : > { %v8581_v22 = vadd.f32 %v8580_v46, %v8579_v3  ;;  %v17012_v17 = vmax.f32 %v8374_v38, %v8406_v26  ;;  %v8544_v34 = vmul.f32 %v17007_v15, %v17007_v15  ;;  %v8377_v11 = vadd.f32 %v8345_v53, %v8313_v41 }
0x11c9   : > { %v8411_v24 = vmul.f32 0.2, %v8379_v51  ;;  %v8277_v55 = vadd.f32 %v14118_v61, %v16883_v5  ;;  %v17023_v63 = vpop.f32.mrf.mxu1  ;;  %v8483_v20 = vsel %vm8461_vm10, %v17007_v15, 0.0  ;;  %v8275_v60 = vadd.f32 %v8186_v42, %v16890_v18  ;;  %v8348_v5 = vld [vmem:[%s19154_s0 + $0x78] sm:$0xff]  ;;  %v8346_v61 = vld [vmem:[%s19154_s0 + $0x68] sm:$0xff]  ;;  %v7949_v42 = vpop.f32.mrf.mxu0 }
0x11ca   : > { %v8479_v30 = vsel %vm8461_vm10, %v17012_v17, 0.0  ;;  %v8542_v48 = vmul.f32 %v17012_v17, %v17012_v17  ;;  %v8409_v45 = vmul.f32 0.2, %v8377_v11  ;;  %v17041_v7 = vadd.f32 %v7936_v49, %v16851_v27  ;;  %v8351_v49 = vld [vmem:[%s19154_s0 + $0x90] sm:$0xff] }
0x11cb   : > { %v8480_v50 = vadd.f32 %v8479_v30, %v8478_v59  ;;  %v17032_v38 = vmax.f32 %v8379_v51, %v8411_v24  ;;  %v8316_v10 = vadd.f32 %v16815_v2, %v8277_v55  ;;  %v17037_v23 = vpop.f32.mrf.mxu1  ;;  %v8314_v3 = vadd.f32 %v16815_v2, %v8275_v60 }
0x11cc   : > { %v8582_v58 = vsel %vm8461_vm10, %v8542_v48, 0.0  ;;  %v8280_v18 = vadd.f32 %v14121_v40, %v16894_v37  ;;  %v8586_v26 = vsel %vm8461_vm10, %v8544_v34, 0.0  ;;  %v17048_v41 = vmax.f32 %v8377_v11, %v8409_v45 }
0x11cd   : > { %v8482_v53 = vadd.f32 %v8481_v16, %v8480_v50  ;;  %v8583_v59 = vadd.f32 %v8582_v58, %v8581_v22  ;;  %v8547_v46 = vmul.f32 %v17032_v38, %v17032_v38  ;;  %v8215_v51 = vpop.f32.mrf.mxu1  ;;  %v8380_v24 = vadd.f32 %v8348_v5, %v8316_v10  ;;  %v14100_v50 = vpop.f32.mrf.mxu0 }
0x11ce   : > { %v8378_v55 = vadd.f32 %v8346_v61, %v8314_v3  ;;  %v8319_v27 = vadd.f32 %v16815_v2, %v8280_v18  ;;  %v8489_v37 = vsel %vm8461_vm10, %v17032_v38, 0.0  ;;  %v17055_v34 = vadd.f32 %v14099_v47, %v16773_v29  ;;  %v8349_v3 = vld [vmem:[%s19154_s0 + $0x80] sm:$0xff] }
0x11cf   : > { %v8585_v30 = vadd.f32 %v8584_v25, %v8583_v59  ;;  %v8484_v40 = vadd.f32 %v8483_v20, %v8482_v53  ;;  %v14126_v16 = vpop.f32.mrf.mxu1  ;;  %v8485_v22 = vsel %vm8461_vm10, %v17048_v41, 0.0  ;;  %v8545_v11 = vmul.f32 %v17048_v41, %v17048_v41 }
0x11d0   : > { %v8412_v48 = vmul.f32 0.2, %v8380_v24  ;;  %v8410_v60 = vmul.f32 0.2, %v8378_v55  ;;  %v8383_v10 = vadd.f32 %v8351_v49, %v8319_v27  ;;  %v8278_v5 = vadd.f32 %v8199_v33, %v16904_v44 }
0x11d1   : > { %v8486_v45 = vadd.f32 %v8485_v22, %v8484_v40  ;;  %v8587_v25 = vadd.f32 %v8586_v26, %v8585_v30  ;;  %v8218_v20 = vpop.f32.mrf.mxu1  ;;  %v8592_v29 = vsel %vm8461_vm10, %v8547_v46, 0.0  ;;  %v8588_v47 = vsel %vm8461_vm10, %v8545_v11, 0.0  ;;  %v8352_v40 = vld [vmem:[%s19154_s0 + $0x98] sm:$0xff] }
0x11d2   : > { %v17064_v61 = vmax.f32 %v8380_v24, %v8412_v48  ;;  %v17066_v58 = vmax.f32 %v8378_v55, %v8410_v60  ;;  %v8415_v53 = vmul.f32 0.2, %v8383_v10  ;;  %v8317_v59 = vadd.f32 %v16815_v2, %v8278_v5  ;;  %v7952_v55 = vpop.f32.mrf.mxu0  ;;  %v8350_v5 = vld [vmem:[%s19154_s0 + $0x88] sm:$0xff] }
0x11d3   : > { %v8589_v18 = vadd.f32 %v8588_v47, %v8587_v25  ;;  %v8281_v26 = vadd.f32 %v14122_v1, %v16913_v36  ;;  %v17071_v27 = vpop.f32.mrf.mxu1  ;;  %v17080_v24 = vadd.f32 %v7949_v42, %v16860_v31  ;;  %v17090_v48 = vadd.f32 %v14100_v50, %v16796_v6 }
0x11d4   : > { %v8548_v44 = vmul.f32 %v17064_v61, %v17064_v61  ;;  %v8487_v33 = vsel %vm8461_vm10, %v17066_v58, 0.0  ;;  %v8546_v46 = vmul.f32 %v17066_v58, %v17066_v58  ;;  %v17082_v30 = vmax.f32 %v8383_v10, %v8415_v53 }
0x11d5   : > { %v8488_v49 = vadd.f32 %v8487_v33, %v8486_v45  ;;  %v8381_v36 = vadd.f32 %v8349_v3, %v8317_v59  ;;  %v8320_v1 = vadd.f32 %v16815_v2, %v8281_v26  ;;  %v8491_v22 = vsel %vm8461_vm10, %v17064_v61, 0.0  ;;  %v8231_v42 = vpop.f32.mrf.mxu1  ;;  %v8353_v33 = vld [vmem:[%s19154_s0 + $0xa0] sm:$0xff] }
0x11d6   : > { %v8590_v11 = vsel %vm8461_vm10, %v8546_v46, 0.0  ;;  %v8279_v31 = vadd.f32 %v17023_v63, %v16924_v8  ;;  %v8594_v60 = vsel %vm8461_vm10, %v8548_v44, 0.0  ;;  %v17096_v10 = vadd.f32 %v7952_v55, %v16870_v12  ;;  %v8355_v44 = vld [vmem:[%s19154_s0 + $0xb0] sm:$0xff] }
0x11d7   : > { %v8490_v45 = vadd.f32 %v8489_v37, %v8488_v49  ;;  %v8591_v25 = vadd.f32 %v8590_v11, %v8589_v18  ;;  %v8413_v47 = vmul.f32 0.2, %v8381_v36  ;;  %v8384_v3 = vadd.f32 %v8352_v40, %v8320_v1  ;;  %v17110_v46 = vpop.f32.mrf.mxu1  ;;  %v8356_v1 = vld [vmem:[%s19154_s0 + $0xb8] sm:$0xff] }
0x11d8   : > { %v8318_v53 = vadd.f32 %v16815_v2, %v8279_v31  ;;  %v8284_v6 = vadd.f32 %v17037_v23, %v16948_v43  ;;  %v8551_v8 = vmul.f32 %v17082_v30, %v17082_v30  ;;  %v8282_v37 = vadd.f32 %v8215_v51, %v16964_v39 }
0x11d9   : > { %v8593_v50 = vadd.f32 %v8592_v29, %v8591_v25  ;;  %v8492_v63 = vadd.f32 %v8491_v22, %v8490_v45  ;;  %v17105_v18 = vmax.f32 %v8381_v36, %v8413_v47  ;;  %v8416_v12 = vmul.f32 0.2, %v8384_v3 }
0x11da   : > { %v8382_v59 = vadd.f32 %v8350_v5, %v8318_v53  ;;  %v8323_v26 = vadd.f32 %v16815_v2, %v8284_v6  ;;  %v8321_v43 = vadd.f32 %v16815_v2, %v8282_v37  ;;  %v8285_v23 = vadd.f32 %v14126_v16, %v16970_v32 }
0x11db   : > { %v8595_v55 = vadd.f32 %v8594_v60, %v8593_v50  ;;  %v8283_v29 = vadd.f32 %v8218_v20, %v16987_v56  ;;  %v8493_v39 = vsel %vm8461_vm10, %v17105_v18, 0.0  ;;  %v8549_v51 = vmul.f32 %v17105_v18, %v17105_v18  ;;  %v8234_v60 = vpop.f32.mrf.mxu1 }
0x11dc   : > { %v17119_v49 = vmax.f32 %v8384_v3, %v8416_v12  ;;  %v8414_v36 = vmul.f32 0.2, %v8382_v59  ;;  %v8494_v40 = vadd.f32 %v8493_v39, %v8492_v63  ;;  %v8387_v22 = vadd.f32 %v8355_v44, %v8323_v26  ;;  %v8354_v3 = vld [vmem:[%s19154_s0 + $0xa8] sm:$0xff] }
0x11dd   : > { %v8385_v11 = vadd.f32 %v8353_v33, %v8321_v43  ;;  %v8324_v31 = vadd.f32 %v16815_v2, %v8285_v23  ;;  %v8497_v32 = vsel %vm8461_vm10, %v17082_v30, 0.0  ;;  %v8600_v56 = vsel %vm8461_vm10, %v8551_v8, 0.0  ;;  %v14133_v43 = vpop.f32.mrf.mxu1 }
0x11de   : > { %v8596_v16 = vsel %vm8461_vm10, %v8549_v51, 0.0  ;;  %v17127_v20 = vmax.f32 %v8382_v59, %v8414_v36  ;;  %v8419_v25 = vmul.f32 0.2, %v8387_v22  ;;  %v8552_v53 = vmul.f32 %v17119_v49, %v17119_v49 }
0x11df   : > { %v8597_v45 = vadd.f32 %v8596_v16, %v8595_v55  ;;  %v8417_v5 = vmul.f32 0.2, %v8385_v11  ;;  %v8388_v47 = vadd.f32 %v8356_v1, %v8324_v31  ;;  %v8322_v8 = vadd.f32 %v16815_v2, %v8283_v29 }
0x11e0   : > { %v8495_v6 = vsel %vm8461_vm10, %v17127_v20, 0.0  ;;  %v8550_v50 = vmul.f32 %v17127_v20, %v17127_v20  ;;  %v17137_v37 = vmax.f32 %v8387_v22, %v8419_v25  ;;  %v8499_v26 = vsel %vm8461_vm10, %v17119_v49, 0.0  ;;  %v8357_v25 = vld [vmem:[%s19154_s0 + $0xc0] sm:$0xff] }
0x11e1   : > { %v8496_v63 = vadd.f32 %v8495_v6, %v8494_v40  ;;  %v17139_v12 = vmax.f32 %v8385_v11, %v8417_v5  ;;  %v8420_v59 = vmul.f32 0.2, %v8388_v47  ;;  %v8386_v33 = vadd.f32 %v8354_v3, %v8322_v8  ;;  %v8359_v11 = vld [vmem:[%s19154_s0 + $0xd0] sm:$0xff]  ;;  %v8247_v5 = vpop.f32.mrf.mxu1 }
0x11e2   : > { %v8598_v44 = vsel %vm8461_vm10, %v8550_v50, 0.0  ;;  %v8288_v55 = vadd.f32 %v17071_v27, %v16996_v4  ;;  %v8555_v29 = vmul.f32 %v17137_v37, %v17137_v37  ;;  %v8286_v51 = vadd.f32 %v8231_v42, %v17015_v35 }
0x11e3   : > { %v8498_v23 = vadd.f32 %v8497_v32, %v8496_v63  ;;  %v8599_v39 = vadd.f32 %v8598_v44, %v8597_v45  ;;  %v8602_v36 = vsel %vm8461_vm10, %v8552_v53, 0.0  ;;  %v8553_v1 = vmul.f32 %v17139_v12, %v17139_v12 }
0x11e4   : > { %v17152_v40 = vmax.f32 %v8388_v47, %v8420_v59  ;;  %v8418_v22 = vmul.f32 0.2, %v8386_v33  ;;  %v8505_v4 = vsel %vm8461_vm10, %v17137_v37, 0.0  ;;  %v8327_v32 = vadd.f32 %v16815_v2, %v8288_v55  ;;  %v8360_v55 = vld [vmem:[%s19154_s0 + $0xd8] sm:$0xff] }
0x11e5   : > { %v8601_v31 = vadd.f32 %v8600_v56, %v8599_v39  ;;  %v8500_v27 = vadd.f32 %v8499_v26, %v8498_v23  ;;  %v8608_v16 = vsel %vm8461_vm10, %v8555_v29, 0.0  ;;  %v8501_v35 = vsel %vm8461_vm10, %v17139_v12, 0.0 }
0x11e6   : > { %v8604_v42 = vsel %vm8461_vm10, %v8553_v1, 0.0  ;;  %v17162_v45 = vmax.f32 %v8386_v33, %v8418_v22  ;;  %v8391_v3 = vadd.f32 %v8359_v11, %v8327_v32  ;;  %v8325_v53 = vadd.f32 %v16815_v2, %v8286_v51 }
0x11e7   : > { %v8502_v47 = vadd.f32 %v8501_v35, %v8500_v27  ;;  %v8603_v56 = vadd.f32 %v8602_v36, %v8601_v31  ;;  %v8556_v6 = vmul.f32 %v17152_v40, %v17152_v40  ;;  %v8289_v63 = vadd.f32 %v17110_v46, %v17018_v19  ;;  %v14134_v36 = vpop.f32.mrf.mxu1  ;;  %v8358_v46 = vld [vmem:[%s19154_s0 + $0xc8] sm:$0xff]  ;;  %v8363_v31 = vld [vmem:[%s19154_s0 + $0xf0] sm:$0xff] }
0x11e8   : > { %v8503_v50 = vsel %vm8461_vm10, %v17162_v45, 0.0  ;;  %v8554_v8 = vmul.f32 %v17162_v45, %v17162_v45  ;;  %v8423_v44 = vmul.f32 0.2, %v8391_v3  ;;  %v8389_v33 = vadd.f32 %v8357_v25, %v8325_v53 }
0x11e9   : > { %v8605_v59 = vadd.f32 %v8604_v42, %v8603_v56  ;;  %v8504_v26 = vadd.f32 %v8503_v50, %v8502_v47  ;;  %v8328_v39 = vadd.f32 %v16815_v2, %v8289_v63  ;;  %v8287_v29 = vadd.f32 %v8234_v60, %v17041_v7 }
0x11ea   : > { %v8606_v23 = vsel %vm8461_vm10, %v8554_v8, 0.0  ;;  %v8292_v51 = vadd.f32 %v14133_v43, %v17055_v34  ;;  %v17179_v11 = vmax.f32 %v8391_v3, %v8423_v44  ;;  %v8421_v19 = vmul.f32 0.2, %v8389_v33  ;;  %v8250_v3 = vpop.f32.mrf.mxu1 }
0x11eb   : > { %v8506_v1 = vadd.f32 %v8505_v4, %v8504_v26  ;;  %v8607_v22 = vadd.f32 %v8606_v23, %v8605_v59  ;;  %v8507_v27 = vsel %vm8461_vm10, %v17152_v40, 0.0  ;;  %v8392_v32 = vadd.f32 %v8360_v55, %v8328_v39  ;;  %v8361_v59 = vld [vmem:[%s19154_s0 + $0xe0] sm:$0xff] }
0x11ec   : > { %v8326_v35 = vadd.f32 %v16815_v2, %v8287_v29  ;;  %v8331_v42 = vadd.f32 %v16815_v2, %v8292_v51  ;;  %v8610_v7 = vsel %vm8461_vm10, %v8556_v6, 0.0  ;;  %v17188_v34 = vmax.f32 %v8389_v33, %v8421_v19  ;;  %v12756_v51 = vld [vmem:[%s19174_s4 + $0x4] sm:$0xf] }
0x11ed   : > { %v8609_v60 = vadd.f32 %v8608_v16, %v8607_v22  ;;  %v8290_v43 = vadd.f32 %v8247_v5, %v17080_v24  ;;  %v8508_v4 = vadd.f32 %v8507_v27, %v8506_v1  ;;  %v8424_v25 = vmul.f32 0.2, %v8392_v32  ;;  %v8898_v1 = vld [vmem:[%s19174_s4] sm:$0xf]  ;;  %14443 = vmatprep.subr.msk.bf16.mxu0 %vm8997_vm11, %v12756_v51 }
0x11ee   : > { %v8390_v47 = vadd.f32 %v8358_v46, %v8326_v35  ;;  %v8395_v56 = vadd.f32 %v8363_v31, %v8331_v42  ;;  %v8559_v53 = vmul.f32 %v17179_v11, %v17179_v11  ;;  %v8509_v50 = vsel %vm8461_vm10, %v17188_v34, 0.0  ;;  %v8364_v31 = vld [vmem:[%s19154_s0 + $0xf8] sm:$0xff]  ;;  %14444 = vmatprep.subr.msk.bf16.mxu1 %vm8997_vm11, %v8898_v1 }
0x11ef   : > { %v8557_v16 = vmul.f32 %v17188_v34, %v17188_v34  ;;  %v8611_v6 = vadd.f32 %v8610_v7, %v8609_v60  ;;  %v8510_v8 = vadd.f32 %v8509_v50, %v8508_v4  ;;  %v17197_v63 = vmax.f32 %v8392_v32, %v8424_v25 }
0x11f0   : > { %v8422_v24 = vmul.f32 0.2, %v8390_v47  ;;  %v8427_v5 = vmul.f32 0.2, %v8395_v56  ;;  %v8329_v44 = vadd.f32 %v16815_v2, %v8290_v43  ;;  %v8293_v33 = vadd.f32 %v14134_v36, %v17090_v48  ;;  %v8362_v36 = vld [vmem:[%s19154_s0 + $0xe8] sm:$0xff]  ;;  %s19207_s0 = sld [smem:[#allocation31_spill]] }
0x11f1   : > { %v8612_v26 = vsel %vm8461_vm10, %v8557_v16, 0.0  ;;  %v8291_v55 = vadd.f32 %v8250_v3, %v17096_v10  ;;  %v8513_v23 = vsel %vm8461_vm10, %v17179_v11, 0.0  ;;  %v8560_v22 = vmul.f32 %v17197_v63, %v17197_v63 }
0x11f2   : > { %v8613_v39 = vadd.f32 %v8612_v26, %v8611_v6  ;;  %v17206_v29 = vmax.f32 %v8390_v47, %v8422_v24  ;;  %v8393_v19 = vadd.f32 %v8361_v59, %v8329_v44  ;;  %v8332_v46 = vadd.f32 %v16815_v2, %v8293_v33  ;;  %v8851_v6 = vld [vmem:[#allocation6 + $0x8] sm:$0xff] }
0x11f3   : > { %v8330_v48 = vadd.f32 %v16815_v2, %v8291_v55  ;;  %v8616_v10 = vsel %vm8461_vm10, %v8559_v53, 0.0  ;;  %v8515_v35 = vsel %vm8461_vm10, %v17197_v63, 0.0  ;;  %v17223_v7 = vmax.f32 %v8395_v56, %v8427_v5  ;;  %v17228_v2 = vld [vmem:[%s19174_s4 + $0x8] sm:$0xf]  ;;  %v8850_v56 = vld [vmem:[#allocation6] sm:$0xff] }
0x11f4   : > { %v8511_v27 = vsel %vm8461_vm10, %v17206_v29, 0.0  ;;  %v8558_v32 = vmul.f32 %v17206_v29, %v17206_v29  ;;  %v8425_v60 = vmul.f32 0.2, %v8393_v19  ;;  %v8396_v4 = vadd.f32 %v8364_v31, %v8332_v46 }
0x11f5   : > { %v8512_v42 = vadd.f32 %v8511_v27, %v8510_v8  ;;  %v8394_v25 = vadd.f32 %v8362_v36, %v8330_v48  ;;  %v8999_v47 = vsel %vm8997_vm11, %v12756_v51, 0  ;;  %v8618_v3 = vsel %vm8461_vm10, %v8560_v22, 0.0  ;;  %v17321_v27 = vld [vmem:[%s19174_s4 + $0xc] sm:$0xf] }
0x11f6   : > { %v8614_v43 = vsel %vm8461_vm10, %v8558_v32, 0.0  ;;  %v17233_v16 = vmax.f32 %v8393_v19, %v8425_v60  ;;  %14136 = vmatpush3.bf16.msra.mxu0 %v8999_v47  ;;  %v8428_v8 = vmul.f32 0.2, %v8396_v4  ;;  %v9211_v5 = vsel %vm8997_vm11, %v8898_v1, 0  ;;  %v8899_v60 = vld [vmem:[#allocation6 + $0x1] sm:$0xff] }
0x11f7   : > { %v8514_v53 = vadd.f32 %v8513_v23, %v8512_v42  ;;  %v8615_v50 = vadd.f32 %v8614_v43, %v8613_v39  ;;  %v8426_v24 = vmul.f32 0.2, %v8394_v25  ;;  %14445 = vmatprep.subr.msk.bf16.mxu0 %vm8997_vm11, %v17228_v2  ;;  %14170 = vmatpush3.bf16.msra.mxu1 %v9211_v5  ;;  %v19175_v55 = vmov 0.0  }
0x11f8   : > { %v8517_v44 = vsel %vm8461_vm10, %v17233_v16, 0.0  ;;  %v8561_v33 = vmul.f32 %v17233_v16, %v17233_v16  ;;  %8812 = vst.msk [vmem:[#allocation6 + $0x10] sm:$0x3] %vm8811_vm12, %v19175_v55  ;;  %8816 = vst.msk [vmem:[#allocation6 + $0x1a8] sm:$0x3] %vm8811_vm12, %v19175_v55  ;;  %v17244_v23 = vmax.f32 %v8396_v4, %v8428_v8  ;;  %v8882_v51 = vpack.c.bf16 %v8851_v6, %v8850_v56 }
0x11f9   : > { %v8617_v59 = vadd.f32 %v8616_v10, %v8615_v50  ;;  %v8516_v26 = vadd.f32 %v8515_v35, %v8514_v53  ;;  %v17246_v39 = vmax.f32 %v8394_v25, %v8426_v24  ;;  %8818 = vst.msk [vmem:[#allocation6 + $0x18] sm:$0x1] %vm8817_vm13, %v19175_v55  ;;  %8819 = vst.msk [vmem:[#allocation6 + $0x30] sm:$0x1] %vm8817_vm13, %v19175_v55  ;;  %v8521_v32 = vsel %vm8461_vm10, %v17223_v7, 0.0 }
0x11fa   : > { %8820 = vst.msk [vmem:[#allocation6 + $0x48] sm:$0x1] %vm8817_vm13, %v19175_v55  ;;  %8821 = vst.msk [vmem:[#allocation6 + $0x60] sm:$0x1] %vm8817_vm13, %v19175_v55  ;;  %v8563_v19 = vmul.f32 %v17223_v7, %v17223_v7  ;;  %v8620_v46 = vsel %vm8461_vm10, %v8561_v33, 0.0  ;;  %14171 = vmatprep.mubr.msk.bf16.mxu1 %vm8461_vm10, %v8882_v51  ;;  %v8564_v35 = vmul.f32 %v17244_v23, %v17244_v23  ;;  %14446 = vmatprep.subr.msk.bf16.mxu1 %vm8997_vm11, %v17321_v27 }
0x11fb   : > { %v8518_v1 = vadd.f32 %v8517_v44, %v8516_v26  ;;  %v8619_v22 = vadd.f32 %v8618_v3, %v8617_v59  ;;  %8822 = vst.msk [vmem:[#allocation6 + $0x78] sm:$0x1] %vm8817_vm13, %v19175_v55  ;;  %8823 = vst.msk [vmem:[#allocation6 + $0x90] sm:$0x1] %vm8817_vm13, %v19175_v55  ;;  %v8519_v31 = vsel %vm8461_vm10, %v17246_v39, 0.0  ;;  %v8562_v48 = vmul.f32 %v17246_v39, %v17246_v39 }
0x11fc   : > { %8824 = vst.msk [vmem:[#allocation6 + $0xa8] sm:$0x1] %vm8817_vm13, %v19175_v55  ;;  %8825 = vst.msk [vmem:[#allocation6 + $0xc0] sm:$0x1] %vm8817_vm13, %v19175_v55  ;;  %v8624_v25 = vsel %vm8461_vm10, %v8563_v19, 0.0  ;;  %v8523_v47 = vsel %vm8461_vm10, %v17244_v23, 0.0 }
0x11fd   : > { %8826 = vst.msk [vmem:[#allocation6 + $0xd8] sm:$0x1] %vm8817_vm13, %v19175_v55  ;;  %8827 = vst.msk [vmem:[#allocation6 + $0xf0] sm:$0x1] %vm8817_vm13, %v19175_v55  ;;  %v8621_v36 = vadd.f32 %v8620_v46, %v8619_v22  ;;  %v8520_v10 = vadd.f32 %v8519_v31, %v8518_v1  ;;  %v8622_v42 = vsel %vm8461_vm10, %v8562_v48, 0.0  ;;  %v8626_v6 = vsel %vm8461_vm10, %v8564_v35, 0.0 }
0x11fe   : > { %8828 = vst.msk [vmem:[#allocation6 + $0x108] sm:$0x1] %vm8817_vm13, %v19175_v55  ;;  %8829 = vst.msk [vmem:[#allocation6 + $0x120] sm:$0x1] %vm8817_vm13, %v19175_v55 }
0x11ff   : > { %8830 = vst.msk [vmem:[#allocation6 + $0x138] sm:$0x1] %vm8817_vm13, %v19175_v55  ;;  %8831 = vst.msk [vmem:[#allocation6 + $0x150] sm:$0x1] %vm8817_vm13, %v19175_v55  ;;  %v8522_v43 = vadd.f32 %v8521_v32, %v8520_v10  ;;  %v8623_v4 = vadd.f32 %v8622_v42, %v8621_v36  ;;  %v8900_v3 = vld [vmem:[#allocation6 + $0x9] sm:$0xff] }
0x1200   : > { %8832 = vst.msk [vmem:[#allocation6 + $0x168] sm:$0x1] %vm8817_vm13, %v19175_v55  ;;  %8833 = vst.msk [vmem:[#allocation6 + $0x180] sm:$0x1] %vm8817_vm13, %v19175_v55  ;;  %v8931_v56 = vpack.c.bf16 %v8900_v3, %v8899_v60 }
0x1201   : > { %8834 = vst.msk [vmem:[#allocation6 + $0x29] sm:$0x1] %vm8817_vm13, %v19175_v55  ;;  %8835 = vst.msk [vmem:[#allocation6 + $0x41] sm:$0x1] %vm8817_vm13, %v19175_v55  ;;  %v8524_v53 = vadd.f32 %v8523_v47, %v8522_v43  ;;  %v8625_v50 = vadd.f32 %v8624_v25, %v8623_v4 }
0x1202   : > { %8836 = vst.msk [vmem:[#allocation6 + $0x59] sm:$0x1] %vm8817_vm13, %v19175_v55  ;;  %8837 = vst.msk [vmem:[#allocation6 + $0x71] sm:$0x1] %vm8817_vm13, %v19175_v55  ;;  %14137 = vmatprep.mubr.msk.bf16.mxu0 %vm8461_vm10, %v8931_v56 }
0x1203   : > { %8838 = vst.msk [vmem:[#allocation6 + $0x89] sm:$0x1] %vm8817_vm13, %v19175_v55  ;;  %8839 = vst.msk [vmem:[#allocation6 + $0xa1] sm:$0x1] %vm8817_vm13, %v19175_v55  ;;  %v8525_v8 = vrot.slane %v8524_v53, 4  ;;  %v8627_v24 = vadd.f32 %v8626_v6, %v8625_v50 }
0x1204   : > { %8840 = vst.msk [vmem:[#allocation6 + $0xb9] sm:$0x1] %vm8817_vm13, %v19175_v55  ;;  %8841 = vst.msk [vmem:[#allocation6 + $0xd1] sm:$0x1] %vm8817_vm13, %v19175_v55 }
0x1205   : > { %8842 = vst.msk [vmem:[#allocation6 + $0xe9] sm:$0x1] %vm8817_vm13, %v19175_v55  ;;  %8843 = vst.msk [vmem:[#allocation6 + $0x101] sm:$0x1] %vm8817_vm13, %v19175_v55  ;;  %v8526_v5 = vadd.f32 %v8525_v8, %v8524_v53  ;;  %v8628_v59 = vrot.slane %v8627_v24, 4 }
0x1206   : > { %8844 = vst.msk [vmem:[#allocation6 + $0x119] sm:$0x1] %vm8817_vm13, %v19175_v55  ;;  %8845 = vst.msk [vmem:[#allocation6 + $0x131] sm:$0x1] %vm8817_vm13, %v19175_v55 }
0x1207   : > { %8846 = vst.msk [vmem:[#allocation6 + $0x149] sm:$0x1] %vm8817_vm13, %v19175_v55  ;;  %8847 = vst.msk [vmem:[#allocation6 + $0x161] sm:$0x1] %vm8817_vm13, %v19175_v55  ;;  %v8527_v26 = vrot.slane %v8526_v5, 2  ;;  %v8629_v44 = vadd.f32 %v8628_v59, %v8627_v24 }
0x1208   : > { %8848 = vst.msk [vmem:[#allocation6 + $0x179] sm:$0x1] %vm8817_vm13, %v19175_v55  ;;  %8849 = vst.msk [vmem:[#allocation6 + $0x191] sm:$0x1] %vm8817_vm13, %v19175_v55 }
0x1209   : > { %v8528_v33 = vadd.f32 %v8527_v26, %v8526_v5  ;;  %v8630_v55 = vrot.slane %v8629_v44, 2  ;;  %v19176_v5 = vld [vmem:[#allocation39_spill] sm:$0xff] }
0x120b   : > { %v8529_v51 = vrot.slane %v8528_v33, 1  ;;  %v8631_v1 = vadd.f32 %v8630_v55, %v8629_v44 }
0x120d   : > { %v8530_v22 = vadd.f32 %v8529_v51, %v8528_v33  ;;  %v8632_v19 = vrot.slane %v8631_v1, 1 }
0x120f   : > { %v17335_v46 = vmul.f32 0.00390625, %v8530_v22  ;;  %v8633_v31 = vadd.f32 %v8632_v19, %v8631_v1 }
0x1211   : > { %v8634_v48 = vmul.f32 0.00390625, %v8633_v31  ;;  %v8635_v36 = vmul.f32 %v17335_v46, %v17335_v46  ;;  %v8667_v10 = vsub.f32 %v17246_v39, %v17335_v46  ;;  %v8654_v42 = vsub.f32 %v17105_v18, %v17335_v46 }
0x1212   : > { %v8655_v60 = vsub.f32 %v17127_v20, %v17335_v46  ;;  %v8656_v43 = vsub.f32 %v17082_v30, %v17335_v46  ;;  %v8657_v25 = vsub.f32 %v17119_v49, %v17335_v46  ;;  %v8658_v47 = vsub.f32 %v17139_v12, %v17335_v46 }
0x1213   : > { %v8636_v32 = vsub.f32 %v8634_v48, %v8635_v36  ;;  %v8659_v39 = vsub.f32 %v17162_v45, %v17335_v46  ;;  %v8660_v3 = vsub.f32 %v17137_v37, %v17335_v46  ;;  %v8661_v18 = vsub.f32 %v17152_v40, %v17335_v46 }
0x1214   : > { %v8662_v20 = vsub.f32 %v17188_v34, %v17335_v46  ;;  %v8663_v30 = vsub.f32 %v17206_v29, %v17335_v46  ;;  %v8664_v49 = vsub.f32 %v17179_v11, %v17335_v46  ;;  %v8665_v12 = vsub.f32 %v17197_v63, %v17335_v46 }
0x1215   : > { %v8637_v35 = vmax.f32 %v8636_v32, 0.0  ;;  %v8666_v45 = vsub.f32 %v17233_v16, %v17335_v46  ;;  %v8668_v37 = vsub.f32 %v17223_v7, %v17335_v46  ;;  %v8669_v40 = vsub.f32 %v17244_v23, %v17335_v46 }
0x1216   : > { %v8638_v34 = vsub.f32 %v16888_v54, %v17335_v46  ;;  %v8639_v29 = vsub.f32 %v16917_v9, %v17335_v46  ;;  %v8640_v11 = vsub.f32 %v16877_v52, %v17335_v46  ;;  %v8641_v63 = vsub.f32 %v16901_v0, %v17335_v46 }
0x1217   : > { %v8670_v4 = vadd.f32 1e-08, %v8637_v35  ;;  %v8642_v16 = vsub.f32 %v16940_v21, %v17335_v46  ;;  %v8643_v7 = vsub.f32 %v16961_v13, %v17335_v46  ;;  %v8644_v23 = vsub.f32 %v16931_v57, %v17335_v46 }
0x1218   : > { %v8645_v54 = vsub.f32 %v16951_v14, %v17335_v46  ;;  %v8646_v9 = vsub.f32 %v16993_v28, %v17335_v46  ;;  %v8647_v52 = vsub.f32 %v17012_v17, %v17335_v46  ;;  %v8648_v0 = vsub.f32 %v16977_v62, %v17335_v46 }
0x1219   : > { %14646 = vrsqrt.f32 %v8670_v4  ;;  %v8649_v21 = vsub.f32 %v17007_v15, %v17335_v46  ;;  %v8650_v13 = vsub.f32 %v17048_v41, %v17335_v46  ;;  %v8651_v57 = vsub.f32 %v17066_v58, %v17335_v46  ;;  %v17404_v58 = vpop.permute.xlu1 %8741 }
0x121a   : > { %v8652_v14 = vsub.f32 %v17032_v38, %v17335_v46  ;;  %v8653_v28 = vsub.f32 %v17064_v61, %v17335_v46  ;;  %19177 = vst [vmem:[#allocation42_spill] sm:$0xff] %v17404_v58 }
0x1226   : > { %v14647_v53 = vpop.eup %14646 }
0x1227   : > { %v8701_v17 = vmul.f32 %v14647_v53, %v8667_v10  ;;  %v8672_v50 = vmul.f32 %v14647_v53, %v8638_v34  ;;  %v8673_v56 = vmul.f32 %v14647_v53, %v8639_v29  ;;  %v8674_v62 = vmul.f32 %v14647_v53, %v8640_v11 }
0x1228   : > { %v8675_v6 = vmul.f32 %v14647_v53, %v8641_v63  ;;  %v8676_v8 = vmul.f32 %v14647_v53, %v8642_v16  ;;  %v8677_v15 = vmul.f32 %v14647_v53, %v8643_v7  ;;  %v8678_v24 = vmul.f32 %v14647_v53, %v8644_v23 }
0x1229   : > { %v8737_v59 = vmul.f32 %v19176_v5, %v8701_v17  ;;  %v8679_v41 = vmul.f32 %v14647_v53, %v8645_v54  ;;  %v8680_v26 = vmul.f32 %v14647_v53, %v8646_v9  ;;  %v8681_v44 = vmul.f32 %v14647_v53, %v8647_v52 }
0x122a   : > { %v8682_v33 = vmul.f32 %v14647_v53, %v8648_v0  ;;  %v8683_v38 = vmul.f32 %v14647_v53, %v8649_v21  ;;  %v8684_v55 = vmul.f32 %v14647_v53, %v8650_v13  ;;  %v8685_v51 = vmul.f32 %v14647_v53, %v8651_v57 }
0x122b   : > { %v8773_v61 = vadd.f32 %v17404_v58, %v8737_v59  ;;  %v8686_v1 = vmul.f32 %v14647_v53, %v8652_v14  ;;  %v8687_v22 = vmul.f32 %v14647_v53, %v8653_v28  ;;  %v8688_v19 = vmul.f32 %v14647_v53, %v8654_v42 }
0x122c   : > { %v8689_v46 = vmul.f32 %v14647_v53, %v8655_v60  ;;  %v8690_v31 = vmul.f32 %v14647_v53, %v8656_v43  ;;  %v8691_v48 = vmul.f32 %v14647_v53, %v8657_v25  ;;  %v8692_v36 = vmul.f32 %v14647_v53, %v8658_v47 }
0x122d   : > { %8806 = vst.msk [vmem:[#allocation6 + $0x171] sm:$0xff] %vm8461_vm10, %v8773_v61  ;;  %v8693_v10 = vmul.f32 %v14647_v53, %v8659_v39  ;;  %v8694_v32 = vmul.f32 %v14647_v53, %v8660_v3  ;;  %v8695_v35 = vmul.f32 %v14647_v53, %v8661_v18  ;;  %v8696_v4 = vmul.f32 %v14647_v53, %v8662_v20 }
0x122e   : > { %v8697_v34 = vmul.f32 %v14647_v53, %v8663_v30  ;;  %v8698_v29 = vmul.f32 %v14647_v53, %v8664_v49  ;;  %v8699_v11 = vmul.f32 %v14647_v53, %v8665_v12  ;;  %v8700_v63 = vmul.f32 %v14647_v53, %v8666_v45 }
0x122f   : > { %v8702_v16 = vmul.f32 %v14647_v53, %v8668_v37  ;;  %v8703_v7 = vmul.f32 %v14647_v53, %v8669_v40  ;;  %v8708_v23 = vmul.f32 %v19176_v5, %v8672_v50  ;;  %v8709_v42 = vmul.f32 %v19176_v5, %v8673_v56 }
0x1230   : > { %v8710_v60 = vmul.f32 %v19176_v5, %v8674_v62  ;;  %v8711_v43 = vmul.f32 %v19176_v5, %v8675_v6  ;;  %v8712_v25 = vmul.f32 %v19176_v5, %v8676_v8  ;;  %v8713_v47 = vmul.f32 %v19176_v5, %v8677_v15 }
0x1231   : > { %v8714_v39 = vmul.f32 %v19176_v5, %v8678_v24  ;;  %v8715_v3 = vmul.f32 %v19176_v5, %v8679_v41  ;;  %v8716_v18 = vmul.f32 %v19176_v5, %v8680_v26  ;;  %v8717_v20 = vmul.f32 %v19176_v5, %v8681_v44 }
0x1232   : > { %v8718_v30 = vmul.f32 %v19176_v5, %v8682_v33  ;;  %v8719_v49 = vmul.f32 %v19176_v5, %v8683_v38  ;;  %v8720_v12 = vmul.f32 %v19176_v5, %v8684_v55  ;;  %v8721_v45 = vmul.f32 %v19176_v5, %v8685_v51 }
0x1233   : > { %v8722_v37 = vmul.f32 %v19176_v5, %v8686_v1  ;;  %v8723_v40 = vmul.f32 %v19176_v5, %v8687_v22  ;;  %v8724_v54 = vmul.f32 %v19176_v5, %v8688_v19  ;;  %v8725_v9 = vmul.f32 %v19176_v5, %v8689_v46 }
0x1234   : > { %v8726_v52 = vmul.f32 %v19176_v5, %v8690_v31  ;;  %v8727_v0 = vmul.f32 %v19176_v5, %v8691_v48  ;;  %v8728_v21 = vmul.f32 %v19176_v5, %v8692_v36  ;;  %v8729_v53 = vmul.f32 %v19176_v5, %v8693_v10 }
0x1235   : > { %v8730_v13 = vmul.f32 %v19176_v5, %v8694_v32  ;;  %v8731_v57 = vmul.f32 %v19176_v5, %v8695_v35  ;;  %v8732_v14 = vmul.f32 %v19176_v5, %v8696_v4  ;;  %v8733_v28 = vmul.f32 %v19176_v5, %v8697_v34 }
0x1236   : > { %v8734_v17 = vmul.f32 %v19176_v5, %v8698_v29  ;;  %v8735_v50 = vmul.f32 %v19176_v5, %v8699_v11  ;;  %v8736_v56 = vmul.f32 %v19176_v5, %v8700_v63  ;;  %v8738_v62 = vmul.f32 %v19176_v5, %v8702_v16 }
0x1237   : > { %v8739_v6 = vmul.f32 %v19176_v5, %v8703_v7  ;;  %v8744_v8 = vadd.f32 %v17404_v58, %v8708_v23  ;;  %v8745_v15 = vadd.f32 %v17404_v58, %v8709_v42  ;;  %v8746_v24 = vadd.f32 %v17404_v58, %v8710_v60 }
0x1238   : > { %v8747_v59 = vadd.f32 %v17404_v58, %v8711_v43  ;;  %v8748_v41 = vadd.f32 %v17404_v58, %v8712_v25  ;;  %v8749_v26 = vadd.f32 %v17404_v58, %v8713_v47  ;;  %v8750_v44 = vadd.f32 %v17404_v58, %v8714_v39 }
0x1239   : > { %v8751_v33 = vadd.f32 %v17404_v58, %v8715_v3  ;;  %v8752_v38 = vadd.f32 %v17404_v58, %v8716_v18  ;;  %v8753_v55 = vadd.f32 %v17404_v58, %v8717_v20  ;;  %v8754_v51 = vadd.f32 %v17404_v58, %v8718_v30  ;;  %8777 = vst.msk [vmem:[#allocation6 + $0x19] sm:$0xff] %vm8461_vm10, %v8744_v8 }
0x123a   : > { %8778 = vst.msk [vmem:[#allocation6 + $0x21] sm:$0xff] %vm8461_vm10, %v8745_v15  ;;  %8779 = vst.msk [vmem:[#allocation6 + $0x31] sm:$0xff] %vm8461_vm10, %v8746_v24  ;;  %v8755_v61 = vadd.f32 %v17404_v58, %v8719_v49  ;;  %v8756_v1 = vadd.f32 %v17404_v58, %v8720_v12  ;;  %v8757_v22 = vadd.f32 %v17404_v58, %v8721_v45  ;;  %v9473_v45 = vsel %vm8997_vm11, %v17228_v2, 0 }
0x123b   : > { %v8758_v19 = vadd.f32 %v17404_v58, %v8722_v37  ;;  %8780 = vst.msk [vmem:[#allocation6 + $0x39] sm:$0xff] %vm8461_vm10, %v8747_v59  ;;  %8781 = vst.msk [vmem:[#allocation6 + $0x49] sm:$0xff] %vm8461_vm10, %v8748_v41  ;;  %v8759_v46 = vadd.f32 %v17404_v58, %v8723_v40  ;;  %v8760_v31 = vadd.f32 %v17404_v58, %v8724_v54  ;;  %v9767_v40 = vsel %vm8997_vm11, %v17321_v27, 0  ;;  %v17516_v54 = vld [vmem:[%s19174_s4 + $0x10] sm:$0xf] }
0x123c   : > { %8782 = vst.msk [vmem:[#allocation6 + $0x51] sm:$0xff] %vm8461_vm10, %v8749_v26  ;;  %8783 = vst.msk [vmem:[#allocation6 + $0x61] sm:$0xff] %vm8461_vm10, %v8750_v44  ;;  %v8761_v48 = vadd.f32 %v17404_v58, %v8725_v9  ;;  %v8762_v36 = vadd.f32 %v17404_v58, %v8726_v52  ;;  %v8763_v10 = vadd.f32 %v17404_v58, %v8727_v0  ;;  %v17523_v9 = vld [vmem:[%s19174_s4 + $0x14] sm:$0xf] }
0x123d   : > { %8784 = vst.msk [vmem:[#allocation6 + $0x69] sm:$0xff] %vm8461_vm10, %v8751_v33  ;;  %8785 = vst.msk [vmem:[#allocation6 + $0x79] sm:$0xff] %vm8461_vm10, %v8752_v38  ;;  %v8764_v32 = vadd.f32 %v17404_v58, %v8728_v21  ;;  %v8765_v35 = vadd.f32 %v17404_v58, %v8729_v53  ;;  %v8766_v4 = vadd.f32 %v17404_v58, %v8730_v13 }
0x123e   : > { %8786 = vst.msk [vmem:[#allocation6 + $0x81] sm:$0xff] %vm8461_vm10, %v8753_v55  ;;  %8787 = vst.msk [vmem:[#allocation6 + $0x91] sm:$0xff] %vm8461_vm10, %v8754_v51  ;;  %v8767_v34 = vadd.f32 %v17404_v58, %v8731_v57  ;;  %v8768_v29 = vadd.f32 %v17404_v58, %v8732_v14  ;;  %v8769_v11 = vadd.f32 %v17404_v58, %v8733_v28 }
0x123f   : > { %8788 = vst.msk [vmem:[#allocation6 + $0x99] sm:$0xff] %vm8461_vm10, %v8755_v61  ;;  %8789 = vst.msk [vmem:[#allocation6 + $0xa9] sm:$0xff] %vm8461_vm10, %v8756_v1  ;;  %v8770_v63 = vadd.f32 %v17404_v58, %v8734_v17  ;;  %v8771_v16 = vadd.f32 %v17404_v58, %v8735_v50  ;;  %v8772_v7 = vadd.f32 %v17404_v58, %v8736_v56 }
0x1240   : > { %8790 = vst.msk [vmem:[#allocation6 + $0xb1] sm:$0xff] %vm8461_vm10, %v8757_v22  ;;  %8791 = vst.msk [vmem:[#allocation6 + $0xc1] sm:$0xff] %vm8461_vm10, %v8758_v19  ;;  %v8774_v23 = vadd.f32 %v17404_v58, %v8738_v62  ;;  %v8775_v42 = vadd.f32 %v17404_v58, %v8739_v6  ;;  %v8901_v60 = vld [vmem:[#allocation6 + $0x19] sm:$0xff] }
0x1241   : > { %8792 = vst.msk [vmem:[#allocation6 + $0xc9] sm:$0xff] %vm8461_vm10, %v8759_v46  ;;  %8793 = vst.msk [vmem:[#allocation6 + $0xd9] sm:$0xff] %vm8461_vm10, %v8760_v31  ;;  %v8902_v43 = vld [vmem:[#allocation6 + $0x21] sm:$0xff]  ;;  %v8852_v25 = vld [vmem:[#allocation6 + $0x18] sm:$0xff] }
0x1242   : > { %8794 = vst.msk [vmem:[#allocation6 + $0xe1] sm:$0xff] %vm8461_vm10, %v8761_v48  ;;  %8795 = vst.msk [vmem:[#allocation6 + $0xf1] sm:$0xff] %vm8461_vm10, %v8762_v36  ;;  %v17501_v47 = vpack.c.bf16 %v8902_v43, %v8901_v60  ;;  %v8853_v39 = vld [vmem:[#allocation6 + $0x20] sm:$0xff]  ;;  %v8903_v3 = vld [vmem:[#allocation6 + $0x31] sm:$0xff] }
0x1243   : > { %8796 = vst.msk [vmem:[#allocation6 + $0xf9] sm:$0xff] %vm8461_vm10, %v8763_v10  ;;  %8797 = vst.msk [vmem:[#allocation6 + $0x109] sm:$0xff] %vm8461_vm10, %v8764_v32  ;;  %v8904_v18 = vld [vmem:[#allocation6 + $0x39] sm:$0xff]  ;;  %v17503_v20 = vpack.c.bf16 %v8853_v39, %v8852_v25  ;;  %v8854_v49 = vld [vmem:[#allocation6 + $0x30] sm:$0xff] }
0x1244   : > { %8798 = vst.msk [vmem:[#allocation6 + $0x111] sm:$0xff] %vm8461_vm10, %v8765_v35  ;;  %8799 = vst.msk [vmem:[#allocation6 + $0x121] sm:$0xff] %vm8461_vm10, %v8766_v4  ;;  %v17505_v30 = vpack.c.bf16 %v8904_v18, %v8903_v3  ;;  %v8855_v12 = vld [vmem:[#allocation6 + $0x38] sm:$0xff]  ;;  %14138 = vmatmul.mubr.msk.bf16.vlgmr.msra.gmra.mxu0 %vm8461_vm10, %v17501_v47  ;;  %v8905_v2 = vld [vmem:[#allocation6 + $0x49] sm:$0xff] }
0x1245   : > { %8800 = vst.msk [vmem:[#allocation6 + $0x129] sm:$0xff] %vm8461_vm10, %v8767_v34  ;;  %8801 = vst.msk [vmem:[#allocation6 + $0x139] sm:$0xff] %vm8461_vm10, %v8768_v29  ;;  %v17511_v37 = vpack.c.bf16 %v8855_v12, %v8854_v49  ;;  %14172 = vmatmul.mubr.msk.bf16.vlgmr.msra.gmra.mxu1 %vm8461_vm10, %v17503_v20  ;;  %14204 = vmatpush3.bf16.msra.mxu0 %v9473_v45  ;;  %v8906_v52 = vld [vmem:[#allocation6 + $0x51] sm:$0xff]  ;;  %v8856_v0 = vld [vmem:[#allocation6 + $0x48] sm:$0xff] }
0x1246   : > { %8802 = vst.msk [vmem:[#allocation6 + $0x141] sm:$0xff] %vm8461_vm10, %v8769_v11  ;;  %8803 = vst.msk [vmem:[#allocation6 + $0x151] sm:$0xff] %vm8461_vm10, %v8770_v63  ;;  %14141 = vmatprep.mubr.msk.bf16.mxu0 %vm8461_vm10, %v17505_v30  ;;  %14238 = vmatpush3.bf16.msra.mxu1 %v9767_v40  ;;  %v8857_v27 = vld [vmem:[#allocation6 + $0x50] sm:$0xff]  ;;  %v8907_v21 = vld [vmem:[#allocation6 + $0x61] sm:$0xff]  ;;  %v17531_v14 = vpack.c.bf16 %v8906_v52, %v8905_v2 }
0x1247   : > { %8804 = vst.msk [vmem:[#allocation6 + $0x159] sm:$0xff] %vm8461_vm10, %v8771_v16  ;;  %8805 = vst.msk [vmem:[#allocation6 + $0x169] sm:$0xff] %vm8461_vm10, %v8772_v7  ;;  %14175 = vmatprep.mubr.msk.bf16.mxu1 %vm8461_vm10, %v17511_v37  ;;  %14447 = vmatprep.subr.msk.bf16.mxu0 %vm8997_vm11, %v17516_v54  ;;  %v8908_v53 = vld [vmem:[#allocation6 + $0x69] sm:$0xff]  ;;  %v8858_v13 = vld [vmem:[#allocation6 + $0x60] sm:$0xff]  ;;  %v17533_v28 = vpack.c.bf16 %v8857_v27, %v8856_v0 }
0x1248   : > { %8807 = vst.msk [vmem:[#allocation6 + $0x181] sm:$0xff] %vm8461_vm10, %v8774_v23  ;;  %8808 = vst.msk [vmem:[#allocation6 + $0x189] sm:$0xff] %vm8461_vm10, %v8775_v42  ;;  %14448 = vmatprep.subr.msk.bf16.mxu1 %vm8997_vm11, %v17523_v9  ;;  %v8859_v57 = vld [vmem:[#allocation6 + $0x68] sm:$0xff]  ;;  %v17535_v17 = vpack.c.bf16 %v8908_v53, %v8907_v21  ;;  %v8909_v56 = vld [vmem:[#allocation6 + $0x79] sm:$0xff] }
0x1249   : > { %v17539_v50 = vpack.c.bf16 %v8859_v57, %v8858_v13  ;;  %v8910_v62 = vld [vmem:[#allocation6 + $0x81] sm:$0xff]  ;;  %v8860_v6 = vld [vmem:[#allocation6 + $0x78] sm:$0xff]  ;;  %v8862_v59 = vld [vmem:[#allocation6 + $0x90] sm:$0xff] }
0x124a   : > { %v8861_v8 = vld [vmem:[#allocation6 + $0x80] sm:$0xff]  ;;  %v8911_v15 = vld [vmem:[#allocation6 + $0x91] sm:$0xff]  ;;  %v17547_v26 = vpack.c.bf16 %v8910_v62, %v8909_v56  ;;  %v8913_v55 = vld [vmem:[#allocation6 + $0xa9] sm:$0xff] }
0x124b   : > { %v8912_v24 = vld [vmem:[#allocation6 + $0x99] sm:$0xff]  ;;  %v17549_v44 = vpack.c.bf16 %v8861_v8, %v8860_v6  ;;  %v8914_v51 = vld [vmem:[#allocation6 + $0xb1] sm:$0xff]  ;;  %v8864_v61 = vld [vmem:[#allocation6 + $0xa8] sm:$0xff] }
0x124c   : > { %14142 = vmatmul.mubr.msk.bf16.gmra.mxu0 %vm8461_vm10, %v17531_v14  ;;  %v8863_v41 = vld [vmem:[#allocation6 + $0x98] sm:$0xff]  ;;  %v17551_v33 = vpack.c.bf16 %v8912_v24, %v8911_v15  ;;  %v8865_v1 = vld [vmem:[#allocation6 + $0xb0] sm:$0xff]  ;;  %v8915_v22 = vld [vmem:[#allocation6 + $0xc1] sm:$0xff]  ;;  %v17563_v48 = vpack.c.bf16 %v8914_v51, %v8913_v55 }
0x124d   : > { %14176 = vmatmul.mubr.msk.bf16.gmra.mxu1 %vm8461_vm10, %v17533_v28  ;;  %14145 = vmatprep.mubr.msk.bf16.mxu0 %vm8461_vm10, %v17535_v17  ;;  %v17555_v38 = vpack.c.bf16 %v8863_v41, %v8862_v59  ;;  %v8916_v19 = vld [vmem:[#allocation6 + $0xc9] sm:$0xff]  ;;  %v8866_v46 = vld [vmem:[#allocation6 + $0xc0] sm:$0xff]  ;;  %v17565_v36 = vpack.c.bf16 %v8865_v1, %v8864_v61  ;;  %v8868_v34 = vld [vmem:[#allocation6 + $0xd8] sm:$0xff] }
0x124e   : > { %14179 = vmatprep.mubr.msk.bf16.mxu1 %vm8461_vm10, %v17539_v50  ;;  %v8867_v31 = vld [vmem:[#allocation6 + $0xc8] sm:$0xff]  ;;  %v17567_v10 = vpack.c.bf16 %v8916_v19, %v8915_v22  ;;  %v8917_v35 = vld [vmem:[#allocation6 + $0xd9] sm:$0xff]  ;;  %v8919_v11 = vld [vmem:[#allocation6 + $0xf1] sm:$0xff] }
0x124f   : > { %v17571_v32 = vpack.c.bf16 %v8867_v31, %v8866_v46  ;;  %v8918_v4 = vld [vmem:[#allocation6 + $0xe1] sm:$0xff]  ;;  %v8920_v63 = vld [vmem:[#allocation6 + $0xf9] sm:$0xff]  ;;  %v8870_v16 = vld [vmem:[#allocation6 + $0xf0] sm:$0xff] }
0x1250   : > { %v8869_v29 = vld [vmem:[#allocation6 + $0xe0] sm:$0xff]  ;;  %v8871_v7 = vld [vmem:[#allocation6 + $0xf8] sm:$0xff]  ;;  %v17579_v23 = vpack.c.bf16 %v8918_v4, %v8917_v35  ;;  %v17583_v60 = vpack.c.bf16 %v8920_v63, %v8919_v11  ;;  %v8921_v25 = vld [vmem:[#allocation6 + $0x109] sm:$0xff] }
0x1251   : > { %v17581_v42 = vpack.c.bf16 %v8869_v29, %v8868_v34  ;;  %v17587_v43 = vpack.c.bf16 %v8871_v7, %v8870_v16  ;;  %v8922_v39 = vld [vmem:[#allocation6 + $0x111] sm:$0xff]  ;;  %v8872_v3 = vld [vmem:[#allocation6 + $0x108] sm:$0xff]  ;;  %v8874_v45 = vld [vmem:[#allocation6 + $0x120] sm:$0xff]  ;;  %v10061_v7 = vsel %vm8997_vm11, %v17516_v54, 0 }
0x1252   : > { %v8873_v18 = vld [vmem:[#allocation6 + $0x110] sm:$0xff]  ;;  %v8923_v49 = vld [vmem:[#allocation6 + $0x121] sm:$0xff]  ;;  %v17595_v2 = vpack.c.bf16 %v8922_v39, %v8921_v25  ;;  %v8925_v21 = vld [vmem:[#allocation6 + $0x139] sm:$0xff]  ;;  %v10355_v25 = vsel %vm8997_vm11, %v17523_v9, 0 }
0x1253   : > { %v8924_v12 = vld [vmem:[#allocation6 + $0x129] sm:$0xff]  ;;  %v17597_v52 = vpack.c.bf16 %v8873_v18, %v8872_v3  ;;  %v8926_v53 = vld [vmem:[#allocation6 + $0x141] sm:$0xff]  ;;  %v8876_v13 = vld [vmem:[#allocation6 + $0x138] sm:$0xff] }
0x1254   : > { %14146 = vmatmul.mubr.msk.bf16.gmra.mxu0 %vm8461_vm10, %v17547_v26  ;;  %v8875_v40 = vld [vmem:[#allocation6 + $0x128] sm:$0xff]  ;;  %v17599_v0 = vpack.c.bf16 %v8924_v12, %v8923_v49  ;;  %v8877_v57 = vld [vmem:[#allocation6 + $0x140] sm:$0xff]  ;;  %v8927_v56 = vld [vmem:[#allocation6 + $0x151] sm:$0xff]  ;;  %v17611_v15 = vpack.c.bf16 %v8926_v53, %v8925_v21 }
0x1255   : > { %14180 = vmatmul.mubr.msk.bf16.gmra.mxu1 %vm8461_vm10, %v17549_v44  ;;  %14149 = vmatprep.mubr.msk.bf16.mxu0 %vm8461_vm10, %v17551_v33  ;;  %v17603_v27 = vpack.c.bf16 %v8875_v40, %v8874_v45  ;;  %v8928_v62 = vld [vmem:[#allocation6 + $0x159] sm:$0xff]  ;;  %v8878_v6 = vld [vmem:[#allocation6 + $0x150] sm:$0xff]  ;;  %v17613_v24 = vpack.c.bf16 %v8877_v57, %v8876_v13  ;;  %v9374_v55 = vld [vmem:[#allocation6 + $0x2] sm:$0xff] }
0x1256   : > { %14183 = vmatprep.mubr.msk.bf16.mxu1 %vm8461_vm10, %v17555_v38  ;;  %v8879_v8 = vld [vmem:[#allocation6 + $0x158] sm:$0xff]  ;;  %v17615_v59 = vpack.c.bf16 %v8928_v62, %v8927_v56  ;;  %v9375_v51 = vld [vmem:[#allocation6 + $0xa] sm:$0xff]  ;;  %v9377_v34 = vld [vmem:[#allocation6 + $0x22] sm:$0xff] }
0x1257   : > { %v17619_v41 = vpack.c.bf16 %v8879_v8, %v8878_v6  ;;  %v8929_v61 = vld [vmem:[#allocation6 + $0x169] sm:$0xff]  ;;  %v8930_v1 = vld [vmem:[#allocation6 + $0x171] sm:$0xff]  ;;  %v9406_v46 = vpack.c.bf16 %v9375_v51, %v9374_v55  ;;  %v9376_v4 = vld [vmem:[#allocation6 + $0x1a] sm:$0xff] }
0x1258   : > { %v8880_v22 = vld [vmem:[#allocation6 + $0x168] sm:$0xff]  ;;  %v8881_v19 = vld [vmem:[#allocation6 + $0x170] sm:$0xff]  ;;  %v17627_v31 = vpack.c.bf16 %v8930_v1, %v8929_v61  ;;  %v9379_v11 = vld [vmem:[#allocation6 + $0x3a] sm:$0xff]  ;;  %v17638_v63 = vpack.c.bf16 %v9377_v34, %v9376_v4 }
0x1259   : > { %v17629_v35 = vpack.c.bf16 %v8881_v19, %v8880_v22  ;;  %v9378_v29 = vld [vmem:[#allocation6 + $0x32] sm:$0xff]  ;;  %v9380_v54 = vld [vmem:[#allocation6 + $0x4a] sm:$0xff]  ;;  %v9382_v9 = vld [vmem:[#allocation6 + $0x62] sm:$0xff] }
0x125a   : > { %v17640_v16 = vpack.c.bf16 %v9379_v11, %v9378_v29  ;;  %v17649_v39 = vld [vmem:[%s19174_s4 + $0x18] sm:$0xf]  ;;  %v9383_v18 = vld [vmem:[#allocation6 + $0x6a] sm:$0xff]  ;;  %v9385_v40 = vld [vmem:[#allocation6 + $0x82] sm:$0xff] }
0x125b   : > { %v9381_v3 = vld [vmem:[#allocation6 + $0x52] sm:$0xff]  ;;  %v17666_v12 = vpack.c.bf16 %v9383_v18, %v9382_v9  ;;  %v9384_v45 = vld [vmem:[#allocation6 + $0x7a] sm:$0xff]  ;;  %v9388_v56 = vld [vmem:[#allocation6 + $0xaa] sm:$0xff] }
0x125c   : > { %14150 = vmatmul.mubr.msk.bf16.gmra.mxu0 %vm8461_vm10, %v17563_v48  ;;  %v17664_v49 = vpack.c.bf16 %v9381_v3, %v9380_v54  ;;  %v9386_v21 = vld [vmem:[#allocation6 + $0x92] sm:$0xff]  ;;  %v9387_v53 = vld [vmem:[#allocation6 + $0x9a] sm:$0xff]  ;;  %v17676_v13 = vpack.c.bf16 %v9385_v40, %v9384_v45  ;;  %v9390_v6 = vld [vmem:[#allocation6 + $0xc2] sm:$0xff] }
0x125d   : > { %14184 = vmatmul.mubr.msk.bf16.gmra.mxu1 %vm8461_vm10, %v17565_v36  ;;  %14153 = vmatprep.mubr.msk.bf16.mxu0 %vm8461_vm10, %v17567_v10  ;;  %v17678_v57 = vpack.c.bf16 %v9387_v53, %v9386_v21  ;;  %v9389_v62 = vld [vmem:[#allocation6 + $0xb2] sm:$0xff]  ;;  %v9391_v8 = vld [vmem:[#allocation6 + $0xca] sm:$0xff]  ;;  %v9392_v61 = vld [vmem:[#allocation6 + $0xda] sm:$0xff] }
0x125e   : > { %14187 = vmatprep.mubr.msk.bf16.mxu1 %vm8461_vm10, %v17571_v32  ;;  %v17688_v55 = vpack.c.bf16 %v9389_v62, %v9388_v56  ;;  %v17690_v51 = vpack.c.bf16 %v9391_v8, %v9390_v6  ;;  %v9393_v1 = vld [vmem:[#allocation6 + $0xe2] sm:$0xff]  ;;  %v9394_v22 = vld [vmem:[#allocation6 + $0xf2] sm:$0xff]  ;;  %v9395_v19 = vld [vmem:[#allocation6 + $0xfa] sm:$0xff] }
0x125f   : > { %v17702_v4 = vpack.c.bf16 %v9395_v19, %v9394_v22  ;;  %v9396_v34 = vld [vmem:[#allocation6 + $0x10a] sm:$0xff]  ;;  %v9397_v29 = vld [vmem:[#allocation6 + $0x112] sm:$0xff]  ;;  %v9398_v11 = vld [vmem:[#allocation6 + $0x122] sm:$0xff] }
0x1260   : > { %v9400_v3 = vld [vmem:[#allocation6 + $0x13a] sm:$0xff]  ;;  %v9401_v9 = vld [vmem:[#allocation6 + $0x142] sm:$0xff]  ;;  %v9402_v18 = vld [vmem:[#allocation6 + $0x152] sm:$0xff] }
0x1261   : > { %v9403_v45 = vld [vmem:[#allocation6 + $0x15a] sm:$0xff]  ;;  %v9419_v40 = vpack.c.bf16 %v9401_v9, %v9400_v3  ;;  %v9404_v53 = vld [vmem:[#allocation6 + $0x16a] sm:$0xff]  ;;  %v9405_v56 = vld [vmem:[#allocation6 + $0x172] sm:$0xff] }
0x1262   : > { %v9420_v21 = vpack.c.bf16 %v9403_v45, %v9402_v18  ;;  %v9698_v62 = vld [vmem:[#allocation6 + $0x180] sm:$0xff]  ;;  %v9699_v6 = vld [vmem:[#allocation6 + $0x188] sm:$0xff]  ;;  %v9421_v8 = vpack.c.bf16 %v9405_v56, %v9404_v53 }
0x1263   : > { %v12891_v19 = vld [vmem:[%s19174_s4 + $0x20] sm:$0xf] }
0x1264   : > { %14154 = vmatmul.mubr.msk.bf16.gmra.mxu0 %vm8461_vm10, %v17579_v23 }
0x1265   : > { %14188 = vmatmul.mubr.msk.bf16.gmra.mxu1 %vm8461_vm10, %v17581_v42  ;;  %14157 = vmatprep.mubr.msk.bf16.mxu0 %vm8461_vm10, %v17583_v60 }
0x1266   : > { %14191 = vmatprep.mubr.msk.bf16.mxu1 %vm8461_vm10, %v17587_v43 }
0x126c   : > { %14158 = vmatmul.mubr.msk.bf16.gmra.mxu0 %vm8461_vm10, %v17595_v2 }
0x126d   : > { %14192 = vmatmul.mubr.msk.bf16.gmra.mxu1 %vm8461_vm10, %v17597_v52  ;;  %14161 = vmatprep.mubr.msk.bf16.mxu0 %vm8461_vm10, %v17599_v0 }
0x126e   : > { %14195 = vmatprep.mubr.msk.bf16.mxu1 %vm8461_vm10, %v17603_v27 }
0x1274   : > { %14162 = vmatmul.mubr.msk.bf16.gmra.mxu0 %vm8461_vm10, %v17611_v15 }
0x1275   : > { %14196 = vmatmul.mubr.msk.bf16.gmra.mxu1 %vm8461_vm10, %v17613_v24  ;;  %14165 = vmatprep.mubr.msk.bf16.mxu0 %vm8461_vm10, %v17615_v59 }
0x1276   : > { %14199 = vmatprep.mubr.msk.bf16.mxu1 %vm8461_vm10, %v17619_v41 }
0x127c   : > { %14166 = vmatmul.mubr.msk.bf16.gmra.mxu0 %vm8461_vm10, %v17627_v31 }
0x127d   : > { %14200 = vmatmul.mubr.msk.bf16.gmra.mxu1 %vm8461_vm10, %v17629_v35  ;;  %14205 = vmatprep.mubr.msk.bf16.mxu0 %vm8461_vm10, %v9406_v46  ;;  %v17700_v46 = vpack.c.bf16 %v9393_v1, %v9392_v61  ;;  %v17730_v61 = vpack.c.bf16 %v9699_v6, %v9698_v62  ;;  %v10650_v1 = vsel %vm8997_vm11, %v17649_v39, 0 }
0x127e   : > { %14239 = vmatprep.mubr.msk.bf16.mxu1 %vm8461_vm10, %v17503_v20  ;;  %v17656_v20 = vld [vmem:[%s19174_s4 + $0x1c] sm:$0xf] }
0x127f   : > { %v10944_v22 = vsel %vm8997_vm11, %v17656_v20, 0 }
0x1284   : > { %14206 = vmatmul.mubr.msk.bf16.vlgmr.msra.gmra.mxu0 %vm8461_vm10, %v17638_v63 }
0x1285   : > { %14240 = vmatmul.mubr.msk.bf16.vlgmr.msra.gmra.mxu1 %vm8461_vm10, %v17511_v37  ;;  %14209 = vmatprep.mubr.msk.bf16.mxu0 %vm8461_vm10, %v17640_v16 }
0x1286   : > { %14243 = vmatprep.mubr.msk.bf16.mxu1 %vm8461_vm10, %v17533_v28  ;;  %14272 = vmatpush3.bf16.msra.mxu0 %v10061_v7  ;;  %v9399_v7 = vld [vmem:[#allocation6 + $0x12a] sm:$0xff] }
0x1287   : > { %14306 = vmatpush3.bf16.msra.mxu1 %v10355_v25  ;;  %14449 = vmatprep.subr.msk.bf16.mxu0 %vm8997_vm11, %v17649_v39  ;;  %v17712_v25 = vpack.c.bf16 %v9397_v29, %v9396_v34  ;;  %v17714_v54 = vpack.c.bf16 %v9399_v7, %v9398_v11  ;;  %v10286_v39 = vld [vmem:[#allocation6 + $0x182] sm:$0xff]  ;;  %v11238_v11 = vsel %vm8997_vm11, %v12891_v19, 0 }
0x1288   : > { %14450 = vmatprep.subr.msk.bf16.mxu1 %vm8997_vm11, %v17656_v20  ;;  %v10287_v20 = vld [vmem:[#allocation6 + $0x18a] sm:$0xff] }
0x1289   : > { %v17800_v29 = vpack.c.bf16 %v10287_v20, %v10286_v39 }
0x128c   : > { %14210 = vmatmul.mubr.msk.bf16.gmra.mxu0 %vm8461_vm10, %v17664_v49 }
0x128d   : > { %14244 = vmatmul.mubr.msk.bf16.gmra.mxu1 %vm8461_vm10, %v17539_v50  ;;  %14213 = vmatprep.mubr.msk.bf16.mxu0 %vm8461_vm10, %v17666_v12 }
0x128e   : > { %14247 = vmatprep.mubr.msk.bf16.mxu1 %vm8461_vm10, %v17549_v44 }
0x1294   : > { %14214 = vmatmul.mubr.msk.bf16.gmra.mxu0 %vm8461_vm10, %v17676_v13 }
0x1295   : > { %14248 = vmatmul.mubr.msk.bf16.gmra.mxu1 %vm8461_vm10, %v17555_v38  ;;  %14217 = vmatprep.mubr.msk.bf16.mxu0 %vm8461_vm10, %v17678_v57 }
0x1296   : > { %14251 = vmatprep.mubr.msk.bf16.mxu1 %vm8461_vm10, %v17565_v36 }
0x129c   : > { %14218 = vmatmul.mubr.msk.bf16.gmra.mxu0 %vm8461_vm10, %v17688_v55 }
0x129d   : > { %14252 = vmatmul.mubr.msk.bf16.gmra.mxu1 %vm8461_vm10, %v17571_v32  ;;  %14221 = vmatprep.mubr.msk.bf16.mxu0 %vm8461_vm10, %v17690_v51 }
0x129e   : > { %14255 = vmatprep.mubr.msk.bf16.mxu1 %vm8461_vm10, %v17581_v42 }
0x12a4   : > { %14222 = vmatmul.mubr.msk.bf16.gmra.mxu0 %vm8461_vm10, %v17700_v46 }
0x12a5   : > { %14256 = vmatmul.mubr.msk.bf16.gmra.mxu1 %vm8461_vm10, %v17587_v43  ;;  %14225 = vmatprep.mubr.msk.bf16.mxu0 %vm8461_vm10, %v17702_v4 }
0x12a6   : > { %14259 = vmatprep.mubr.msk.bf16.mxu1 %vm8461_vm10, %v17597_v52 }
0x12ac   : > { %14226 = vmatmul.mubr.msk.bf16.gmra.mxu0 %vm8461_vm10, %v17712_v25 }
0x12ad   : > { %14260 = vmatmul.mubr.msk.bf16.gmra.mxu1 %vm8461_vm10, %v17603_v27  ;;  %14229 = vmatprep.mubr.msk.bf16.mxu0 %vm8461_vm10, %v17714_v54 }
0x12ae   : > { %14263 = vmatprep.mubr.msk.bf16.mxu1 %vm8461_vm10, %v17613_v24 }
0x12b4   : > { %14230 = vmatmul.mubr.msk.bf16.gmra.mxu0 %vm8461_vm10, %v9419_v40 }
0x12b5   : > { %14264 = vmatmul.mubr.msk.bf16.gmra.mxu1 %vm8461_vm10, %v17619_v41  ;;  %14233 = vmatprep.mubr.msk.bf16.mxu0 %vm8461_vm10, %v9420_v21 }
0x12b6   : > { %14267 = vmatprep.mubr.msk.bf16.mxu1 %vm8461_vm10, %v17629_v35 }
0x12bc   : > { %14234 = vmatmul.mubr.msk.bf16.gmra.mxu0 %vm8461_vm10, %v9421_v8 }
0x12bd   : > { %14268 = vmatmul.mubr.msk.bf16.gmra.mxu1 %vm8461_vm10, %v17730_v61  ;;  %14273 = vmatprep.mubr.msk.bf16.mxu0 %vm8461_vm10, %v17501_v47  ;;  %v9992_v47 = vld [vmem:[#allocation6 + $0x181] sm:$0xff] }
0x12be   : > { %14307 = vmatprep.mubr.msk.bf16.mxu1 %vm8461_vm10, %v17638_v63  ;;  %v9993_v63 = vld [vmem:[#allocation6 + $0x189] sm:$0xff] }
0x12bf   : > { %v17798_v34 = vpack.c.bf16 %v9993_v63, %v9992_v47 }
0x12c4   : > { %14274 = vmatmul.mubr.msk.bf16.vlgmr.msra.gmra.mxu0 %vm8461_vm10, %v17505_v30 }
0x12c5   : > { %14308 = vmatmul.mubr.msk.bf16.vlgmr.msra.gmra.mxu1 %vm8461_vm10, %v17640_v16  ;;  %14277 = vmatprep.mubr.msk.bf16.mxu0 %vm8461_vm10, %v17531_v14 }
0x12c6   : > { %14311 = vmatprep.mubr.msk.bf16.mxu1 %vm8461_vm10, %v17664_v49  ;;  %14340 = vmatpush3.bf16.msra.mxu0 %v10650_v1 }
0x12c7   : > { %14374 = vmatpush3.bf16.msra.mxu1 %v10944_v22  ;;  %14451 = vmatprep.subr.msk.bf16.mxu0 %vm8997_vm11, %v12891_v19 }
0x12cc   : > { %14278 = vmatmul.mubr.msk.bf16.gmra.mxu0 %vm8461_vm10, %v17535_v17 }
0x12cd   : > { %14312 = vmatmul.mubr.msk.bf16.gmra.mxu1 %vm8461_vm10, %v17666_v12  ;;  %14281 = vmatprep.mubr.msk.bf16.mxu0 %vm8461_vm10, %v17547_v26 }
0x12ce   : > { %14315 = vmatprep.mubr.msk.bf16.mxu1 %vm8461_vm10, %v17676_v13 }
0x12d4   : > { %14282 = vmatmul.mubr.msk.bf16.gmra.mxu0 %vm8461_vm10, %v17551_v33 }
0x12d5   : > { %14316 = vmatmul.mubr.msk.bf16.gmra.mxu1 %vm8461_vm10, %v17678_v57  ;;  %14285 = vmatprep.mubr.msk.bf16.mxu0 %vm8461_vm10, %v17563_v48 }
0x12d6   : > { %14319 = vmatprep.mubr.msk.bf16.mxu1 %vm8461_vm10, %v17688_v55 }
0x12dc   : > { %14286 = vmatmul.mubr.msk.bf16.gmra.mxu0 %vm8461_vm10, %v17567_v10 }
0x12dd   : > { %14320 = vmatmul.mubr.msk.bf16.gmra.mxu1 %vm8461_vm10, %v17690_v51  ;;  %14289 = vmatprep.mubr.msk.bf16.mxu0 %vm8461_vm10, %v17579_v23 }
0x12de   : > { %14323 = vmatprep.mubr.msk.bf16.mxu1 %vm8461_vm10, %v17700_v46 }
0x12e4   : > { %14290 = vmatmul.mubr.msk.bf16.gmra.mxu0 %vm8461_vm10, %v17583_v60 }
0x12e5   : > { %14324 = vmatmul.mubr.msk.bf16.gmra.mxu1 %vm8461_vm10, %v17702_v4  ;;  %14293 = vmatprep.mubr.msk.bf16.mxu0 %vm8461_vm10, %v17595_v2 }
0x12e6   : > { %14327 = vmatprep.mubr.msk.bf16.mxu1 %vm8461_vm10, %v17712_v25 }
0x12ec   : > { %14294 = vmatmul.mubr.msk.bf16.gmra.mxu0 %vm8461_vm10, %v17599_v0 }
0x12ed   : > { %14328 = vmatmul.mubr.msk.bf16.gmra.mxu1 %vm8461_vm10, %v17714_v54  ;;  %14297 = vmatprep.mubr.msk.bf16.mxu0 %vm8461_vm10, %v17611_v15 }
0x12ee   : > { %14331 = vmatprep.mubr.msk.bf16.mxu1 %vm8461_vm10, %v9419_v40 }
0x12f4   : > { %14298 = vmatmul.mubr.msk.bf16.gmra.mxu0 %vm8461_vm10, %v17615_v59 }
0x12f5   : > { %14332 = vmatmul.mubr.msk.bf16.gmra.mxu1 %vm8461_vm10, %v9420_v21  ;;  %14301 = vmatprep.mubr.msk.bf16.mxu0 %vm8461_vm10, %v17627_v31 }
0x12f6   : > { %14335 = vmatprep.mubr.msk.bf16.mxu1 %vm8461_vm10, %v9421_v8 }
0x12fc   : > { %14302 = vmatmul.mubr.msk.bf16.gmra.mxu0 %vm8461_vm10, %v17798_v34 }
0x12fd   : > { %14336 = vmatmul.mubr.msk.bf16.gmra.mxu1 %vm8461_vm10, %v17800_v29  ;;  %14341 = vmatprep.mubr.msk.bf16.mxu0 %vm8461_vm10, %v17511_v37 }
0x12fe   : > { %14375 = vmatprep.mubr.msk.bf16.mxu1 %vm8461_vm10, %v17505_v30 }
0x1304   : > { %v14139_v7 = vpop.f32.mrf.mxu0  ;;  %14342 = vmatmul.mubr.msk.bf16.vlgmr.msra.gmra.mxu0 %vm8461_vm10, %v17533_v28 }
0x1305   : > { %v14173_v3 = vpop.f32.mrf.mxu1  ;;  %14376 = vmatmul.mubr.msk.bf16.vlgmr.msra.gmra.mxu1 %vm8461_vm10, %v17531_v14  ;;  %14345 = vmatprep.mubr.msk.bf16.mxu0 %vm8461_vm10, %v17539_v50 }
0x1306   : > { %v17817_v9 = vadd.f32 %v14173_v3, %v14139_v7  ;;  %14379 = vmatprep.mubr.msk.bf16.mxu1 %vm8461_vm10, %v17535_v17  ;;  %v9035_v37 = vpop.f32.mrf.mxu0  ;;  %14408 = vmatpush3.bf16.msra.mxu0 %v11238_v11 }
0x1307   : > { %v9247_v30 = vpop.f32.mrf.mxu1 }
0x1308   : > { %v17821_v18 = vadd.f32 %v9247_v30, %v9035_v37  ;;  %v14140_v45 = vpop.f32.mrf.mxu0 }
0x1309   : > { %v14174_v40 = vpop.f32.mrf.mxu1 }
0x130a   : > { %v17823_v28 = vadd.f32 %v14174_v40, %v14140_v45  ;;  %v9038_v21 = vpop.f32.mrf.mxu0 }
0x130b   : > { %v9250_v53 = vpop.f32.mrf.mxu1 }
0x130c   : > { %v17825_v14 = vadd.f32 %v9250_v53, %v9038_v21  ;;  %v14143_v56 = vpop.f32.mrf.mxu0  ;;  %14346 = vmatmul.mubr.msk.bf16.gmra.mxu0 %vm8461_vm10, %v17549_v44 }
0x130d   : > { %v14177_v50 = vpop.f32.mrf.mxu1  ;;  %14380 = vmatmul.mubr.msk.bf16.gmra.mxu1 %vm8461_vm10, %v17547_v26  ;;  %14349 = vmatprep.mubr.msk.bf16.mxu0 %vm8461_vm10, %v17555_v38 }
0x130e   : > { %v17833_v17 = vadd.f32 %v14177_v50, %v14143_v56  ;;  %14383 = vmatprep.mubr.msk.bf16.mxu1 %vm8461_vm10, %v17551_v33  ;;  %v9051_v62 = vpop.f32.mrf.mxu0 }
0x130f   : > { %v9263_v6 = vpop.f32.mrf.mxu1 }
0x1310   : > { %v17837_v8 = vadd.f32 %v9263_v6, %v9051_v62  ;;  %v14144_v1 = vpop.f32.mrf.mxu0 }
0x1311   : > { %v14178_v22 = vpop.f32.mrf.mxu1 }
0x1312   : > { %v17839_v19 = vadd.f32 %v14178_v22, %v14144_v1  ;;  %v9054_v44 = vpop.f32.mrf.mxu0 }
0x1313   : > { %v9266_v47 = vpop.f32.mrf.mxu1 }
0x1314   : > { %v17841_v63 = vadd.f32 %v9266_v47, %v9054_v44  ;;  %v14147_v26 = vpop.f32.mrf.mxu0  ;;  %14350 = vmatmul.mubr.msk.bf16.gmra.mxu0 %vm8461_vm10, %v17565_v36 }
0x1315   : > { %v14181_v38 = vpop.f32.mrf.mxu1  ;;  %14384 = vmatmul.mubr.msk.bf16.gmra.mxu1 %vm8461_vm10, %v17563_v48  ;;  %14353 = vmatprep.mubr.msk.bf16.mxu0 %vm8461_vm10, %v17571_v32 }
0x1316   : > { %v17849_v33 = vadd.f32 %v14181_v38, %v14147_v26  ;;  %14387 = vmatprep.mubr.msk.bf16.mxu1 %vm8461_vm10, %v17567_v10  ;;  %v9067_v39 = vpop.f32.mrf.mxu0 }
0x1317   : > { %v9279_v20 = vpop.f32.mrf.mxu1 }
0x1318   : > { %v17853_v11 = vadd.f32 %v9279_v20, %v9067_v39  ;;  %v14148_v7 = vpop.f32.mrf.mxu0 }
0x1319   : > { %v14182_v3 = vpop.f32.mrf.mxu1 }
0x131a   : > { %v17855_v37 = vadd.f32 %v14182_v3, %v14148_v7  ;;  %v9070_v36 = vpop.f32.mrf.mxu0 }
0x131b   : > { %v9282_v30 = vpop.f32.mrf.mxu1 }
0x131c   : > { %v17857_v45 = vadd.f32 %v9282_v30, %v9070_v36  ;;  %v14151_v48 = vpop.f32.mrf.mxu0  ;;  %14354 = vmatmul.mubr.msk.bf16.gmra.mxu0 %vm8461_vm10, %v17581_v42 }
0x131d   : > { %v14185_v32 = vpop.f32.mrf.mxu1  ;;  %14388 = vmatmul.mubr.msk.bf16.gmra.mxu1 %vm8461_vm10, %v17579_v23  ;;  %14357 = vmatprep.mubr.msk.bf16.mxu0 %vm8461_vm10, %v17587_v43 }
0x131e   : > { %v17865_v10 = vadd.f32 %v14185_v32, %v14151_v48  ;;  %14391 = vmatprep.mubr.msk.bf16.mxu1 %vm8461_vm10, %v17583_v60  ;;  %v9083_v40 = vpop.f32.mrf.mxu0 }
0x131f   : > { %v9295_v21 = vpop.f32.mrf.mxu1 }
0x1320   : > { %v17869_v53 = vadd.f32 %v9295_v21, %v9083_v40  ;;  %v14152_v56 = vpop.f32.mrf.mxu0 }
0x1321   : > { %v14186_v50 = vpop.f32.mrf.mxu1 }
0x1322   : > { %v17871_v62 = vadd.f32 %v14186_v50, %v14152_v56  ;;  %v9086_v42 = vpop.f32.mrf.mxu0  ;;  %v10582_v56 = vld [vmem:[#allocation6 + $0x1a0] sm:$0xff] }
0x1323   : > { %v9298_v6 = vpop.f32.mrf.mxu1 }
0x1324   : > { %v17873_v1 = vadd.f32 %v9298_v6, %v9086_v42  ;;  %v14155_v23 = vpop.f32.mrf.mxu0  ;;  %14358 = vmatmul.mubr.msk.bf16.gmra.mxu0 %vm8461_vm10, %v17597_v52  ;;  %v10875_v6 = vld [vmem:[#allocation6 + $0x199] sm:$0xff] }
0x1325   : > { %v14189_v43 = vpop.f32.mrf.mxu1  ;;  %14392 = vmatmul.mubr.msk.bf16.gmra.mxu1 %vm8461_vm10, %v17595_v2  ;;  %14361 = vmatprep.mubr.msk.bf16.mxu0 %vm8461_vm10, %v17603_v27 }
0x1326   : > { %v17881_v60 = vadd.f32 %v14189_v43, %v14155_v23  ;;  %14395 = vmatprep.mubr.msk.bf16.mxu1 %vm8461_vm10, %v17599_v0  ;;  %v9099_v22 = vpop.f32.mrf.mxu0  ;;  %v10876_v23 = vld [vmem:[#allocation6 + $0x1a1] sm:$0xff] }
0x1327   : > { %v9311_v44 = vpop.f32.mrf.mxu1 }
0x1328   : > { %v17885_v47 = vadd.f32 %v9311_v44, %v9099_v22  ;;  %v14156_v26 = vpop.f32.mrf.mxu0 }
0x1329   : > { %v14190_v38 = vpop.f32.mrf.mxu1 }
0x132a   : > { %v17887_v39 = vadd.f32 %v14190_v38, %v14156_v26  ;;  %v17889_v52 = vpop.f32.mrf.mxu0 }
0x132b   : > { %v17891_v20 = vpop.f32.mrf.mxu1 }
0x132c   : > { %v14159_v2 = vpop.f32.mrf.mxu0  ;;  %14362 = vmatmul.mubr.msk.bf16.gmra.mxu0 %vm8461_vm10, %v17613_v24 }
0x132d   : > { %v14193_v27 = vpop.f32.mrf.mxu1  ;;  %14396 = vmatmul.mubr.msk.bf16.gmra.mxu1 %vm8461_vm10, %v17611_v15  ;;  %14365 = vmatprep.mubr.msk.bf16.mxu0 %vm8461_vm10, %v17619_v41 }
0x132e   : > { %v17899_v0 = vadd.f32 %v14193_v27, %v14159_v2  ;;  %14399 = vmatprep.mubr.msk.bf16.mxu1 %vm8461_vm10, %v17615_v59  ;;  %v9115_v7 = vpop.f32.mrf.mxu0  ;;  %v10581_v59 = vld [vmem:[#allocation6 + $0x198] sm:$0xff] }
0x132f   : > { %v9327_v3 = vpop.f32.mrf.mxu1  ;;  %v10598_v44 = vpack.c.bf16 %v10582_v56, %v10581_v59 }
0x1330   : > { %v17903_v36 = vadd.f32 %v9327_v3, %v9115_v7  ;;  %v14160_v30 = vpop.f32.mrf.mxu0 }
0x1331   : > { %v14194_v48 = vpop.f32.mrf.mxu1 }
0x1332   : > { %v17905_v32 = vadd.f32 %v14194_v48, %v14160_v30  ;;  %v9118_v24 = vpop.f32.mrf.mxu0 }
0x1333   : > { %v9330_v40 = vpop.f32.mrf.mxu1 }
0x1334   : > { %v17907_v21 = vadd.f32 %v9330_v40, %v9118_v24  ;;  %v14163_v15 = vpop.f32.mrf.mxu0  ;;  %14366 = vmatmul.mubr.msk.bf16.gmra.mxu0 %vm8461_vm10, %v17629_v35 }
0x1335   : > { %v14197_v41 = vpop.f32.mrf.mxu1  ;;  %14400 = vmatmul.mubr.msk.bf16.gmra.mxu1 %vm8461_vm10, %v17627_v31  ;;  %14369 = vmatprep.mubr.msk.bf16.mxu0 %vm8461_vm10, %v17730_v61  ;;  %v10892_v31 = vpack.c.bf16 %v10876_v23, %v10875_v6 }
0x1336   : > { %v17915_v50 = vadd.f32 %v14197_v41, %v14163_v15  ;;  %14403 = vmatprep.mubr.msk.bf16.mxu1 %vm8461_vm10, %v17798_v34  ;;  %v9131_v42 = vpop.f32.mrf.mxu0 }
0x1337   : > { %v9343_v43 = vpop.f32.mrf.mxu1 }
0x1338   : > { %v17919_v22 = vadd.f32 %v9343_v43, %v9131_v42  ;;  %v14164_v35 = vpop.f32.mrf.mxu0 }
0x1339   : > { %v14198_v26 = vpop.f32.mrf.mxu1 }
0x133a   : > { %v17921_v38 = vadd.f32 %v14198_v26, %v14164_v35  ;;  %v9134_v61 = vpop.f32.mrf.mxu0 }
0x133b   : > { %v9346_v2 = vpop.f32.mrf.mxu1 }
0x133c   : > { %v17923_v27 = vadd.f32 %v9346_v2, %v9134_v61  ;;  %v14167_v7 = vpop.f32.mrf.mxu0  ;;  %14370 = vmatmul.mubr.msk.bf16.gmra.mxu0 %vm8461_vm10, %v10598_v44 }
0x133d   : > { %v14201_v34 = vpop.f32.mrf.mxu1  ;;  %14409 = vmatprep.mubr.msk.bf16.mxu0 %vm8461_vm10, %v17640_v16  ;;  %14404 = vmatmul.mubr.msk.bf16.gmra.mxu1 %vm8461_vm10, %v10892_v31 }
0x133e   : > { %v17929_v3 = vadd.f32 %v14201_v34, %v14167_v7  ;;  %v9147_v30 = vpop.f32.mrf.mxu0 }
0x133f   : > { %v9359_v48 = vpop.f32.mrf.mxu1 }
0x1340   : > { %v17931_v24 = vadd.f32 %v9359_v48, %v9147_v30  ;;  %v14168_v40 = vpop.f32.mrf.mxu0 }
0x1341   : > { %v14202_v15 = vpop.f32.mrf.mxu1 }
0x1342   : > { %v17933_v41 = vadd.f32 %v14202_v15, %v14168_v40  ;;  %v9150_v59 = vpop.f32.mrf.mxu0 }
0x1343   : > { %v9362_v56 = vpop.f32.mrf.mxu1 }
0x1344   : > { %v17935_v42 = vadd.f32 %v9362_v56, %v9150_v59  ;;  %v14207_v6 = vpop.f32.mrf.mxu0  ;;  %14410 = vmatmul.mubr.msk.bf16.vlgmr.msra.gmra.mxu0 %vm8461_vm10, %v17664_v49 }
0x1345   : > { %v9638_v16 = vadd.f32 %v14207_v6, %v17817_v9  ;;  %v14241_v23 = vpop.f32.mrf.mxu1  ;;  %14413 = vmatprep.mubr.msk.bf16.mxu0 %vm8461_vm10, %v17666_v12 }
0x1346   : > { %v9509_v43 = vpop.f32.mrf.mxu0 }
0x1347   : > { %v17942_v35 = vadd.f32 %v14241_v23, %v9638_v16  ;;  %v9636_v44 = vadd.f32 %v9509_v43, %v17821_v18  ;;  %v9803_v26 = vpop.f32.mrf.mxu1 }
0x1348   : > { %v14208_v31 = vpop.f32.mrf.mxu0 }
0x1349   : > { %v17945_v61 = vadd.f32 %v9803_v26, %v9636_v44  ;;  %v9639_v2 = vadd.f32 %v14208_v31, %v17823_v28  ;;  %v14242_v7 = vpop.f32.mrf.mxu1 }
0x134a   : > { %v9512_v34 = vpop.f32.mrf.mxu0 }
0x134b   : > { %v17948_v49 = vadd.f32 %v14242_v7, %v9639_v2  ;;  %v9637_v9 = vadd.f32 %v9512_v34, %v17825_v14  ;;  %v9806_v30 = vpop.f32.mrf.mxu1 }
0x134c   : > { %v14211_v48 = vpop.f32.mrf.mxu0  ;;  %14414 = vmatmul.mubr.msk.bf16.gmra.mxu0 %vm8461_vm10, %v17676_v13 }
0x134d   : > { %v17953_v12 = vadd.f32 %v9806_v30, %v9637_v9  ;;  %v9642_v18 = vadd.f32 %v14211_v48, %v17833_v17  ;;  %v14245_v40 = vpop.f32.mrf.mxu1  ;;  %14417 = vmatprep.mubr.msk.bf16.mxu0 %vm8461_vm10, %v17678_v57 }
0x134e   : > { %v9525_v28 = vpop.f32.mrf.mxu0 }
0x134f   : > { %v17958_v15 = vadd.f32 %v14245_v40, %v9642_v18  ;;  %v9640_v59 = vadd.f32 %v9525_v28, %v17837_v8  ;;  %v9819_v56 = vpop.f32.mrf.mxu1 }
0x1350   : > { %v14212_v14 = vpop.f32.mrf.mxu0 }
0x1351   : > { %v17961_v6 = vadd.f32 %v9819_v56, %v9640_v59  ;;  %v9643_v16 = vadd.f32 %v14212_v14, %v17839_v19  ;;  %v14246_v13 = vpop.f32.mrf.mxu1 }
0x1352   : > { %v9528_v23 = vpop.f32.mrf.mxu0 }
0x1353   : > { %v17964_v43 = vadd.f32 %v14246_v13, %v9643_v16  ;;  %v9641_v17 = vadd.f32 %v9528_v23, %v17841_v63  ;;  %v9822_v44 = vpop.f32.mrf.mxu1 }
0x1354   : > { %v14215_v26 = vpop.f32.mrf.mxu0  ;;  %14418 = vmatmul.mubr.msk.bf16.gmra.mxu0 %vm8461_vm10, %v17688_v55 }
0x1355   : > { %v17969_v57 = vadd.f32 %v9822_v44, %v9641_v17  ;;  %v9646_v8 = vadd.f32 %v14215_v26, %v17849_v33  ;;  %v14249_v31 = vpop.f32.mrf.mxu1  ;;  %14421 = vmatprep.mubr.msk.bf16.mxu0 %vm8461_vm10, %v17690_v51 }
0x1356   : > { %v9541_v19 = vpop.f32.mrf.mxu0 }
0x1357   : > { %v17974_v2 = vadd.f32 %v14249_v31, %v9646_v8  ;;  %v9644_v7 = vadd.f32 %v9541_v19, %v17853_v11  ;;  %v9835_v34 = vpop.f32.mrf.mxu1 }
0x1358   : > { %v14216_v63 = vpop.f32.mrf.mxu0 }
0x1359   : > { %v17977_v9 = vadd.f32 %v9835_v34, %v9644_v7  ;;  %v9647_v30 = vadd.f32 %v14216_v63, %v17855_v37  ;;  %v14250_v55 = vpop.f32.mrf.mxu1  ;;  %v11162_v63 = vld [vmem:[#allocation6 + $0x142] sm:$0xff] }
0x135a   : > { %v9544_v48 = vpop.f32.mrf.mxu0 }
0x135b   : > { %v17980_v18 = vadd.f32 %v14250_v55, %v9647_v30  ;;  %v9645_v33 = vadd.f32 %v9544_v48, %v17857_v45  ;;  %v9838_v40 = vpop.f32.mrf.mxu1  ;;  %v11163_v55 = vld [vmem:[#allocation6 + $0x152] sm:$0xff]  ;;  %v11164_v48 = vld [vmem:[#allocation6 + $0x15a] sm:$0xff] }
0x135c   : > { %v14219_v28 = vpop.f32.mrf.mxu0  ;;  %14422 = vmatmul.mubr.msk.bf16.gmra.mxu0 %vm8461_vm10, %v17700_v46 }
0x135d   : > { %v17985_v51 = vadd.f32 %v9838_v40, %v9645_v33  ;;  %v9650_v11 = vadd.f32 %v14219_v28, %v17865_v10  ;;  %v14253_v59 = vpop.f32.mrf.mxu1  ;;  %14425 = vmatprep.mubr.msk.bf16.mxu0 %vm8461_vm10, %v17702_v4 }
0x135e   : > { %v9557_v37 = vpop.f32.mrf.mxu0 }
0x135f   : > { %v17990_v56 = vadd.f32 %v14253_v59, %v9650_v11  ;;  %v9648_v14 = vadd.f32 %v9557_v37, %v17869_v53  ;;  %v9851_v16 = vpop.f32.mrf.mxu1  ;;  %v11183_v37 = vpack.c.bf16 %v11164_v48, %v11163_v55  ;;  %v11170_v48 = vld [vmem:[#allocation6 + $0x1a2] sm:$0xff] }
0x1360   : > { %v14220_v45 = vpop.f32.mrf.mxu0 }
0x1361   : > { %v17993_v13 = vadd.f32 %v9851_v16, %v9648_v14  ;;  %v9651_v23 = vadd.f32 %v14220_v45, %v17871_v62  ;;  %v14254_v46 = vpop.f32.mrf.mxu1 }
0x1362   : > { %v9560_v17 = vpop.f32.mrf.mxu0 }
0x1363   : > { %v17996_v44 = vadd.f32 %v14254_v46, %v9651_v23  ;;  %v9649_v10 = vadd.f32 %v9560_v17, %v17873_v1  ;;  %v9854_v26 = vpop.f32.mrf.mxu1  ;;  %v11161_v1 = vld [vmem:[#allocation6 + $0x13a] sm:$0xff]  ;;  %v11165_v17 = vld [vmem:[#allocation6 + $0x16a] sm:$0xff] }
0x1364   : > { %v14223_v8 = vpop.f32.mrf.mxu0  ;;  %14426 = vmatmul.mubr.msk.bf16.gmra.mxu0 %vm8461_vm10, %v17712_v25  ;;  %v9315_v25 = vadd.f32 %v17891_v20, %v17889_v52  ;;  %v11182_v28 = vpack.c.bf16 %v11162_v63, %v11161_v1 }
0x1365   : > { %v18001_v4 = vadd.f32 %v9854_v26, %v9649_v10  ;;  %v9654_v53 = vadd.f32 %v14223_v8, %v17881_v60  ;;  %v14257_v31 = vpop.f32.mrf.mxu1  ;;  %14429 = vmatprep.mubr.msk.bf16.mxu0 %vm8461_vm10, %v17714_v54  ;;  %v11166_v10 = vld [vmem:[#allocation6 + $0x172] sm:$0xff] }
0x1366   : > { %v9573_v62 = vpop.f32.mrf.mxu0 }
0x1367   : > { %v18006_v19 = vadd.f32 %v14257_v31, %v9654_v53  ;;  %v9652_v7 = vadd.f32 %v9573_v62, %v17885_v47  ;;  %v9867_v34 = vpop.f32.mrf.mxu1 }
0x1368   : > { %v14224_v30 = vpop.f32.mrf.mxu0 }
0x1369   : > { %v18011_v33 = vadd.f32 %v9867_v34, %v9652_v7  ;;  %v9655_v60 = vadd.f32 %v14224_v30, %v17887_v39  ;;  %v14258_v40 = vpop.f32.mrf.mxu1  ;;  %v11184_v7 = vpack.c.bf16 %v11166_v10, %v11165_v17 }
0x136a   : > { %v9576_v54 = vpop.f32.mrf.mxu0 }
0x136b   : > { %v18014_v11 = vadd.f32 %v14258_v40, %v9655_v60  ;;  %v9653_v59 = vadd.f32 %v9576_v54, %v9315_v25  ;;  %v9870_v47 = vpop.f32.mrf.mxu1 }
0x136c   : > { %v14227_v14 = vpop.f32.mrf.mxu0  ;;  %14430 = vmatmul.mubr.msk.bf16.gmra.mxu0 %vm8461_vm10, %v11182_v28 }
0x136d   : > { %v18017_v16 = vadd.f32 %v9870_v47, %v9653_v59  ;;  %v9658_v45 = vadd.f32 %v14227_v14, %v17899_v0  ;;  %v14261_v52 = vpop.f32.mrf.mxu1  ;;  %14433 = vmatprep.mubr.msk.bf16.mxu0 %vm8461_vm10, %v11183_v37 }
0x136e   : > { %v9589_v20 = vpop.f32.mrf.mxu0 }
0x136f   : > { %v18021_v39 = vadd.f32 %v14261_v52, %v9658_v45  ;;  %v9656_v23 = vadd.f32 %v9589_v20, %v17903_v36  ;;  %v9883_v46 = vpop.f32.mrf.mxu1 }
0x1370   : > { %v14228_v26 = vpop.f32.mrf.mxu0 }
0x1371   : > { %v18024_v8 = vadd.f32 %v9883_v46, %v9656_v23  ;;  %v9659_v53 = vadd.f32 %v14228_v26, %v17905_v32  ;;  %v14262_v31 = vpop.f32.mrf.mxu1  ;;  %v11169_v32 = vld [vmem:[#allocation6 + $0x19a] sm:$0xff] }
0x1372   : > { %v9592_v62 = vpop.f32.mrf.mxu0  ;;  %v11186_v28 = vpack.c.bf16 %v11170_v48, %v11169_v32 }
0x1373   : > { %v18027_v0 = vadd.f32 %v14262_v31, %v9659_v53  ;;  %v9657_v34 = vadd.f32 %v9592_v62, %v17907_v21  ;;  %v9886_v1 = vpop.f32.mrf.mxu1 }
0x1374   : > { %v14231_v63 = vpop.f32.mrf.mxu0  ;;  %14434 = vmatmul.mubr.msk.bf16.gmra.mxu0 %vm8461_vm10, %v11184_v7 }
0x1375   : > { %v18031_v36 = vadd.f32 %v9886_v1, %v9657_v34  ;;  %v9662_v30 = vadd.f32 %v14231_v63, %v17915_v50  ;;  %v14265_v55 = vpop.f32.mrf.mxu1  ;;  %14437 = vmatprep.mubr.msk.bf16.mxu0 %vm8461_vm10, %v17800_v29 }
0x1376   : > { %v9605_v25 = vpop.f32.mrf.mxu0 }
0x1377   : > { %v18036_v60 = vadd.f32 %v14265_v55, %v9662_v30  ;;  %v9660_v40 = vadd.f32 %v9605_v25, %v17919_v22  ;;  %v9899_v21 = vpop.f32.mrf.mxu1 }
0x1378   : > { %v14232_v54 = vpop.f32.mrf.mxu0 }
0x1379   : > { %v18039_v59 = vadd.f32 %v9899_v21, %v9660_v40  ;;  %v9663_v47 = vadd.f32 %v14232_v54, %v17921_v38  ;;  %v14266_v37 = vpop.f32.mrf.mxu1 }
0x137a   : > { %v9608_v50 = vpop.f32.mrf.mxu0 }
0x137b   : > { %v18042_v14 = vadd.f32 %v14266_v37, %v9663_v47  ;;  %v9661_v29 = vadd.f32 %v9608_v50, %v17923_v27  ;;  %v9902_v45 = vpop.f32.mrf.mxu1 }
0x137c   : > { %v14235_v52 = vpop.f32.mrf.mxu0  ;;  %14438 = vmatmul.mubr.msk.bf16.gmra.mxu0 %vm8461_vm10, %v11186_v28 }
0x137d   : > { %v18046_v20 = vadd.f32 %v9902_v45, %v9661_v29  ;;  %v9666_v22 = vadd.f32 %v14235_v52, %v17929_v3  ;;  %v14269_v23 = vpop.f32.mrf.mxu1 }
0x137e   : > { %v9621_v46 = vpop.f32.mrf.mxu0 }
0x137f   : > { %v18049_v17 = vadd.f32 %v14269_v23, %v9666_v22  ;;  %v9664_v38 = vadd.f32 %v9621_v46, %v17931_v24  ;;  %v9915_v10 = vpop.f32.mrf.mxu1 }
0x1380   : > { %v14236_v26 = vpop.f32.mrf.mxu0 }
0x1381   : > { %v18052_v53 = vadd.f32 %v9915_v10, %v9664_v38  ;;  %v9667_v27 = vadd.f32 %v14236_v26, %v17933_v41  ;;  %v14270_v31 = vpop.f32.mrf.mxu1 }
0x1382   : > { %v9624_v62 = vpop.f32.mrf.mxu0 }
0x1383   : > { %v18055_v7 = vadd.f32 %v14270_v31, %v9667_v27  ;;  %v9665_v34 = vadd.f32 %v9624_v62, %v17935_v42  ;;  %v9918_v1 = vpop.f32.mrf.mxu1 }
0x1384   : > { %v14275_v3 = vpop.f32.mrf.mxu0 }
0x1385   : > { %v18058_v63 = vadd.f32 %v9918_v1, %v9665_v34  ;;  %v10226_v30 = vadd.f32 %v14275_v3, %v17942_v35  ;;  %v14309_v55 = vpop.f32.mrf.mxu1 }
0x1386   : > { %v10097_v24 = vpop.f32.mrf.mxu0 }
0x1387   : > { %v18061_v32 = vadd.f32 %v14309_v55, %v10226_v30  ;;  %v10224_v48 = vadd.f32 %v10097_v24, %v17945_v61  ;;  %v10391_v25 = vpop.f32.mrf.mxu1 }
0x1388   : > { %v14276_v41 = vpop.f32.mrf.mxu0 }
0x1389   : > { %v18064_v40 = vadd.f32 %v10391_v25, %v10224_v48  ;;  %v10227_v21 = vadd.f32 %v14276_v41, %v17948_v49  ;;  %v14310_v54 = vpop.f32.mrf.mxu1 }
0x138a   : > { %v10100_v42 = vpop.f32.mrf.mxu0 }
0x138b   : > { %v18067_v28 = vadd.f32 %v14310_v54, %v10227_v21  ;;  %v18070_v47 = vadd.f32 %v10100_v42, %v17953_v12  ;;  %v18072_v35 = vpop.f32.mrf.mxu1 }
0x138c   : > { %v14279_v37 = vpop.f32.mrf.mxu0 }
0x138d   : > { %v10230_v50 = vadd.f32 %v14279_v37, %v17958_v15  ;;  %v14313_v29 = vpop.f32.mrf.mxu1 }
0x138e   : > { %v10113_v61 = vpop.f32.mrf.mxu0 }
0x138f   : > { %v18075_v45 = vadd.f32 %v14313_v29, %v10230_v50  ;;  %v18078_v52 = vadd.f32 %v10113_v61, %v17961_v6  ;;  %v18080_v49 = vpop.f32.mrf.mxu1 }
0x1390   : > { %v14280_v22 = vpop.f32.mrf.mxu0 }
0x1391   : > { %v10231_v23 = vadd.f32 %v14280_v22, %v17964_v43  ;;  %v14314_v46 = vpop.f32.mrf.mxu1 }
0x1392   : > { %v10116_v12 = vpop.f32.mrf.mxu0 }
0x1393   : > { %v18083_v38 = vadd.f32 %v14314_v46, %v10231_v23  ;;  %v18086_v10 = vadd.f32 %v10116_v12, %v17969_v57  ;;  %v18088_v15 = vpop.f32.mrf.mxu1 }
0x1394   : > { %v14283_v26 = vpop.f32.mrf.mxu0 }
0x1395   : > { %v10234_v27 = vadd.f32 %v14283_v26, %v17974_v2  ;;  %v14317_v31 = vpop.f32.mrf.mxu1 }
0x1396   : > { %v10129_v6 = vpop.f32.mrf.mxu0 }
0x1397   : > { %v18091_v62 = vadd.f32 %v14317_v31, %v10234_v27  ;;  %v18094_v34 = vadd.f32 %v10129_v6, %v17977_v9  ;;  %v18096_v43 = vpop.f32.mrf.mxu1 }
0x1398   : > { %v14284_v1 = vpop.f32.mrf.mxu0 }
0x1399   : > { %v10235_v3 = vadd.f32 %v14284_v1, %v17980_v18  ;;  %v14318_v30 = vpop.f32.mrf.mxu1 }
0x139a   : > { %v10132_v57 = vpop.f32.mrf.mxu0 }
0x139b   : > { %v18099_v55 = vadd.f32 %v14318_v30, %v10235_v3  ;;  %v18102_v24 = vadd.f32 %v10132_v57, %v17985_v51  ;;  %v18104_v2 = vpop.f32.mrf.mxu1 }
0x139c   : > { %v14287_v48 = vpop.f32.mrf.mxu0 }
0x139d   : > { %v10238_v25 = vadd.f32 %v14287_v48, %v17990_v56  ;;  %v14321_v41 = vpop.f32.mrf.mxu1 }
0x139e   : > { %v10145_v9 = vpop.f32.mrf.mxu0 }
0x139f   : > { %v18107_v21 = vadd.f32 %v14321_v41, %v10238_v25  ;;  %v18110_v54 = vadd.f32 %v10145_v9, %v17993_v13  ;;  %v18112_v18 = vpop.f32.mrf.mxu1 }
0x13a0   : > { %v14288_v42 = vpop.f32.mrf.mxu0 }
0x13a1   : > { %v10239_v37 = vadd.f32 %v14288_v42, %v17996_v44  ;;  %v14322_v50 = vpop.f32.mrf.mxu1 }
0x13a2   : > { %v10148_v51 = vpop.f32.mrf.mxu0 }
0x13a3   : > { %v18115_v29 = vadd.f32 %v14322_v50, %v10239_v37  ;;  %v18118_v61 = vadd.f32 %v10148_v51, %v18001_v4  ;;  %v18120_v56 = vpop.f32.mrf.mxu1 }
0x13a4   : > { %v14291_v22 = vpop.f32.mrf.mxu0 }
0x13a5   : > { %v10242_v23 = vadd.f32 %v14291_v22, %v18006_v19  ;;  %v14325_v46 = vpop.f32.mrf.mxu1 }
0x13a6   : > { %v10161_v13 = vpop.f32.mrf.mxu0 }
0x13a7   : > { %v18123_v12 = vadd.f32 %v14325_v46, %v10242_v23  ;;  %v18126_v26 = vadd.f32 %v10161_v13, %v18011_v33  ;;  %v18128_v44 = vpop.f32.mrf.mxu1 }
0x13a8   : > { %v14292_v27 = vpop.f32.mrf.mxu0 }
0x13a9   : > { %v10243_v31 = vadd.f32 %v14292_v27, %v18014_v11  ;;  %v14326_v6 = vpop.f32.mrf.mxu1 }
0x13aa   : > { %v10164_v4 = vpop.f32.mrf.mxu0 }
0x13ab   : > { %v18131_v1 = vadd.f32 %v14326_v6, %v10243_v31  ;;  %v18134_v3 = vadd.f32 %v10164_v4, %v18017_v16  ;;  %v18136_v19 = vpop.f32.mrf.mxu1 }
0x13ac   : > { %v14295_v30 = vpop.f32.mrf.mxu0 }
0x13ad   : > { %v10246_v57 = vadd.f32 %v14295_v30, %v18021_v39  ;;  %v14329_v48 = vpop.f32.mrf.mxu1 }
0x13ae   : > { %v10177_v33 = vpop.f32.mrf.mxu0 }
0x13af   : > { %v18139_v25 = vadd.f32 %v14329_v48, %v10246_v57  ;;  %v18142_v41 = vadd.f32 %v10177_v33, %v18024_v8  ;;  %v18144_v11 = vpop.f32.mrf.mxu1 }
0x13b0   : > { %v14296_v9 = vpop.f32.mrf.mxu0 }
0x13b1   : > { %v10247_v42 = vadd.f32 %v14296_v9, %v18027_v0  ;;  %v14330_v37 = vpop.f32.mrf.mxu1 }
0x13b2   : > { %v10180_v16 = vpop.f32.mrf.mxu0 }
0x13b3   : > { %v18147_v50 = vadd.f32 %v14330_v37, %v10247_v42  ;;  %v18150_v51 = vadd.f32 %v10180_v16, %v18031_v36  ;;  %v18152_v39 = vpop.f32.mrf.mxu1 }
0x13b4   : > { %v14299_v22 = vpop.f32.mrf.mxu0 }
0x13b5   : > { %v10250_v23 = vadd.f32 %v14299_v22, %v18036_v60  ;;  %v14333_v46 = vpop.f32.mrf.mxu1 }
0x13b6   : > { %v10193_v8 = vpop.f32.mrf.mxu0 }
0x13b7   : > { %v18155_v13 = vadd.f32 %v14333_v46, %v10250_v23  ;;  %v18158_v27 = vadd.f32 %v10193_v8, %v18039_v59  ;;  %v18160_v0 = vpop.f32.mrf.mxu1 }
0x13b8   : > { %v14300_v31 = vpop.f32.mrf.mxu0 }
0x13b9   : > { %v10251_v6 = vadd.f32 %v14300_v31, %v18042_v14  ;;  %v14334_v4 = vpop.f32.mrf.mxu1 }
0x13ba   : > { %v10196_v36 = vpop.f32.mrf.mxu0 }
0x13bb   : > { %v18163_v30 = vadd.f32 %v14334_v4, %v10251_v6  ;;  %v18166_v57 = vadd.f32 %v10196_v36, %v18046_v20  ;;  %v18168_v60 = vpop.f32.mrf.mxu1 }
0x13bc   : > { %v14303_v48 = vpop.f32.mrf.mxu0 }
0x13bd   : > { %v10254_v33 = vadd.f32 %v14303_v48, %v18049_v17  ;;  %v14337_v9 = vpop.f32.mrf.mxu1 }
0x13be   : > { %v10209_v59 = vpop.f32.mrf.mxu0 }
0x13bf   : > { %v18171_v42 = vadd.f32 %v14337_v9, %v10254_v33  ;;  %v18174_v37 = vadd.f32 %v10209_v59, %v18052_v53  ;;  %v18176_v14 = vpop.f32.mrf.mxu1 }
0x13c0   : > { %v14304_v16 = vpop.f32.mrf.mxu0 }
0x13c1   : > { %v10255_v22 = vadd.f32 %v14304_v16, %v18055_v7  ;;  %v14338_v23 = vpop.f32.mrf.mxu1 }
0x13c2   : > { %v10212_v20 = vpop.f32.mrf.mxu0 }
0x13c3   : > { %v18179_v46 = vadd.f32 %v14338_v23, %v10255_v22  ;;  %v18182_v8 = vadd.f32 %v10212_v20, %v18058_v63  ;;  %v18184_v17 = vpop.f32.mrf.mxu1 }
0x13c4   : > { %v14343_v31 = vpop.f32.mrf.mxu0 }
0x13c5   : > { %v18187_v6 = vadd.f32 %v14343_v31, %v18061_v32  ;;  %v18189_v53 = vpop.f32.mrf.mxu1 }
0x13c6   : > { %v10686_v4 = vpop.f32.mrf.mxu0 }
0x13c7   : > { %v18192_v36 = vadd.f32 %v10686_v4, %v18064_v40  ;;  %v18194_v7 = vpop.f32.mrf.mxu1 }
0x13c8   : > { %v14344_v48 = vpop.f32.mrf.mxu0 }
0x13c9   : > { %v18197_v33 = vadd.f32 %v14344_v48, %v18067_v28  ;;  %v18199_v63 = vpop.f32.mrf.mxu1 }
0x13ca   : > { %v18201_v9 = vpop.f32.mrf.mxu0 }
0x13cb   : > { %v18203_v59 = vpop.f32.mrf.mxu1 }
0x13cc   : > { %v14347_v32 = vpop.f32.mrf.mxu0 }
0x13cd   : > { %v18206_v16 = vadd.f32 %v14347_v32, %v18075_v45  ;;  %v18208_v22 = vpop.f32.mrf.mxu1 }
0x13ce   : > { %19178 = vst [vmem:[#allocation40_spill] sm:$0xff] %v18208_v22  ;;  %v18210_v40 = vpop.f32.mrf.mxu0 }
0x13cf   : > { %v18212_v23 = vpop.f32.mrf.mxu1 }
0x13d0   : > { %19179 = vst [vmem:[#allocation43_spill] sm:$0xff] %v18212_v23  ;;  %v14348_v20 = vpop.f32.mrf.mxu0 }
0x13d1   : > { %v18215_v28 = vadd.f32 %v14348_v20, %v18083_v38  ;;  %v18217_v31 = vpop.f32.mrf.mxu1 }
0x13d2   : > { %19181 = vst [vmem:[#allocation41_spill] sm:$0xff] %v18217_v31  ;;  %v18219_v4 = vpop.f32.mrf.mxu0 }
0x13d3   : > { %19180 = vst [vmem:[#allocation45_spill] sm:$0xff] %v18215_v28  ;;  %v18221_v48 = vpop.f32.mrf.mxu1 }
0x13d4   : > { %19182 = vst [vmem:[#allocation47_spill] sm:$0xff] %v18221_v48  ;;  %v14351_v58 = vpop.f32.mrf.mxu0 }
0x13d5   : > { %v18224_v45 = vadd.f32 %v14351_v58, %v18091_v62  ;;  %v18226_v32 = vpop.f32.mrf.mxu1 }
0x13d6   : > { %19184 = vst [vmem:[#allocation37_spill] sm:$0xff] %v18226_v32  ;;  %v18228_v5 = vpop.f32.mrf.mxu0 }
0x13d7   : > { %19183 = vst [vmem:[#allocation48_spill] sm:$0xff] %v18224_v45  ;;  %v18230_v22 = vpop.f32.mrf.mxu1 }
0x13d8   : > { %19185 = vst [vmem:[#allocation38_spill] sm:$0xff] %v18230_v22  ;;  %v14352_v23 = vpop.f32.mrf.mxu0 }
0x13d9   : > { %v18233_v38 = vadd.f32 %v14352_v23, %v18099_v55  ;;  %v18235_v20 = vpop.f32.mrf.mxu1 }
0x13da   : > { %19187 = vst [vmem:[#allocation36_spill] sm:$0xff] %v18235_v20  ;;  %v18237_v31 = vpop.f32.mrf.mxu0 }
0x13db   : > { %19186 = vst [vmem:[#allocation54_spill] sm:$0xff] %v18233_v38  ;;  %v18239_v28 = vpop.f32.mrf.mxu1 }
0x13dc   : > { %19188 = vst [vmem:[#allocation56_spill] sm:$0xff] %v18239_v28  ;;  %v14355_v48 = vpop.f32.mrf.mxu0 }
0x13dd   : > { %v18242_v58 = vadd.f32 %v14355_v48, %v18107_v21  ;;  %v18244_v62 = vpop.f32.mrf.mxu1 }
0x13de   : > { %19190 = vst [vmem:[#allocation59_spill] sm:$0xff] %v18244_v62  ;;  %v18246_v32 = vpop.f32.mrf.mxu0 }
0x13df   : > { %19189 = vst [vmem:[#allocation57_spill] sm:$0xff] %v18242_v58  ;;  %v18248_v45 = vpop.f32.mrf.mxu1 }
0x13e0   : > { %19191 = vst [vmem:[#allocation49_spill] sm:$0xff] %v18248_v45  ;;  %v14356_v22 = vpop.f32.mrf.mxu0 }
0x13e1   : > { %v18251_v55 = vadd.f32 %v14356_v22, %v18115_v29  ;;  %v18253_v23 = vpop.f32.mrf.mxu1 }
0x13e2   : > { %19193 = vst [vmem:[#allocation44_spill] sm:$0xff] %v18253_v23  ;;  %v18255_v20 = vpop.f32.mrf.mxu0 }
0x13e3   : > { %19192 = vst [vmem:[#allocation60_spill] sm:$0xff] %v18251_v55  ;;  %v18257_v38 = vpop.f32.mrf.mxu1 }
0x13e4   : > { %19194 = vst [vmem:[#allocation46_spill] sm:$0xff] %v18257_v38  ;;  %v14359_v28 = vpop.f32.mrf.mxu0 }
0x13e5   : > { %v18260_v21 = vadd.f32 %v14359_v28, %v18123_v12  ;;  %v18262_v48 = vpop.f32.mrf.mxu1 }
0x13e6   : > { %19196 = vst [vmem:[#allocation65_spill] sm:$0xff] %v18262_v48  ;;  %v18264_v62 = vpop.f32.mrf.mxu0 }
0x13e7   : > { %19195 = vst [vmem:[#allocation50_spill] sm:$0xff] %v18260_v21  ;;  %v18266_v58 = vpop.f32.mrf.mxu1 }
0x13e8   : > { %19197 = vst [vmem:[#allocation67_spill] sm:$0xff] %v18266_v58  ;;  %v14360_v45 = vpop.f32.mrf.mxu0 }
0x13e9   : > { %v18269_v29 = vadd.f32 %v14360_v45, %v18131_v1  ;;  %v18271_v22 = vpop.f32.mrf.mxu1 }
0x13ea   : > { %19199 = vst [vmem:[#allocation68_spill] sm:$0xff] %v18271_v22  ;;  %v18273_v23 = vpop.f32.mrf.mxu0 }
0x13eb   : > { %19198 = vst [vmem:[#allocation51_spill] sm:$0xff] %v18269_v29  ;;  %v18275_v55 = vpop.f32.mrf.mxu1 }
0x13ec   : > { %19200 = vst [vmem:[#allocation52_spill] sm:$0xff] %v18275_v55  ;;  %v14363_v38 = vpop.f32.mrf.mxu0 }
0x13ed   : > { %v18278_v12 = vadd.f32 %v14363_v38, %v18139_v25  ;;  %v18282_v48 = vpop.f32.mrf.mxu1 }
0x13ee   : > { %v18280_v28 = vpop.f32.mrf.mxu0  ;;  %19202 = vst [vmem:[#allocation71_spill] sm:$0xff] %v18282_v48 }
0x13ef   : > { %19201 = vst [vmem:[#allocation53_spill] sm:$0xff] %v18278_v12  ;;  %v18289_v45 = vpop.f32.mrf.mxu1 }
0x13f0   : > { %v14364_v21 = vpop.f32.mrf.mxu0 }
0x13f1   : > { %v18285_v58 = vadd.f32 %v14364_v21, %v18147_v50  ;;  %v18296_v25 = vpop.f32.mrf.mxu1 }
0x13f2   : > { %v18287_v1 = vpop.f32.mrf.mxu0 }
0x13f3   : > { %19203 = vst [vmem:[#allocation55_spill] sm:$0xff] %v18285_v58  ;;  %v18303_v50 = vpop.f32.mrf.mxu1  ;;  %v10519_v58 = vadd.f32 %v18072_v35, %v18070_v47  ;;  %v10531_v47 = vadd.f32 %v18120_v56, %v18118_v61  ;;  %v10534_v35 = vadd.f32 %v18128_v44, %v18126_v26  ;;  %v18350_v26 = vadd.f32 %v18184_v17, %v18182_v8 }
0x13f4   : > { %v14367_v22 = vpop.f32.mrf.mxu0  ;;  %19206 = vst [vmem:[#allocation62_spill] sm:$0xff] %v18303_v50  ;;  %v11109_v44 = vadd.f32 %v18189_v53, %v18187_v6  ;;  %v18375_v6 = vld [vmem:[%s19207_s0] ss:$0 sm:$0xff]  ;;  %v19213_v53 = vld [vmem:[#allocation47_spill] sm:$0xff]  ;;  %s14709_s0 = smov 16  }
0x13f5   : > { %v18292_v29 = vadd.f32 %v14367_v22, %v18155_v13  ;;  %v10522_v13 = vadd.f32 %v18080_v49, %v18078_v52  ;;  %v10535_v52 = vadd.f32 %v18136_v19, %v18134_v3  ;;  %v10814_v49 = vadd.f32 %v18201_v9, %v10519_v58 }
0x13f6   : > { %v18294_v55 = vpop.f32.mrf.mxu0  ;;  %v10829_v9 = vadd.f32 %v18264_v62, %v10534_v35  ;;  %v19222_v62 = vld [vmem:[#allocation49_spill] sm:$0xff] }
0x13f7   : > { %19204 = vst [vmem:[#allocation58_spill] sm:$0xff] %v18292_v29  ;;  %v10523_v29 = vadd.f32 %v18088_v15, %v18086_v10  ;;  %v10538_v10 = vadd.f32 %v18144_v11, %v18142_v41  ;;  %v10539_v15 = vadd.f32 %v18152_v39, %v18150_v51  ;;  %v11107_v11 = vadd.f32 %v18194_v7, %v18192_v36  ;;  %v19214_v7 = vld [vmem:[#allocation48_spill] sm:$0xff] }
0x13f8   : > { %v14368_v38 = vpop.f32.mrf.mxu0  ;;  %v11110_v51 = vadd.f32 %v18199_v63, %v18197_v33  ;;  %v11108_v39 = vadd.f32 %v18203_v59, %v10814_v49  ;;  %v19215_v33 = vld [vmem:[#allocation37_spill] sm:$0xff] }
0x13f9   : > { %v18299_v12 = vadd.f32 %v14368_v38, %v18163_v30  ;;  %v10526_v30 = vadd.f32 %v18096_v43, %v18094_v34  ;;  %v10527_v38 = vadd.f32 %v18104_v2, %v18102_v24  ;;  %v10542_v34 = vadd.f32 %v18160_v0, %v18158_v27  ;;  %v18336_v24 = vpop.f32.mrf.mxu1  ;;  %v19208_v0 = vld [vmem:[#allocation40_spill] sm:$0xff] }
0x13fa   : > { %v18301_v48 = vpop.f32.mrf.mxu0  ;;  %v10817_v43 = vadd.f32 %v18210_v40, %v10522_v13  ;;  %v10818_v61 = vadd.f32 %v18219_v4, %v10523_v29  ;;  %v18382_v63 = vadd.f32 %v19215_v33, %v19214_v7  ;;  %v19218_v4 = vld [vmem:[#allocation36_spill] sm:$0xff]  ;;  %v10830_v29 = vadd.f32 %v18273_v23, %v10535_v52  ;;  %v19220_v13 = vld [vmem:[#allocation57_spill] sm:$0xff]  ;;  %v19226_v23 = vld [vmem:[#allocation50_spill] sm:$0xff] }
0x13fb   : > { %19205 = vst [vmem:[#allocation61_spill] sm:$0xff] %v18299_v12  ;;  %v10530_v12 = vadd.f32 %v18112_v18, %v18110_v54  ;;  %v10543_v54 = vadd.f32 %v18168_v60, %v18166_v57  ;;  %v18342_v18 = vadd.f32 %v18176_v14, %v18174_v37  ;;  %v10821_v3 = vadd.f32 %v18228_v5, %v10526_v30  ;;  %v19210_v60 = vld [vmem:[#allocation43_spill] sm:$0xff]  ;;  %v19212_v37 = vld [vmem:[#allocation41_spill] sm:$0xff]  ;;  %v11076_v8 = vpop.f32.mrf.mxu1 }
0x13fc   : > { %v14371_v21 = vpop.f32.mrf.mxu0  ;;  %v10822_v19 = vadd.f32 %v18237_v31, %v10527_v38  ;;  %v11113_v57 = vadd.f32 %v19208_v0, %v18206_v16  ;;  %v18367_v5 = vadd.f32 %v19210_v60, %v10817_v43  ;;  %v18378_v36 = vadd.f32 %v19213_v53, %v10818_v61  ;;  %v19216_v16 = vld [vmem:[#allocation38_spill] sm:$0xff]  ;;  %v19221_v30 = vld [vmem:[#allocation59_spill] sm:$0xff]  ;;  %v19223_v43 = vld [vmem:[#allocation60_spill] sm:$0xff] }
0x13fd   : > { %v18310_v22 = vadd.f32 %v14371_v21, %v18171_v42  ;;  %v10825_v27 = vadd.f32 %v18246_v32, %v10530_v12  ;;  %v19211_v42 = vld [vmem:[#allocation45_spill] sm:$0xff]  ;;  %v18386_v40 = vadd.f32 %v19216_v16, %v10821_v3  ;;  %v19217_v31 = vld [vmem:[#allocation54_spill] sm:$0xff]  ;;  %v11474_v12 = vld [vmem:[%s19209_s2 + $0x10] sm:$0xff]  ;;  %v18399_v38 = vadd.f32 %v19221_v30, %v19220_v13  ;;  %v14402_v60 = vpop.f32.mrf.mxu1 }
0x13fe   : > { %v18320_v50 = vpop.f32.mrf.mxu0  ;;  %v18371_v14 = vadd.f32 %v19212_v37, %v19211_v42  ;;  %v18390_v32 = vadd.f32 %v19218_v4, %v19217_v31  ;;  %v19227_v52 = vld [vmem:[#allocation65_spill] sm:$0xff]  ;;  %v10833_v0 = vadd.f32 %v18280_v28, %v10538_v10  ;;  %v19228_v37 = vld [vmem:[#allocation67_spill] sm:$0xff]  ;;  %v19231_v16 = vld [vmem:[#allocation52_spill] sm:$0xff]  ;;  %v10834_v4 = vadd.f32 %v18287_v1, %v10539_v15 }
0x13ff   : > { %v19229_v33 = vld [vmem:[#allocation51_spill] sm:$0xff]  ;;  %v18427_v31 = vadd.f32 %v19231_v16, %v10830_v29  ;;  %v10837_v28 = vadd.f32 %v18294_v55, %v10542_v34  ;;  %v11475_v10 = vld [vmem:[%s19209_s2 + $0x18] sm:$0xff]  ;;  %v10838_v55 = vadd.f32 %v18301_v48, %v10543_v54  ;;  %v11079_v15 = vpop.f32.mrf.mxu1 }
0x1400   : > { %v14372_v2 = vpop.f32.mrf.mxu0  ;;  %v19233_v30 = vld [vmem:[#allocation71_spill] sm:$0xff] }
0x1401   : > { %v18346_v56 = vadd.f32 %v14372_v2, %v18179_v46  ;;  %v10826_v46 = vadd.f32 %v18255_v20, %v10531_v47  ;;  %v19219_v20 = vld [vmem:[#allocation56_spill] sm:$0xff]  ;;  %v18402_v47 = vadd.f32 %v19222_v62, %v10825_v27  ;;  %v11472_v27 = vld [vmem:[%s19209_s2] sm:$0xff]  ;;  %v19234_v29 = vld [vmem:[#allocation55_spill] sm:$0xff]  ;;  %v14405_v48 = vpop.f32.mrf.mxu1 }
0x1402   : > { %v18356_v41 = vpop.f32.mrf.mxu0  ;;  %v18393_v58 = vadd.f32 %v19219_v20, %v10822_v19  ;;  %v19224_v2 = vld [vmem:[#allocation44_spill] sm:$0xff]  ;;  %v18414_v19 = vadd.f32 %v19227_v52, %v19226_v23  ;;  %v18442_v1 = vadd.f32 %v18296_v25, %v19234_v29  ;;  %v19235_v23 = vld [vmem:[#allocation62_spill] sm:$0xff]  ;;  %v18456_v25 = vadd.f32 %v11076_v8, %v10837_v28 }
0x1403   : > { %v18407_v61 = vadd.f32 %v19224_v2, %v19223_v43  ;;  %v18450_v52 = vadd.f32 %v19235_v23, %v10834_v4  ;;  %v18472_v4 = vadd.f32 %v18320_v50, %v18342_v18 }
0x1404   : > { %v14411_v17 = vpop.f32.mrf.mxu0 }
0x1405   : > { %v11403_v59 = vadd.f32 %v14411_v17, %v11109_v44  ;;  %v19225_v44 = vld [vmem:[#allocation46_spill] sm:$0xff]  ;;  %v18419_v17 = vadd.f32 %v19228_v37, %v10829_v9 }
0x1406   : > { %v11274_v21 = vpop.f32.mrf.mxu0  ;;  %v18410_v3 = vadd.f32 %v19225_v44, %v10826_v46  ;;  %v11473_v44 = vld [vmem:[%s19209_s2 + $0x8] sm:$0xff] }
0x1407   : > { %v11442_v35 = vadd.f32 %v18375_v6, %v11403_v59  ;;  %v11401_v49 = vadd.f32 %v11274_v21, %v11107_v11  ;;  %v19230_v59 = vld [vmem:[#allocation68_spill] sm:$0xff] }
0x1408   : > { %v14412_v42 = vpop.f32.mrf.mxu0  ;;  %v18424_v46 = vadd.f32 %v19230_v59, %v19229_v33  ;;  %v11478_v33 = vld [vmem:[%s19209_s2 + $0x30] sm:$0xff]  ;;  %v18466_v59 = vadd.f32 %v11079_v15, %v10838_v55 }
0x1409   : > { %v11506_v11 = vadd.f32 %v11474_v12, %v11442_v35  ;;  %v11440_v53 = vadd.f32 %v18375_v6, %v11401_v49  ;;  %v11404_v7 = vadd.f32 %v14412_v42, %v11110_v51  ;;  %v19232_v51 = vld [vmem:[#allocation53_spill] sm:$0xff]  ;;  %v18438_v35 = vadd.f32 %v18289_v45, %v10833_v0  ;;  %v19236_v45 = vld [vmem:[#allocation58_spill] sm:$0xff] }
0x140a   : > { %v11277_v20 = vpop.f32.mrf.mxu0  ;;  %v18435_v62 = vadd.f32 %v19233_v30, %v19232_v51  ;;  %v18454_v0 = vadd.f32 %v18336_v24, %v19236_v45  ;;  %v19237_v42 = vld [vmem:[#allocation61_spill] sm:$0xff] }
0x140b   : > { %v11538_v9 = vmul.f32 0.2, %v11506_v11  ;;  %v11504_v21 = vadd.f32 %v11472_v27, %v11440_v53  ;;  %v11443_v12 = vadd.f32 %v18375_v6, %v11404_v7  ;;  %v11402_v13 = vadd.f32 %v11277_v20, %v11108_v39  ;;  %v11476_v20 = vld [vmem:[%s19209_s2 + $0x20] sm:$0xff] }
0x140c   : > { %v14415_v34 = vpop.f32.mrf.mxu0  ;;  %v18459_v37 = vadd.f32 %v14402_v60, %v19237_v42  ;;  %v18475_v60 = vadd.f32 %v14405_v48, %v18310_v22 }
0x140d   : > { %v18445_v49 = vmax.f32 %v11506_v11, %v11538_v9  ;;  %v11536_v43 = vmul.f32 0.2, %v11504_v21  ;;  %v11507_v39 = vadd.f32 %v11475_v10, %v11443_v12  ;;  %v11441_v2 = vadd.f32 %v18375_v6, %v11402_v13 }
0x140e   : > { %v11407_v54 = vadd.f32 %v14415_v34, %v11113_v57  ;;  %v11290_v27 = vpop.f32.mrf.mxu0  ;;  %v11479_v34 = vld [vmem:[%s19209_s2 + $0x38] sm:$0xff] }
0x140f   : > { %v11672_v11 = vmul.f32 %v18445_v49, %v18445_v49  ;;  %v18463_v53 = vmax.f32 %v11504_v21, %v11536_v43  ;;  %v11539_v7 = vmul.f32 0.2, %v11507_v39  ;;  %v11505_v24 = vadd.f32 %v11473_v44, %v11441_v2 }
0x1410   : > { %v11446_v8 = vadd.f32 %v18375_v6, %v11407_v54  ;;  %v11405_v16 = vadd.f32 %v11290_v27, %v18367_v5  ;;  %v14416_v57 = vpop.f32.mrf.mxu0  ;;  %v11603_v50 = vsel %vm8461_vm10, %v18445_v49, 0.0 }
0x1411   : > { %v11670_v28 = vmul.f32 %v18463_v53, %v18463_v53  ;;  %v18479_v10 = vmax.f32 %v11507_v39, %v11539_v7  ;;  %v11537_v9 = vmul.f32 0.2, %v11505_v24  ;;  %v11408_v12 = vadd.f32 %v14416_v57, %v18371_v14  ;;  %v11477_v14 = vld [vmem:[%s19209_s2 + $0x28] sm:$0xff] }
0x1412   : > { %v11510_v21 = vadd.f32 %v11478_v33, %v11446_v8  ;;  %v11444_v5 = vadd.f32 %v18375_v6, %v11405_v16  ;;  %v11293_v13 = vpop.f32.mrf.mxu0  ;;  %v11705_v22 = vsel %vm8461_vm10, %v11672_v11, 0.0  ;;  %v11600_v39 = vsel %vm8461_vm10, %v18463_v53, 0.0 }
0x1413   : > { %v11673_v18 = vmul.f32 %v18479_v10, %v18479_v10  ;;  %v11406_v51 = vadd.f32 %v11293_v13, %v18378_v36  ;;  %v18490_v30 = vmax.f32 %v11505_v24, %v11537_v9  ;;  %v11447_v15 = vadd.f32 %v18375_v6, %v11408_v12  ;;  %v11482_v24 = vld [vmem:[%s19209_s2 + $0x50] sm:$0xff] }
0x1414   : > { %v11542_v29 = vmul.f32 0.2, %v11510_v21  ;;  %v11508_v55 = vadd.f32 %v11476_v20, %v11444_v5  ;;  %v14419_v43 = vpop.f32.mrf.mxu0  ;;  %v11702_v2 = vsel %vm8461_vm10, %v11670_v28, 0.0  ;;  %v11605_v8 = vsel %vm8461_vm10, %v18479_v10, 0.0 }
0x1415   : > { %v11445_v44 = vadd.f32 %v18375_v6, %v11406_v51  ;;  %v11411_v23 = vadd.f32 %v14419_v43, %v18382_v63  ;;  %v11601_v36 = vsel %vm8461_vm10, %v18490_v30, 0.0  ;;  %v11671_v45 = vmul.f32 %v18490_v30, %v18490_v30 }
0x1416   : > { %v18504_v48 = vmax.f32 %v11510_v21, %v11542_v29  ;;  %v11540_v54 = vmul.f32 0.2, %v11508_v55  ;;  %v11306_v27 = vpop.f32.mrf.mxu0  ;;  %v11602_v42 = vadd.f32 %v11601_v36, %v11600_v39  ;;  %v11511_v11 = vadd.f32 %v11479_v34, %v11447_v15 }
0x1417   : > { %v11509_v7 = vadd.f32 %v11477_v14, %v11445_v44  ;;  %v11450_v33 = vadd.f32 %v18375_v6, %v11411_v23  ;;  %v11707_v63 = vsel %vm8461_vm10, %v11673_v18, 0.0  ;;  %v11703_v16 = vsel %vm8461_vm10, %v11671_v45, 0.0 }
0x1418   : > { %v18512_v57 = vmax.f32 %v11508_v55, %v11540_v54  ;;  %v14420_v28 = vpop.f32.mrf.mxu0  ;;  %v11604_v20 = vadd.f32 %v11603_v50, %v11602_v42  ;;  %v11704_v9 = vadd.f32 %v11703_v16, %v11702_v2  ;;  %v11543_v21 = vmul.f32 0.2, %v11511_v11  ;;  %v11480_v54 = vld [vmem:[%s19209_s2 + $0x40] sm:$0xff] }
0x1419   : > { %v11541_v5 = vmul.f32 0.2, %v11509_v7  ;;  %v11611_v12 = vsel %vm8461_vm10, %v18504_v48, 0.0  ;;  %v11676_v13 = vmul.f32 %v18504_v48, %v18504_v48  ;;  %v11514_v18 = vadd.f32 %v11482_v24, %v11450_v33 }
0x141a   : > { %v11674_v51 = vmul.f32 %v18512_v57, %v18512_v57  ;;  %v11309_v29 = vpop.f32.mrf.mxu0  ;;  %v11706_v15 = vadd.f32 %v11705_v22, %v11704_v9  ;;  %v11606_v55 = vadd.f32 %v11605_v8, %v11604_v20  ;;  %v18520_v34 = vmax.f32 %v11511_v11, %v11543_v21 }
0x141b   : > { %v18522_v50 = vmax.f32 %v11509_v7, %v11541_v5  ;;  %v11607_v14 = vsel %vm8461_vm10, %v18512_v57, 0.0  ;;  %v11546_v43 = vmul.f32 0.2, %v11514_v18  ;;  %v11409_v39 = vadd.f32 %v11306_v27, %v18386_v40 }
0x141c   : > { %v11412_v2 = vadd.f32 %v14420_v28, %v18390_v32  ;;  %v14423_v44 = vpop.f32.mrf.mxu0  ;;  %v11608_v23 = vadd.f32 %v11607_v14, %v11606_v55  ;;  %v11708_v36 = vadd.f32 %v11707_v63, %v11706_v15  ;;  %v11709_v45 = vsel %vm8461_vm10, %v11674_v51, 0.0  ;;  %v11483_v32 = vld [vmem:[%s19209_s2 + $0x58] sm:$0xff]  ;;  %v11481_v14 = vld [vmem:[%s19209_s2 + $0x48] sm:$0xff] }
0x141d   : > { %v11677_v22 = vmul.f32 %v18520_v34, %v18520_v34  ;;  %v11609_v42 = vsel %vm8461_vm10, %v18522_v50, 0.0  ;;  %v11675_v11 = vmul.f32 %v18522_v50, %v18522_v50  ;;  %v18536_v7 = vmax.f32 %v11514_v18, %v11546_v43 }
0x141e   : > { %v11448_v40 = vadd.f32 %v18375_v6, %v11409_v39  ;;  %v11322_v27 = vpop.f32.mrf.mxu0  ;;  %v11713_v33 = vsel %vm8461_vm10, %v11676_v13, 0.0  ;;  %v11710_v24 = vadd.f32 %v11709_v45, %v11708_v36  ;;  %v11610_v8 = vadd.f32 %v11609_v42, %v11608_v23 }
0x141f   : > { %v11451_v63 = vadd.f32 %v18375_v6, %v11412_v2  ;;  %v11613_v16 = vsel %vm8461_vm10, %v18520_v34, 0.0  ;;  %v11715_v28 = vsel %vm8461_vm10, %v11677_v22, 0.0  ;;  %v11711_v20 = vsel %vm8461_vm10, %v11675_v11, 0.0 }
0x1420   : > { %v11512_v9 = vadd.f32 %v11480_v54, %v11448_v40  ;;  %v14424_v21 = vpop.f32.mrf.mxu0  ;;  %v11612_v5 = vadd.f32 %v11611_v12, %v11610_v8  ;;  %v11712_v51 = vadd.f32 %v11711_v20, %v11710_v24  ;;  %v11410_v13 = vadd.f32 %v11309_v29, %v18393_v58  ;;  %v11486_v12 = vld [vmem:[%s19209_s2 + $0x70] sm:$0xff]  ;;  %v11484_v54 = vld [vmem:[%s19209_s2 + $0x60] sm:$0xff] }
0x1421   : > { %v11515_v18 = vadd.f32 %v11483_v32, %v11451_v63  ;;  %v11680_v15 = vmul.f32 %v18536_v7, %v18536_v7  ;;  %v11415_v43 = vadd.f32 %v14423_v44, %v18399_v38  ;;  %v11413_v39 = vadd.f32 %v11322_v27, %v18402_v47 }
0x1422   : > { %v11544_v55 = vmul.f32 0.2, %v11512_v9  ;;  %v11325_v2 = vpop.f32.mrf.mxu0  ;;  %v11714_v23 = vadd.f32 %v11713_v33, %v11712_v51  ;;  %v11614_v36 = vadd.f32 %v11613_v16, %v11612_v5  ;;  %v11449_v22 = vadd.f32 %v18375_v6, %v11410_v13 }
0x1423   : > { %v11547_v45 = vmul.f32 0.2, %v11515_v18  ;;  %v11454_v58 = vadd.f32 %v18375_v6, %v11415_v43  ;;  %v11452_v29 = vadd.f32 %v18375_v6, %v11413_v39  ;;  %v11416_v11 = vadd.f32 %v14424_v21, %v18407_v61 }
0x1424   : > { %v18555_v42 = vmax.f32 %v11512_v9, %v11544_v55  ;;  %v14427_v38 = vpop.f32.mrf.mxu0  ;;  %v11716_v44 = vadd.f32 %v11715_v28, %v11714_v23  ;;  %v11513_v40 = vadd.f32 %v11481_v14, %v11449_v22  ;;  %v11414_v32 = vadd.f32 %v11325_v2, %v18410_v3  ;;  %v11487_v9 = vld [vmem:[%s19209_s2 + $0x78] sm:$0xff] }
0x1425   : > { %v18560_v47 = vmax.f32 %v11515_v18, %v11547_v45  ;;  %v11518_v24 = vadd.f32 %v11486_v12, %v11454_v58  ;;  %v11516_v8 = vadd.f32 %v11484_v54, %v11452_v29  ;;  %v11619_v61 = vsel %vm8461_vm10, %v18536_v7, 0.0  ;;  %v11485_v18 = vld [vmem:[%s19209_s2 + $0x68] sm:$0xff] }
0x1426   : > { %v11615_v27 = vsel %vm8461_vm10, %v18555_v42, 0.0  ;;  %v11678_v33 = vmul.f32 %v18555_v42, %v18555_v42  ;;  %v11338_v63 = vpop.f32.mrf.mxu0  ;;  %v11545_v20 = vmul.f32 0.2, %v11513_v40  ;;  %v11455_v51 = vadd.f32 %v18375_v6, %v11416_v11 }
0x1427   : > { %v11616_v16 = vadd.f32 %v11615_v27, %v11614_v36  ;;  %v11681_v28 = vmul.f32 %v18560_v47, %v18560_v47  ;;  %v11550_v21 = vmul.f32 0.2, %v11518_v24  ;;  %v11548_v5 = vmul.f32 0.2, %v11516_v8 }
0x1428   : > { %v11717_v3 = vsel %vm8461_vm10, %v11678_v33, 0.0  ;;  %v14428_v13 = vpop.f32.mrf.mxu0  ;;  %v11721_v55 = vsel %vm8461_vm10, %v11680_v15, 0.0  ;;  %v18576_v43 = vmax.f32 %v11513_v40, %v11545_v20  ;;  %v11453_v39 = vadd.f32 %v18375_v6, %v11414_v32 }
0x1429   : > { %v11718_v14 = vadd.f32 %v11717_v3, %v11716_v44  ;;  %v18579_v2 = vmax.f32 %v11518_v24, %v11550_v21  ;;  %v18581_v23 = vmax.f32 %v11516_v8, %v11548_v5  ;;  %v11519_v36 = vadd.f32 %v11487_v9, %v11455_v51  ;;  %v11490_v24 = vld [vmem:[%s19209_s2 + $0x90] sm:$0xff]  ;;  %v11488_v5 = vld [vmem:[%s19209_s2 + $0x80] sm:$0xff] }
0x142a   : > { %v11419_v45 = vadd.f32 %v14427_v38, %v18414_v19  ;;  %v11341_v22 = vpop.f32.mrf.mxu0  ;;  %v11617_v12 = vsel %vm8461_vm10, %v18576_v43, 0.0  ;;  %v11679_v15 = vmul.f32 %v18576_v43, %v18576_v43  ;;  %v11517_v54 = vadd.f32 %v11485_v18, %v11453_v39 }
0x142b   : > { %v11417_v58 = vadd.f32 %v11338_v63, %v18419_v17  ;;  %v11621_v29 = vsel %vm8461_vm10, %v18560_v47, 0.0  ;;  %v11723_v11 = vsel %vm8461_vm10, %v11681_v28, 0.0  ;;  %v11618_v44 = vadd.f32 %v11617_v12, %v11616_v16 }
0x142c   : > { %v11627_v40 = vsel %vm8461_vm10, %v18579_v2, 0.0  ;;  %v14431_v19 = vpop.f32.mrf.mxu0  ;;  %v11719_v38 = vsel %vm8461_vm10, %v11679_v15, 0.0  ;;  %v11684_v32 = vmul.f32 %v18579_v2, %v18579_v2  ;;  %v11551_v27 = vmul.f32 0.2, %v11519_v36 }
0x142d   : > { %v11549_v33 = vmul.f32 0.2, %v11517_v54  ;;  %v11620_v17 = vadd.f32 %v11619_v61, %v11618_v44  ;;  %v11720_v8 = vadd.f32 %v11719_v38, %v11718_v14  ;;  %v11623_v63 = vsel %vm8461_vm10, %v18581_v23, 0.0  ;;  %v11491_v44 = vld [vmem:[%s19209_s2 + $0x98] sm:$0xff] }
0x142e   : > { %v11458_v16 = vadd.f32 %v18375_v6, %v11419_v45  ;;  %v11354_v28 = vpop.f32.mrf.mxu0  ;;  %v11682_v20 = vmul.f32 %v18581_v23, %v18581_v23  ;;  %v18603_v9 = vmax.f32 %v11519_v36, %v11551_v27  ;;  %v11456_v21 = vadd.f32 %v18375_v6, %v11417_v58 }
0x142f   : > { %v18605_v3 = vmax.f32 %v11517_v54, %v11549_v33  ;;  %v11722_v51 = vadd.f32 %v11721_v55, %v11720_v8  ;;  %v11622_v61 = vadd.f32 %v11621_v29, %v11620_v17  ;;  %v11420_v14 = vadd.f32 %v14428_v13, %v18424_v46 }
0x1430   : > { %v11522_v18 = vadd.f32 %v11490_v24, %v11458_v16  ;;  %v14432_v39 = vpop.f32.mrf.mxu0  ;;  %v11729_v45 = vsel %vm8461_vm10, %v11684_v32, 0.0  ;;  %v11685_v12 = vmul.f32 %v18603_v9, %v18603_v9  ;;  %v11520_v29 = vadd.f32 %v11488_v5, %v11456_v21 }
0x1431   : > { %v11625_v36 = vsel %vm8461_vm10, %v18605_v3, 0.0  ;;  %v11683_v15 = vmul.f32 %v18605_v3, %v18605_v3  ;;  %v11624_v54 = vadd.f32 %v11623_v63, %v11622_v61  ;;  %v11724_v58 = vadd.f32 %v11723_v11, %v11722_v51  ;;  %v11489_v63 = vld [vmem:[%s19209_s2 + $0x88] sm:$0xff] }
0x1432   : > { %v11554_v55 = vmul.f32 0.2, %v11522_v18  ;;  %v11357_v38 = vpop.f32.mrf.mxu0  ;;  %v11725_v46 = vsel %vm8461_vm10, %v11682_v20, 0.0  ;;  %v11459_v32 = vadd.f32 %v18375_v6, %v11420_v14  ;;  %v11418_v27 = vadd.f32 %v11341_v22, %v18427_v31 }
0x1433   : > { %v11727_v13 = vsel %vm8461_vm10, %v11683_v15, 0.0  ;;  %v11726_v33 = vadd.f32 %v11725_v46, %v11724_v58  ;;  %v11626_v24 = vadd.f32 %v11625_v36, %v11624_v54  ;;  %v11552_v8 = vmul.f32 0.2, %v11520_v29  ;;  %v11494_v58 = vld [vmem:[%s19209_s2 + $0xb0] sm:$0xff] }
0x1434   : > { %v18622_v17 = vmax.f32 %v11522_v18, %v11554_v55  ;;  %v14435_v11 = vpop.f32.mrf.mxu0  ;;  %v11523_v16 = vadd.f32 %v11491_v44, %v11459_v32  ;;  %v11457_v21 = vadd.f32 %v18375_v6, %v11418_v27  ;;  %v11423_v20 = vadd.f32 %v14431_v19, %v18435_v62  ;;  %v11492_v55 = vld [vmem:[%s19209_s2 + $0xa0] sm:$0xff]  ;;  %v11092_v44 = vpop.f32.mrf.mxu1 }
0x1435   : > { %v11421_v5 = vadd.f32 %v11354_v28, %v18438_v35  ;;  %v11629_v51 = vsel %vm8461_vm10, %v18603_v9, 0.0  ;;  %v11731_v31 = vsel %vm8461_vm10, %v11685_v12, 0.0  ;;  %v11628_v22 = vadd.f32 %v11627_v40, %v11626_v24 }
0x1436   : > { %v11728_v61 = vadd.f32 %v11727_v13, %v11726_v33  ;;  %v11370_v18 = vpop.f32.mrf.mxu0  ;;  %v18631_v14 = vmax.f32 %v11520_v29, %v11552_v8  ;;  %v11555_v36 = vmul.f32 0.2, %v11523_v16  ;;  %v11521_v15 = vadd.f32 %v11489_v63, %v11457_v21 }
0x1437   : > { %v11462_v54 = vadd.f32 %v18375_v6, %v11423_v20  ;;  %v11688_v35 = vmul.f32 %v18622_v17, %v18622_v17  ;;  %v11630_v19 = vadd.f32 %v11629_v51, %v11628_v22  ;;  %v11460_v28 = vadd.f32 %v18375_v6, %v11421_v5 }
0x1438   : > { %v11730_v62 = vadd.f32 %v11729_v45, %v11728_v61  ;;  %v11631_v40 = vsel %vm8461_vm10, %v18631_v14, 0.0  ;;  %v11686_v12 = vmul.f32 %v18631_v14, %v18631_v14  ;;  %v18643_v29 = vmax.f32 %v11523_v16, %v11555_v36  ;;  %v14436_v45 = vpop.f32.mrf.mxu0 }
0x1439   : > { %v11553_v46 = vmul.f32 0.2, %v11521_v15  ;;  %v11632_v13 = vadd.f32 %v11631_v40, %v11630_v19  ;;  %v11526_v27 = vadd.f32 %v11494_v58, %v11462_v54  ;;  %v11524_v33 = vadd.f32 %v11492_v55, %v11460_v28  ;;  %v11495_v55 = vld [vmem:[%s19209_s2 + $0xb8] sm:$0xff] }
0x143a   : > { %v11732_v32 = vadd.f32 %v11731_v31, %v11730_v62  ;;  %v18646_v24 = vadd.f32 %v11092_v44, %v18472_v4  ;;  %v11635_v8 = vsel %vm8461_vm10, %v18622_v17, 0.0  ;;  %v11733_v63 = vsel %vm8461_vm10, %v11686_v12, 0.0  ;;  %v11493_v44 = vld [vmem:[%s19209_s2 + $0xa8] sm:$0xff] }
0x143b   : > { %v18651_v21 = vmax.f32 %v11521_v15, %v11553_v46  ;;  %v11689_v20 = vmul.f32 %v18643_v29, %v18643_v29  ;;  %v11556_v5 = vmul.f32 0.2, %v11524_v33  ;;  %v11424_v51 = vadd.f32 %v14432_v39, %v18442_v1  ;;  %v11373_v1 = vpop.f32.mrf.mxu0 }
0x143c   : > { %v11734_v16 = vadd.f32 %v11733_v63, %v11732_v32  ;;  %v11558_v22 = vmul.f32 0.2, %v11526_v27  ;;  %v11422_v61 = vadd.f32 %v11357_v38, %v18450_v52  ;;  %v11737_v36 = vsel %vm8461_vm10, %v11688_v35, 0.0 }
0x143d   : > { %v11633_v4 = vsel %vm8461_vm10, %v18651_v21, 0.0  ;;  %v11687_v31 = vmul.f32 %v18651_v21, %v18651_v21  ;;  %v18662_v54 = vmax.f32 %v11524_v33, %v11556_v5  ;;  %v11463_v58 = vadd.f32 %v18375_v6, %v11424_v51  ;;  %v11498_v33 = vld [vmem:[%s19209_s2 + $0xd0] sm:$0xff]  ;;  %v14406_v51 = vpop.f32.mrf.mxu1 }
0x143e   : > { %v11634_v15 = vadd.f32 %v11633_v4, %v11632_v13  ;;  %v11461_v62 = vadd.f32 %v18375_v6, %v11422_v61  ;;  %v11427_v19 = vadd.f32 %v14435_v11, %v18454_v0  ;;  %v11425_v52 = vadd.f32 %v11370_v18, %v18456_v25  ;;  %v11496_v11 = vld [vmem:[%s19209_s2 + $0xc0] sm:$0xff]  ;;  %v14439_v18 = vpop.f32.mrf.mxu0 }
0x143f   : > { %v11735_v39 = vsel %vm8461_vm10, %v11687_v31, 0.0  ;;  %v11637_v38 = vsel %vm8461_vm10, %v18643_v29, 0.0  ;;  %v11739_v35 = vsel %vm8461_vm10, %v11689_v20, 0.0  ;;  %v18674_v12 = vmax.f32 %v11526_v27, %v11558_v22 }
0x1440   : > { %v11636_v28 = vadd.f32 %v11635_v8, %v11634_v15  ;;  %v11736_v40 = vadd.f32 %v11735_v39, %v11734_v16  ;;  %v11690_v46 = vmul.f32 %v18662_v54, %v18662_v54  ;;  %v11527_v13 = vadd.f32 %v11495_v55, %v11463_v58  ;;  %v11499_v55 = vld [vmem:[%s19209_s2 + $0xd8] sm:$0xff] }
0x1441   : > { %v11525_v32 = vadd.f32 %v11493_v44, %v11461_v62  ;;  %v11639_v0 = vsel %vm8461_vm10, %v18662_v54, 0.0  ;;  %v11466_v25 = vadd.f32 %v18375_v6, %v11427_v19  ;;  %v11464_v20 = vadd.f32 %v18375_v6, %v11425_v52 }
0x1442   : > { %v11738_v63 = vadd.f32 %v11737_v36, %v11736_v40  ;;  %v11638_v5 = vadd.f32 %v11637_v38, %v11636_v28  ;;  %v11741_v8 = vsel %vm8461_vm10, %v11690_v46, 0.0  ;;  %v11559_v27 = vmul.f32 0.2, %v11527_v13  ;;  %v11386_v38 = vpop.f32.mrf.mxu0 }
0x1443   : > { %v11557_v16 = vmul.f32 0.2, %v11525_v32  ;;  %v11530_v22 = vadd.f32 %v11498_v33, %v11466_v25  ;;  %v11428_v61 = vadd.f32 %v14436_v45, %v18459_v37  ;;  %v11528_v58 = vadd.f32 %v11496_v11, %v11464_v20 }
0x1444   : > { %v11640_v4 = vadd.f32 %v11639_v0, %v11638_v5  ;;  %v11740_v31 = vadd.f32 %v11739_v35, %v11738_v63  ;;  %v18686_v36 = vmax.f32 %v11527_v13, %v11559_v27  ;;  %v11426_v44 = vadd.f32 %v11373_v1, %v18466_v59  ;;  %v11497_v13 = vld [vmem:[%s19209_s2 + $0xc8] sm:$0xff]  ;;  %v14440_v0 = vpop.f32.mrf.mxu0  ;;  %v11502_v27 = vld [vmem:[%s19209_s2 + $0xf0] sm:$0xff] }
0x1445   : > { %v18688_v15 = vmax.f32 %v11525_v32, %v11557_v16  ;;  %v11692_v39 = vmul.f32 %v18674_v12, %v18674_v12  ;;  %v11467_v19 = vadd.f32 %v18375_v6, %v11428_v61  ;;  %v11431_v52 = vadd.f32 %v14439_v18, %v18475_v60  ;;  %v11095_v16 = vpop.f32.mrf.mxu1 }
0x1446   : > { %v11742_v62 = vadd.f32 %v11741_v8, %v11740_v31  ;;  %v10842_v37 = vadd.f32 %v18356_v41, %v18350_v26  ;;  %v11138_v45 = vadd.f32 %v14406_v51, %v18346_v56  ;;  %v11562_v28 = vmul.f32 0.2, %v11530_v22 }
0x1447   : > { %v11641_v35 = vsel %vm8461_vm10, %v18688_v15, 0.0  ;;  %v11691_v59 = vmul.f32 %v18688_v15, %v18688_v15  ;;  %v11560_v40 = vmul.f32 0.2, %v11528_v58  ;;  %v11531_v46 = vadd.f32 %v11499_v55, %v11467_v19 }
0x1448   : > { %v11642_v1 = vadd.f32 %v11641_v35, %v11640_v4  ;;  %v11643_v60 = vsel %vm8461_vm10, %v18674_v12, 0.0  ;;  %v11693_v26 = vmul.f32 %v18686_v36, %v18686_v36  ;;  %v11465_v41 = vadd.f32 %v18375_v6, %v11426_v44  ;;  %v11389_v35 = vpop.f32.mrf.mxu0 }
0x1449   : > { %v11743_v56 = vsel %vm8461_vm10, %v11691_v59, 0.0  ;;  %v11745_v32 = vsel %vm8461_vm10, %v11692_v39, 0.0  ;;  %v11470_v5 = vadd.f32 %v18375_v6, %v11431_v52  ;;  %v11645_v25 = vsel %vm8461_vm10, %v18686_v36, 0.0  ;;  %v11500_v39 = vld [vmem:[%s19209_s2 + $0xe0] sm:$0xff] }
0x144a   : > { %v11644_v33 = vadd.f32 %v11643_v60, %v11642_v1  ;;  %v11744_v63 = vadd.f32 %v11743_v56, %v11742_v62  ;;  %v18714_v11 = vmax.f32 %v11528_v58, %v11560_v40  ;;  %v11563_v18 = vmul.f32 0.2, %v11531_v46 }
0x144b   : > { %v11529_v8 = vadd.f32 %v11497_v13, %v11465_v41  ;;  %v18717_v51 = vmax.f32 %v11530_v22, %v11562_v28  ;;  %v11429_v31 = vadd.f32 %v11386_v38, %v18646_v24  ;;  %v11747_v61 = vsel %vm8461_vm10, %v11693_v26, 0.0 }
0x144c   : > { %v11746_v20 = vadd.f32 %v11745_v32, %v11744_v63  ;;  %v11646_v4 = vadd.f32 %v11645_v25, %v11644_v33  ;;  %v11647_v55 = vsel %vm8461_vm10, %v18714_v11, 0.0  ;;  %v11694_v44 = vmul.f32 %v18714_v11, %v18714_v11 }
0x144d   : > { %v11561_v58 = vmul.f32 0.2, %v11529_v8  ;;  %v11534_v52 = vadd.f32 %v11502_v27, %v11470_v5  ;;  %v11468_v22 = vadd.f32 %v18375_v6, %v11429_v31  ;;  %v11136_v59 = vadd.f32 %v11095_v16, %v10842_v37  ;;  %v11503_v37 = vld [vmem:[%s19209_s2 + $0xf8] sm:$0xff]  ;;  %v11501_v5 = vld [vmem:[%s19209_s2 + $0xe8] sm:$0xff] }
0x144e   : > { %v11648_v62 = vadd.f32 %v11647_v55, %v11646_v4  ;;  %v11748_v19 = vadd.f32 %v11747_v61, %v11746_v20  ;;  %v11749_v24 = vsel %vm8461_vm10, %v11694_v44, 0.0  ;;  %v18728_v38 = vmax.f32 %v11531_v46, %v11563_v18 }
0x144f   : > { %v18730_v1 = vmax.f32 %v11529_v8, %v11561_v58  ;;  %v11532_v40 = vadd.f32 %v11500_v39, %v11468_v22  ;;  %v11432_v13 = vadd.f32 %v14440_v0, %v11138_v45  ;;  %v11696_v60 = vmul.f32 %v18717_v51, %v18717_v51 }
0x1450   : > { %v11750_v28 = vadd.f32 %v11749_v24, %v11748_v19  ;;  %v11430_v41 = vadd.f32 %v11389_v35, %v11136_v59  ;;  %v11651_v46 = vsel %vm8461_vm10, %v18717_v51, 0.0  ;;  %v11566_v33 = vmul.f32 0.2, %v11534_v52 }
0x1451   : > { %v11649_v26 = vsel %vm8461_vm10, %v18730_v1, 0.0  ;;  %v11695_v56 = vmul.f32 %v18730_v1, %v18730_v1  ;;  %v11564_v63 = vmul.f32 0.2, %v11532_v40  ;;  %v11697_v45 = vmul.f32 %v18728_v38, %v18728_v38 }
0x1452   : > { %v11650_v32 = vadd.f32 %v11649_v26, %v11648_v62  ;;  %v11471_v25 = vadd.f32 %v18375_v6, %v11432_v13  ;;  %v11469_v18 = vadd.f32 %v18375_v6, %v11430_v41  ;;  %v11753_v20 = vsel %vm8461_vm10, %v11696_v60, 0.0 }
0x1453   : > { %v11751_v0 = vsel %vm8461_vm10, %v11695_v56, 0.0  ;;  %v18747_v16 = vmax.f32 %v11532_v40, %v11564_v63  ;;  %v11653_v4 = vsel %vm8461_vm10, %v18728_v38, 0.0  ;;  %v18752_v44 = vmax.f32 %v11534_v52, %v11566_v33 }
0x1454   : > { %v11652_v8 = vadd.f32 %v11651_v46, %v11650_v32  ;;  %v11752_v27 = vadd.f32 %v11751_v0, %v11750_v28  ;;  %v11535_v31 = vadd.f32 %v11503_v37, %v11471_v25  ;;  %v11533_v61 = vadd.f32 %v11501_v5, %v11469_v18 }
0x1455   : > { %v11698_v39 = vmul.f32 %v18747_v16, %v18747_v16  ;;  %v11755_v6 = vsel %vm8461_vm10, %v11697_v45, 0.0  ;;  %v11655_v62 = vsel %vm8461_vm10, %v18747_v16, 0.0  ;;  %v11700_v13 = vmul.f32 %v18752_v44, %v18752_v44 }
0x1456   : > { %v11754_v55 = vadd.f32 %v11753_v20, %v11752_v27  ;;  %v11654_v58 = vadd.f32 %v11653_v4, %v11652_v8  ;;  %v11567_v19 = vmul.f32 0.2, %v11535_v31  ;;  %v11565_v22 = vmul.f32 0.2, %v11533_v61 }
0x1457   : > { %v11757_v24 = vsel %vm8461_vm10, %v11698_v39, 0.0  ;;  %v11659_v37 = vsel %vm8461_vm10, %v18752_v44, 0.0  ;;  %v11761_v63 = vsel %vm8461_vm10, %v11700_v13, 0.0 }
0x1458   : > { %v11656_v35 = vadd.f32 %v11655_v62, %v11654_v58  ;;  %v11756_v59 = vadd.f32 %v11755_v6, %v11754_v55  ;;  %v18760_v28 = vmax.f32 %v11535_v31, %v11567_v19  ;;  %v18762_v40 = vmax.f32 %v11533_v61, %v11565_v22 }
0x145a   : > { %v11758_v52 = vadd.f32 %v11757_v24, %v11756_v59  ;;  %v11657_v60 = vsel %vm8461_vm10, %v18762_v40, 0.0  ;;  %v11699_v26 = vmul.f32 %v18762_v40, %v18762_v40  ;;  %v11701_v41 = vmul.f32 %v18760_v28, %v18760_v28 }
0x145b   : > { %v11658_v56 = vadd.f32 %v11657_v60, %v11656_v35  ;;  %v11661_v5 = vsel %vm8461_vm10, %v18760_v28, 0.0 }
0x145c   : > { %v11759_v46 = vsel %vm8461_vm10, %v11699_v26, 0.0  ;;  %v11763_v25 = vsel %vm8461_vm10, %v11701_v41, 0.0 }
0x145d   : > { %v11660_v32 = vadd.f32 %v11659_v37, %v11658_v56  ;;  %v11760_v33 = vadd.f32 %v11759_v46, %v11758_v52 }
0x145f   : > { %v11662_v45 = vadd.f32 %v11661_v5, %v11660_v32  ;;  %v11762_v0 = vadd.f32 %v11761_v63, %v11760_v33 }
0x1461   : > { %v11663_v18 = vrot.slane %v11662_v45, 4  ;;  %v11764_v8 = vadd.f32 %v11763_v25, %v11762_v0 }
0x1463   : > { %v11664_v27 = vadd.f32 %v11663_v18, %v11662_v45  ;;  %v11765_v20 = vrot.slane %v11764_v8, 4 }
0x1465   : > { %v11665_v4 = vrot.slane %v11664_v27, 2  ;;  %v11766_v31 = vadd.f32 %v11765_v20, %v11764_v8 }
0x1467   : > { %v11666_v61 = vadd.f32 %v11665_v4, %v11664_v27  ;;  %v11767_v55 = vrot.slane %v11766_v31, 2 }
0x1469   : > { %v11667_v58 = vrot.slane %v11666_v61, 1  ;;  %v11768_v39 = vadd.f32 %v11767_v55, %v11766_v31 }
0x146b   : > { %v11668_v6 = vadd.f32 %v11667_v58, %v11666_v61  ;;  %v11769_v62 = vrot.slane %v11768_v39, 1 }
0x146d   : > { %v18779_v19 = vmul.f32 0.00390625, %v11668_v6  ;;  %v11770_v22 = vadd.f32 %v11769_v62, %v11768_v39 }
0x146f   : > { %v11771_v35 = vmul.f32 0.00390625, %v11770_v22  ;;  %v11772_v59 = vmul.f32 %v18779_v19, %v18779_v19  ;;  %v11790_v24 = vsub.f32 %v18603_v9, %v18779_v19  ;;  %v11806_v52 = vsub.f32 %v18760_v28, %v18779_v19 }
0x1470   : > { %v11805_v13 = vsub.f32 %v18752_v44, %v18779_v19  ;;  %v11788_v60 = vsub.f32 %v18605_v3, %v18779_v19  ;;  %v11804_v56 = vsub.f32 %v18762_v40, %v18779_v19  ;;  %v11803_v37 = vsub.f32 %v18747_v16, %v18779_v19 }
0x1471   : > { %v11773_v26 = vsub.f32 %v11771_v35, %v11772_v59  ;;  %v11802_v41 = vsub.f32 %v18728_v38, %v18779_v19  ;;  %v11801_v9 = vsub.f32 %v18717_v51, %v18779_v19  ;;  %v11800_v44 = vsub.f32 %v18730_v1, %v18779_v19 }
0x1472   : > { %v11799_v3 = vsub.f32 %v18714_v11, %v18779_v19  ;;  %v11798_v46 = vsub.f32 %v18686_v36, %v18779_v19  ;;  %v11797_v40 = vsub.f32 %v18674_v12, %v18779_v19  ;;  %v11796_v38 = vsub.f32 %v18688_v15, %v18779_v19 }
0x1473   : > { %v11774_v28 = vmax.f32 %v11773_v26, 0.0  ;;  %v11795_v51 = vsub.f32 %v18662_v54, %v18779_v19  ;;  %v11794_v32 = vsub.f32 %v18643_v29, %v18779_v19  ;;  %v11792_v11 = vsub.f32 %v18651_v21, %v18779_v19 }
0x1474   : > { %v11791_v36 = vsub.f32 %v18631_v14, %v18779_v19  ;;  %v11789_v12 = vsub.f32 %v18579_v2, %v18779_v19  ;;  %v11787_v1 = vsub.f32 %v18581_v23, %v18779_v19  ;;  %v11786_v15 = vsub.f32 %v18560_v47, %v18779_v19 }
0x1475   : > { %v11807_v16 = vadd.f32 1e-08, %v11774_v28  ;;  %v11785_v54 = vsub.f32 %v18536_v7, %v18779_v19  ;;  %v11784_v29 = vsub.f32 %v18576_v43, %v18779_v19  ;;  %v11783_v21 = vsub.f32 %v18555_v42, %v18779_v19  ;;  %v19239_v28 = vld [vmem:[#allocation42_spill] sm:$0xff] }
0x1476   : > { %v11782_v14 = vsub.f32 %v18520_v34, %v18779_v19  ;;  %v11781_v2 = vsub.f32 %v18504_v48, %v18779_v19  ;;  %v11780_v23 = vsub.f32 %v18522_v50, %v18779_v19  ;;  %v11779_v47 = vsub.f32 %v18512_v57, %v18779_v19 }
0x1477   : > { %14648 = vrsqrt.f32 %v11807_v16  ;;  %v11778_v7 = vsub.f32 %v18479_v10, %v18779_v19  ;;  %v11777_v43 = vsub.f32 %v18445_v49, %v18779_v19  ;;  %v11793_v42 = vsub.f32 %v18622_v17, %v18779_v19 }
0x1478   : > { %v11776_v34 = vsub.f32 %v18490_v30, %v18779_v19  ;;  %v11775_v48 = vsub.f32 %v18463_v53, %v18779_v19 }
0x1484   : > { %v14649_v33 = vpop.eup %14648 }
0x1485   : > { %v11824_v50 = vmul.f32 %v14649_v33, %v11790_v24  ;;  %v11823_v63 = vmul.f32 %v14649_v33, %v11789_v12  ;;  %v11840_v5 = vmul.f32 %v14649_v33, %v11806_v52  ;;  %v11839_v57 = vmul.f32 %v14649_v33, %v11805_v13 }
0x1486   : > { %v11822_v45 = vmul.f32 %v14649_v33, %v11788_v60  ;;  %v11821_v0 = vmul.f32 %v14649_v33, %v11787_v1  ;;  %v11838_v10 = vmul.f32 %v14649_v33, %v11804_v56  ;;  %v11837_v25 = vmul.f32 %v14649_v33, %v11803_v37  ;;  %v19238_v37 = vld [vmem:[#allocation39_spill] sm:$0xff] }
0x1487   : > { %11903 = vrot.lane.b32.xlu1 %v11824_v50, %s14709_s0  ;;  %11901 = vrot.lane.b32.xlu0 %v11823_v63, %s14709_s0  ;;  %v11820_v49 = vmul.f32 %v14649_v33, %v11786_v15  ;;  %v11819_v17 = vmul.f32 %v14649_v33, %v11785_v54  ;;  %v11836_v18 = vmul.f32 %v14649_v33, %v11802_v41 }
0x1488   : > { %v11835_v30 = vmul.f32 %v14649_v33, %v11801_v9  ;;  %v11818_v8 = vmul.f32 %v14649_v33, %v11784_v29  ;;  %v11817_v27 = vmul.f32 %v14649_v33, %v11783_v21  ;;  %v11834_v53 = vmul.f32 %v14649_v33, %v11800_v44 }
0x1489   : > { %v11833_v20 = vmul.f32 %v14649_v33, %v11799_v3  ;;  %v11816_v4 = vmul.f32 %v14649_v33, %v11782_v14  ;;  %v11815_v31 = vmul.f32 %v14649_v33, %v11781_v2  ;;  %v11832_v61 = vmul.f32 %v14649_v33, %v11798_v46 }
0x148a   : > { %v11831_v55 = vmul.f32 %v14649_v33, %v11797_v40  ;;  %v11814_v58 = vmul.f32 %v14649_v33, %v11780_v23  ;;  %v11813_v39 = vmul.f32 %v14649_v33, %v11779_v47  ;;  %v11830_v6 = vmul.f32 %v14649_v33, %v11796_v38 }
0x148b   : > { %11935 = vrot.lane.b32.xlu1 %v11840_v5, %s14709_s0  ;;  %11933 = vrot.lane.b32.xlu0 %v11839_v57, %s14709_s0  ;;  %v11829_v62 = vmul.f32 %v14649_v33, %v11795_v51  ;;  %v11812_v19 = vmul.f32 %v14649_v33, %v11778_v7  ;;  %v11811_v22 = vmul.f32 %v14649_v33, %v11777_v43 }
0x148c   : > { %v11828_v35 = vmul.f32 %v14649_v33, %v11794_v32  ;;  %v11827_v59 = vmul.f32 %v14649_v33, %v11793_v42  ;;  %v11810_v24 = vmul.f32 %v14649_v33, %v11776_v34  ;;  %v11809_v52 = vmul.f32 %v14649_v33, %v11775_v48 }
0x148d   : > { %v11826_v13 = vmul.f32 %v14649_v33, %v11792_v11  ;;  %v11825_v60 = vmul.f32 %v14649_v33, %v11791_v36 }
0x148f   : > { %11899 = vrot.lane.b32.xlu1 %v11822_v45, %s14709_s0  ;;  %11897 = vrot.lane.b32.xlu0 %v11821_v0, %s14709_s0 }
0x1493   : > { %11931 = vrot.lane.b32.xlu1 %v11838_v10, %s14709_s0  ;;  %11929 = vrot.lane.b32.xlu0 %v11837_v25, %s14709_s0 }
0x1497   : > { %11895 = vrot.lane.b32.xlu1 %v11820_v49, %s14709_s0  ;;  %11893 = vrot.lane.b32.xlu0 %v11819_v17, %s14709_s0 }
0x149b   : > { %11927 = vrot.lane.b32.xlu1 %v11836_v18, %s14709_s0  ;;  %11925 = vrot.lane.b32.xlu0 %v11835_v30, %s14709_s0 }
0x149f   : > { %11891 = vrot.lane.b32.xlu1 %v11818_v8, %s14709_s0  ;;  %11889 = vrot.lane.b32.xlu0 %v11817_v27, %s14709_s0 }
0x14a3   : > { %11923 = vrot.lane.b32.xlu1 %v11834_v53, %s14709_s0  ;;  %11921 = vrot.lane.b32.xlu0 %v11833_v20, %s14709_s0 }
0x14a7   : > { %11887 = vrot.lane.b32.xlu1 %v11816_v4, %s14709_s0  ;;  %11885 = vrot.lane.b32.xlu0 %v11815_v31, %s14709_s0 }
0x14ab   : > { %11919 = vrot.lane.b32.xlu1 %v11832_v61, %s14709_s0  ;;  %11917 = vrot.lane.b32.xlu0 %v11831_v55, %s14709_s0 }
0x14af   : > { %11883 = vrot.lane.b32.xlu1 %v11814_v58, %s14709_s0  ;;  %11881 = vrot.lane.b32.xlu0 %v11813_v39, %s14709_s0 }
0x14b3   : > { %11915 = vrot.lane.b32.xlu1 %v11830_v6, %s14709_s0  ;;  %11913 = vrot.lane.b32.xlu0 %v11829_v62, %s14709_s0 }
0x14b7   : > { %11879 = vrot.lane.b32.xlu1 %v11812_v19, %s14709_s0  ;;  %11877 = vrot.lane.b32.xlu0 %v11811_v22, %s14709_s0 }
0x14bb   : > { %11911 = vrot.lane.b32.xlu1 %v11828_v35, %s14709_s0  ;;  %11909 = vrot.lane.b32.xlu0 %v11827_v59, %s14709_s0 }
0x14bf   : > { %11875 = vrot.lane.b32.xlu1 %v11810_v24, %s14709_s0  ;;  %11873 = vrot.lane.b32.xlu0 %v11809_v52, %s14709_s0 }
0x14c3   : > { %11907 = vrot.lane.b32.xlu1 %v11826_v13, %s14709_s0  ;;  %11905 = vrot.lane.b32.xlu0 %v11825_v60, %s14709_s0  ;;  %s19240_s0 = smov 112  }
0x14f9   : > { %v11904_v26 = vpop.permute.xlu1 %11903  ;;  %v11902_v56 = vpop.permute.xlu0 %11901 }
0x14fa   : > { %v11984_v41 = vmul.f32 %v11904_v26, %v19238_v37  ;;  %v11983_v9 = vmul.f32 %v11902_v56, %v19238_v37 }
0x14fc   : > { %v12016_v44 = vadd.f32 %v11984_v41, %v19239_v28  ;;  %v12015_v3 = vadd.f32 %v11983_v9, %v19239_v28 }
0x14fd   : > { %v11936_v46 = vpop.permute.xlu1 %11935  ;;  %v11934_v40 = vpop.permute.xlu0 %11933 }
0x14fe   : > { %v12000_v16 = vmul.f32 %v11936_v46, %v19238_v37  ;;  %v11999_v38 = vmul.f32 %v11934_v40, %v19238_v37  ;;  %v12041_v51 = vpack.c.bf16 %v12016_v44, %v12015_v3 }
0x1500   : > { %v12032_v32 = vadd.f32 %v12000_v16, %v19239_v28  ;;  %v12031_v11 = vadd.f32 %v11999_v38, %v19239_v28  ;;  %12086 = vrot.lane.b32.xlu0 %v12041_v51, %s19240_s0 }
0x1501   : > { %v11900_v36 = vpop.permute.xlu1 %11899  ;;  %v11898_v12 = vpop.permute.xlu0 %11897 }
0x1502   : > { %v11982_v1 = vmul.f32 %v11900_v36, %v19238_v37  ;;  %v11981_v15 = vmul.f32 %v11898_v12, %v19238_v37  ;;  %v12049_v54 = vpack.c.bf16 %v12032_v32, %v12031_v11 }
0x1504   : > { %v12014_v29 = vadd.f32 %v11982_v1, %v19239_v28  ;;  %v12013_v21 = vadd.f32 %v11981_v15, %v19239_v28  ;;  %12102 = vrot.lane.b32.xlu1 %v12049_v54, %s19240_s0 }
0x1505   : > { %v11932_v14 = vpop.permute.xlu1 %11931  ;;  %v11930_v2 = vpop.permute.xlu0 %11929 }
0x1506   : > { %v11998_v23 = vmul.f32 %v11932_v14, %v19238_v37  ;;  %v11997_v47 = vmul.f32 %v11930_v2, %v19238_v37  ;;  %v12040_v7 = vpack.c.bf16 %v12014_v29, %v12013_v21 }
0x1508   : > { %v12030_v33 = vadd.f32 %v11998_v23, %v19239_v28  ;;  %v12029_v43 = vadd.f32 %v11997_v47, %v19239_v28  ;;  %12084 = vrot.lane.b32.xlu0 %v12040_v7, %s19240_s0 }
0x1509   : > { %v11896_v42 = vpop.permute.xlu1 %11895  ;;  %v11894_v34 = vpop.permute.xlu0 %11893 }
0x150a   : > { %v11980_v48 = vmul.f32 %v11896_v42, %v19238_v37  ;;  %v11979_v50 = vmul.f32 %v11894_v34, %v19238_v37  ;;  %v12048_v63 = vpack.c.bf16 %v12030_v33, %v12029_v43 }
0x150c   : > { %v12012_v5 = vadd.f32 %v11980_v48, %v19239_v28  ;;  %v12011_v57 = vadd.f32 %v11979_v50, %v19239_v28  ;;  %12100 = vrot.lane.b32.xlu1 %v12048_v63, %s19240_s0 }
0x150d   : > { %v11928_v45 = vpop.permute.xlu1 %11927  ;;  %v11926_v0 = vpop.permute.xlu0 %11925 }
0x150e   : > { %v11996_v10 = vmul.f32 %v11928_v45, %v19238_v37  ;;  %v11995_v25 = vmul.f32 %v11926_v0, %v19238_v37  ;;  %v12039_v49 = vpack.c.bf16 %v12012_v5, %v12011_v57  ;;  %v18949_v0 = vld [vmem:[%s14929_s12] sm:$0x3] }
0x150f   : > { %13419 = vmatprep.mubr.msk.bf16.mxu1 %vm8461_vm10, %v18949_v0 }
0x1510   : > { %v12028_v17 = vadd.f32 %v11996_v10, %v19239_v28  ;;  %v12027_v18 = vadd.f32 %v11995_v25, %v19239_v28  ;;  %12082 = vrot.lane.b32.xlu0 %v12039_v49, %s19240_s0 }
0x1511   : > { %v11892_v30 = vpop.permute.xlu1 %11891  ;;  %v11890_v8 = vpop.permute.xlu0 %11889 }
0x1512   : > { %v11978_v27 = vmul.f32 %v11892_v30, %v19238_v37  ;;  %v11977_v53 = vmul.f32 %v11890_v8, %v19238_v37  ;;  %v12047_v20 = vpack.c.bf16 %v12028_v17, %v12027_v18 }
0x1514   : > { %v12010_v4 = vadd.f32 %v11978_v27, %v19239_v28  ;;  %v12009_v31 = vadd.f32 %v11977_v53, %v19239_v28  ;;  %12098 = vrot.lane.b32.xlu1 %v12047_v20, %s19240_s0 }
0x1515   : > { %v11924_v61 = vpop.permute.xlu1 %11923  ;;  %v11922_v55 = vpop.permute.xlu0 %11921 }
0x1516   : > { %v11994_v58 = vmul.f32 %v11924_v61, %v19238_v37  ;;  %v11993_v39 = vmul.f32 %v11922_v55, %v19238_v37  ;;  %v12038_v6 = vpack.c.bf16 %v12010_v4, %v12009_v31 }
0x1518   : > { %v12026_v62 = vadd.f32 %v11994_v58, %v19239_v28  ;;  %v12025_v19 = vadd.f32 %v11993_v39, %v19239_v28  ;;  %12080 = vrot.lane.b32.xlu0 %v12038_v6, %s19240_s0  ;;  %v14710_v58 = vmov 0   ;;  %v12050_v39 = vld [vmem:[%s14934_s20] sm:$0x7] }
0x1519   : > { %v11888_v22 = vpop.permute.xlu1 %11887  ;;  %v11886_v35 = vpop.permute.xlu0 %11885  ;;  %14521 = vset.pattern.permute.xlu0 %v14710_v58 }
0x151a   : > { %v11976_v59 = vmul.f32 %v11888_v22, %v19238_v37  ;;  %v11975_v24 = vmul.f32 %v11886_v35, %v19238_v37  ;;  %v12046_v52 = vpack.c.bf16 %v12026_v62, %v12025_v19 }
0x151c   : > { %v12008_v13 = vadd.f32 %v11976_v59, %v19239_v28  ;;  %v12007_v60 = vadd.f32 %v11975_v24, %v19239_v28  ;;  %12096 = vrot.lane.b32.xlu1 %v12046_v52, %s19240_s0 }
0x151d   : > { %v11920_v26 = vpop.permute.xlu1 %11919  ;;  %v11918_v56 = vpop.permute.xlu0 %11917 }
0x151e   : > { %v11992_v41 = vmul.f32 %v11920_v26, %v19238_v37  ;;  %v11991_v9 = vmul.f32 %v11918_v56, %v19238_v37  ;;  %v12037_v44 = vpack.c.bf16 %v12008_v13, %v12007_v60 }
0x1520   : > { %v12024_v3 = vadd.f32 %v11992_v41, %v19239_v28  ;;  %v12023_v46 = vadd.f32 %v11991_v9, %v19239_v28  ;;  %12078 = vrot.lane.b32.xlu0 %v12037_v44, %s19240_s0 }
0x1521   : > { %v11884_v40 = vpop.permute.xlu1 %11883  ;;  %v11882_v16 = vpop.permute.xlu0 %11881 }
0x1522   : > { %v11974_v38 = vmul.f32 %v11884_v40, %v19238_v37  ;;  %v11973_v51 = vmul.f32 %v11882_v16, %v19238_v37  ;;  %v12045_v32 = vpack.c.bf16 %v12024_v3, %v12023_v46 }
0x1524   : > { %v12006_v11 = vadd.f32 %v11974_v38, %v19239_v28  ;;  %v12005_v36 = vadd.f32 %v11973_v51, %v19239_v28  ;;  %12094 = vrot.lane.b32.xlu1 %v12045_v32, %s19240_s0 }
0x1525   : > { %v11916_v12 = vpop.permute.xlu1 %11915  ;;  %v11914_v1 = vpop.permute.xlu0 %11913 }
0x1526   : > { %v11990_v15 = vmul.f32 %v11916_v12, %v19238_v37  ;;  %v11989_v54 = vmul.f32 %v11914_v1, %v19238_v37  ;;  %v12036_v29 = vpack.c.bf16 %v12006_v11, %v12005_v36 }
0x1528   : > { %v12022_v21 = vadd.f32 %v11990_v15, %v19239_v28  ;;  %v12021_v14 = vadd.f32 %v11989_v54, %v19239_v28  ;;  %12076 = vrot.lane.b32.xlu0 %v12036_v29, %s19240_s0 }
0x1529   : > { %v11880_v2 = vpop.permute.xlu1 %11879  ;;  %v11878_v23 = vpop.permute.xlu0 %11877 }
0x152a   : > { %v11972_v47 = vmul.f32 %v11880_v2, %v19238_v37  ;;  %v11971_v7 = vmul.f32 %v11878_v23, %v19238_v37  ;;  %v12044_v33 = vpack.c.bf16 %v12022_v21, %v12021_v14 }
0x152c   : > { %v12004_v43 = vadd.f32 %v11972_v47, %v19239_v28  ;;  %v12003_v42 = vadd.f32 %v11971_v7, %v19239_v28  ;;  %12092 = vrot.lane.b32.xlu1 %v12044_v33, %s19240_s0 }
0x152d   : > { %v11912_v34 = vpop.permute.xlu1 %11911  ;;  %v11910_v48 = vpop.permute.xlu0 %11909 }
0x152e   : > { %v11988_v50 = vmul.f32 %v11912_v34, %v19238_v37  ;;  %v11987_v63 = vmul.f32 %v11910_v48, %v19238_v37  ;;  %v12035_v5 = vpack.c.bf16 %v12004_v43, %v12003_v42 }
0x1530   : > { %v12020_v57 = vadd.f32 %v11988_v50, %v19239_v28  ;;  %v12019_v45 = vadd.f32 %v11987_v63, %v19239_v28  ;;  %12074 = vrot.lane.b32.xlu0 %v12035_v5, %s19240_s0 }
0x1531   : > { %v11876_v10 = vpop.permute.xlu1 %11875  ;;  %v11874_v25 = vpop.permute.xlu0 %11873 }
0x1532   : > { %v11970_v49 = vmul.f32 %v11876_v10, %v19238_v37  ;;  %v11969_v17 = vmul.f32 %v11874_v25, %v19238_v37  ;;  %v12043_v18 = vpack.c.bf16 %v12020_v57, %v12019_v45 }
0x1534   : > { %v12002_v30 = vadd.f32 %v11970_v49, %v19239_v28  ;;  %v12001_v8 = vadd.f32 %v11969_v17, %v19239_v28  ;;  %12090 = vrot.lane.b32.xlu1 %v12043_v18, %s19240_s0 }
0x1535   : > { %v11908_v27 = vpop.permute.xlu1 %11907  ;;  %v11906_v53 = vpop.permute.xlu0 %11905 }
0x1536   : > { %v11986_v20 = vmul.f32 %v11908_v27, %v19238_v37  ;;  %v11985_v4 = vmul.f32 %v11906_v53, %v19238_v37  ;;  %v12034_v31 = vpack.c.bf16 %v12002_v30, %v12001_v8 }
0x1538   : > { %v12018_v61 = vadd.f32 %v11986_v20, %v19239_v28  ;;  %v12017_v55 = vadd.f32 %v11985_v4, %v19239_v28  ;;  %12072 = vrot.lane.b32.xlu0 %v12034_v31, %s19240_s0 }
0x153a   : > { %v12042_v6 = vpack.c.bf16 %v12018_v61, %v12017_v55 }
0x153c   : > { %12088 = vrot.lane.b32.xlu1 %v12042_v6, %s19240_s0  ;;  %12053 = vperm.xlu0 %14521, %v12050_v39   ;;  %s12912_s0 = sshll.u32 %s19242_s1, 3 }
0x153d   : > { %s1316_s2 = scalar_lea.vmem %s14939_s27, %s12912_s0 }
0x1572   : > { %v12087_v62 = vpop.permute.xlu0 %12086 }
0x1573   : > { %v12129_v22 = vsel %vm8461_vm10, %v12087_v62, 0 }
0x1576   : > { %v12103_v19 = vpop.permute.xlu1 %12102 }
0x1577   : > { %14452 = vmatprep.subr.msk.bf16.mxu1 %vm8461_vm10, %v12103_v19 }
0x1578   : > { %13404 = vmatpush3.bf16.xpose.msra.mxu1 %v12129_v22 }
0x157a   : > { %v12085_v37 = vpop.permute.xlu0 %12084 }
0x157b   : > { %v12126_v28 = vsel %vm8461_vm10, %v12085_v37, 0 }
0x157e   : > { %v12101_v35 = vpop.permute.xlu1 %12100 }
0x157f   : > { %14453 = vmatprep.subr.msk.bf16.mxu1 %vm8461_vm10, %v12101_v35 }
0x1580   : > { %13406 = vmatpush3.bf16.xpose.msra.mxu1 %v12126_v28 }
0x1582   : > { %v12083_v59 = vpop.permute.xlu0 %12082 }
0x1583   : > { %v12123_v52 = vsel %vm8461_vm10, %v12083_v59, 0 }
0x1586   : > { %v12099_v24 = vpop.permute.xlu1 %12098 }
0x1587   : > { %14454 = vmatprep.subr.msk.bf16.mxu1 %vm8461_vm10, %v12099_v24 }
0x1588   : > { %13408 = vmatpush3.bf16.xpose.msra.mxu1 %v12123_v52 }
0x158a   : > { %v12081_v13 = vpop.permute.xlu0 %12080 }
0x158b   : > { %v12120_v26 = vsel %vm8461_vm10, %v12081_v13, 0 }
0x158e   : > { %v12097_v60 = vpop.permute.xlu1 %12096 }
0x158f   : > { %14455 = vmatprep.subr.msk.bf16.mxu1 %vm8461_vm10, %v12097_v60 }
0x1590   : > { %13410 = vmatpush3.bf16.xpose.msra.mxu1 %v12120_v26 }
0x1592   : > { %v12079_v56 = vpop.permute.xlu0 %12078 }
0x1593   : > { %v12117_v9 = vsel %vm8461_vm10, %v12079_v56, 0 }
0x1596   : > { %v12095_v41 = vpop.permute.xlu1 %12094 }
0x1597   : > { %14456 = vmatprep.subr.msk.bf16.mxu1 %vm8461_vm10, %v12095_v41 }
0x1598   : > { %13412 = vmatpush3.bf16.xpose.msra.mxu1 %v12117_v9 }
0x159a   : > { %v12077_v44 = vpop.permute.xlu0 %12076 }
0x159b   : > { %v12114_v46 = vsel %vm8461_vm10, %v12077_v44, 0 }
0x159e   : > { %v12093_v3 = vpop.permute.xlu1 %12092 }
0x159f   : > { %14457 = vmatprep.subr.msk.bf16.mxu1 %vm8461_vm10, %v12093_v3 }
0x15a0   : > { %13414 = vmatpush3.bf16.xpose.msra.mxu1 %v12114_v46 }
0x15a2   : > { %v12075_v40 = vpop.permute.xlu0 %12074 }
0x15a3   : > { %v12111_v38 = vsel %vm8461_vm10, %v12075_v40, 0 }
0x15a6   : > { %v12091_v16 = vpop.permute.xlu1 %12090 }
0x15a7   : > { %14458 = vmatprep.subr.msk.bf16.mxu1 %vm8461_vm10, %v12091_v16 }
0x15a8   : > { %13416 = vmatpush3.bf16.xpose.msra.mxu1 %v12111_v38 }
0x15aa   : > { %v12073_v51 = vpop.permute.xlu0 %12072 }
0x15ab   : > { %v12108_v11 = vsel %vm8461_vm10, %v12073_v51, 0 }
0x15ae   : > { %v12089_v32 = vpop.permute.xlu1 %12088 }
0x15af   : > { %14459 = vmatprep.subr.msk.bf16.mxu1 %vm8461_vm10, %v12089_v32 }
0x15b0   : > { %13418 = vmatpush3.bf16.xpose.msra.mxu1 %v12108_v11 }
0x15b7   : > { %13420 = vmatmul.mubr.msk.bf16.vlgmr.msra.gmra.mxu1 %vm8461_vm10, %v18949_v0  ;;  %v12054_v12 = vpop.permute.xlu0 %12053 }
0x1677   : > { %v12189_v36 = vpop.f32.mrf.mxu1 }
0x1678   : > { %v12190_v15 = vadd.f32 %v12189_v36, %v12054_v12 }
0x1679   : > { %v12191_v1 = vpop.f32.mrf.mxu1 }
0x167a   : > { %v12192_v54 = vadd.f32 %v12191_v1, %v12054_v12 }
0x167b   : > { %v12193_v29 = vpop.f32.mrf.mxu1 }
0x167c   : > { %v12198_v21 = vcombine.low %v12190_v15, %v12192_v54 }
0x167d   : > { %v12194_v14 = vpop.f32.mrf.mxu1 }
0x167e   : > { %12200 = vst [vmem:[%s1316_s2] sm:$0x77] %v12198_v21 }
0x167f PF: > { %s99_s28 = sadd.s32 1, %s14656_s28  }
0x1680   : > { %p96_p4 = scmp.ge.s32.totalorder %s99_s28, 4  }
0x1682   :  { %98 = sbr.rel (!%p96_p4) target bundleno = 89 (0x59), region = 325 }

</bundles_post_ra>
